<compile_context>
chip_gen: v5e
topology: v5e:2x2
jax: 0.10.0
libtpu: 0.0.40
codegen_flags: <defaults>
</compile_context>

<pallas_src>
import math

import jax
import jax.numpy as jnp
from jax import lax
from jax.experimental import pallas as pl
from jax.experimental.pallas import tpu as pltpu

HIDDEN = 32      # true model hidden size
HP = 128         # lane-padded hidden size used inside the kernel
LAYER_NUM = 3
ROWS = 8         # destination rows per gather/update tile (one f32 sublane tile)


def _elu(x):
    return jnp.where(x > 0, x, jnp.exp(x) - 1.0)


def _round_up(x, m):
    return ((x + m - 1) // m) * m


def _pad2(x, rows, cols):
    out = jnp.zeros((rows, cols), x.dtype)
    return out.at[: x.shape[0], : x.shape[1]].set(x)


# --------------------------------------------------------------------------------------
# Fused kernel: all layers (projection -> graph attention -> ELU update) + readout.
# Grid = (LAYER_NUM,); features persist in VMEM scratch across grid steps.
# --------------------------------------------------------------------------------------
def dgsr_fused_kernel(
    # scalar prefetch (SMEM)
    nbr_i_ref,      # (DI, NI_pad) int32 : user-neighbour row of each item, slot-major
    nbr_u_ref,      # (DU, NU_pad) int32 : item-neighbour row of each user, slot-major
    sel_u_ref,      # (B_pad,)     int32 : target-user row per batch graph
    sel_i_ref,      # (B_pad,)     int32 : last-item row per batch graph
    # inputs (VMEM)
    uemb_ref,       # (NU_pad, HP) f32 : initial user embeddings (lane-padded)
    iemb_ref,       # (NI_pad, HP) f32
    t_i_ref,        # (NI_pad, DI) f32 : compact edge times (item destinations)
    t_u_ref,        # (NU_pad, DU) f32
    te_ref,         # (8, HP)      f32 : TimeEncode basis/phase rows
    wu_ref,         # (HP, HP)     bf16 : user_weight.T (this layer)
    wi_ref,         # (HP, HP)     bf16 : item_weight.T
    wuu_ref,        # (2HP, HP)    bf16 : user_update.T, rows [0,HP)=agg part, [HP,2HP)=old
    wiu_ref,        # (2HP, HP)    bf16 : item_update.T
    wmap_ref,       # (HP, HP)     bf16 : unified_map block for this layer
    wmap_last_ref,  # (HP, HP)     bf16 : unified_map block for the last_item slot
    wd_ref,         # (HP, HP)     bf16 : dense.T (padded)
    bd_ref,         # (1, HP)      f32  : dense bias (padded)
    # output
    out_ref,        # (B_pad, HP)  f32
    # scratch (persist across grid steps)
    user_h, item_h,   # current node features (layer inputs)
    uh_s, ih_s,       # projected features (gather sources / attention dst)
    sel_buf, uni,     # readout staging buffer / unified_map accumulator
):
    layer = pl.program_id(0)
    last = pl.num_programs(0) - 1
    NU, NI = user_h.shape[0], item_h.shape[0]
    DI, DU = t_i_ref.shape[1], t_u_ref.shape[1]
    B_pad = sel_buf.shape[0]
    scale = 1.0 / math.sqrt(float(HIDDEN))

    # 1 on the HIDDEN real feature lanes, 0 on padding lanes (keeps features truly padded)
    lane_mask = (lax.broadcasted_iota(jnp.int32, (1, HP), 1) < HIDDEN).astype(jnp.float32)
    # sublane index column used to place gathered rows into a register tile
    sub_iota = lax.broadcasted_iota(jnp.int32, (ROWS, 1), 0)

    # ---------------- one-time init (layer 0) --------------------------------
    @pl.when(layer == 0)
    def _init():
        user_h[...] = uemb_ref[...]
        item_h[...] = iemb_ref[...]
        uni[...] = jnp.zeros_like(uni)

    # ---------------- projections (bf16 MXU, f32 accumulate) -----------------
    uh_s[...] = jnp.dot(user_h[...].astype(jnp.bfloat16), wu_ref[...],
                        preferred_element_type=jnp.float32)
    ih_s[...] = jnp.dot(item_h[...].astype(jnp.bfloat16), wi_ref[...],
                        preferred_element_type=jnp.float32)

    # TimeEncode params (shared across layers here): one vreg, loaded once per step
    te = te_ref[...]

    def gather8(src_ref, idx_of):
        # Gather ROWS dynamically-indexed rows into a REGISTER tile: one masked 1-row load
        # + sublane-broadcast + select per row; no VMEM stores on the gather path.
        tile = jnp.zeros((ROWS, HP), jnp.float32)
        for r in range(ROWS):
            row = src_ref[pl.ds(idx_of(r), 1), :]                      # (1, HP)
            tile = jnp.where(sub_iota == r, jnp.broadcast_to(row, (ROWS, HP)), tile)
        return tile

    def agg_update_tile(t, src_ref, dst_ref, old_ref, nbr_ref, time_ref, deg,
                        q_b, q_p, k_b, k_p, wupd_ref):
        # One 8-row destination tile: online-softmax attention over `deg` neighbour slots,
        # then the fused ELU update; all intermediate state stays in registers.
        base = pl.multiple_of(t * ROWS, ROWS)
        dst = dst_ref[pl.ds(base, ROWS), :]          # projected destination features
        old = old_ref[pl.ds(base, ROWS), :]          # layer-input destination features
        tv = time_ref[pl.ds(base, ROWS), :]          # (ROWS, deg) compact edge times

        def slot(d):
            s = gather8(src_ref, lambda r: nbr_ref[d, base + r])
            tc = tv[:, d:d + 1]                      # (ROWS, 1)
            q = jnp.cos(tc * q_b + q_p)              # recomputed on the EUP, no big cache
            k = jnp.cos(tc * k_b + k_p)
            e = jnp.sum((q + s) * dst, axis=-1, keepdims=True) * scale
            return s, k, e

        s, k, e = slot(0)
        m = e
        denom = jnp.ones_like(e)
        num = s + k
        for d in range(1, deg):
            s, k, e = slot(d)
            m_new = jnp.maximum(m, e)
            a = jnp.exp(m - m_new)
            p = jnp.exp(e - m_new)
            num = a * num + p * (s + k)
            denom = a * denom + p
            m = m_new
        agg = num * pl.reciprocal(denom, approx=True) * lane_mask

        # update: elu(agg @ W_now + old @ W_old); no 256-lane concat is materialised.
        new = _elu(
            jnp.dot(agg.astype(jnp.bfloat16), wupd_ref[:HP, :],
                    preferred_element_type=jnp.float32)
            + jnp.dot(old.astype(jnp.bfloat16), wupd_ref[HP:, :],
                      preferred_element_type=jnp.float32))
        old_ref[pl.ds(base, ROWS), :] = new

    # item_h <- attention over incoming users ('pby', i_time_encoding / _k)
    def item_body(t, carry):
        agg_update_tile(t, uh_s, ih_s, item_h, nbr_i_ref, t_i_ref, DI,
                        te[0:1], te[1:2], te[2:3], te[3:4], wiu_ref)
        return carry

    # user_h <- attention over incoming items ('by', u_time_encoding / _k)
    def user_body(t, carry):
        agg_update_tile(t, ih_s, uh_s, user_h, nbr_u_ref, t_u_ref, DU,
                        te[4:5], te[5:6], te[6:7], te[7:8], wuu_ref)
        return carry

    lax.fori_loop(0, NI // ROWS, item_body, 0)
    lax.fori_loop(0, NU // ROWS, user_body, 0)

    # -------- readout: accumulate this layer's target-user contribution ------
    for g0 in range(0, B_pad, ROWS):
        sel_buf[pl.ds(g0, ROWS), :] = gather8(user_h, lambda r: sel_u_ref[g0 + r])
    uni[...] += jnp.dot(sel_buf[...].astype(jnp.bfloat16), wmap_ref[...],
                        preferred_element_type=jnp.float32)

    # -------- final step: add last-item contribution, dense + relu -----------
    @pl.when(layer == last)
    def _final():
        for g0 in range(0, B_pad, ROWS):
            sel_buf[pl.ds(g0, ROWS), :] = gather8(item_h, lambda r: sel_i_ref[g0 + r])
        unified = uni[...] + jnp.dot(sel_buf[...].astype(jnp.bfloat16), wmap_last_ref[...],
                                     preferred_element_type=jnp.float32)
        logits = jnp.dot(unified.astype(jnp.bfloat16), wd_ref[...],
                         preferred_element_type=jnp.float32) + bd_ref[...]
        out_ref[...] = jnp.maximum(logits, 0.0)


# --------------------------------------------------------------------------------------
# Wrapper: padding / weight re-layout glue + the single fused pallas_call
# --------------------------------------------------------------------------------------
def _vmem_limit_bytes():
    # v7x has 64 MiB VMEM per TensorCore; v5e/v6e have 128 MiB -> leave headroom.
    try:
        kind = jax.devices()[0].device_kind.lower()
    except Exception:
        kind = ""
    return (48 if "v7" in kind else 96) * 1024 * 1024


def dgsr_forward(params, graph, user_index, last_item_index):
    H, L = HIDDEN, len(params["layers"])
    user_feat = params["user_emb"][graph["user_id"]]        # (NU, H) embedding lookup (glue)
    item_feat = params["item_emb"][graph["item_id"]]        # (NI, H)
    NU, NI = user_feat.shape[0], item_feat.shape[0]
    NU_pad, NI_pad = _round_up(NU, ROWS), _round_up(NI, ROWS)
    B = int(user_index.shape[0])
    B_pad = _round_up(max(B, ROWS), ROWS)
    DI = graph["item_nbr_users"].shape[1]
    DU = graph["user_nbr_items"].shape[1]
    U, I = graph["users_per_graph"], graph["items_per_graph"]

    # node embeddings, zero-padded to lane-dense (N_pad, 128)
    uemb_p = _pad2(user_feat.astype(jnp.float32), NU_pad, HP)
    iemb_p = _pad2(item_feat.astype(jnp.float32), NI_pad, HP)

    # neighbour-id tables -> SMEM scalar-prefetch operands, slot-major (cheap SMEM padding)
    nbr_i = _pad2(graph["item_nbr_users"].astype(jnp.int32).T, DI, NI_pad)
    nbr_u = _pad2(graph["user_nbr_items"].astype(jnp.int32).T, DU, NU_pad)

    # compact edge-time tables (destination-major, degree on lanes) -- no 128-lane broadcast
    t_i_p = _pad2(graph["t_item"].astype(jnp.float32), NI_pad, DI)
    t_u_p = _pad2(graph["t_user"].astype(jnp.float32), NU_pad, DU)

    # TimeEncode params (shared across layers in this implementation)
    te_p = _pad2(params["layers"][0]["te"], 8, HP)

    # weights: torch layout (out, in) -> (in, out), zero-padded, bf16 for the MXU
    def pad_sq(w):                       # (H, H) -> (HP, HP)
        return _pad2(w.T, HP, HP)

    def pad_upd(w):                      # (H, 2H) with in = [now, old] -> (2*HP, HP)
        wt = w.T                         # (2H, H)
        out = jnp.zeros((2 * HP, HP), jnp.float32)
        out = out.at[:H, :H].set(wt[:H])            # rows [0, HP)   : aggregate part
        out = out.at[HP:HP + H, :H].set(wt[H:])     # rows [HP, 2HP) : old-feature part
        return out

    wu_s = jnp.stack([pad_sq(lp["Wu"]) for lp in params["layers"]]).astype(jnp.bfloat16)
    wi_s = jnp.stack([pad_sq(lp["Wi"]) for lp in params["layers"]]).astype(jnp.bfloat16)
    wuu_s = jnp.stack([pad_upd(lp["Wuu"]) for lp in params["layers"]]).astype(jnp.bfloat16)
    wiu_s = jnp.stack([pad_upd(lp["Wiu"]) for lp in params["layers"]]).astype(jnp.bfloat16)

    # unified_map split into per-slot (H, H) blocks == cat(user_layer) @ Wmap.T
    wm_t = params["Wmap"].T                                  # ((L+1)*H, H)
    wm_blocks = [_pad2(wm_t[l * H:(l + 1) * H], HP, HP) for l in range(L + 1)]
    wmap_s = jnp.stack(wm_blocks[:L]).astype(jnp.bfloat16)
    wmap_last = wm_blocks[L].astype(jnp.bfloat16)

    wd_p = _pad2(params["Wdense"].T, HP, HP).astype(jnp.bfloat16)
    bd_p = _pad2(params["bdense"].reshape(1, -1), 1, HP)

    # graph_user / graph_item: roll(cumsum(sizes),1) with [0]=0  ==  arange(B)*size
    user_off = jnp.arange(B, dtype=jnp.int32) * U
    item_off = jnp.arange(B, dtype=jnp.int32) * I
    sel_u = jnp.zeros((B_pad,), jnp.int32).at[:B].set(user_off + user_index.astype(jnp.int32))
    sel_i = jnp.zeros((B_pad,), jnp.int32).at[:B].set(item_off + last_item_index.astype(jnp.int32))

    grid_spec = pltpu.PrefetchScalarGridSpec(
        num_scalar_prefetch=4,
        grid=(L,),
        in_specs=[
            pl.BlockSpec((NU_pad, HP), lambda l, *_: (0, 0)),           # uemb (fetched once)
            pl.BlockSpec((NI_pad, HP), lambda l, *_: (0, 0)),           # iemb
            pl.BlockSpec((NI_pad, DI), lambda l, *_: (0, 0)),           # t_item (compact)
            pl.BlockSpec((NU_pad, DU), lambda l, *_: (0, 0)),           # t_user (compact)
            pl.BlockSpec((8, HP), lambda l, *_: (0, 0)),                # TimeEncode params
            pl.BlockSpec((None, HP, HP), lambda l, *_: (l, 0, 0)),      # Wu  (per layer)
            pl.BlockSpec((None, HP, HP), lambda l, *_: (l, 0, 0)),      # Wi
            pl.BlockSpec((None, 2 * HP, HP), lambda l, *_: (l, 0, 0)),  # Wuu
            pl.BlockSpec((None, 2 * HP, HP), lambda l, *_: (l, 0, 0)),  # Wiu
            pl.BlockSpec((None, HP, HP), lambda l, *_: (l, 0, 0)),      # Wmap layer block
            pl.BlockSpec((HP, HP), lambda l, *_: (0, 0)),               # Wmap last-item block
            pl.BlockSpec((HP, HP), lambda l, *_: (0, 0)),               # Wdense
            pl.BlockSpec((1, HP), lambda l, *_: (0, 0)),                # bdense
        ],
        out_specs=pl.BlockSpec((B_pad, HP), lambda l, *_: (0, 0)),
        scratch_shapes=[
            pltpu.VMEM((NU_pad, HP), jnp.float32),      # user_h
            pltpu.VMEM((NI_pad, HP), jnp.float32),      # item_h
            pltpu.VMEM((NU_pad, HP), jnp.float32),      # uh_s (projected users)
            pltpu.VMEM((NI_pad, HP), jnp.float32),      # ih_s (projected items)
            pltpu.VMEM((B_pad, HP), jnp.float32),       # sel_buf (readout staging)
            pltpu.VMEM((B_pad, HP), jnp.float32),       # uni accumulator
        ],
    )

    out_padded = pl.pallas_call(
        dgsr_fused_kernel,
        out_shape=jax.ShapeDtypeStruct((B_pad, HP), jnp.float32),
        grid_spec=grid_spec,
        compiler_params=pltpu.CompilerParams(
            dimension_semantics=("arbitrary",),          # layer axis carries state
            vmem_limit_bytes=_vmem_limit_bytes(),
        ),
    )(nbr_i, nbr_u, sel_u, sel_i,
      uemb_p, iemb_p, t_i_p, t_u_p, te_p,
      wu_s, wi_s, wuu_s, wiu_s, wmap_s, wmap_last, wd_p, bd_p)

    return out_padded[:B, :3]


# --------------------------------------------------------------------------------------
# Deterministic parameter / graph construction
# --------------------------------------------------------------------------------------
def xavier_normal(key, shape, gain=math.sqrt(2.0)):
    fan_out, fan_in = shape[0], shape[1]
    std = gain * math.sqrt(2.0 / (fan_in + fan_out))
    return (std * jax.random.normal(key, shape)).astype(jnp.float32)


def init_params(key, user_num, item_num, hidden, layer_num):
    keys = jax.random.split(key, 6 + layer_num * 4)
    basis = (10.0 ** (-jnp.linspace(0.0, 9.0, hidden))).astype(jnp.float32)
    phase = jnp.zeros((hidden,), jnp.float32)
    te = jnp.stack([basis, phase, basis, phase, basis, phase, basis, phase], axis=0)  # (8, H)
    layers = []
    for l in range(layer_num):
        k0, k1, k2, k3 = keys[6 + 4 * l: 6 + 4 * l + 4]
        layers.append(dict(
            Wu=xavier_normal(k0, (hidden, hidden)),          # user_weight  (out, in)
            Wi=xavier_normal(k1, (hidden, hidden)),          # item_weight
            Wuu=xavier_normal(k2, (hidden, 2 * hidden)),     # user_update
            Wiu=xavier_normal(k3, (hidden, 2 * hidden)),     # item_update
            te=te,                                           # TimeEncode params (shared)
        ))
    return dict(
        user_emb=xavier_normal(keys[0], (user_num, hidden)),
        item_emb=xavier_normal(keys[1], (item_num, hidden)),
        Wmap=xavier_normal(keys[2], (hidden, (layer_num + 1) * hidden)),  # unified_map
        Wdense=xavier_normal(keys[3], (3, hidden)),                        # dense
        bdense=(jax.random.uniform(keys[4], (3,), minval=-1.0, maxval=1.0)
                / math.sqrt(hidden)).astype(jnp.float32),
        layers=layers,
    )


def build_graph(key, batch, users_per_graph, items_per_graph, deg_item, deg_user,
                user_num, item_num):
    NU = batch * users_per_graph
    NI = batch * items_per_graph
    k1, k2, k3, k4 = jax.random.split(key, 4)
    user_id = jax.random.randint(k1, (NU,), 0, user_num)
    item_id = jax.random.randint(k2, (NI,), 0, item_num)

    # fixed-degree neighbour index lists, local to each batch graph
    item_nodes = jnp.arange(NI)
    b_item, loc_item = item_nodes // items_per_graph, item_nodes % items_per_graph
    item_nbr_users = (b_item[:, None] * users_per_graph
                      + (loc_item[:, None] + jnp.arange(deg_item)[None, :]) % users_per_graph
                      ).astype(jnp.int32)                                   # (NI, deg_item)
    user_nodes = jnp.arange(NU)
    b_user, loc_user = user_nodes // users_per_graph, user_nodes % users_per_graph
    user_nbr_items = (b_user[:, None] * items_per_graph
                      + (loc_user[:, None] + jnp.arange(deg_user)[None, :]) % items_per_graph
                      ).astype(jnp.int32)                                   # (NU, deg_user)

    t_item = jax.random.uniform(k3, (NI, deg_item), minval=0.0, maxval=8.0).astype(jnp.float32)
    t_user = jax.random.uniform(k4, (NU, deg_user), minval=0.0, maxval=8.0).astype(jnp.float32)
    return dict(user_id=user_id, item_id=item_id,
                item_nbr_users=item_nbr_users, t_item=t_item,
                user_nbr_items=user_nbr_items, t_user=t_user,
                users_per_graph=users_per_graph, items_per_graph=items_per_graph)


if __name__ == "__main__":
    key = jax.random.PRNGKey(0)
    kp, kg = jax.random.split(key)

    user_num, item_num = 20, 30
    B, U, I = 2, 3, 4          # 2 batch graphs, 3 users + 4 items each

    params = init_params(kp, user_num, item_num, HIDDEN, LAYER_NUM)
    graph = build_graph(kg, B, U, I, deg_item=3, deg_user=4,
                        user_num=user_num, item_num=item_num)

    user_index = jnp.array([1, 2], dtype=jnp.int32)        # target user per batch graph
    last_item_index = jnp.array([3, 0], dtype=jnp.int32)   # last item per batch graph

    out = dgsr_forward(params, graph, user_index, last_item_index)
    out = jax.block_until_ready(out)
    assert out.shape == (B, 3) and out.dtype == jnp.float32
    print("KERNEL_OK")
</pallas_src>

<mosaic_0001>
module attributes {stable_mosaic.version = 11 : i64} {
  func.func @dgsr_fused_kernel(%arg0: i32, %arg1: memref<3x8xi32, #tpu.memory_space<smem>>, %arg2: memref<4x8xi32, #tpu.memory_space<smem>>, %arg3: memref<8xi32, #tpu.memory_space<smem>>, %arg4: memref<8xi32, #tpu.memory_space<smem>>, %arg5: memref<8x128xf32, #tpu.memory_space<vmem>>, %arg6: memref<8x128xf32, #tpu.memory_space<vmem>>, %arg7: memref<8x3xf32, #tpu.memory_space<vmem>>, %arg8: memref<8x4xf32, #tpu.memory_space<vmem>>, %arg9: memref<8x128xf32, #tpu.memory_space<vmem>>, %arg10: memref<1x128x128xbf16, #tpu.memory_space<vmem>>, %arg11: memref<1x128x128xbf16, #tpu.memory_space<vmem>>, %arg12: memref<1x256x128xbf16, #tpu.memory_space<vmem>>, %arg13: memref<1x256x128xbf16, #tpu.memory_space<vmem>>, %arg14: memref<1x128x128xbf16, #tpu.memory_space<vmem>>, %arg15: memref<128x128xbf16, #tpu.memory_space<vmem>>, %arg16: memref<128x128xbf16, #tpu.memory_space<vmem>>, %arg17: memref<1x128xf32, #tpu.memory_space<vmem>>, %arg18: memref<8x128xf32, #tpu.memory_space<vmem>>, %arg19: memref<8x128xf32, #tpu.memory_space<vmem>>, %arg20: memref<8x128xf32, #tpu.memory_space<vmem>>, %arg21: memref<8x128xf32, #tpu.memory_space<vmem>>, %arg22: memref<8x128xf32, #tpu.memory_space<vmem>>, %arg23: memref<8x128xf32, #tpu.memory_space<vmem>>, %arg24: memref<8x128xf32, #tpu.memory_space<vmem>>) attributes {dimension_semantics = [#tpu.dimension_semantics<arbitrary>], iteration_bounds = array<i64: 3>, scalar_prefetch = 4 : i64, scratch_operands = 6 : i64, tpu.core_type = #tpu.core_type<tc>, window_params = [{pipeline_mode = #tpu.pipeline_mode<synchronous>, transform_indices = @transform_0, window_bounds = array<i64: 8, 128>}, {pipeline_mode = #tpu.pipeline_mode<synchronous>, transform_indices = @transform_1, window_bounds = array<i64: 8, 128>}, {pipeline_mode = #tpu.pipeline_mode<synchronous>, transform_indices = @transform_2, window_bounds = array<i64: 8, 3>}, {pipeline_mode = #tpu.pipeline_mode<synchronous>, transform_indices = @transform_3, window_bounds = array<i64: 8, 4>}, {pipeline_mode = #tpu.pipeline_mode<synchronous>, transform_indices = @transform_4, window_bounds = array<i64: 8, 128>}, {transform_indices = @transform_5, window_bounds = array<i64: 1, 128, 128>}, {transform_indices = @transform_6, window_bounds = array<i64: 1, 128, 128>}, {transform_indices = @transform_7, window_bounds = array<i64: 1, 256, 128>}, {transform_indices = @transform_8, window_bounds = array<i64: 1, 256, 128>}, {transform_indices = @transform_9, window_bounds = array<i64: 1, 128, 128>}, {pipeline_mode = #tpu.pipeline_mode<synchronous>, transform_indices = @transform_10, window_bounds = array<i64: 128, 128>}, {pipeline_mode = #tpu.pipeline_mode<synchronous>, transform_indices = @transform_11, window_bounds = array<i64: 128, 128>}, {pipeline_mode = #tpu.pipeline_mode<synchronous>, transform_indices = @transform_12, window_bounds = array<i64: 1, 128>}, {pipeline_mode = #tpu.pipeline_mode<synchronous>, transform_indices = @transform_13, window_bounds = array<i64: 8, 128>}]} {
    %0 = tpu.iota {dimensions = array<i32: 1>} : vector<1x128xi32>
    %c32_i32 = arith.constant 32 : i32
    %1 = vector.broadcast %c32_i32 : i32 to vector<1x128xi32>
    %2 = arith.cmpi slt, %0, %1 : vector<1x128xi32>
    %3 = arith.extui %2 : vector<1x128xi1> to vector<1x128xi32>
    %4 = arith.sitofp %3 : vector<1x128xi32> to vector<1x128xf32>
    %5 = tpu.iota {dimensions = array<i32: 0>} : vector<8x1xi32>
    %c0_i32 = arith.constant 0 : i32
    %6 = arith.cmpi eq, %arg0, %c0_i32 : i32
    %7 = arith.extui %6 : i1 to i32
    %c0_i32_0 = arith.constant 0 : i32
    %8 = arith.cmpi ne, %7, %c0_i32_0 : i32
    scf.if %8 {
      %c0_321 = arith.constant 0 : index
      %c0_322 = arith.constant 0 : index
      %1064 = vector.load %arg5[%c0_321, %c0_322] : memref<8x128xf32, #tpu.memory_space<vmem>>, vector<8x128xf32>
      %c0_323 = arith.constant 0 : index
      %c0_324 = arith.constant 0 : index
      %1065 = vector.load %arg19[%c0_323, %c0_324] : memref<8x128xf32, #tpu.memory_space<vmem>>, vector<8x128xf32>
      tpu.vector_store %arg19[%c0_323, %c0_324], %1064 {strides = array<i32>} : memref<8x128xf32, #tpu.memory_space<vmem>>, vector<8x128xf32>,
      %c0_325 = arith.constant 0 : index
      %c0_326 = arith.constant 0 : index
      %1066 = vector.load %arg6[%c0_325, %c0_326] : memref<8x128xf32, #tpu.memory_space<vmem>>, vector<8x128xf32>
      %c0_327 = arith.constant 0 : index
      %c0_328 = arith.constant 0 : index
      %1067 = vector.load %arg20[%c0_327, %c0_328] : memref<8x128xf32, #tpu.memory_space<vmem>>, vector<8x128xf32>
      tpu.vector_store %arg20[%c0_327, %c0_328], %1066 {strides = array<i32>} : memref<8x128xf32, #tpu.memory_space<vmem>>, vector<8x128xf32>,
      %cst_329 = arith.constant 0.000000e+00 : f32
      %1068 = vector.broadcast %cst_329 : f32 to vector<8x128xf32>
      %c0_330 = arith.constant 0 : index
      %c0_331 = arith.constant 0 : index
      %1069 = vector.load %arg24[%c0_330, %c0_331] : memref<8x128xf32, #tpu.memory_space<vmem>>, vector<8x128xf32>
      tpu.vector_store %arg24[%c0_330, %c0_331], %1068 {strides = array<i32>} : memref<8x128xf32, #tpu.memory_space<vmem>>, vector<8x128xf32>,
    } else {
    }
    %c0 = arith.constant 0 : index
    %c0_1 = arith.constant 0 : index
    %9 = vector.load %arg19[%c0, %c0_1] : memref<8x128xf32, #tpu.memory_space<vmem>>, vector<8x128xf32>
    %10 = arith.truncf %9 : vector<8x128xf32> to vector<8x128xbf16>
    %c0_2 = arith.constant 0 : index
    %c0_3 = arith.constant 0 : index
    %c0_4 = arith.constant 0 : index
    %11 = vector.load %arg10[%c0_2, %c0_3, %c0_4] : memref<1x128x128xbf16, #tpu.memory_space<vmem>>, vector<1x128x128xbf16>
    %12 = vector.shape_cast %11 : vector<1x128x128xbf16> to vector<128x128xbf16>
    %cst = arith.constant dense<0.000000e+00> : vector<8x128xf32>
    %13 = tpu.matmul %10, %12, %cst {dimension_numbers = #tpu.dot_dimension_numbers<[1], [0], [0], [1], [0, 0, 1, 1], [], []>} : vector<8x128xbf16>, vector<128x128xbf16>, vector<8x128xf32> -> vector<8x128xf32>
    %c0_5 = arith.constant 0 : index
    %c0_6 = arith.constant 0 : index
    %14 = vector.load %arg21[%c0_5, %c0_6] : memref<8x128xf32, #tpu.memory_space<vmem>>, vector<8x128xf32>
    tpu.vector_store %arg21[%c0_5, %c0_6], %13 {strides = array<i32>} : memref<8x128xf32, #tpu.memory_space<vmem>>, vector<8x128xf32>,
    %c0_7 = arith.constant 0 : index
    %c0_8 = arith.constant 0 : index
    %15 = vector.load %arg20[%c0_7, %c0_8] : memref<8x128xf32, #tpu.memory_space<vmem>>, vector<8x128xf32>
    %16 = arith.truncf %15 : vector<8x128xf32> to vector<8x128xbf16>
    %c0_9 = arith.constant 0 : index
    %c0_10 = arith.constant 0 : index
    %c0_11 = arith.constant 0 : index
    %17 = vector.load %arg11[%c0_9, %c0_10, %c0_11] : memref<1x128x128xbf16, #tpu.memory_space<vmem>>, vector<1x128x128xbf16>
    %18 = vector.shape_cast %17 : vector<1x128x128xbf16> to vector<128x128xbf16>
    %cst_12 = arith.constant dense<0.000000e+00> : vector<8x128xf32>
    %19 = tpu.matmul %16, %18, %cst_12 {dimension_numbers = #tpu.dot_dimension_numbers<[1], [0], [0], [1], [0, 0, 1, 1], [], []>} : vector<8x128xbf16>, vector<128x128xbf16>, vector<8x128xf32> -> vector<8x128xf32>
    %c0_13 = arith.constant 0 : index
    %c0_14 = arith.constant 0 : index
    %20 = vector.load %arg22[%c0_13, %c0_14] : memref<8x128xf32, #tpu.memory_space<vmem>>, vector<8x128xf32>
    tpu.vector_store %arg22[%c0_13, %c0_14], %19 {strides = array<i32>} : memref<8x128xf32, #tpu.memory_space<vmem>>, vector<8x128xf32>,
    %c0_15 = arith.constant 0 : index
    %c0_16 = arith.constant 0 : index
    %21 = vector.load %arg9[%c0_15, %c0_16] : memref<8x128xf32, #tpu.memory_space<vmem>>, vector<8x128xf32>
    %c0_i32_17 = arith.constant 0 : i32
    %22 = vector.extract_strided_slice %21 {offsets = [0, 0], sizes = [1, 128], strides = [1, 1]} : vector<8x128xf32> to vector<1x128xf32>
    %23 = vector.extract_strided_slice %21 {offsets = [1, 0], sizes = [1, 128], strides = [1, 1]} : vector<8x128xf32> to vector<1x128xf32>
    %24 = vector.extract_strided_slice %21 {offsets = [2, 0], sizes = [1, 128], strides = [1, 1]} : vector<8x128xf32> to vector<1x128xf32>
    %25 = vector.extract_strided_slice %21 {offsets = [3, 0], sizes = [1, 128], strides = [1, 1]} : vector<8x128xf32> to vector<1x128xf32>
    %c8_i32 = arith.constant 8 : i32
    %26 = arith.muli %c0_i32_17, %c8_i32 : i32
    %27 = tpu.assume_multiple %26, 8 : i32
    %28 = arith.index_cast %27 : i32 to index
    %c0_18 = arith.constant 0 : index
    %29 = vector.load %arg22[%28, %c0_18] : memref<8x128xf32, #tpu.memory_space<vmem>>, vector<8x128xf32>
    %30 = arith.index_cast %27 : i32 to index
    %c0_19 = arith.constant 0 : index
    %31 = vector.load %arg20[%30, %c0_19] : memref<8x128xf32, #tpu.memory_space<vmem>>, vector<8x128xf32>
    %32 = arith.index_cast %27 : i32 to index
    %c0_20 = arith.constant 0 : index
    %33 = vector.load %arg7[%32, %c0_20] : memref<8x3xf32, #tpu.memory_space<vmem>>, vector<8x3xf32>
    %cst_21 = arith.constant 0.000000e+00 : f32
    %34 = vector.broadcast %cst_21 : f32 to vector<8x128xf32>
    %c0_i32_22 = arith.constant 0 : i32
    %35 = arith.addi %27, %c0_i32_22 : i32
    %c0_23 = arith.constant 0 : index
    %36 = arith.index_cast %35 : i32 to index
    %37 = memref.load %arg1[%c0_23, %36] : memref<3x8xi32, #tpu.memory_space<smem>>
    %38 = arith.index_cast %37 : i32 to index
    %c0_24 = arith.constant 0 : index
    %39 = vector.load %arg21[%38, %c0_24] : memref<8x128xf32, #tpu.memory_space<vmem>>, vector<1x128xf32>
    %c0_i32_25 = arith.constant 0 : i32
    %40 = vector.broadcast %c0_i32_25 : i32 to vector<8x1xi32>
    %41 = arith.cmpi eq, %5, %40 : vector<8x1xi32>
    %42 = vector.shape_cast %39 : vector<1x128xf32> to vector<1x128xf32>
    %43 = vector.broadcast %42 : vector<1x128xf32> to vector<8x128xf32>
    %44 = vector.shape_cast %41 : vector<8x1xi1> to vector<8x1xi1>
    %45 = vector.broadcast %44 : vector<8x1xi1> to vector<8x128xi1>
    %46 = arith.select %45, %43, %34 : vector<8x128xi1>, vector<8x128xf32>
    %c1_i32 = arith.constant 1 : i32
    %47 = arith.addi %27, %c1_i32 : i32
    %c0_26 = arith.constant 0 : index
    %48 = arith.index_cast %47 : i32 to index
    %49 = memref.load %arg1[%c0_26, %48] : memref<3x8xi32, #tpu.memory_space<smem>>
    %50 = arith.index_cast %49 : i32 to index
    %c0_27 = arith.constant 0 : index
    %51 = vector.load %arg21[%50, %c0_27] : memref<8x128xf32, #tpu.memory_space<vmem>>, vector<1x128xf32>
    %c1_i32_28 = arith.constant 1 : i32
    %52 = vector.broadcast %c1_i32_28 : i32 to vector<8x1xi32>
    %53 = arith.cmpi eq, %5, %52 : vector<8x1xi32>
    %54 = vector.shape_cast %51 : vector<1x128xf32> to vector<1x128xf32>
    %55 = vector.broadcast %54 : vector<1x128xf32> to vector<8x128xf32>
    %56 = vector.shape_cast %53 : vector<8x1xi1> to vector<8x1xi1>
    %57 = vector.broadcast %56 : vector<8x1xi1> to vector<8x128xi1>
    %58 = arith.select %57, %55, %46 : vector<8x128xi1>, vector<8x128xf32>
    %c2_i32 = arith.constant 2 : i32
    %59 = arith.addi %27, %c2_i32 : i32
    %c0_29 = arith.constant 0 : index
    %60 = arith.index_cast %59 : i32 to index
    %61 = memref.load %arg1[%c0_29, %60] : memref<3x8xi32, #tpu.memory_space<smem>>
    %62 = arith.index_cast %61 : i32 to index
    %c0_30 = arith.constant 0 : index
    %63 = vector.load %arg21[%62, %c0_30] : memref<8x128xf32, #tpu.memory_space<vmem>>, vector<1x128xf32>
    %c2_i32_31 = arith.constant 2 : i32
    %64 = vector.broadcast %c2_i32_31 : i32 to vector<8x1xi32>
    %65 = arith.cmpi eq, %5, %64 : vector<8x1xi32>
    %66 = vector.shape_cast %63 : vector<1x128xf32> to vector<1x128xf32>
    %67 = vector.broadcast %66 : vector<1x128xf32> to vector<8x128xf32>
    %68 = vector.shape_cast %65 : vector<8x1xi1> to vector<8x1xi1>
    %69 = vector.broadcast %68 : vector<8x1xi1> to vector<8x128xi1>
    %70 = arith.select %69, %67, %58 : vector<8x128xi1>, vector<8x128xf32>
    %c3_i32 = arith.constant 3 : i32
    %71 = arith.addi %27, %c3_i32 : i32
    %c0_32 = arith.constant 0 : index
    %72 = arith.index_cast %71 : i32 to index
    %73 = memref.load %arg1[%c0_32, %72] : memref<3x8xi32, #tpu.memory_space<smem>>
    %74 = arith.index_cast %73 : i32 to index
    %c0_33 = arith.constant 0 : index
    %75 = vector.load %arg21[%74, %c0_33] : memref<8x128xf32, #tpu.memory_space<vmem>>, vector<1x128xf32>
    %c3_i32_34 = arith.constant 3 : i32
    %76 = vector.broadcast %c3_i32_34 : i32 to vector<8x1xi32>
    %77 = arith.cmpi eq, %5, %76 : vector<8x1xi32>
    %78 = vector.shape_cast %75 : vector<1x128xf32> to vector<1x128xf32>
    %79 = vector.broadcast %78 : vector<1x128xf32> to vector<8x128xf32>
    %80 = vector.shape_cast %77 : vector<8x1xi1> to vector<8x1xi1>
    %81 = vector.broadcast %80 : vector<8x1xi1> to vector<8x128xi1>
    %82 = arith.select %81, %79, %70 : vector<8x128xi1>, vector<8x128xf32>
    %c4_i32 = arith.constant 4 : i32
    %83 = arith.addi %27, %c4_i32 : i32
    %c0_35 = arith.constant 0 : index
    %84 = arith.index_cast %83 : i32 to index
    %85 = memref.load %arg1[%c0_35, %84] : memref<3x8xi32, #tpu.memory_space<smem>>
    %86 = arith.index_cast %85 : i32 to index
    %c0_36 = arith.constant 0 : index
    %87 = vector.load %arg21[%86, %c0_36] : memref<8x128xf32, #tpu.memory_space<vmem>>, vector<1x128xf32>
    %c4_i32_37 = arith.constant 4 : i32
    %88 = vector.broadcast %c4_i32_37 : i32 to vector<8x1xi32>
    %89 = arith.cmpi eq, %5, %88 : vector<8x1xi32>
    %90 = vector.shape_cast %87 : vector<1x128xf32> to vector<1x128xf32>
    %91 = vector.broadcast %90 : vector<1x128xf32> to vector<8x128xf32>
    %92 = vector.shape_cast %89 : vector<8x1xi1> to vector<8x1xi1>
    %93 = vector.broadcast %92 : vector<8x1xi1> to vector<8x128xi1>
    %94 = arith.select %93, %91, %82 : vector<8x128xi1>, vector<8x128xf32>
    %c5_i32 = arith.constant 5 : i32
    %95 = arith.addi %27, %c5_i32 : i32
    %c0_38 = arith.constant 0 : index
    %96 = arith.index_cast %95 : i32 to index
    %97 = memref.load %arg1[%c0_38, %96] : memref<3x8xi32, #tpu.memory_space<smem>>
    %98 = arith.index_cast %97 : i32 to index
    %c0_39 = arith.constant 0 : index
    %99 = vector.load %arg21[%98, %c0_39] : memref<8x128xf32, #tpu.memory_space<vmem>>, vector<1x128xf32>
    %c5_i32_40 = arith.constant 5 : i32
    %100 = vector.broadcast %c5_i32_40 : i32 to vector<8x1xi32>
    %101 = arith.cmpi eq, %5, %100 : vector<8x1xi32>
    %102 = vector.shape_cast %99 : vector<1x128xf32> to vector<1x128xf32>
    %103 = vector.broadcast %102 : vector<1x128xf32> to vector<8x128xf32>
    %104 = vector.shape_cast %101 : vector<8x1xi1> to vector<8x1xi1>
    %105 = vector.broadcast %104 : vector<8x1xi1> to vector<8x128xi1>
    %106 = arith.select %105, %103, %94 : vector<8x128xi1>, vector<8x128xf32>
    %c6_i32 = arith.constant 6 : i32
    %107 = arith.addi %27, %c6_i32 : i32
    %c0_41 = arith.constant 0 : index
    %108 = arith.index_cast %107 : i32 to index
    %109 = memref.load %arg1[%c0_41, %108] : memref<3x8xi32, #tpu.memory_space<smem>>
    %110 = arith.index_cast %109 : i32 to index
    %c0_42 = arith.constant 0 : index
    %111 = vector.load %arg21[%110, %c0_42] : memref<8x128xf32, #tpu.memory_space<vmem>>, vector<1x128xf32>
    %c6_i32_43 = arith.constant 6 : i32
    %112 = vector.broadcast %c6_i32_43 : i32 to vector<8x1xi32>
    %113 = arith.cmpi eq, %5, %112 : vector<8x1xi32>
    %114 = vector.shape_cast %111 : vector<1x128xf32> to vector<1x128xf32>
    %115 = vector.broadcast %114 : vector<1x128xf32> to vector<8x128xf32>
    %116 = vector.shape_cast %113 : vector<8x1xi1> to vector<8x1xi1>
    %117 = vector.broadcast %116 : vector<8x1xi1> to vector<8x128xi1>
    %118 = arith.select %117, %115, %106 : vector<8x128xi1>, vector<8x128xf32>
    %c7_i32 = arith.constant 7 : i32
    %119 = arith.addi %27, %c7_i32 : i32
    %c0_44 = arith.constant 0 : index
    %120 = arith.index_cast %119 : i32 to index
    %121 = memref.load %arg1[%c0_44, %120] : memref<3x8xi32, #tpu.memory_space<smem>>
    %122 = arith.index_cast %121 : i32 to index
    %c0_45 = arith.constant 0 : index
    %123 = vector.load %arg21[%122, %c0_45] : memref<8x128xf32, #tpu.memory_space<vmem>>, vector<1x128xf32>
    %c7_i32_46 = arith.constant 7 : i32
    %124 = vector.broadcast %c7_i32_46 : i32 to vector<8x1xi32>
    %125 = arith.cmpi eq, %5, %124 : vector<8x1xi32>
    %126 = vector.shape_cast %123 : vector<1x128xf32> to vector<1x128xf32>
    %127 = vector.broadcast %126 : vector<1x128xf32> to vector<8x128xf32>
    %128 = vector.shape_cast %125 : vector<8x1xi1> to vector<8x1xi1>
    %129 = vector.broadcast %128 : vector<8x1xi1> to vector<8x128xi1>
    %130 = arith.select %129, %127, %118 : vector<8x128xi1>, vector<8x128xf32>
    %131 = vector.extract_strided_slice %33 {offsets = [0, 0], sizes = [8, 1], strides = [1, 1]} : vector<8x3xf32> to vector<8x1xf32>
    %132 = vector.broadcast %131 : vector<8x1xf32> to vector<8x128xf32>
    %133 = vector.broadcast %22 : vector<1x128xf32> to vector<8x128xf32>
    %134 = arith.mulf %132, %133 : vector<8x128xf32>
    %135 = vector.broadcast %23 : vector<1x128xf32> to vector<8x128xf32>
    %136 = arith.addf %134, %135 : vector<8x128xf32>
    %137 = math.cos %136 : vector<8x128xf32>
    %138 = vector.broadcast %131 : vector<8x1xf32> to vector<8x128xf32>
    %139 = vector.broadcast %24 : vector<1x128xf32> to vector<8x128xf32>
    %140 = arith.mulf %138, %139 : vector<8x128xf32>
    %141 = vector.broadcast %25 : vector<1x128xf32> to vector<8x128xf32>
    %142 = arith.addf %140, %141 : vector<8x128xf32>
    %143 = math.cos %142 : vector<8x128xf32>
    %144 = arith.addf %137, %130 : vector<8x128xf32>
    %145 = arith.mulf %144, %29 : vector<8x128xf32>
    %cst_47 = arith.constant dense<0.000000e+00> : vector<8xf32>
    %146 = vector.multi_reduction <add>, %145, %cst_47 [1] : vector<8x128xf32> to vector<8xf32>
    %147 = vector.shape_cast %146 : vector<8xf32> to vector<8x1xf32>
    %cst_48 = arith.constant 0.176776692 : f32
    %148 = vector.broadcast %cst_48 : f32 to vector<8x1xf32>
    %149 = arith.mulf %147, %148 : vector<8x1xf32>
    %cst_49 = arith.constant 1.000000e+00 : f32
    %150 = vector.broadcast %cst_49 : f32 to vector<8x1xf32>
    %151 = arith.addf %130, %143 : vector<8x128xf32>
    %cst_50 = arith.constant 0.000000e+00 : f32
    %152 = vector.broadcast %cst_50 : f32 to vector<8x128xf32>
    %c0_i32_51 = arith.constant 0 : i32
    %153 = arith.addi %27, %c0_i32_51 : i32
    %c1 = arith.constant 1 : index
    %154 = arith.index_cast %153 : i32 to index
    %155 = memref.load %arg1[%c1, %154] : memref<3x8xi32, #tpu.memory_space<smem>>
    %156 = arith.index_cast %155 : i32 to index
    %c0_52 = arith.constant 0 : index
    %157 = vector.load %arg21[%156, %c0_52] : memref<8x128xf32, #tpu.memory_space<vmem>>, vector<1x128xf32>
    %c0_i32_53 = arith.constant 0 : i32
    %158 = vector.broadcast %c0_i32_53 : i32 to vector<8x1xi32>
    %159 = arith.cmpi eq, %5, %158 : vector<8x1xi32>
    %160 = vector.shape_cast %157 : vector<1x128xf32> to vector<1x128xf32>
    %161 = vector.broadcast %160 : vector<1x128xf32> to vector<8x128xf32>
    %162 = vector.shape_cast %159 : vector<8x1xi1> to vector<8x1xi1>
    %163 = vector.broadcast %162 : vector<8x1xi1> to vector<8x128xi1>
    %164 = arith.select %163, %161, %152 : vector<8x128xi1>, vector<8x128xf32>
    %c1_i32_54 = arith.constant 1 : i32
    %165 = arith.addi %27, %c1_i32_54 : i32
    %c1_55 = arith.constant 1 : index
    %166 = arith.index_cast %165 : i32 to index
    %167 = memref.load %arg1[%c1_55, %166] : memref<3x8xi32, #tpu.memory_space<smem>>
    %168 = arith.index_cast %167 : i32 to index
    %c0_56 = arith.constant 0 : index
    %169 = vector.load %arg21[%168, %c0_56] : memref<8x128xf32, #tpu.memory_space<vmem>>, vector<1x128xf32>
    %c1_i32_57 = arith.constant 1 : i32
    %170 = vector.broadcast %c1_i32_57 : i32 to vector<8x1xi32>
    %171 = arith.cmpi eq, %5, %170 : vector<8x1xi32>
    %172 = vector.shape_cast %169 : vector<1x128xf32> to vector<1x128xf32>
    %173 = vector.broadcast %172 : vector<1x128xf32> to vector<8x128xf32>
    %174 = vector.shape_cast %171 : vector<8x1xi1> to vector<8x1xi1>
    %175 = vector.broadcast %174 : vector<8x1xi1> to vector<8x128xi1>
    %176 = arith.select %175, %173, %164 : vector<8x128xi1>, vector<8x128xf32>
    %c2_i32_58 = arith.constant 2 : i32
    %177 = arith.addi %27, %c2_i32_58 : i32
    %c1_59 = arith.constant 1 : index
    %178 = arith.index_cast %177 : i32 to index
    %179 = memref.load %arg1[%c1_59, %178] : memref<3x8xi32, #tpu.memory_space<smem>>
    %180 = arith.index_cast %179 : i32 to index
    %c0_60 = arith.constant 0 : index
    %181 = vector.load %arg21[%180, %c0_60] : memref<8x128xf32, #tpu.memory_space<vmem>>, vector<1x128xf32>
    %c2_i32_61 = arith.constant 2 : i32
    %182 = vector.broadcast %c2_i32_61 : i32 to vector<8x1xi32>
    %183 = arith.cmpi eq, %5, %182 : vector<8x1xi32>
    %184 = vector.shape_cast %181 : vector<1x128xf32> to vector<1x128xf32>
    %185 = vector.broadcast %184 : vector<1x128xf32> to vector<8x128xf32>
    %186 = vector.shape_cast %183 : vector<8x1xi1> to vector<8x1xi1>
    %187 = vector.broadcast %186 : vector<8x1xi1> to vector<8x128xi1>
    %188 = arith.select %187, %185, %176 : vector<8x128xi1>, vector<8x128xf32>
    %c3_i32_62 = arith.constant 3 : i32
    %189 = arith.addi %27, %c3_i32_62 : i32
    %c1_63 = arith.constant 1 : index
    %190 = arith.index_cast %189 : i32 to index
    %191 = memref.load %arg1[%c1_63, %190] : memref<3x8xi32, #tpu.memory_space<smem>>
    %192 = arith.index_cast %191 : i32 to index
    %c0_64 = arith.constant 0 : index
    %193 = vector.load %arg21[%192, %c0_64] : memref<8x128xf32, #tpu.memory_space<vmem>>, vector<1x128xf32>
    %c3_i32_65 = arith.constant 3 : i32
    %194 = vector.broadcast %c3_i32_65 : i32 to vector<8x1xi32>
    %195 = arith.cmpi eq, %5, %194 : vector<8x1xi32>
    %196 = vector.shape_cast %193 : vector<1x128xf32> to vector<1x128xf32>
    %197 = vector.broadcast %196 : vector<1x128xf32> to vector<8x128xf32>
    %198 = vector.shape_cast %195 : vector<8x1xi1> to vector<8x1xi1>
    %199 = vector.broadcast %198 : vector<8x1xi1> to vector<8x128xi1>
    %200 = arith.select %199, %197, %188 : vector<8x128xi1>, vector<8x128xf32>
    %c4_i32_66 = arith.constant 4 : i32
    %201 = arith.addi %27, %c4_i32_66 : i32
    %c1_67 = arith.constant 1 : index
    %202 = arith.index_cast %201 : i32 to index
    %203 = memref.load %arg1[%c1_67, %202] : memref<3x8xi32, #tpu.memory_space<smem>>
    %204 = arith.index_cast %203 : i32 to index
    %c0_68 = arith.constant 0 : index
    %205 = vector.load %arg21[%204, %c0_68] : memref<8x128xf32, #tpu.memory_space<vmem>>, vector<1x128xf32>
    %c4_i32_69 = arith.constant 4 : i32
    %206 = vector.broadcast %c4_i32_69 : i32 to vector<8x1xi32>
    %207 = arith.cmpi eq, %5, %206 : vector<8x1xi32>
    %208 = vector.shape_cast %205 : vector<1x128xf32> to vector<1x128xf32>
    %209 = vector.broadcast %208 : vector<1x128xf32> to vector<8x128xf32>
    %210 = vector.shape_cast %207 : vector<8x1xi1> to vector<8x1xi1>
    %211 = vector.broadcast %210 : vector<8x1xi1> to vector<8x128xi1>
    %212 = arith.select %211, %209, %200 : vector<8x128xi1>, vector<8x128xf32>
    %c5_i32_70 = arith.constant 5 : i32
    %213 = arith.addi %27, %c5_i32_70 : i32
    %c1_71 = arith.constant 1 : index
    %214 = arith.index_cast %213 : i32 to index
    %215 = memref.load %arg1[%c1_71, %214] : memref<3x8xi32, #tpu.memory_space<smem>>
    %216 = arith.index_cast %215 : i32 to index
    %c0_72 = arith.constant 0 : index
    %217 = vector.load %arg21[%216, %c0_72] : memref<8x128xf32, #tpu.memory_space<vmem>>, vector<1x128xf32>
    %c5_i32_73 = arith.constant 5 : i32
    %218 = vector.broadcast %c5_i32_73 : i32 to vector<8x1xi32>
    %219 = arith.cmpi eq, %5, %218 : vector<8x1xi32>
    %220 = vector.shape_cast %217 : vector<1x128xf32> to vector<1x128xf32>
    %221 = vector.broadcast %220 : vector<1x128xf32> to vector<8x128xf32>
    %222 = vector.shape_cast %219 : vector<8x1xi1> to vector<8x1xi1>
    %223 = vector.broadcast %222 : vector<8x1xi1> to vector<8x128xi1>
    %224 = arith.select %223, %221, %212 : vector<8x128xi1>, vector<8x128xf32>
    %c6_i32_74 = arith.constant 6 : i32
    %225 = arith.addi %27, %c6_i32_74 : i32
    %c1_75 = arith.constant 1 : index
    %226 = arith.index_cast %225 : i32 to index
    %227 = memref.load %arg1[%c1_75, %226] : memref<3x8xi32, #tpu.memory_space<smem>>
    %228 = arith.index_cast %227 : i32 to index
    %c0_76 = arith.constant 0 : index
    %229 = vector.load %arg21[%228, %c0_76] : memref<8x128xf32, #tpu.memory_space<vmem>>, vector<1x128xf32>
    %c6_i32_77 = arith.constant 6 : i32
    %230 = vector.broadcast %c6_i32_77 : i32 to vector<8x1xi32>
    %231 = arith.cmpi eq, %5, %230 : vector<8x1xi32>
    %232 = vector.shape_cast %229 : vector<1x128xf32> to vector<1x128xf32>
    %233 = vector.broadcast %232 : vector<1x128xf32> to vector<8x128xf32>
    %234 = vector.shape_cast %231 : vector<8x1xi1> to vector<8x1xi1>
    %235 = vector.broadcast %234 : vector<8x1xi1> to vector<8x128xi1>
    %236 = arith.select %235, %233, %224 : vector<8x128xi1>, vector<8x128xf32>
    %c7_i32_78 = arith.constant 7 : i32
    %237 = arith.addi %27, %c7_i32_78 : i32
    %c1_79 = arith.constant 1 : index
    %238 = arith.index_cast %237 : i32 to index
    %239 = memref.load %arg1[%c1_79, %238] : memref<3x8xi32, #tpu.memory_space<smem>>
    %240 = arith.index_cast %239 : i32 to index
    %c0_80 = arith.constant 0 : index
    %241 = vector.load %arg21[%240, %c0_80] : memref<8x128xf32, #tpu.memory_space<vmem>>, vector<1x128xf32>
    %c7_i32_81 = arith.constant 7 : i32
    %242 = vector.broadcast %c7_i32_81 : i32 to vector<8x1xi32>
    %243 = arith.cmpi eq, %5, %242 : vector<8x1xi32>
    %244 = vector.shape_cast %241 : vector<1x128xf32> to vector<1x128xf32>
    %245 = vector.broadcast %244 : vector<1x128xf32> to vector<8x128xf32>
    %246 = vector.shape_cast %243 : vector<8x1xi1> to vector<8x1xi1>
    %247 = vector.broadcast %246 : vector<8x1xi1> to vector<8x128xi1>
    %248 = arith.select %247, %245, %236 : vector<8x128xi1>, vector<8x128xf32>
    %249 = vector.extract_strided_slice %33 {offsets = [0, 1], sizes = [8, 1], strides = [1, 1]} : vector<8x3xf32> to vector<8x1xf32>
    %250 = vector.broadcast %249 : vector<8x1xf32> to vector<8x128xf32>
    %251 = vector.broadcast %22 : vector<1x128xf32> to vector<8x128xf32>
    %252 = arith.mulf %250, %251 : vector<8x128xf32>
    %253 = vector.broadcast %23 : vector<1x128xf32> to vector<8x128xf32>
    %254 = arith.addf %252, %253 : vector<8x128xf32>
    %255 = math.cos %254 : vector<8x128xf32>
    %256 = vector.broadcast %249 : vector<8x1xf32> to vector<8x128xf32>
    %257 = vector.broadcast %24 : vector<1x128xf32> to vector<8x128xf32>
    %258 = arith.mulf %256, %257 : vector<8x128xf32>
    %259 = vector.broadcast %25 : vector<1x128xf32> to vector<8x128xf32>
    %260 = arith.addf %258, %259 : vector<8x128xf32>
    %261 = math.cos %260 : vector<8x128xf32>
    %262 = arith.addf %255, %248 : vector<8x128xf32>
    %263 = arith.mulf %262, %29 : vector<8x128xf32>
    %cst_82 = arith.constant dense<0.000000e+00> : vector<8xf32>
    %264 = vector.multi_reduction <add>, %263, %cst_82 [1] : vector<8x128xf32> to vector<8xf32>
    %265 = vector.shape_cast %264 : vector<8xf32> to vector<8x1xf32>
    %cst_83 = arith.constant 0.176776692 : f32
    %266 = vector.broadcast %cst_83 : f32 to vector<8x1xf32>
    %267 = arith.mulf %265, %266 : vector<8x1xf32>
    %268 = arith.maximumf %149, %267 : vector<8x1xf32>
    %269 = arith.subf %149, %268 : vector<8x1xf32>
    %270 = math.exp %269 : vector<8x1xf32>
    %271 = arith.subf %267, %268 : vector<8x1xf32>
    %272 = math.exp %271 : vector<8x1xf32>
    %273 = vector.broadcast %270 : vector<8x1xf32> to vector<8x128xf32>
    %274 = arith.mulf %273, %151 : vector<8x128xf32>
    %275 = arith.addf %248, %261 : vector<8x128xf32>
    %276 = vector.broadcast %272 : vector<8x1xf32> to vector<8x128xf32>
    %277 = arith.mulf %276, %275 : vector<8x128xf32>
    %278 = arith.addf %274, %277 : vector<8x128xf32>
    %279 = arith.mulf %270, %150 : vector<8x1xf32>
    %280 = arith.addf %279, %272 : vector<8x1xf32>
    %cst_84 = arith.constant 0.000000e+00 : f32
    %281 = vector.broadcast %cst_84 : f32 to vector<8x128xf32>
    %c0_i32_85 = arith.constant 0 : i32
    %282 = arith.addi %27, %c0_i32_85 : i32
    %c2 = arith.constant 2 : index
    %283 = arith.index_cast %282 : i32 to index
    %284 = memref.load %arg1[%c2, %283] : memref<3x8xi32, #tpu.memory_space<smem>>
    %285 = arith.index_cast %284 : i32 to index
    %c0_86 = arith.constant 0 : index
    %286 = vector.load %arg21[%285, %c0_86] : memref<8x128xf32, #tpu.memory_space<vmem>>, vector<1x128xf32>
    %c0_i32_87 = arith.constant 0 : i32
    %287 = vector.broadcast %c0_i32_87 : i32 to vector<8x1xi32>
    %288 = arith.cmpi eq, %5, %287 : vector<8x1xi32>
    %289 = vector.shape_cast %286 : vector<1x128xf32> to vector<1x128xf32>
    %290 = vector.broadcast %289 : vector<1x128xf32> to vector<8x128xf32>
    %291 = vector.shape_cast %288 : vector<8x1xi1> to vector<8x1xi1>
    %292 = vector.broadcast %291 : vector<8x1xi1> to vector<8x128xi1>
    %293 = arith.select %292, %290, %281 : vector<8x128xi1>, vector<8x128xf32>
    %c1_i32_88 = arith.constant 1 : i32
    %294 = arith.addi %27, %c1_i32_88 : i32
    %c2_89 = arith.constant 2 : index
    %295 = arith.index_cast %294 : i32 to index
    %296 = memref.load %arg1[%c2_89, %295] : memref<3x8xi32, #tpu.memory_space<smem>>
    %297 = arith.index_cast %296 : i32 to index
    %c0_90 = arith.constant 0 : index
    %298 = vector.load %arg21[%297, %c0_90] : memref<8x128xf32, #tpu.memory_space<vmem>>, vector<1x128xf32>
    %c1_i32_91 = arith.constant 1 : i32
    %299 = vector.broadcast %c1_i32_91 : i32 to vector<8x1xi32>
    %300 = arith.cmpi eq, %5, %299 : vector<8x1xi32>
    %301 = vector.shape_cast %298 : vector<1x128xf32> to vector<1x128xf32>
    %302 = vector.broadcast %301 : vector<1x128xf32> to vector<8x128xf32>
    %303 = vector.shape_cast %300 : vector<8x1xi1> to vector<8x1xi1>
    %304 = vector.broadcast %303 : vector<8x1xi1> to vector<8x128xi1>
    %305 = arith.select %304, %302, %293 : vector<8x128xi1>, vector<8x128xf32>
    %c2_i32_92 = arith.constant 2 : i32
    %306 = arith.addi %27, %c2_i32_92 : i32
    %c2_93 = arith.constant 2 : index
    %307 = arith.index_cast %306 : i32 to index
    %308 = memref.load %arg1[%c2_93, %307] : memref<3x8xi32, #tpu.memory_space<smem>>
    %309 = arith.index_cast %308 : i32 to index
    %c0_94 = arith.constant 0 : index
    %310 = vector.load %arg21[%309, %c0_94] : memref<8x128xf32, #tpu.memory_space<vmem>>, vector<1x128xf32>
    %c2_i32_95 = arith.constant 2 : i32
    %311 = vector.broadcast %c2_i32_95 : i32 to vector<8x1xi32>
    %312 = arith.cmpi eq, %5, %311 : vector<8x1xi32>
    %313 = vector.shape_cast %310 : vector<1x128xf32> to vector<1x128xf32>
    %314 = vector.broadcast %313 : vector<1x128xf32> to vector<8x128xf32>
    %315 = vector.shape_cast %312 : vector<8x1xi1> to vector<8x1xi1>
    %316 = vector.broadcast %315 : vector<8x1xi1> to vector<8x128xi1>
    %317 = arith.select %316, %314, %305 : vector<8x128xi1>, vector<8x128xf32>
    %c3_i32_96 = arith.constant 3 : i32
    %318 = arith.addi %27, %c3_i32_96 : i32
    %c2_97 = arith.constant 2 : index
    %319 = arith.index_cast %318 : i32 to index
    %320 = memref.load %arg1[%c2_97, %319] : memref<3x8xi32, #tpu.memory_space<smem>>
    %321 = arith.index_cast %320 : i32 to index
    %c0_98 = arith.constant 0 : index
    %322 = vector.load %arg21[%321, %c0_98] : memref<8x128xf32, #tpu.memory_space<vmem>>, vector<1x128xf32>
    %c3_i32_99 = arith.constant 3 : i32
    %323 = vector.broadcast %c3_i32_99 : i32 to vector<8x1xi32>
    %324 = arith.cmpi eq, %5, %323 : vector<8x1xi32>
    %325 = vector.shape_cast %322 : vector<1x128xf32> to vector<1x128xf32>
    %326 = vector.broadcast %325 : vector<1x128xf32> to vector<8x128xf32>
    %327 = vector.shape_cast %324 : vector<8x1xi1> to vector<8x1xi1>
    %328 = vector.broadcast %327 : vector<8x1xi1> to vector<8x128xi1>
    %329 = arith.select %328, %326, %317 : vector<8x128xi1>, vector<8x128xf32>
    %c4_i32_100 = arith.constant 4 : i32
    %330 = arith.addi %27, %c4_i32_100 : i32
    %c2_101 = arith.constant 2 : index
    %331 = arith.index_cast %330 : i32 to index
    %332 = memref.load %arg1[%c2_101, %331] : memref<3x8xi32, #tpu.memory_space<smem>>
    %333 = arith.index_cast %332 : i32 to index
    %c0_102 = arith.constant 0 : index
    %334 = vector.load %arg21[%333, %c0_102] : memref<8x128xf32, #tpu.memory_space<vmem>>, vector<1x128xf32>
    %c4_i32_103 = arith.constant 4 : i32
    %335 = vector.broadcast %c4_i32_103 : i32 to vector<8x1xi32>
    %336 = arith.cmpi eq, %5, %335 : vector<8x1xi32>
    %337 = vector.shape_cast %334 : vector<1x128xf32> to vector<1x128xf32>
    %338 = vector.broadcast %337 : vector<1x128xf32> to vector<8x128xf32>
    %339 = vector.shape_cast %336 : vector<8x1xi1> to vector<8x1xi1>
    %340 = vector.broadcast %339 : vector<8x1xi1> to vector<8x128xi1>
    %341 = arith.select %340, %338, %329 : vector<8x128xi1>, vector<8x128xf32>
    %c5_i32_104 = arith.constant 5 : i32
    %342 = arith.addi %27, %c5_i32_104 : i32
    %c2_105 = arith.constant 2 : index
    %343 = arith.index_cast %342 : i32 to index
    %344 = memref.load %arg1[%c2_105, %343] : memref<3x8xi32, #tpu.memory_space<smem>>
    %345 = arith.index_cast %344 : i32 to index
    %c0_106 = arith.constant 0 : index
    %346 = vector.load %arg21[%345, %c0_106] : memref<8x128xf32, #tpu.memory_space<vmem>>, vector<1x128xf32>
    %c5_i32_107 = arith.constant 5 : i32
    %347 = vector.broadcast %c5_i32_107 : i32 to vector<8x1xi32>
    %348 = arith.cmpi eq, %5, %347 : vector<8x1xi32>
    %349 = vector.shape_cast %346 : vector<1x128xf32> to vector<1x128xf32>
    %350 = vector.broadcast %349 : vector<1x128xf32> to vector<8x128xf32>
    %351 = vector.shape_cast %348 : vector<8x1xi1> to vector<8x1xi1>
    %352 = vector.broadcast %351 : vector<8x1xi1> to vector<8x128xi1>
    %353 = arith.select %352, %350, %341 : vector<8x128xi1>, vector<8x128xf32>
    %c6_i32_108 = arith.constant 6 : i32
    %354 = arith.addi %27, %c6_i32_108 : i32
    %c2_109 = arith.constant 2 : index
    %355 = arith.index_cast %354 : i32 to index
    %356 = memref.load %arg1[%c2_109, %355] : memref<3x8xi32, #tpu.memory_space<smem>>
    %357 = arith.index_cast %356 : i32 to index
    %c0_110 = arith.constant 0 : index
    %358 = vector.load %arg21[%357, %c0_110] : memref<8x128xf32, #tpu.memory_space<vmem>>, vector<1x128xf32>
    %c6_i32_111 = arith.constant 6 : i32
    %359 = vector.broadcast %c6_i32_111 : i32 to vector<8x1xi32>
    %360 = arith.cmpi eq, %5, %359 : vector<8x1xi32>
    %361 = vector.shape_cast %358 : vector<1x128xf32> to vector<1x128xf32>
    %362 = vector.broadcast %361 : vector<1x128xf32> to vector<8x128xf32>
    %363 = vector.shape_cast %360 : vector<8x1xi1> to vector<8x1xi1>
    %364 = vector.broadcast %363 : vector<8x1xi1> to vector<8x128xi1>
    %365 = arith.select %364, %362, %353 : vector<8x128xi1>, vector<8x128xf32>
    %c7_i32_112 = arith.constant 7 : i32
    %366 = arith.addi %27, %c7_i32_112 : i32
    %c2_113 = arith.constant 2 : index
    %367 = arith.index_cast %366 : i32 to index
    %368 = memref.load %arg1[%c2_113, %367] : memref<3x8xi32, #tpu.memory_space<smem>>
    %369 = arith.index_cast %368 : i32 to index
    %c0_114 = arith.constant 0 : index
    %370 = vector.load %arg21[%369, %c0_114] : memref<8x128xf32, #tpu.memory_space<vmem>>, vector<1x128xf32>
    %c7_i32_115 = arith.constant 7 : i32
    %371 = vector.broadcast %c7_i32_115 : i32 to vector<8x1xi32>
    %372 = arith.cmpi eq, %5, %371 : vector<8x1xi32>
    %373 = vector.shape_cast %370 : vector<1x128xf32> to vector<1x128xf32>
    %374 = vector.broadcast %373 : vector<1x128xf32> to vector<8x128xf32>
    %375 = vector.shape_cast %372 : vector<8x1xi1> to vector<8x1xi1>
    %376 = vector.broadcast %375 : vector<8x1xi1> to vector<8x128xi1>
    %377 = arith.select %376, %374, %365 : vector<8x128xi1>, vector<8x128xf32>
    %378 = vector.extract_strided_slice %33 {offsets = [0, 2], sizes = [8, 1], strides = [1, 1]} : vector<8x3xf32> to vector<8x1xf32>
    %379 = vector.broadcast %378 : vector<8x1xf32> to vector<8x128xf32>
    %380 = vector.broadcast %22 : vector<1x128xf32> to vector<8x128xf32>
    %381 = arith.mulf %379, %380 : vector<8x128xf32>
    %382 = vector.broadcast %23 : vector<1x128xf32> to vector<8x128xf32>
    %383 = arith.addf %381, %382 : vector<8x128xf32>
    %384 = math.cos %383 : vector<8x128xf32>
    %385 = vector.broadcast %378 : vector<8x1xf32> to vector<8x128xf32>
    %386 = vector.broadcast %24 : vector<1x128xf32> to vector<8x128xf32>
    %387 = arith.mulf %385, %386 : vector<8x128xf32>
    %388 = vector.broadcast %25 : vector<1x128xf32> to vector<8x128xf32>
    %389 = arith.addf %387, %388 : vector<8x128xf32>
    %390 = math.cos %389 : vector<8x128xf32>
    %391 = arith.addf %384, %377 : vector<8x128xf32>
    %392 = arith.mulf %391, %29 : vector<8x128xf32>
    %cst_116 = arith.constant dense<0.000000e+00> : vector<8xf32>
    %393 = vector.multi_reduction <add>, %392, %cst_116 [1] : vector<8x128xf32> to vector<8xf32>
    %394 = vector.shape_cast %393 : vector<8xf32> to vector<8x1xf32>
    %cst_117 = arith.constant 0.176776692 : f32
    %395 = vector.broadcast %cst_117 : f32 to vector<8x1xf32>
    %396 = arith.mulf %394, %395 : vector<8x1xf32>
    %397 = arith.maximumf %268, %396 : vector<8x1xf32>
    %398 = arith.subf %268, %397 : vector<8x1xf32>
    %399 = math.exp %398 : vector<8x1xf32>
    %400 = arith.subf %396, %397 : vector<8x1xf32>
    %401 = math.exp %400 : vector<8x1xf32>
    %402 = vector.broadcast %399 : vector<8x1xf32> to vector<8x128xf32>
    %403 = arith.mulf %402, %278 : vector<8x128xf32>
    %404 = arith.addf %377, %390 : vector<8x128xf32>
    %405 = vector.broadcast %401 : vector<8x1xf32> to vector<8x128xf32>
    %406 = arith.mulf %405, %404 : vector<8x128xf32>
    %407 = arith.addf %403, %406 : vector<8x128xf32>
    %408 = arith.mulf %399, %280 : vector<8x1xf32>
    %409 = arith.addf %408, %401 : vector<8x1xf32>
    %410 = tpu.reciprocal %409 {approx = true} : vector<8x1xf32> -> vector<8x1xf32>
    %411 = vector.broadcast %410 : vector<8x1xf32> to vector<8x128xf32>
    %412 = arith.mulf %407, %411 : vector<8x128xf32>
    %413 = vector.broadcast %4 : vector<1x128xf32> to vector<8x128xf32>
    %414 = arith.mulf %412, %413 : vector<8x128xf32>
    %415 = arith.truncf %414 : vector<8x128xf32> to vector<8x128xbf16>
    %c0_118 = arith.constant 0 : index
    %c0_119 = arith.constant 0 : index
    %c0_120 = arith.constant 0 : index
    %416 = vector.load %arg13[%c0_118, %c0_119, %c0_120] : memref<1x256x128xbf16, #tpu.memory_space<vmem>>, vector<1x128x128xbf16>
    %417 = vector.shape_cast %416 : vector<1x128x128xbf16> to vector<128x128xbf16>
    %cst_121 = arith.constant dense<0.000000e+00> : vector<8x128xf32>
    %418 = tpu.matmul %415, %417, %cst_121 {dimension_numbers = #tpu.dot_dimension_numbers<[1], [0], [0], [1], [0, 0, 1, 1], [], []>} : vector<8x128xbf16>, vector<128x128xbf16>, vector<8x128xf32> -> vector<8x128xf32>
    %419 = arith.truncf %31 : vector<8x128xf32> to vector<8x128xbf16>
    %c0_122 = arith.constant 0 : index
    %c128 = arith.constant 128 : index
    %c0_123 = arith.constant 0 : index
    %420 = vector.load %arg13[%c0_122, %c128, %c0_123] : memref<1x256x128xbf16, #tpu.memory_space<vmem>>, vector<1x128x128xbf16>
    %421 = vector.shape_cast %420 : vector<1x128x128xbf16> to vector<128x128xbf16>
    %cst_124 = arith.constant dense<0.000000e+00> : vector<8x128xf32>
    %422 = tpu.matmul %419, %421, %cst_124 {dimension_numbers = #tpu.dot_dimension_numbers<[1], [0], [0], [1], [0, 0, 1, 1], [], []>} : vector<8x128xbf16>, vector<128x128xbf16>, vector<8x128xf32> -> vector<8x128xf32>
    %423 = arith.addf %418, %422 : vector<8x128xf32>
    %cst_125 = arith.constant 0.000000e+00 : f32
    %424 = vector.broadcast %cst_125 : f32 to vector<8x128xf32>
    %425 = arith.cmpf ogt, %423, %424 : vector<8x128xf32>
    %426 = math.exp %423 : vector<8x128xf32>
    %cst_126 = arith.constant 1.000000e+00 : f32
    %427 = vector.broadcast %cst_126 : f32 to vector<8x128xf32>
    %428 = arith.subf %426, %427 : vector<8x128xf32>
    %429 = arith.select %425, %423, %428 : vector<8x128xi1>, vector<8x128xf32>
    %430 = arith.index_cast %27 : i32 to index
    %c0_127 = arith.constant 0 : index
    %431 = vector.load %arg20[%430, %c0_127] : memref<8x128xf32, #tpu.memory_space<vmem>>, vector<8x128xf32>
    tpu.vector_store %arg20[%430, %c0_127], %429 {strides = array<i32>} : memref<8x128xf32, #tpu.memory_space<vmem>>, vector<8x128xf32>,
    %c1_i32_128 = arith.constant 1 : i32
    %c0_i32_129 = arith.constant 0 : i32
    %432 = vector.extract_strided_slice %21 {offsets = [4, 0], sizes = [1, 128], strides = [1, 1]} : vector<8x128xf32> to vector<1x128xf32>
    %433 = vector.extract_strided_slice %21 {offsets = [5, 0], sizes = [1, 128], strides = [1, 1]} : vector<8x128xf32> to vector<1x128xf32>
    %434 = vector.extract_strided_slice %21 {offsets = [6, 0], sizes = [1, 128], strides = [1, 1]} : vector<8x128xf32> to vector<1x128xf32>
    %435 = vector.extract_strided_slice %21 {offsets = [7, 0], sizes = [1, 128], strides = [1, 1]} : vector<8x128xf32> to vector<1x128xf32>
    %c8_i32_130 = arith.constant 8 : i32
    %436 = arith.muli %c0_i32_129, %c8_i32_130 : i32
    %437 = tpu.assume_multiple %436, 8 : i32
    %438 = arith.index_cast %437 : i32 to index
    %c0_131 = arith.constant 0 : index
    %439 = vector.load %arg21[%438, %c0_131] : memref<8x128xf32, #tpu.memory_space<vmem>>, vector<8x128xf32>
    %440 = arith.index_cast %437 : i32 to index
    %c0_132 = arith.constant 0 : index
    %441 = vector.load %arg19[%440, %c0_132] : memref<8x128xf32, #tpu.memory_space<vmem>>, vector<8x128xf32>
    %442 = arith.index_cast %437 : i32 to index
    %c0_133 = arith.constant 0 : index
    %443 = vector.load %arg8[%442, %c0_133] : memref<8x4xf32, #tpu.memory_space<vmem>>, vector<8x4xf32>
    %cst_134 = arith.constant 0.000000e+00 : f32
    %444 = vector.broadcast %cst_134 : f32 to vector<8x128xf32>
    %c0_i32_135 = arith.constant 0 : i32
    %445 = arith.addi %437, %c0_i32_135 : i32
    %c0_136 = arith.constant 0 : index
    %446 = arith.index_cast %445 : i32 to index
    %447 = memref.load %arg2[%c0_136, %446] : memref<4x8xi32, #tpu.memory_space<smem>>
    %448 = arith.index_cast %447 : i32 to index
    %c0_137 = arith.constant 0 : index
    %449 = vector.load %arg22[%448, %c0_137] : memref<8x128xf32, #tpu.memory_space<vmem>>, vector<1x128xf32>
    %c0_i32_138 = arith.constant 0 : i32
    %450 = vector.broadcast %c0_i32_138 : i32 to vector<8x1xi32>
    %451 = arith.cmpi eq, %5, %450 : vector<8x1xi32>
    %452 = vector.shape_cast %449 : vector<1x128xf32> to vector<1x128xf32>
    %453 = vector.broadcast %452 : vector<1x128xf32> to vector<8x128xf32>
    %454 = vector.shape_cast %451 : vector<8x1xi1> to vector<8x1xi1>
    %455 = vector.broadcast %454 : vector<8x1xi1> to vector<8x128xi1>
    %456 = arith.select %455, %453, %444 : vector<8x128xi1>, vector<8x128xf32>
    %c1_i32_139 = arith.constant 1 : i32
    %457 = arith.addi %437, %c1_i32_139 : i32
    %c0_140 = arith.constant 0 : index
    %458 = arith.index_cast %457 : i32 to index
    %459 = memref.load %arg2[%c0_140, %458] : memref<4x8xi32, #tpu.memory_space<smem>>
    %460 = arith.index_cast %459 : i32 to index
    %c0_141 = arith.constant 0 : index
    %461 = vector.load %arg22[%460, %c0_141] : memref<8x128xf32, #tpu.memory_space<vmem>>, vector<1x128xf32>
    %c1_i32_142 = arith.constant 1 : i32
    %462 = vector.broadcast %c1_i32_142 : i32 to vector<8x1xi32>
    %463 = arith.cmpi eq, %5, %462 : vector<8x1xi32>
    %464 = vector.shape_cast %461 : vector<1x128xf32> to vector<1x128xf32>
    %465 = vector.broadcast %464 : vector<1x128xf32> to vector<8x128xf32>
    %466 = vector.shape_cast %463 : vector<8x1xi1> to vector<8x1xi1>
    %467 = vector.broadcast %466 : vector<8x1xi1> to vector<8x128xi1>
    %468 = arith.select %467, %465, %456 : vector<8x128xi1>, vector<8x128xf32>
    %c2_i32_143 = arith.constant 2 : i32
    %469 = arith.addi %437, %c2_i32_143 : i32
    %c0_144 = arith.constant 0 : index
    %470 = arith.index_cast %469 : i32 to index
    %471 = memref.load %arg2[%c0_144, %470] : memref<4x8xi32, #tpu.memory_space<smem>>
    %472 = arith.index_cast %471 : i32 to index
    %c0_145 = arith.constant 0 : index
    %473 = vector.load %arg22[%472, %c0_145] : memref<8x128xf32, #tpu.memory_space<vmem>>, vector<1x128xf32>
    %c2_i32_146 = arith.constant 2 : i32
    %474 = vector.broadcast %c2_i32_146 : i32 to vector<8x1xi32>
    %475 = arith.cmpi eq, %5, %474 : vector<8x1xi32>
    %476 = vector.shape_cast %473 : vector<1x128xf32> to vector<1x128xf32>
    %477 = vector.broadcast %476 : vector<1x128xf32> to vector<8x128xf32>
    %478 = vector.shape_cast %475 : vector<8x1xi1> to vector<8x1xi1>
    %479 = vector.broadcast %478 : vector<8x1xi1> to vector<8x128xi1>
    %480 = arith.select %479, %477, %468 : vector<8x128xi1>, vector<8x128xf32>
    %c3_i32_147 = arith.constant 3 : i32
    %481 = arith.addi %437, %c3_i32_147 : i32
    %c0_148 = arith.constant 0 : index
    %482 = arith.index_cast %481 : i32 to index
    %483 = memref.load %arg2[%c0_148, %482] : memref<4x8xi32, #tpu.memory_space<smem>>
    %484 = arith.index_cast %483 : i32 to index
    %c0_149 = arith.constant 0 : index
    %485 = vector.load %arg22[%484, %c0_149] : memref<8x128xf32, #tpu.memory_space<vmem>>, vector<1x128xf32>
    %c3_i32_150 = arith.constant 3 : i32
    %486 = vector.broadcast %c3_i32_150 : i32 to vector<8x1xi32>
    %487 = arith.cmpi eq, %5, %486 : vector<8x1xi32>
    %488 = vector.shape_cast %485 : vector<1x128xf32> to vector<1x128xf32>
    %489 = vector.broadcast %488 : vector<1x128xf32> to vector<8x128xf32>
    %490 = vector.shape_cast %487 : vector<8x1xi1> to vector<8x1xi1>
    %491 = vector.broadcast %490 : vector<8x1xi1> to vector<8x128xi1>
    %492 = arith.select %491, %489, %480 : vector<8x128xi1>, vector<8x128xf32>
    %c4_i32_151 = arith.constant 4 : i32
    %493 = arith.addi %437, %c4_i32_151 : i32
    %c0_152 = arith.constant 0 : index
    %494 = arith.index_cast %493 : i32 to index
    %495 = memref.load %arg2[%c0_152, %494] : memref<4x8xi32, #tpu.memory_space<smem>>
    %496 = arith.index_cast %495 : i32 to index
    %c0_153 = arith.constant 0 : index
    %497 = vector.load %arg22[%496, %c0_153] : memref<8x128xf32, #tpu.memory_space<vmem>>, vector<1x128xf32>
    %c4_i32_154 = arith.constant 4 : i32
    %498 = vector.broadcast %c4_i32_154 : i32 to vector<8x1xi32>
    %499 = arith.cmpi eq, %5, %498 : vector<8x1xi32>
    %500 = vector.shape_cast %497 : vector<1x128xf32> to vector<1x128xf32>
    %501 = vector.broadcast %500 : vector<1x128xf32> to vector<8x128xf32>
    %502 = vector.shape_cast %499 : vector<8x1xi1> to vector<8x1xi1>
    %503 = vector.broadcast %502 : vector<8x1xi1> to vector<8x128xi1>
    %504 = arith.select %503, %501, %492 : vector<8x128xi1>, vector<8x128xf32>
    %c5_i32_155 = arith.constant 5 : i32
    %505 = arith.addi %437, %c5_i32_155 : i32
    %c0_156 = arith.constant 0 : index
    %506 = arith.index_cast %505 : i32 to index
    %507 = memref.load %arg2[%c0_156, %506] : memref<4x8xi32, #tpu.memory_space<smem>>
    %508 = arith.index_cast %507 : i32 to index
    %c0_157 = arith.constant 0 : index
    %509 = vector.load %arg22[%508, %c0_157] : memref<8x128xf32, #tpu.memory_space<vmem>>, vector<1x128xf32>
    %c5_i32_158 = arith.constant 5 : i32
    %510 = vector.broadcast %c5_i32_158 : i32 to vector<8x1xi32>
    %511 = arith.cmpi eq, %5, %510 : vector<8x1xi32>
    %512 = vector.shape_cast %509 : vector<1x128xf32> to vector<1x128xf32>
    %513 = vector.broadcast %512 : vector<1x128xf32> to vector<8x128xf32>
    %514 = vector.shape_cast %511 : vector<8x1xi1> to vector<8x1xi1>
    %515 = vector.broadcast %514 : vector<8x1xi1> to vector<8x128xi1>
    %516 = arith.select %515, %513, %504 : vector<8x128xi1>, vector<8x128xf32>
    %c6_i32_159 = arith.constant 6 : i32
    %517 = arith.addi %437, %c6_i32_159 : i32
    %c0_160 = arith.constant 0 : index
    %518 = arith.index_cast %517 : i32 to index
    %519 = memref.load %arg2[%c0_160, %518] : memref<4x8xi32, #tpu.memory_space<smem>>
    %520 = arith.index_cast %519 : i32 to index
    %c0_161 = arith.constant 0 : index
    %521 = vector.load %arg22[%520, %c0_161] : memref<8x128xf32, #tpu.memory_space<vmem>>, vector<1x128xf32>
    %c6_i32_162 = arith.constant 6 : i32
    %522 = vector.broadcast %c6_i32_162 : i32 to vector<8x1xi32>
    %523 = arith.cmpi eq, %5, %522 : vector<8x1xi32>
    %524 = vector.shape_cast %521 : vector<1x128xf32> to vector<1x128xf32>
    %525 = vector.broadcast %524 : vector<1x128xf32> to vector<8x128xf32>
    %526 = vector.shape_cast %523 : vector<8x1xi1> to vector<8x1xi1>
    %527 = vector.broadcast %526 : vector<8x1xi1> to vector<8x128xi1>
    %528 = arith.select %527, %525, %516 : vector<8x128xi1>, vector<8x128xf32>
    %c7_i32_163 = arith.constant 7 : i32
    %529 = arith.addi %437, %c7_i32_163 : i32
    %c0_164 = arith.constant 0 : index
    %530 = arith.index_cast %529 : i32 to index
    %531 = memref.load %arg2[%c0_164, %530] : memref<4x8xi32, #tpu.memory_space<smem>>
    %532 = arith.index_cast %531 : i32 to index
    %c0_165 = arith.constant 0 : index
    %533 = vector.load %arg22[%532, %c0_165] : memref<8x128xf32, #tpu.memory_space<vmem>>, vector<1x128xf32>
    %c7_i32_166 = arith.constant 7 : i32
    %534 = vector.broadcast %c7_i32_166 : i32 to vector<8x1xi32>
    %535 = arith.cmpi eq, %5, %534 : vector<8x1xi32>
    %536 = vector.shape_cast %533 : vector<1x128xf32> to vector<1x128xf32>
    %537 = vector.broadcast %536 : vector<1x128xf32> to vector<8x128xf32>
    %538 = vector.shape_cast %535 : vector<8x1xi1> to vector<8x1xi1>
    %539 = vector.broadcast %538 : vector<8x1xi1> to vector<8x128xi1>
    %540 = arith.select %539, %537, %528 : vector<8x128xi1>, vector<8x128xf32>
    %541 = vector.extract_strided_slice %443 {offsets = [0, 0], sizes = [8, 1], strides = [1, 1]} : vector<8x4xf32> to vector<8x1xf32>
    %542 = vector.broadcast %541 : vector<8x1xf32> to vector<8x128xf32>
    %543 = vector.broadcast %432 : vector<1x128xf32> to vector<8x128xf32>
    %544 = arith.mulf %542, %543 : vector<8x128xf32>
    %545 = vector.broadcast %433 : vector<1x128xf32> to vector<8x128xf32>
    %546 = arith.addf %544, %545 : vector<8x128xf32>
    %547 = math.cos %546 : vector<8x128xf32>
    %548 = vector.broadcast %541 : vector<8x1xf32> to vector<8x128xf32>
    %549 = vector.broadcast %434 : vector<1x128xf32> to vector<8x128xf32>
    %550 = arith.mulf %548, %549 : vector<8x128xf32>
    %551 = vector.broadcast %435 : vector<1x128xf32> to vector<8x128xf32>
    %552 = arith.addf %550, %551 : vector<8x128xf32>
    %553 = math.cos %552 : vector<8x128xf32>
    %554 = arith.addf %547, %540 : vector<8x128xf32>
    %555 = arith.mulf %554, %439 : vector<8x128xf32>
    %cst_167 = arith.constant dense<0.000000e+00> : vector<8xf32>
    %556 = vector.multi_reduction <add>, %555, %cst_167 [1] : vector<8x128xf32> to vector<8xf32>
    %557 = vector.shape_cast %556 : vector<8xf32> to vector<8x1xf32>
    %cst_168 = arith.constant 0.176776692 : f32
    %558 = vector.broadcast %cst_168 : f32 to vector<8x1xf32>
    %559 = arith.mulf %557, %558 : vector<8x1xf32>
    %cst_169 = arith.constant 1.000000e+00 : f32
    %560 = vector.broadcast %cst_169 : f32 to vector<8x1xf32>
    %561 = arith.addf %540, %553 : vector<8x128xf32>
    %cst_170 = arith.constant 0.000000e+00 : f32
    %562 = vector.broadcast %cst_170 : f32 to vector<8x128xf32>
    %c0_i32_171 = arith.constant 0 : i32
    %563 = arith.addi %437, %c0_i32_171 : i32
    %c1_172 = arith.constant 1 : index
    %564 = arith.index_cast %563 : i32 to index
    %565 = memref.load %arg2[%c1_172, %564] : memref<4x8xi32, #tpu.memory_space<smem>>
    %566 = arith.index_cast %565 : i32 to index
    %c0_173 = arith.constant 0 : index
    %567 = vector.load %arg22[%566, %c0_173] : memref<8x128xf32, #tpu.memory_space<vmem>>, vector<1x128xf32>
    %c0_i32_174 = arith.constant 0 : i32
    %568 = vector.broadcast %c0_i32_174 : i32 to vector<8x1xi32>
    %569 = arith.cmpi eq, %5, %568 : vector<8x1xi32>
    %570 = vector.shape_cast %567 : vector<1x128xf32> to vector<1x128xf32>
    %571 = vector.broadcast %570 : vector<1x128xf32> to vector<8x128xf32>
    %572 = vector.shape_cast %569 : vector<8x1xi1> to vector<8x1xi1>
    %573 = vector.broadcast %572 : vector<8x1xi1> to vector<8x128xi1>
    %574 = arith.select %573, %571, %562 : vector<8x128xi1>, vector<8x128xf32>
    %c1_i32_175 = arith.constant 1 : i32
    %575 = arith.addi %437, %c1_i32_175 : i32
    %c1_176 = arith.constant 1 : index
    %576 = arith.index_cast %575 : i32 to index
    %577 = memref.load %arg2[%c1_176, %576] : memref<4x8xi32, #tpu.memory_space<smem>>
    %578 = arith.index_cast %577 : i32 to index
    %c0_177 = arith.constant 0 : index
    %579 = vector.load %arg22[%578, %c0_177] : memref<8x128xf32, #tpu.memory_space<vmem>>, vector<1x128xf32>
    %c1_i32_178 = arith.constant 1 : i32
    %580 = vector.broadcast %c1_i32_178 : i32 to vector<8x1xi32>
    %581 = arith.cmpi eq, %5, %580 : vector<8x1xi32>
    %582 = vector.shape_cast %579 : vector<1x128xf32> to vector<1x128xf32>
    %583 = vector.broadcast %582 : vector<1x128xf32> to vector<8x128xf32>
    %584 = vector.shape_cast %581 : vector<8x1xi1> to vector<8x1xi1>
    %585 = vector.broadcast %584 : vector<8x1xi1> to vector<8x128xi1>
    %586 = arith.select %585, %583, %574 : vector<8x128xi1>, vector<8x128xf32>
    %c2_i32_179 = arith.constant 2 : i32
    %587 = arith.addi %437, %c2_i32_179 : i32
    %c1_180 = arith.constant 1 : index
    %588 = arith.index_cast %587 : i32 to index
    %589 = memref.load %arg2[%c1_180, %588] : memref<4x8xi32, #tpu.memory_space<smem>>
    %590 = arith.index_cast %589 : i32 to index
    %c0_181 = arith.constant 0 : index
    %591 = vector.load %arg22[%590, %c0_181] : memref<8x128xf32, #tpu.memory_space<vmem>>, vector<1x128xf32>
    %c2_i32_182 = arith.constant 2 : i32
    %592 = vector.broadcast %c2_i32_182 : i32 to vector<8x1xi32>
    %593 = arith.cmpi eq, %5, %592 : vector<8x1xi32>
    %594 = vector.shape_cast %591 : vector<1x128xf32> to vector<1x128xf32>
    %595 = vector.broadcast %594 : vector<1x128xf32> to vector<8x128xf32>
    %596 = vector.shape_cast %593 : vector<8x1xi1> to vector<8x1xi1>
    %597 = vector.broadcast %596 : vector<8x1xi1> to vector<8x128xi1>
    %598 = arith.select %597, %595, %586 : vector<8x128xi1>, vector<8x128xf32>
    %c3_i32_183 = arith.constant 3 : i32
    %599 = arith.addi %437, %c3_i32_183 : i32
    %c1_184 = arith.constant 1 : index
    %600 = arith.index_cast %599 : i32 to index
    %601 = memref.load %arg2[%c1_184, %600] : memref<4x8xi32, #tpu.memory_space<smem>>
    %602 = arith.index_cast %601 : i32 to index
    %c0_185 = arith.constant 0 : index
    %603 = vector.load %arg22[%602, %c0_185] : memref<8x128xf32, #tpu.memory_space<vmem>>, vector<1x128xf32>
    %c3_i32_186 = arith.constant 3 : i32
    %604 = vector.broadcast %c3_i32_186 : i32 to vector<8x1xi32>
    %605 = arith.cmpi eq, %5, %604 : vector<8x1xi32>
    %606 = vector.shape_cast %603 : vector<1x128xf32> to vector<1x128xf32>
    %607 = vector.broadcast %606 : vector<1x128xf32> to vector<8x128xf32>
    %608 = vector.shape_cast %605 : vector<8x1xi1> to vector<8x1xi1>
    %609 = vector.broadcast %608 : vector<8x1xi1> to vector<8x128xi1>
    %610 = arith.select %609, %607, %598 : vector<8x128xi1>, vector<8x128xf32>
    %c4_i32_187 = arith.constant 4 : i32
    %611 = arith.addi %437, %c4_i32_187 : i32
    %c1_188 = arith.constant 1 : index
    %612 = arith.index_cast %611 : i32 to index
    %613 = memref.load %arg2[%c1_188, %612] : memref<4x8xi32, #tpu.memory_space<smem>>
    %614 = arith.index_cast %613 : i32 to index
    %c0_189 = arith.constant 0 : index
    %615 = vector.load %arg22[%614, %c0_189] : memref<8x128xf32, #tpu.memory_space<vmem>>, vector<1x128xf32>
    %c4_i32_190 = arith.constant 4 : i32
    %616 = vector.broadcast %c4_i32_190 : i32 to vector<8x1xi32>
    %617 = arith.cmpi eq, %5, %616 : vector<8x1xi32>
    %618 = vector.shape_cast %615 : vector<1x128xf32> to vector<1x128xf32>
    %619 = vector.broadcast %618 : vector<1x128xf32> to vector<8x128xf32>
    %620 = vector.shape_cast %617 : vector<8x1xi1> to vector<8x1xi1>
    %621 = vector.broadcast %620 : vector<8x1xi1> to vector<8x128xi1>
    %622 = arith.select %621, %619, %610 : vector<8x128xi1>, vector<8x128xf32>
    %c5_i32_191 = arith.constant 5 : i32
    %623 = arith.addi %437, %c5_i32_191 : i32
    %c1_192 = arith.constant 1 : index
    %624 = arith.index_cast %623 : i32 to index
    %625 = memref.load %arg2[%c1_192, %624] : memref<4x8xi32, #tpu.memory_space<smem>>
    %626 = arith.index_cast %625 : i32 to index
    %c0_193 = arith.constant 0 : index
    %627 = vector.load %arg22[%626, %c0_193] : memref<8x128xf32, #tpu.memory_space<vmem>>, vector<1x128xf32>
    %c5_i32_194 = arith.constant 5 : i32
    %628 = vector.broadcast %c5_i32_194 : i32 to vector<8x1xi32>
    %629 = arith.cmpi eq, %5, %628 : vector<8x1xi32>
    %630 = vector.shape_cast %627 : vector<1x128xf32> to vector<1x128xf32>
    %631 = vector.broadcast %630 : vector<1x128xf32> to vector<8x128xf32>
    %632 = vector.shape_cast %629 : vector<8x1xi1> to vector<8x1xi1>
    %633 = vector.broadcast %632 : vector<8x1xi1> to vector<8x128xi1>
    %634 = arith.select %633, %631, %622 : vector<8x128xi1>, vector<8x128xf32>
    %c6_i32_195 = arith.constant 6 : i32
    %635 = arith.addi %437, %c6_i32_195 : i32
    %c1_196 = arith.constant 1 : index
    %636 = arith.index_cast %635 : i32 to index
    %637 = memref.load %arg2[%c1_196, %636] : memref<4x8xi32, #tpu.memory_space<smem>>
    %638 = arith.index_cast %637 : i32 to index
    %c0_197 = arith.constant 0 : index
    %639 = vector.load %arg22[%638, %c0_197] : memref<8x128xf32, #tpu.memory_space<vmem>>, vector<1x128xf32>
    %c6_i32_198 = arith.constant 6 : i32
    %640 = vector.broadcast %c6_i32_198 : i32 to vector<8x1xi32>
    %641 = arith.cmpi eq, %5, %640 : vector<8x1xi32>
    %642 = vector.shape_cast %639 : vector<1x128xf32> to vector<1x128xf32>
    %643 = vector.broadcast %642 : vector<1x128xf32> to vector<8x128xf32>
    %644 = vector.shape_cast %641 : vector<8x1xi1> to vector<8x1xi1>
    %645 = vector.broadcast %644 : vector<8x1xi1> to vector<8x128xi1>
    %646 = arith.select %645, %643, %634 : vector<8x128xi1>, vector<8x128xf32>
    %c7_i32_199 = arith.constant 7 : i32
    %647 = arith.addi %437, %c7_i32_199 : i32
    %c1_200 = arith.constant 1 : index
    %648 = arith.index_cast %647 : i32 to index
    %649 = memref.load %arg2[%c1_200, %648] : memref<4x8xi32, #tpu.memory_space<smem>>
    %650 = arith.index_cast %649 : i32 to index
    %c0_201 = arith.constant 0 : index
    %651 = vector.load %arg22[%650, %c0_201] : memref<8x128xf32, #tpu.memory_space<vmem>>, vector<1x128xf32>
    %c7_i32_202 = arith.constant 7 : i32
    %652 = vector.broadcast %c7_i32_202 : i32 to vector<8x1xi32>
    %653 = arith.cmpi eq, %5, %652 : vector<8x1xi32>
    %654 = vector.shape_cast %651 : vector<1x128xf32> to vector<1x128xf32>
    %655 = vector.broadcast %654 : vector<1x128xf32> to vector<8x128xf32>
    %656 = vector.shape_cast %653 : vector<8x1xi1> to vector<8x1xi1>
    %657 = vector.broadcast %656 : vector<8x1xi1> to vector<8x128xi1>
    %658 = arith.select %657, %655, %646 : vector<8x128xi1>, vector<8x128xf32>
    %659 = vector.extract_strided_slice %443 {offsets = [0, 1], sizes = [8, 1], strides = [1, 1]} : vector<8x4xf32> to vector<8x1xf32>
    %660 = vector.broadcast %659 : vector<8x1xf32> to vector<8x128xf32>
    %661 = vector.broadcast %432 : vector<1x128xf32> to vector<8x128xf32>
    %662 = arith.mulf %660, %661 : vector<8x128xf32>
    %663 = vector.broadcast %433 : vector<1x128xf32> to vector<8x128xf32>
    %664 = arith.addf %662, %663 : vector<8x128xf32>
    %665 = math.cos %664 : vector<8x128xf32>
    %666 = vector.broadcast %659 : vector<8x1xf32> to vector<8x128xf32>
    %667 = vector.broadcast %434 : vector<1x128xf32> to vector<8x128xf32>
    %668 = arith.mulf %666, %667 : vector<8x128xf32>
    %669 = vector.broadcast %435 : vector<1x128xf32> to vector<8x128xf32>
    %670 = arith.addf %668, %669 : vector<8x128xf32>
    %671 = math.cos %670 : vector<8x128xf32>
    %672 = arith.addf %665, %658 : vector<8x128xf32>
    %673 = arith.mulf %672, %439 : vector<8x128xf32>
    %cst_203 = arith.constant dense<0.000000e+00> : vector<8xf32>
    %674 = vector.multi_reduction <add>, %673, %cst_203 [1] : vector<8x128xf32> to vector<8xf32>
    %675 = vector.shape_cast %674 : vector<8xf32> to vector<8x1xf32>
    %cst_204 = arith.constant 0.176776692 : f32
    %676 = vector.broadcast %cst_204 : f32 to vector<8x1xf32>
    %677 = arith.mulf %675, %676 : vector<8x1xf32>
    %678 = arith.maximumf %559, %677 : vector<8x1xf32>
    %679 = arith.subf %559, %678 : vector<8x1xf32>
    %680 = math.exp %679 : vector<8x1xf32>
    %681 = arith.subf %677, %678 : vector<8x1xf32>
    %682 = math.exp %681 : vector<8x1xf32>
    %683 = vector.broadcast %680 : vector<8x1xf32> to vector<8x128xf32>
    %684 = arith.mulf %683, %561 : vector<8x128xf32>
    %685 = arith.addf %658, %671 : vector<8x128xf32>
    %686 = vector.broadcast %682 : vector<8x1xf32> to vector<8x128xf32>
    %687 = arith.mulf %686, %685 : vector<8x128xf32>
    %688 = arith.addf %684, %687 : vector<8x128xf32>
    %689 = arith.mulf %680, %560 : vector<8x1xf32>
    %690 = arith.addf %689, %682 : vector<8x1xf32>
    %cst_205 = arith.constant 0.000000e+00 : f32
    %691 = vector.broadcast %cst_205 : f32 to vector<8x128xf32>
    %c0_i32_206 = arith.constant 0 : i32
    %692 = arith.addi %437, %c0_i32_206 : i32
    %c2_207 = arith.constant 2 : index
    %693 = arith.index_cast %692 : i32 to index
    %694 = memref.load %arg2[%c2_207, %693] : memref<4x8xi32, #tpu.memory_space<smem>>
    %695 = arith.index_cast %694 : i32 to index
    %c0_208 = arith.constant 0 : index
    %696 = vector.load %arg22[%695, %c0_208] : memref<8x128xf32, #tpu.memory_space<vmem>>, vector<1x128xf32>
    %c0_i32_209 = arith.constant 0 : i32
    %697 = vector.broadcast %c0_i32_209 : i32 to vector<8x1xi32>
    %698 = arith.cmpi eq, %5, %697 : vector<8x1xi32>
    %699 = vector.shape_cast %696 : vector<1x128xf32> to vector<1x128xf32>
    %700 = vector.broadcast %699 : vector<1x128xf32> to vector<8x128xf32>
    %701 = vector.shape_cast %698 : vector<8x1xi1> to vector<8x1xi1>
    %702 = vector.broadcast %701 : vector<8x1xi1> to vector<8x128xi1>
    %703 = arith.select %702, %700, %691 : vector<8x128xi1>, vector<8x128xf32>
    %c1_i32_210 = arith.constant 1 : i32
    %704 = arith.addi %437, %c1_i32_210 : i32
    %c2_211 = arith.constant 2 : index
    %705 = arith.index_cast %704 : i32 to index
    %706 = memref.load %arg2[%c2_211, %705] : memref<4x8xi32, #tpu.memory_space<smem>>
    %707 = arith.index_cast %706 : i32 to index
    %c0_212 = arith.constant 0 : index
    %708 = vector.load %arg22[%707, %c0_212] : memref<8x128xf32, #tpu.memory_space<vmem>>, vector<1x128xf32>
    %c1_i32_213 = arith.constant 1 : i32
    %709 = vector.broadcast %c1_i32_213 : i32 to vector<8x1xi32>
    %710 = arith.cmpi eq, %5, %709 : vector<8x1xi32>
    %711 = vector.shape_cast %708 : vector<1x128xf32> to vector<1x128xf32>
    %712 = vector.broadcast %711 : vector<1x128xf32> to vector<8x128xf32>
    %713 = vector.shape_cast %710 : vector<8x1xi1> to vector<8x1xi1>
    %714 = vector.broadcast %713 : vector<8x1xi1> to vector<8x128xi1>
    %715 = arith.select %714, %712, %703 : vector<8x128xi1>, vector<8x128xf32>
    %c2_i32_214 = arith.constant 2 : i32
    %716 = arith.addi %437, %c2_i32_214 : i32
    %c2_215 = arith.constant 2 : index
    %717 = arith.index_cast %716 : i32 to index
    %718 = memref.load %arg2[%c2_215, %717] : memref<4x8xi32, #tpu.memory_space<smem>>
    %719 = arith.index_cast %718 : i32 to index
    %c0_216 = arith.constant 0 : index
    %720 = vector.load %arg22[%719, %c0_216] : memref<8x128xf32, #tpu.memory_space<vmem>>, vector<1x128xf32>
    %c2_i32_217 = arith.constant 2 : i32
    %721 = vector.broadcast %c2_i32_217 : i32 to vector<8x1xi32>
    %722 = arith.cmpi eq, %5, %721 : vector<8x1xi32>
    %723 = vector.shape_cast %720 : vector<1x128xf32> to vector<1x128xf32>
    %724 = vector.broadcast %723 : vector<1x128xf32> to vector<8x128xf32>
    %725 = vector.shape_cast %722 : vector<8x1xi1> to vector<8x1xi1>
    %726 = vector.broadcast %725 : vector<8x1xi1> to vector<8x128xi1>
    %727 = arith.select %726, %724, %715 : vector<8x128xi1>, vector<8x128xf32>
    %c3_i32_218 = arith.constant 3 : i32
    %728 = arith.addi %437, %c3_i32_218 : i32
    %c2_219 = arith.constant 2 : index
    %729 = arith.index_cast %728 : i32 to index
    %730 = memref.load %arg2[%c2_219, %729] : memref<4x8xi32, #tpu.memory_space<smem>>
    %731 = arith.index_cast %730 : i32 to index
    %c0_220 = arith.constant 0 : index
    %732 = vector.load %arg22[%731, %c0_220] : memref<8x128xf32, #tpu.memory_space<vmem>>, vector<1x128xf32>
    %c3_i32_221 = arith.constant 3 : i32
    %733 = vector.broadcast %c3_i32_221 : i32 to vector<8x1xi32>
    %734 = arith.cmpi eq, %5, %733 : vector<8x1xi32>
    %735 = vector.shape_cast %732 : vector<1x128xf32> to vector<1x128xf32>
    %736 = vector.broadcast %735 : vector<1x128xf32> to vector<8x128xf32>
    %737 = vector.shape_cast %734 : vector<8x1xi1> to vector<8x1xi1>
    %738 = vector.broadcast %737 : vector<8x1xi1> to vector<8x128xi1>
    %739 = arith.select %738, %736, %727 : vector<8x128xi1>, vector<8x128xf32>
    %c4_i32_222 = arith.constant 4 : i32
    %740 = arith.addi %437, %c4_i32_222 : i32
    %c2_223 = arith.constant 2 : index
    %741 = arith.index_cast %740 : i32 to index
    %742 = memref.load %arg2[%c2_223, %741] : memref<4x8xi32, #tpu.memory_space<smem>>
    %743 = arith.index_cast %742 : i32 to index
    %c0_224 = arith.constant 0 : index
    %744 = vector.load %arg22[%743, %c0_224] : memref<8x128xf32, #tpu.memory_space<vmem>>, vector<1x128xf32>
    %c4_i32_225 = arith.constant 4 : i32
    %745 = vector.broadcast %c4_i32_225 : i32 to vector<8x1xi32>
    %746 = arith.cmpi eq, %5, %745 : vector<8x1xi32>
    %747 = vector.shape_cast %744 : vector<1x128xf32> to vector<1x128xf32>
    %748 = vector.broadcast %747 : vector<1x128xf32> to vector<8x128xf32>
    %749 = vector.shape_cast %746 : vector<8x1xi1> to vector<8x1xi1>
    %750 = vector.broadcast %749 : vector<8x1xi1> to vector<8x128xi1>
    %751 = arith.select %750, %748, %739 : vector<8x128xi1>, vector<8x128xf32>
    %c5_i32_226 = arith.constant 5 : i32
    %752 = arith.addi %437, %c5_i32_226 : i32
    %c2_227 = arith.constant 2 : index
    %753 = arith.index_cast %752 : i32 to index
    %754 = memref.load %arg2[%c2_227, %753] : memref<4x8xi32, #tpu.memory_space<smem>>
    %755 = arith.index_cast %754 : i32 to index
    %c0_228 = arith.constant 0 : index
    %756 = vector.load %arg22[%755, %c0_228] : memref<8x128xf32, #tpu.memory_space<vmem>>, vector<1x128xf32>
    %c5_i32_229 = arith.constant 5 : i32
    %757 = vector.broadcast %c5_i32_229 : i32 to vector<8x1xi32>
    %758 = arith.cmpi eq, %5, %757 : vector<8x1xi32>
    %759 = vector.shape_cast %756 : vector<1x128xf32> to vector<1x128xf32>
    %760 = vector.broadcast %759 : vector<1x128xf32> to vector<8x128xf32>
    %761 = vector.shape_cast %758 : vector<8x1xi1> to vector<8x1xi1>
    %762 = vector.broadcast %761 : vector<8x1xi1> to vector<8x128xi1>
    %763 = arith.select %762, %760, %751 : vector<8x128xi1>, vector<8x128xf32>
    %c6_i32_230 = arith.constant 6 : i32
    %764 = arith.addi %437, %c6_i32_230 : i32
    %c2_231 = arith.constant 2 : index
    %765 = arith.index_cast %764 : i32 to index
    %766 = memref.load %arg2[%c2_231, %765] : memref<4x8xi32, #tpu.memory_space<smem>>
    %767 = arith.index_cast %766 : i32 to index
    %c0_232 = arith.constant 0 : index
    %768 = vector.load %arg22[%767, %c0_232] : memref<8x128xf32, #tpu.memory_space<vmem>>, vector<1x128xf32>
    %c6_i32_233 = arith.constant 6 : i32
    %769 = vector.broadcast %c6_i32_233 : i32 to vector<8x1xi32>
    %770 = arith.cmpi eq, %5, %769 : vector<8x1xi32>
    %771 = vector.shape_cast %768 : vector<1x128xf32> to vector<1x128xf32>
    %772 = vector.broadcast %771 : vector<1x128xf32> to vector<8x128xf32>
    %773 = vector.shape_cast %770 : vector<8x1xi1> to vector<8x1xi1>
    %774 = vector.broadcast %773 : vector<8x1xi1> to vector<8x128xi1>
    %775 = arith.select %774, %772, %763 : vector<8x128xi1>, vector<8x128xf32>
    %c7_i32_234 = arith.constant 7 : i32
    %776 = arith.addi %437, %c7_i32_234 : i32
    %c2_235 = arith.constant 2 : index
    %777 = arith.index_cast %776 : i32 to index
    %778 = memref.load %arg2[%c2_235, %777] : memref<4x8xi32, #tpu.memory_space<smem>>
    %779 = arith.index_cast %778 : i32 to index
    %c0_236 = arith.constant 0 : index
    %780 = vector.load %arg22[%779, %c0_236] : memref<8x128xf32, #tpu.memory_space<vmem>>, vector<1x128xf32>
    %c7_i32_237 = arith.constant 7 : i32
    %781 = vector.broadcast %c7_i32_237 : i32 to vector<8x1xi32>
    %782 = arith.cmpi eq, %5, %781 : vector<8x1xi32>
    %783 = vector.shape_cast %780 : vector<1x128xf32> to vector<1x128xf32>
    %784 = vector.broadcast %783 : vector<1x128xf32> to vector<8x128xf32>
    %785 = vector.shape_cast %782 : vector<8x1xi1> to vector<8x1xi1>
    %786 = vector.broadcast %785 : vector<8x1xi1> to vector<8x128xi1>
    %787 = arith.select %786, %784, %775 : vector<8x128xi1>, vector<8x128xf32>
    %788 = vector.extract_strided_slice %443 {offsets = [0, 2], sizes = [8, 1], strides = [1, 1]} : vector<8x4xf32> to vector<8x1xf32>
    %789 = vector.broadcast %788 : vector<8x1xf32> to vector<8x128xf32>
    %790 = vector.broadcast %432 : vector<1x128xf32> to vector<8x128xf32>
    %791 = arith.mulf %789, %790 : vector<8x128xf32>
    %792 = vector.broadcast %433 : vector<1x128xf32> to vector<8x128xf32>
    %793 = arith.addf %791, %792 : vector<8x128xf32>
    %794 = math.cos %793 : vector<8x128xf32>
    %795 = vector.broadcast %788 : vector<8x1xf32> to vector<8x128xf32>
    %796 = vector.broadcast %434 : vector<1x128xf32> to vector<8x128xf32>
    %797 = arith.mulf %795, %796 : vector<8x128xf32>
    %798 = vector.broadcast %435 : vector<1x128xf32> to vector<8x128xf32>
    %799 = arith.addf %797, %798 : vector<8x128xf32>
    %800 = math.cos %799 : vector<8x128xf32>
    %801 = arith.addf %794, %787 : vector<8x128xf32>
    %802 = arith.mulf %801, %439 : vector<8x128xf32>
    %cst_238 = arith.constant dense<0.000000e+00> : vector<8xf32>
    %803 = vector.multi_reduction <add>, %802, %cst_238 [1] : vector<8x128xf32> to vector<8xf32>
    %804 = vector.shape_cast %803 : vector<8xf32> to vector<8x1xf32>
    %cst_239 = arith.constant 0.176776692 : f32
    %805 = vector.broadcast %cst_239 : f32 to vector<8x1xf32>
    %806 = arith.mulf %804, %805 : vector<8x1xf32>
    %807 = arith.maximumf %678, %806 : vector<8x1xf32>
    %808 = arith.subf %678, %807 : vector<8x1xf32>
    %809 = math.exp %808 : vector<8x1xf32>
    %810 = arith.subf %806, %807 : vector<8x1xf32>
    %811 = math.exp %810 : vector<8x1xf32>
    %812 = vector.broadcast %809 : vector<8x1xf32> to vector<8x128xf32>
    %813 = arith.mulf %812, %688 : vector<8x128xf32>
    %814 = arith.addf %787, %800 : vector<8x128xf32>
    %815 = vector.broadcast %811 : vector<8x1xf32> to vector<8x128xf32>
    %816 = arith.mulf %815, %814 : vector<8x128xf32>
    %817 = arith.addf %813, %816 : vector<8x128xf32>
    %818 = arith.mulf %809, %690 : vector<8x1xf32>
    %819 = arith.addf %818, %811 : vector<8x1xf32>
    %cst_240 = arith.constant 0.000000e+00 : f32
    %820 = vector.broadcast %cst_240 : f32 to vector<8x128xf32>
    %c0_i32_241 = arith.constant 0 : i32
    %821 = arith.addi %437, %c0_i32_241 : i32
    %c3 = arith.constant 3 : index
    %822 = arith.index_cast %821 : i32 to index
    %823 = memref.load %arg2[%c3, %822] : memref<4x8xi32, #tpu.memory_space<smem>>
    %824 = arith.index_cast %823 : i32 to index
    %c0_242 = arith.constant 0 : index
    %825 = vector.load %arg22[%824, %c0_242] : memref<8x128xf32, #tpu.memory_space<vmem>>, vector<1x128xf32>
    %c0_i32_243 = arith.constant 0 : i32
    %826 = vector.broadcast %c0_i32_243 : i32 to vector<8x1xi32>
    %827 = arith.cmpi eq, %5, %826 : vector<8x1xi32>
    %828 = vector.shape_cast %825 : vector<1x128xf32> to vector<1x128xf32>
    %829 = vector.broadcast %828 : vector<1x128xf32> to vector<8x128xf32>
    %830 = vector.shape_cast %827 : vector<8x1xi1> to vector<8x1xi1>
    %831 = vector.broadcast %830 : vector<8x1xi1> to vector<8x128xi1>
    %832 = arith.select %831, %829, %820 : vector<8x128xi1>, vector<8x128xf32>
    %c1_i32_244 = arith.constant 1 : i32
    %833 = arith.addi %437, %c1_i32_244 : i32
    %c3_245 = arith.constant 3 : index
    %834 = arith.index_cast %833 : i32 to index
    %835 = memref.load %arg2[%c3_245, %834] : memref<4x8xi32, #tpu.memory_space<smem>>
    %836 = arith.index_cast %835 : i32 to index
    %c0_246 = arith.constant 0 : index
    %837 = vector.load %arg22[%836, %c0_246] : memref<8x128xf32, #tpu.memory_space<vmem>>, vector<1x128xf32>
    %c1_i32_247 = arith.constant 1 : i32
    %838 = vector.broadcast %c1_i32_247 : i32 to vector<8x1xi32>
    %839 = arith.cmpi eq, %5, %838 : vector<8x1xi32>
    %840 = vector.shape_cast %837 : vector<1x128xf32> to vector<1x128xf32>
    %841 = vector.broadcast %840 : vector<1x128xf32> to vector<8x128xf32>
    %842 = vector.shape_cast %839 : vector<8x1xi1> to vector<8x1xi1>
    %843 = vector.broadcast %842 : vector<8x1xi1> to vector<8x128xi1>
    %844 = arith.select %843, %841, %832 : vector<8x128xi1>, vector<8x128xf32>
    %c2_i32_248 = arith.constant 2 : i32
    %845 = arith.addi %437, %c2_i32_248 : i32
    %c3_249 = arith.constant 3 : index
    %846 = arith.index_cast %845 : i32 to index
    %847 = memref.load %arg2[%c3_249, %846] : memref<4x8xi32, #tpu.memory_space<smem>>
    %848 = arith.index_cast %847 : i32 to index
    %c0_250 = arith.constant 0 : index
    %849 = vector.load %arg22[%848, %c0_250] : memref<8x128xf32, #tpu.memory_space<vmem>>, vector<1x128xf32>
    %c2_i32_251 = arith.constant 2 : i32
    %850 = vector.broadcast %c2_i32_251 : i32 to vector<8x1xi32>
    %851 = arith.cmpi eq, %5, %850 : vector<8x1xi32>
    %852 = vector.shape_cast %849 : vector<1x128xf32> to vector<1x128xf32>
    %853 = vector.broadcast %852 : vector<1x128xf32> to vector<8x128xf32>
    %854 = vector.shape_cast %851 : vector<8x1xi1> to vector<8x1xi1>
    %855 = vector.broadcast %854 : vector<8x1xi1> to vector<8x128xi1>
    %856 = arith.select %855, %853, %844 : vector<8x128xi1>, vector<8x128xf32>
    %c3_i32_252 = arith.constant 3 : i32
    %857 = arith.addi %437, %c3_i32_252 : i32
    %c3_253 = arith.constant 3 : index
    %858 = arith.index_cast %857 : i32 to index
    %859 = memref.load %arg2[%c3_253, %858] : memref<4x8xi32, #tpu.memory_space<smem>>
    %860 = arith.index_cast %859 : i32 to index
    %c0_254 = arith.constant 0 : index
    %861 = vector.load %arg22[%860, %c0_254] : memref<8x128xf32, #tpu.memory_space<vmem>>, vector<1x128xf32>
    %c3_i32_255 = arith.constant 3 : i32
    %862 = vector.broadcast %c3_i32_255 : i32 to vector<8x1xi32>
    %863 = arith.cmpi eq, %5, %862 : vector<8x1xi32>
    %864 = vector.shape_cast %861 : vector<1x128xf32> to vector<1x128xf32>
    %865 = vector.broadcast %864 : vector<1x128xf32> to vector<8x128xf32>
    %866 = vector.shape_cast %863 : vector<8x1xi1> to vector<8x1xi1>
    %867 = vector.broadcast %866 : vector<8x1xi1> to vector<8x128xi1>
    %868 = arith.select %867, %865, %856 : vector<8x128xi1>, vector<8x128xf32>
    %c4_i32_256 = arith.constant 4 : i32
    %869 = arith.addi %437, %c4_i32_256 : i32
    %c3_257 = arith.constant 3 : index
    %870 = arith.index_cast %869 : i32 to index
    %871 = memref.load %arg2[%c3_257, %870] : memref<4x8xi32, #tpu.memory_space<smem>>
    %872 = arith.index_cast %871 : i32 to index
    %c0_258 = arith.constant 0 : index
    %873 = vector.load %arg22[%872, %c0_258] : memref<8x128xf32, #tpu.memory_space<vmem>>, vector<1x128xf32>
    %c4_i32_259 = arith.constant 4 : i32
    %874 = vector.broadcast %c4_i32_259 : i32 to vector<8x1xi32>
    %875 = arith.cmpi eq, %5, %874 : vector<8x1xi32>
    %876 = vector.shape_cast %873 : vector<1x128xf32> to vector<1x128xf32>
    %877 = vector.broadcast %876 : vector<1x128xf32> to vector<8x128xf32>
    %878 = vector.shape_cast %875 : vector<8x1xi1> to vector<8x1xi1>
    %879 = vector.broadcast %878 : vector<8x1xi1> to vector<8x128xi1>
    %880 = arith.select %879, %877, %868 : vector<8x128xi1>, vector<8x128xf32>
    %c5_i32_260 = arith.constant 5 : i32
    %881 = arith.addi %437, %c5_i32_260 : i32
    %c3_261 = arith.constant 3 : index
    %882 = arith.index_cast %881 : i32 to index
    %883 = memref.load %arg2[%c3_261, %882] : memref<4x8xi32, #tpu.memory_space<smem>>
    %884 = arith.index_cast %883 : i32 to index
    %c0_262 = arith.constant 0 : index
    %885 = vector.load %arg22[%884, %c0_262] : memref<8x128xf32, #tpu.memory_space<vmem>>, vector<1x128xf32>
    %c5_i32_263 = arith.constant 5 : i32
    %886 = vector.broadcast %c5_i32_263 : i32 to vector<8x1xi32>
    %887 = arith.cmpi eq, %5, %886 : vector<8x1xi32>
    %888 = vector.shape_cast %885 : vector<1x128xf32> to vector<1x128xf32>
    %889 = vector.broadcast %888 : vector<1x128xf32> to vector<8x128xf32>
    %890 = vector.shape_cast %887 : vector<8x1xi1> to vector<8x1xi1>
    %891 = vector.broadcast %890 : vector<8x1xi1> to vector<8x128xi1>
    %892 = arith.select %891, %889, %880 : vector<8x128xi1>, vector<8x128xf32>
    %c6_i32_264 = arith.constant 6 : i32
    %893 = arith.addi %437, %c6_i32_264 : i32
    %c3_265 = arith.constant 3 : index
    %894 = arith.index_cast %893 : i32 to index
    %895 = memref.load %arg2[%c3_265, %894] : memref<4x8xi32, #tpu.memory_space<smem>>
    %896 = arith.index_cast %895 : i32 to index
    %c0_266 = arith.constant 0 : index
    %897 = vector.load %arg22[%896, %c0_266] : memref<8x128xf32, #tpu.memory_space<vmem>>, vector<1x128xf32>
    %c6_i32_267 = arith.constant 6 : i32
    %898 = vector.broadcast %c6_i32_267 : i32 to vector<8x1xi32>
    %899 = arith.cmpi eq, %5, %898 : vector<8x1xi32>
    %900 = vector.shape_cast %897 : vector<1x128xf32> to vector<1x128xf32>
    %901 = vector.broadcast %900 : vector<1x128xf32> to vector<8x128xf32>
    %902 = vector.shape_cast %899 : vector<8x1xi1> to vector<8x1xi1>
    %903 = vector.broadcast %902 : vector<8x1xi1> to vector<8x128xi1>
    %904 = arith.select %903, %901, %892 : vector<8x128xi1>, vector<8x128xf32>
    %c7_i32_268 = arith.constant 7 : i32
    %905 = arith.addi %437, %c7_i32_268 : i32
    %c3_269 = arith.constant 3 : index
    %906 = arith.index_cast %905 : i32 to index
    %907 = memref.load %arg2[%c3_269, %906] : memref<4x8xi32, #tpu.memory_space<smem>>
    %908 = arith.index_cast %907 : i32 to index
    %c0_270 = arith.constant 0 : index
    %909 = vector.load %arg22[%908, %c0_270] : memref<8x128xf32, #tpu.memory_space<vmem>>, vector<1x128xf32>
    %c7_i32_271 = arith.constant 7 : i32
    %910 = vector.broadcast %c7_i32_271 : i32 to vector<8x1xi32>
    %911 = arith.cmpi eq, %5, %910 : vector<8x1xi32>
    %912 = vector.shape_cast %909 : vector<1x128xf32> to vector<1x128xf32>
    %913 = vector.broadcast %912 : vector<1x128xf32> to vector<8x128xf32>
    %914 = vector.shape_cast %911 : vector<8x1xi1> to vector<8x1xi1>
    %915 = vector.broadcast %914 : vector<8x1xi1> to vector<8x128xi1>
    %916 = arith.select %915, %913, %904 : vector<8x128xi1>, vector<8x128xf32>
    %917 = vector.extract_strided_slice %443 {offsets = [0, 3], sizes = [8, 1], strides = [1, 1]} : vector<8x4xf32> to vector<8x1xf32>
    %918 = vector.broadcast %917 : vector<8x1xf32> to vector<8x128xf32>
    %919 = vector.broadcast %432 : vector<1x128xf32> to vector<8x128xf32>
    %920 = arith.mulf %918, %919 : vector<8x128xf32>
    %921 = vector.broadcast %433 : vector<1x128xf32> to vector<8x128xf32>
    %922 = arith.addf %920, %921 : vector<8x128xf32>
    %923 = math.cos %922 : vector<8x128xf32>
    %924 = vector.broadcast %917 : vector<8x1xf32> to vector<8x128xf32>
    %925 = vector.broadcast %434 : vector<1x128xf32> to vector<8x128xf32>
    %926 = arith.mulf %924, %925 : vector<8x128xf32>
    %927 = vector.broadcast %435 : vector<1x128xf32> to vector<8x128xf32>
    %928 = arith.addf %926, %927 : vector<8x128xf32>
    %929 = math.cos %928 : vector<8x128xf32>
    %930 = arith.addf %923, %916 : vector<8x128xf32>
    %931 = arith.mulf %930, %439 : vector<8x128xf32>
    %cst_272 = arith.constant dense<0.000000e+00> : vector<8xf32>
    %932 = vector.multi_reduction <add>, %931, %cst_272 [1] : vector<8x128xf32> to vector<8xf32>
    %933 = vector.shape_cast %932 : vector<8xf32> to vector<8x1xf32>
    %cst_273 = arith.constant 0.176776692 : f32
    %934 = vector.broadcast %cst_273 : f32 to vector<8x1xf32>
    %935 = arith.mulf %933, %934 : vector<8x1xf32>
    %936 = arith.maximumf %807, %935 : vector<8x1xf32>
    %937 = arith.subf %807, %936 : vector<8x1xf32>
    %938 = math.exp %937 : vector<8x1xf32>
    %939 = arith.subf %935, %936 : vector<8x1xf32>
    %940 = math.exp %939 : vector<8x1xf32>
    %941 = vector.broadcast %938 : vector<8x1xf32> to vector<8x128xf32>
    %942 = arith.mulf %941, %817 : vector<8x128xf32>
    %943 = arith.addf %916, %929 : vector<8x128xf32>
    %944 = vector.broadcast %940 : vector<8x1xf32> to vector<8x128xf32>
    %945 = arith.mulf %944, %943 : vector<8x128xf32>
    %946 = arith.addf %942, %945 : vector<8x128xf32>
    %947 = arith.mulf %938, %819 : vector<8x1xf32>
    %948 = arith.addf %947, %940 : vector<8x1xf32>
    %949 = tpu.reciprocal %948 {approx = true} : vector<8x1xf32> -> vector<8x1xf32>
    %950 = vector.broadcast %949 : vector<8x1xf32> to vector<8x128xf32>
    %951 = arith.mulf %946, %950 : vector<8x128xf32>
    %952 = vector.broadcast %4 : vector<1x128xf32> to vector<8x128xf32>
    %953 = arith.mulf %951, %952 : vector<8x128xf32>
    %954 = arith.truncf %953 : vector<8x128xf32> to vector<8x128xbf16>
    %c0_274 = arith.constant 0 : index
    %c0_275 = arith.constant 0 : index
    %c0_276 = arith.constant 0 : index
    %955 = vector.load %arg12[%c0_274, %c0_275, %c0_276] : memref<1x256x128xbf16, #tpu.memory_space<vmem>>, vector<1x128x128xbf16>
    %956 = vector.shape_cast %955 : vector<1x128x128xbf16> to vector<128x128xbf16>
    %cst_277 = arith.constant dense<0.000000e+00> : vector<8x128xf32>
    %957 = tpu.matmul %954, %956, %cst_277 {dimension_numbers = #tpu.dot_dimension_numbers<[1], [0], [0], [1], [0, 0, 1, 1], [], []>} : vector<8x128xbf16>, vector<128x128xbf16>, vector<8x128xf32> -> vector<8x128xf32>
    %958 = arith.truncf %441 : vector<8x128xf32> to vector<8x128xbf16>
    %c0_278 = arith.constant 0 : index
    %c128_279 = arith.constant 128 : index
    %c0_280 = arith.constant 0 : index
    %959 = vector.load %arg12[%c0_278, %c128_279, %c0_280] : memref<1x256x128xbf16, #tpu.memory_space<vmem>>, vector<1x128x128xbf16>
    %960 = vector.shape_cast %959 : vector<1x128x128xbf16> to vector<128x128xbf16>
    %cst_281 = arith.constant dense<0.000000e+00> : vector<8x128xf32>
    %961 = tpu.matmul %958, %960, %cst_281 {dimension_numbers = #tpu.dot_dimension_numbers<[1], [0], [0], [1], [0, 0, 1, 1], [], []>} : vector<8x128xbf16>, vector<128x128xbf16>, vector<8x128xf32> -> vector<8x128xf32>
    %962 = arith.addf %957, %961 : vector<8x128xf32>
    %cst_282 = arith.constant 0.000000e+00 : f32
    %963 = vector.broadcast %cst_282 : f32 to vector<8x128xf32>
    %964 = arith.cmpf ogt, %962, %963 : vector<8x128xf32>
    %965 = math.exp %962 : vector<8x128xf32>
    %cst_283 = arith.constant 1.000000e+00 : f32
    %966 = vector.broadcast %cst_283 : f32 to vector<8x128xf32>
    %967 = arith.subf %965, %966 : vector<8x128xf32>
    %968 = arith.select %964, %962, %967 : vector<8x128xi1>, vector<8x128xf32>
    %969 = arith.index_cast %437 : i32 to index
    %c0_284 = arith.constant 0 : index
    %970 = vector.load %arg19[%969, %c0_284] : memref<8x128xf32, #tpu.memory_space<vmem>>, vector<8x128xf32>
    tpu.vector_store %arg19[%969, %c0_284], %968 {strides = array<i32>} : memref<8x128xf32, #tpu.memory_space<vmem>>, vector<8x128xf32>,
    %c1_i32_285 = arith.constant 1 : i32
    %cst_286 = arith.constant 0.000000e+00 : f32
    %971 = vector.broadcast %cst_286 : f32 to vector<8x128xf32>
    %c0_287 = arith.constant 0 : index
    %972 = memref.load %arg3[%c0_287] : memref<8xi32, #tpu.memory_space<smem>>
    %973 = arith.index_cast %972 : i32 to index
    %c0_288 = arith.constant 0 : index
    %974 = vector.load %arg19[%973, %c0_288] : memref<8x128xf32, #tpu.memory_space<vmem>>, vector<1x128xf32>
    %c0_i32_289 = arith.constant 0 : i32
    %975 = vector.broadcast %c0_i32_289 : i32 to vector<8x1xi32>
    %976 = arith.cmpi eq, %5, %975 : vector<8x1xi32>
    %977 = vector.shape_cast %974 : vector<1x128xf32> to vector<1x128xf32>
    %978 = vector.broadcast %977 : vector<1x128xf32> to vector<8x128xf32>
    %979 = vector.shape_cast %976 : vector<8x1xi1> to vector<8x1xi1>
    %980 = vector.broadcast %979 : vector<8x1xi1> to vector<8x128xi1>
    %981 = arith.select %980, %978, %971 : vector<8x128xi1>, vector<8x128xf32>
    %c1_290 = arith.constant 1 : index
    %982 = memref.load %arg3[%c1_290] : memref<8xi32, #tpu.memory_space<smem>>
    %983 = arith.index_cast %982 : i32 to index
    %c0_291 = arith.constant 0 : index
    %984 = vector.load %arg19[%983, %c0_291] : memref<8x128xf32, #tpu.memory_space<vmem>>, vector<1x128xf32>
    %c1_i32_292 = arith.constant 1 : i32
    %985 = vector.broadcast %c1_i32_292 : i32 to vector<8x1xi32>
    %986 = arith.cmpi eq, %5, %985 : vector<8x1xi32>
    %987 = vector.shape_cast %984 : vector<1x128xf32> to vector<1x128xf32>
    %988 = vector.broadcast %987 : vector<1x128xf32> to vector<8x128xf32>
    %989 = vector.shape_cast %986 : vector<8x1xi1> to vector<8x1xi1>
    %990 = vector.broadcast %989 : vector<8x1xi1> to vector<8x128xi1>
    %991 = arith.select %990, %988, %981 : vector<8x128xi1>, vector<8x128xf32>
    %c2_293 = arith.constant 2 : index
    %992 = memref.load %arg3[%c2_293] : memref<8xi32, #tpu.memory_space<smem>>
    %993 = arith.index_cast %992 : i32 to index
    %c0_294 = arith.constant 0 : index
    %994 = vector.load %arg19[%993, %c0_294] : memref<8x128xf32, #tpu.memory_space<vmem>>, vector<1x128xf32>
    %c2_i32_295 = arith.constant 2 : i32
    %995 = vector.broadcast %c2_i32_295 : i32 to vector<8x1xi32>
    %996 = arith.cmpi eq, %5, %995 : vector<8x1xi32>
    %997 = vector.shape_cast %994 : vector<1x128xf32> to vector<1x128xf32>
    %998 = vector.broadcast %997 : vector<1x128xf32> to vector<8x128xf32>
    %999 = vector.shape_cast %996 : vector<8x1xi1> to vector<8x1xi1>
    %1000 = vector.broadcast %999 : vector<8x1xi1> to vector<8x128xi1>
    %1001 = arith.select %1000, %998, %991 : vector<8x128xi1>, vector<8x128xf32>
    %c3_296 = arith.constant 3 : index
    %1002 = memref.load %arg3[%c3_296] : memref<8xi32, #tpu.memory_space<smem>>
    %1003 = arith.index_cast %1002 : i32 to index
    %c0_297 = arith.constant 0 : index
    %1004 = vector.load %arg19[%1003, %c0_297] : memref<8x128xf32, #tpu.memory_space<vmem>>, vector<1x128xf32>
    %c3_i32_298 = arith.constant 3 : i32
    %1005 = vector.broadcast %c3_i32_298 : i32 to vector<8x1xi32>
    %1006 = arith.cmpi eq, %5, %1005 : vector<8x1xi32>
    %1007 = vector.shape_cast %1004 : vector<1x128xf32> to vector<1x128xf32>
    %1008 = vector.broadcast %1007 : vector<1x128xf32> to vector<8x128xf32>
    %1009 = vector.shape_cast %1006 : vector<8x1xi1> to vector<8x1xi1>
    %1010 = vector.broadcast %1009 : vector<8x1xi1> to vector<8x128xi1>
    %1011 = arith.select %1010, %1008, %1001 : vector<8x128xi1>, vector<8x128xf32>
    %c4 = arith.constant 4 : index
    %1012 = memref.load %arg3[%c4] : memref<8xi32, #tpu.memory_space<smem>>
    %1013 = arith.index_cast %1012 : i32 to index
    %c0_299 = arith.constant 0 : index
    %1014 = vector.load %arg19[%1013, %c0_299] : memref<8x128xf32, #tpu.memory_space<vmem>>, vector<1x128xf32>
    %c4_i32_300 = arith.constant 4 : i32
    %1015 = vector.broadcast %c4_i32_300 : i32 to vector<8x1xi32>
    %1016 = arith.cmpi eq, %5, %1015 : vector<8x1xi32>
    %1017 = vector.shape_cast %1014 : vector<1x128xf32> to vector<1x128xf32>
    %1018 = vector.broadcast %1017 : vector<1x128xf32> to vector<8x128xf32>
    %1019 = vector.shape_cast %1016 : vector<8x1xi1> to vector<8x1xi1>
    %1020 = vector.broadcast %1019 : vector<8x1xi1> to vector<8x128xi1>
    %1021 = arith.select %1020, %1018, %1011 : vector<8x128xi1>, vector<8x128xf32>
    %c5 = arith.constant 5 : index
    %1022 = memref.load %arg3[%c5] : memref<8xi32, #tpu.memory_space<smem>>
    %1023 = arith.index_cast %1022 : i32 to index
    %c0_301 = arith.constant 0 : index
    %1024 = vector.load %arg19[%1023, %c0_301] : memref<8x128xf32, #tpu.memory_space<vmem>>, vector<1x128xf32>
    %c5_i32_302 = arith.constant 5 : i32
    %1025 = vector.broadcast %c5_i32_302 : i32 to vector<8x1xi32>
    %1026 = arith.cmpi eq, %5, %1025 : vector<8x1xi32>
    %1027 = vector.shape_cast %1024 : vector<1x128xf32> to vector<1x128xf32>
    %1028 = vector.broadcast %1027 : vector<1x128xf32> to vector<8x128xf32>
    %1029 = vector.shape_cast %1026 : vector<8x1xi1> to vector<8x1xi1>
    %1030 = vector.broadcast %1029 : vector<8x1xi1> to vector<8x128xi1>
    %1031 = arith.select %1030, %1028, %1021 : vector<8x128xi1>, vector<8x128xf32>
    %c6 = arith.constant 6 : index
    %1032 = memref.load %arg3[%c6] : memref<8xi32, #tpu.memory_space<smem>>
    %1033 = arith.index_cast %1032 : i32 to index
    %c0_303 = arith.constant 0 : index
    %1034 = vector.load %arg19[%1033, %c0_303] : memref<8x128xf32, #tpu.memory_space<vmem>>, vector<1x128xf32>
    %c6_i32_304 = arith.constant 6 : i32
    %1035 = vector.broadcast %c6_i32_304 : i32 to vector<8x1xi32>
    %1036 = arith.cmpi eq, %5, %1035 : vector<8x1xi32>
    %1037 = vector.shape_cast %1034 : vector<1x128xf32> to vector<1x128xf32>
    %1038 = vector.broadcast %1037 : vector<1x128xf32> to vector<8x128xf32>
    %1039 = vector.shape_cast %1036 : vector<8x1xi1> to vector<8x1xi1>
    %1040 = vector.broadcast %1039 : vector<8x1xi1> to vector<8x128xi1>
    %1041 = arith.select %1040, %1038, %1031 : vector<8x128xi1>, vector<8x128xf32>
    %c7 = arith.constant 7 : index
    %1042 = memref.load %arg3[%c7] : memref<8xi32, #tpu.memory_space<smem>>
    %1043 = arith.index_cast %1042 : i32 to index
    %c0_305 = arith.constant 0 : index
    %1044 = vector.load %arg19[%1043, %c0_305] : memref<8x128xf32, #tpu.memory_space<vmem>>, vector<1x128xf32>
    %c7_i32_306 = arith.constant 7 : i32
    %1045 = vector.broadcast %c7_i32_306 : i32 to vector<8x1xi32>
    %1046 = arith.cmpi eq, %5, %1045 : vector<8x1xi32>
    %1047 = vector.shape_cast %1044 : vector<1x128xf32> to vector<1x128xf32>
    %1048 = vector.broadcast %1047 : vector<1x128xf32> to vector<8x128xf32>
    %1049 = vector.shape_cast %1046 : vector<8x1xi1> to vector<8x1xi1>
    %1050 = vector.broadcast %1049 : vector<8x1xi1> to vector<8x128xi1>
    %1051 = arith.select %1050, %1048, %1041 : vector<8x128xi1>, vector<8x128xf32>
    %c0_307 = arith.constant 0 : index
    %c0_308 = arith.constant 0 : index
    %1052 = vector.load %arg23[%c0_307, %c0_308] : memref<8x128xf32, #tpu.memory_space<vmem>>, vector<8x128xf32>
    tpu.vector_store %arg23[%c0_307, %c0_308], %1051 {strides = array<i32>} : memref<8x128xf32, #tpu.memory_space<vmem>>, vector<8x128xf32>,
    %c0_309 = arith.constant 0 : index
    %c0_310 = arith.constant 0 : index
    %1053 = vector.load %arg24[%c0_309, %c0_310] : memref<8x128xf32, #tpu.memory_space<vmem>>, vector<8x128xf32>
    %c0_311 = arith.constant 0 : index
    %c0_312 = arith.constant 0 : index
    %1054 = vector.load %arg23[%c0_311, %c0_312] : memref<8x128xf32, #tpu.memory_space<vmem>>, vector<8x128xf32>
    %1055 = arith.truncf %1054 : vector<8x128xf32> to vector<8x128xbf16>
    %c0_313 = arith.constant 0 : index
    %c0_314 = arith.constant 0 : index
    %c0_315 = arith.constant 0 : index
    %1056 = vector.load %arg14[%c0_313, %c0_314, %c0_315] : memref<1x128x128xbf16, #tpu.memory_space<vmem>>, vector<1x128x128xbf16>
    %1057 = vector.shape_cast %1056 : vector<1x128x128xbf16> to vector<128x128xbf16>
    %cst_316 = arith.constant dense<0.000000e+00> : vector<8x128xf32>
    %1058 = tpu.matmul %1055, %1057, %cst_316 {dimension_numbers = #tpu.dot_dimension_numbers<[1], [0], [0], [1], [0, 0, 1, 1], [], []>} : vector<8x128xbf16>, vector<128x128xbf16>, vector<8x128xf32> -> vector<8x128xf32>
    %1059 = arith.addf %1053, %1058 : vector<8x128xf32>
    %c0_317 = arith.constant 0 : index
    %c0_318 = arith.constant 0 : index
    %1060 = vector.load %arg24[%c0_317, %c0_318] : memref<8x128xf32, #tpu.memory_space<vmem>>, vector<8x128xf32>
    tpu.vector_store %arg24[%c0_317, %c0_318], %1059 {strides = array<i32>} : memref<8x128xf32, #tpu.memory_space<vmem>>, vector<8x128xf32>,
    %c2_i32_319 = arith.constant 2 : i32
    %1061 = arith.cmpi eq, %arg0, %c2_i32_319 : i32
    %1062 = arith.extui %1061 : i1 to i32
    %c0_i32_320 = arith.constant 0 : i32
    %1063 = arith.cmpi ne, %1062, %c0_i32_320 : i32
    scf.if %1063 {
      %cst_321 = arith.constant 0.000000e+00 : f32
      %1064 = vector.broadcast %cst_321 : f32 to vector<8x128xf32>
      %c0_322 = arith.constant 0 : index
      %1065 = memref.load %arg4[%c0_322] : memref<8xi32, #tpu.memory_space<smem>>
      %1066 = arith.index_cast %1065 : i32 to index
      %c0_323 = arith.constant 0 : index
      %1067 = vector.load %arg20[%1066, %c0_323] : memref<8x128xf32, #tpu.memory_space<vmem>>, vector<1x128xf32>
      %c0_i32_324 = arith.constant 0 : i32
      %1068 = vector.broadcast %c0_i32_324 : i32 to vector<8x1xi32>
      %1069 = arith.cmpi eq, %5, %1068 : vector<8x1xi32>
      %1070 = vector.shape_cast %1067 : vector<1x128xf32> to vector<1x128xf32>
      %1071 = vector.broadcast %1070 : vector<1x128xf32> to vector<8x128xf32>
      %1072 = vector.shape_cast %1069 : vector<8x1xi1> to vector<8x1xi1>
      %1073 = vector.broadcast %1072 : vector<8x1xi1> to vector<8x128xi1>
      %1074 = arith.select %1073, %1071, %1064 : vector<8x128xi1>, vector<8x128xf32>
      %c1_325 = arith.constant 1 : index
      %1075 = memref.load %arg4[%c1_325] : memref<8xi32, #tpu.memory_space<smem>>
      %1076 = arith.index_cast %1075 : i32 to index
      %c0_326 = arith.constant 0 : index
      %1077 = vector.load %arg20[%1076, %c0_326] : memref<8x128xf32, #tpu.memory_space<vmem>>, vector<1x128xf32>
      %c1_i32_327 = arith.constant 1 : i32
      %1078 = vector.broadcast %c1_i32_327 : i32 to vector<8x1xi32>
      %1079 = arith.cmpi eq, %5, %1078 : vector<8x1xi32>
      %1080 = vector.shape_cast %1077 : vector<1x128xf32> to vector<1x128xf32>
      %1081 = vector.broadcast %1080 : vector<1x128xf32> to vector<8x128xf32>
      %1082 = vector.shape_cast %1079 : vector<8x1xi1> to vector<8x1xi1>
      %1083 = vector.broadcast %1082 : vector<8x1xi1> to vector<8x128xi1>
      %1084 = arith.select %1083, %1081, %1074 : vector<8x128xi1>, vector<8x128xf32>
      %c2_328 = arith.constant 2 : index
      %1085 = memref.load %arg4[%c2_328] : memref<8xi32, #tpu.memory_space<smem>>
      %1086 = arith.index_cast %1085 : i32 to index
      %c0_329 = arith.constant 0 : index
      %1087 = vector.load %arg20[%1086, %c0_329] : memref<8x128xf32, #tpu.memory_space<vmem>>, vector<1x128xf32>
      %c2_i32_330 = arith.constant 2 : i32
      %1088 = vector.broadcast %c2_i32_330 : i32 to vector<8x1xi32>
      %1089 = arith.cmpi eq, %5, %1088 : vector<8x1xi32>
      %1090 = vector.shape_cast %1087 : vector<1x128xf32> to vector<1x128xf32>
      %1091 = vector.broadcast %1090 : vector<1x128xf32> to vector<8x128xf32>
      %1092 = vector.shape_cast %1089 : vector<8x1xi1> to vector<8x1xi1>
      %1093 = vector.broadcast %1092 : vector<8x1xi1> to vector<8x128xi1>
      %1094 = arith.select %1093, %1091, %1084 : vector<8x128xi1>, vector<8x128xf32>
      %c3_331 = arith.constant 3 : index
      %1095 = memref.load %arg4[%c3_331] : memref<8xi32, #tpu.memory_space<smem>>
      %1096 = arith.index_cast %1095 : i32 to index
      %c0_332 = arith.constant 0 : index
      %1097 = vector.load %arg20[%1096, %c0_332] : memref<8x128xf32, #tpu.memory_space<vmem>>, vector<1x128xf32>
      %c3_i32_333 = arith.constant 3 : i32
      %1098 = vector.broadcast %c3_i32_333 : i32 to vector<8x1xi32>
      %1099 = arith.cmpi eq, %5, %1098 : vector<8x1xi32>
      %1100 = vector.shape_cast %1097 : vector<1x128xf32> to vector<1x128xf32>
      %1101 = vector.broadcast %1100 : vector<1x128xf32> to vector<8x128xf32>
      %1102 = vector.shape_cast %1099 : vector<8x1xi1> to vector<8x1xi1>
      %1103 = vector.broadcast %1102 : vector<8x1xi1> to vector<8x128xi1>
      %1104 = arith.select %1103, %1101, %1094 : vector<8x128xi1>, vector<8x128xf32>
      %c4_334 = arith.constant 4 : index
      %1105 = memref.load %arg4[%c4_334] : memref<8xi32, #tpu.memory_space<smem>>
      %1106 = arith.index_cast %1105 : i32 to index
      %c0_335 = arith.constant 0 : index
      %1107 = vector.load %arg20[%1106, %c0_335] : memref<8x128xf32, #tpu.memory_space<vmem>>, vector<1x128xf32>
      %c4_i32_336 = arith.constant 4 : i32
      %1108 = vector.broadcast %c4_i32_336 : i32 to vector<8x1xi32>
      %1109 = arith.cmpi eq, %5, %1108 : vector<8x1xi32>
      %1110 = vector.shape_cast %1107 : vector<1x128xf32> to vector<1x128xf32>
      %1111 = vector.broadcast %1110 : vector<1x128xf32> to vector<8x128xf32>
      %1112 = vector.shape_cast %1109 : vector<8x1xi1> to vector<8x1xi1>
      %1113 = vector.broadcast %1112 : vector<8x1xi1> to vector<8x128xi1>
      %1114 = arith.select %1113, %1111, %1104 : vector<8x128xi1>, vector<8x128xf32>
      %c5_337 = arith.constant 5 : index
      %1115 = memref.load %arg4[%c5_337] : memref<8xi32, #tpu.memory_space<smem>>
      %1116 = arith.index_cast %1115 : i32 to index
      %c0_338 = arith.constant 0 : index
      %1117 = vector.load %arg20[%1116, %c0_338] : memref<8x128xf32, #tpu.memory_space<vmem>>, vector<1x128xf32>
      %c5_i32_339 = arith.constant 5 : i32
      %1118 = vector.broadcast %c5_i32_339 : i32 to vector<8x1xi32>
      %1119 = arith.cmpi eq, %5, %1118 : vector<8x1xi32>
      %1120 = vector.shape_cast %1117 : vector<1x128xf32> to vector<1x128xf32>
      %1121 = vector.broadcast %1120 : vector<1x128xf32> to vector<8x128xf32>
      %1122 = vector.shape_cast %1119 : vector<8x1xi1> to vector<8x1xi1>
      %1123 = vector.broadcast %1122 : vector<8x1xi1> to vector<8x128xi1>
      %1124 = arith.select %1123, %1121, %1114 : vector<8x128xi1>, vector<8x128xf32>
      %c6_340 = arith.constant 6 : index
      %1125 = memref.load %arg4[%c6_340] : memref<8xi32, #tpu.memory_space<smem>>
      %1126 = arith.index_cast %1125 : i32 to index
      %c0_341 = arith.constant 0 : index
      %1127 = vector.load %arg20[%1126, %c0_341] : memref<8x128xf32, #tpu.memory_space<vmem>>, vector<1x128xf32>
      %c6_i32_342 = arith.constant 6 : i32
      %1128 = vector.broadcast %c6_i32_342 : i32 to vector<8x1xi32>
      %1129 = arith.cmpi eq, %5, %1128 : vector<8x1xi32>
      %1130 = vector.shape_cast %1127 : vector<1x128xf32> to vector<1x128xf32>
      %1131 = vector.broadcast %1130 : vector<1x128xf32> to vector<8x128xf32>
      %1132 = vector.shape_cast %1129 : vector<8x1xi1> to vector<8x1xi1>
      %1133 = vector.broadcast %1132 : vector<8x1xi1> to vector<8x128xi1>
      %1134 = arith.select %1133, %1131, %1124 : vector<8x128xi1>, vector<8x128xf32>
      %c7_343 = arith.constant 7 : index
      %1135 = memref.load %arg4[%c7_343] : memref<8xi32, #tpu.memory_space<smem>>
      %1136 = arith.index_cast %1135 : i32 to index
      %c0_344 = arith.constant 0 : index
      %1137 = vector.load %arg20[%1136, %c0_344] : memref<8x128xf32, #tpu.memory_space<vmem>>, vector<1x128xf32>
      %c7_i32_345 = arith.constant 7 : i32
      %1138 = vector.broadcast %c7_i32_345 : i32 to vector<8x1xi32>
      %1139 = arith.cmpi eq, %5, %1138 : vector<8x1xi32>
      %1140 = vector.shape_cast %1137 : vector<1x128xf32> to vector<1x128xf32>
      %1141 = vector.broadcast %1140 : vector<1x128xf32> to vector<8x128xf32>
      %1142 = vector.shape_cast %1139 : vector<8x1xi1> to vector<8x1xi1>
      %1143 = vector.broadcast %1142 : vector<8x1xi1> to vector<8x128xi1>
      %1144 = arith.select %1143, %1141, %1134 : vector<8x128xi1>, vector<8x128xf32>
      %c0_346 = arith.constant 0 : index
      %c0_347 = arith.constant 0 : index
      %1145 = vector.load %arg23[%c0_346, %c0_347] : memref<8x128xf32, #tpu.memory_space<vmem>>, vector<8x128xf32>
      tpu.vector_store %arg23[%c0_346, %c0_347], %1144 {strides = array<i32>} : memref<8x128xf32, #tpu.memory_space<vmem>>, vector<8x128xf32>,
      %c0_348 = arith.constant 0 : index
      %c0_349 = arith.constant 0 : index
      %1146 = vector.load %arg24[%c0_348, %c0_349] : memref<8x128xf32, #tpu.memory_space<vmem>>, vector<8x128xf32>
      %c0_350 = arith.constant 0 : index
      %c0_351 = arith.constant 0 : index
      %1147 = vector.load %arg23[%c0_350, %c0_351] : memref<8x128xf32, #tpu.memory_space<vmem>>, vector<8x128xf32>
      %1148 = arith.truncf %1147 : vector<8x128xf32> to vector<8x128xbf16>
      %c0_352 = arith.constant 0 : index
      %c0_353 = arith.constant 0 : index
      %1149 = vector.load %arg15[%c0_352, %c0_353] : memref<128x128xbf16, #tpu.memory_space<vmem>>, vector<128x128xbf16>
      %cst_354 = arith.constant dense<0.000000e+00> : vector<8x128xf32>
      %1150 = tpu.matmul %1148, %1149, %cst_354 {dimension_numbers = #tpu.dot_dimension_numbers<[1], [0], [0], [1], [0, 0, 1, 1], [], []>} : vector<8x128xbf16>, vector<128x128xbf16>, vector<8x128xf32> -> vector<8x128xf32>
      %1151 = arith.addf %1146, %1150 : vector<8x128xf32>
      %1152 = arith.truncf %1151 : vector<8x128xf32> to vector<8x128xbf16>
      %c0_355 = arith.constant 0 : index
      %c0_356 = arith.constant 0 : index
      %1153 = vector.load %arg16[%c0_355, %c0_356] : memref<128x128xbf16, #tpu.memory_space<vmem>>, vector<128x128xbf16>
      %cst_357 = arith.constant dense<0.000000e+00> : vector<8x128xf32>
      %1154 = tpu.matmul %1152, %1153, %cst_357 {dimension_numbers = #tpu.dot_dimension_numbers<[1], [0], [0], [1], [0, 0, 1, 1], [], []>} : vector<8x128xbf16>, vector<128x128xbf16>, vector<8x128xf32> -> vector<8x128xf32>
      %c0_358 = arith.constant 0 : index
      %c0_359 = arith.constant 0 : index
      %1155 = vector.load %arg17[%c0_358, %c0_359] : memref<1x128xf32, #tpu.memory_space<vmem>>, vector<1x128xf32>
      %1156 = vector.broadcast %1155 : vector<1x128xf32> to vector<8x128xf32>
      %1157 = arith.addf %1154, %1156 : vector<8x128xf32>
      %cst_360 = arith.constant 0.000000e+00 : f32
      %1158 = vector.broadcast %cst_360 : f32 to vector<8x128xf32>
      %1159 = arith.maximumf %1157, %1158 : vector<8x128xf32>
      %c0_361 = arith.constant 0 : index
      %c0_362 = arith.constant 0 : index
      %1160 = vector.load %arg18[%c0_361, %c0_362] : memref<8x128xf32, #tpu.memory_space<vmem>>, vector<8x128xf32>
      tpu.vector_store %arg18[%c0_361, %c0_362], %1159 {strides = array<i32>} : memref<8x128xf32, #tpu.memory_space<vmem>>, vector<8x128xf32>,
    } else {
    }
    return
  }
  func.func @transform_0(%arg0: i32, %arg1: memref<3x8xi32, #tpu.memory_space<smem>>, %arg2: memref<4x8xi32, #tpu.memory_space<smem>>, %arg3: memref<8xi32, #tpu.memory_space<smem>>, %arg4: memref<8xi32, #tpu.memory_space<smem>>) -> (i32, i32) {
    %c0_i32 = arith.constant 0 : i32
    %c0_i32_0 = arith.constant 0 : i32
    %c0_i32_1 = arith.constant 0 : i32
    return %c0_i32, %c0_i32_0 : i32, i32
  }
  func.func @transform_1(%arg0: i32, %arg1: memref<3x8xi32, #tpu.memory_space<smem>>, %arg2: memref<4x8xi32, #tpu.memory_space<smem>>, %arg3: memref<8xi32, #tpu.memory_space<smem>>, %arg4: memref<8xi32, #tpu.memory_space<smem>>) -> (i32, i32) {
    %c0_i32 = arith.constant 0 : i32
    %c0_i32_0 = arith.constant 0 : i32
    %c0_i32_1 = arith.constant 0 : i32
    return %c0_i32, %c0_i32_0 : i32, i32
  }
  func.func @transform_2(%arg0: i32, %arg1: memref<3x8xi32, #tpu.memory_space<smem>>, %arg2: memref<4x8xi32, #tpu.memory_space<smem>>, %arg3: memref<8xi32, #tpu.memory_space<smem>>, %arg4: memref<8xi32, #tpu.memory_space<smem>>) -> (i32, i32) {
    %c0_i32 = arith.constant 0 : i32
    %c0_i32_0 = arith.constant 0 : i32
    %c0_i32_1 = arith.constant 0 : i32
    return %c0_i32, %c0_i32_0 : i32, i32
  }
  func.func @transform_3(%arg0: i32, %arg1: memref<3x8xi32, #tpu.memory_space<smem>>, %arg2: memref<4x8xi32, #tpu.memory_space<smem>>, %arg3: memref<8xi32, #tpu.memory_space<smem>>, %arg4: memref<8xi32, #tpu.memory_space<smem>>) -> (i32, i32) {
    %c0_i32 = arith.constant 0 : i32
    %c0_i32_0 = arith.constant 0 : i32
    %c0_i32_1 = arith.constant 0 : i32
    return %c0_i32, %c0_i32_0 : i32, i32
  }
  func.func @transform_4(%arg0: i32, %arg1: memref<3x8xi32, #tpu.memory_space<smem>>, %arg2: memref<4x8xi32, #tpu.memory_space<smem>>, %arg3: memref<8xi32, #tpu.memory_space<smem>>, %arg4: memref<8xi32, #tpu.memory_space<smem>>) -> (i32, i32) {
    %c0_i32 = arith.constant 0 : i32
    %c0_i32_0 = arith.constant 0 : i32
    %c0_i32_1 = arith.constant 0 : i32
    return %c0_i32, %c0_i32_0 : i32, i32
  }
  func.func @transform_5(%arg0: i32, %arg1: memref<3x8xi32, #tpu.memory_space<smem>>, %arg2: memref<4x8xi32, #tpu.memory_space<smem>>, %arg3: memref<8xi32, #tpu.memory_space<smem>>, %arg4: memref<8xi32, #tpu.memory_space<smem>>) -> (i32, i32, i32) {
    %c0_i32 = arith.constant 0 : i32
    %c0_i32_0 = arith.constant 0 : i32
    %c0_i32_1 = arith.constant 0 : i32
    return %arg0, %c0_i32, %c0_i32_0 : i32, i32, i32
  }
  func.func @transform_6(%arg0: i32, %arg1: memref<3x8xi32, #tpu.memory_space<smem>>, %arg2: memref<4x8xi32, #tpu.memory_space<smem>>, %arg3: memref<8xi32, #tpu.memory_space<smem>>, %arg4: memref<8xi32, #tpu.memory_space<smem>>) -> (i32, i32, i32) {
    %c0_i32 = arith.constant 0 : i32
    %c0_i32_0 = arith.constant 0 : i32
    %c0_i32_1 = arith.constant 0 : i32
    return %arg0, %c0_i32, %c0_i32_0 : i32, i32, i32
  }
  func.func @transform_7(%arg0: i32, %arg1: memref<3x8xi32, #tpu.memory_space<smem>>, %arg2: memref<4x8xi32, #tpu.memory_space<smem>>, %arg3: memref<8xi32, #tpu.memory_space<smem>>, %arg4: memref<8xi32, #tpu.memory_space<smem>>) -> (i32, i32, i32) {
    %c0_i32 = arith.constant 0 : i32
    %c0_i32_0 = arith.constant 0 : i32
    %c0_i32_1 = arith.constant 0 : i32
    return %arg0, %c0_i32, %c0_i32_0 : i32, i32, i32
  }
  func.func @transform_8(%arg0: i32, %arg1: memref<3x8xi32, #tpu.memory_space<smem>>, %arg2: memref<4x8xi32, #tpu.memory_space<smem>>, %arg3: memref<8xi32, #tpu.memory_space<smem>>, %arg4: memref<8xi32, #tpu.memory_space<smem>>) -> (i32, i32, i32) {
    %c0_i32 = arith.constant 0 : i32
    %c0_i32_0 = arith.constant 0 : i32
    %c0_i32_1 = arith.constant 0 : i32
    return %arg0, %c0_i32, %c0_i32_0 : i32, i32, i32
  }
  func.func @transform_9(%arg0: i32, %arg1: memref<3x8xi32, #tpu.memory_space<smem>>, %arg2: memref<4x8xi32, #tpu.memory_space<smem>>, %arg3: memref<8xi32, #tpu.memory_space<smem>>, %arg4: memref<8xi32, #tpu.memory_space<smem>>) -> (i32, i32, i32) {
    %c0_i32 = arith.constant 0 : i32
    %c0_i32_0 = arith.constant 0 : i32
    %c0_i32_1 = arith.constant 0 : i32
    return %arg0, %c0_i32, %c0_i32_0 : i32, i32, i32
  }
  func.func @transform_10(%arg0: i32, %arg1: memref<3x8xi32, #tpu.memory_space<smem>>, %arg2: memref<4x8xi32, #tpu.memory_space<smem>>, %arg3: memref<8xi32, #tpu.memory_space<smem>>, %arg4: memref<8xi32, #tpu.memory_space<smem>>) -> (i32, i32) {
    %c0_i32 = arith.constant 0 : i32
    %c0_i32_0 = arith.constant 0 : i32
    %c0_i32_1 = arith.constant 0 : i32
    return %c0_i32, %c0_i32_0 : i32, i32
  }
  func.func @transform_11(%arg0: i32, %arg1: memref<3x8xi32, #tpu.memory_space<smem>>, %arg2: memref<4x8xi32, #tpu.memory_space<smem>>, %arg3: memref<8xi32, #tpu.memory_space<smem>>, %arg4: memref<8xi32, #tpu.memory_space<smem>>) -> (i32, i32) {
    %c0_i32 = arith.constant 0 : i32
    %c0_i32_0 = arith.constant 0 : i32
    %c0_i32_1 = arith.constant 0 : i32
    return %c0_i32, %c0_i32_0 : i32, i32
  }
  func.func @transform_12(%arg0: i32, %arg1: memref<3x8xi32, #tpu.memory_space<smem>>, %arg2: memref<4x8xi32, #tpu.memory_space<smem>>, %arg3: memref<8xi32, #tpu.memory_space<smem>>, %arg4: memref<8xi32, #tpu.memory_space<smem>>) -> (i32, i32) {
    %c0_i32 = arith.constant 0 : i32
    %c0_i32_0 = arith.constant 0 : i32
    %c0_i32_1 = arith.constant 0 : i32
    return %c0_i32, %c0_i32_0 : i32, i32
  }
  func.func @transform_13(%arg0: i32, %arg1: memref<3x8xi32, #tpu.memory_space<smem>>, %arg2: memref<4x8xi32, #tpu.memory_space<smem>>, %arg3: memref<8xi32, #tpu.memory_space<smem>>, %arg4: memref<8xi32, #tpu.memory_space<smem>>) -> (i32, i32) {
    %c0_i32 = arith.constant 0 : i32
    %c0_i32_0 = arith.constant 0 : i32
    %c0_i32_1 = arith.constant 0 : i32
    return %c0_i32, %c0_i32_0 : i32, i32
  }
}

</mosaic_0001>

<bundles_post_ra>
// kernel: tpu_custom_call.1
= control target key start
LH: loop header
LB: loop body
LE: loop exit
PB: predicated region body
PF: predicated region fallthrough
CT: control target
= control target key end

     0   :  { %s5635_s30 = smov [#allocation10]   ;;  %s5636_s23 = smov [#allocation11]   ;;  %s9203_s0 = inlined_call_operand.vmem [shape: s32[3,8], index: 0, kind: input, shape index: {}]   ;;  %s9204_s4 = inlined_call_operand.vmem [shape: f32[8,128], index: 4, kind: input, shape index: {}]   ;;  %s9205_s5 = inlined_call_operand.vmem [shape: f32[8,128], index: 5, kind: input, shape index: {}]   ;;  %s9206_s6 = inlined_call_operand.vmem [shape: f32[8,3], index: 6, kind: input, shape index: {}]   ;;  %s9207_s7 = inlined_call_operand.vmem [shape: f32[8,4], index: 7, kind: input, shape index: {}]   ;;  %s9208_s8 = inlined_call_operand.hbm [shape: f32[8,128], index: 8, kind: input, shape index: {}]   ;;  %s9209_s9 = inlined_call_operand.hbm [shape: bf16[3,128,128], index: 9, kind: input, shape index: {}]   ;;  %s9210_s10 = inlined_call_operand.hbm [shape: bf16[3,128,128], index: 10, kind: input, shape index: {}]   ;;  %s9211_s11 = inlined_call_operand.hbm [shape: bf16[3,256,128], index: 11, kind: input, shape index: {}]   ;;  %s9212_s12 = inlined_call_operand.hbm [shape: bf16[3,256,128], index: 12, kind: input, shape index: {}]   ;;  %s9213_s13 = inlined_call_operand.hbm [shape: bf16[3,128,128], index: 13, kind: input, shape index: {}]   ;;  %s9214_s14 = inlined_call_operand.hbm [shape: bf16[128,128], index: 14, kind: input, shape index: {}]   ;;  %s9215_s15 = inlined_call_operand.hbm [shape: bf16[128,128], index: 15, kind: input, shape index: {}]   ;;  %s9216_s16 = inlined_call_operand.vmem [shape: f32[1,128], index: 16, kind: input, shape index: {}]   ;;  %s9217_s17 = inlined_call_operand.hbm [shape: f32[8,128], index: 17, kind: output, shape index: {}]   ;;  %s9218_s1 = inlined_call_operand.hbm [shape: s32[4,8], index: 1, kind: input, shape index: {}]   ;;  %s9219_s2 = inlined_call_operand.vmem [shape: s32[8], index: 2, kind: input, shape index: {}]   ;;  %s9220_s3 = inlined_call_operand.hbm [shape: s32[8], index: 3, kind: input, shape index: {}]  }
   0x1   :  { %9371 = sst [smem:[#allocation93_spill]] %s9203_s0  ;;  %s28_s29 = sshll.u32 %s9218_s1, 4  ;;  %s29_s29 = int_to_ptr.hbm [resolvable:$true] %s28_s29 }
   0x2   :  { %9372 = sst [smem:[#allocation94_spill]] %s9204_s4  ;;  %s5634_s0 = smov [#allocation9]  }
   0x3   :  { %9373 = sst [smem:[#allocation95_spill]] %s9205_s5  ;;  %s33_s4 = sshll.u32 %s9219_s2, 4  ;;  %s34_s4 = int_to_ptr.vmem [resolvable:$true] %s33_s4 }
   0x4   :  { %9374 = sst [smem:[#allocation96_spill]] %s9206_s6  ;;  %s38_s22 = sshll.u32 %s9220_s3, 4  ;;  %s39_s22 = int_to_ptr.hbm [resolvable:$true] %s38_s22 }
   0x5   :  { %9375 = sst [smem:[#allocation97_spill]] %s9207_s7  ;;  %s5637_s24 = smov [#allocation12]  }
   0x6   :  { %9376 = sst [smem:[#allocation98_spill]] %s9208_s8 }
   0x7   :  { %9377 = sst [smem:[#allocation99_spill]] %s9209_s9 }
   0x8   :  { %9378 = sst [smem:[#allocation100_spill]] %s9210_s10 }
   0x9   :  { %9379 = sst [smem:[#allocation101_spill]] %s9211_s11 }
   0xa   :  { %9380 = sst [smem:[#allocation102_spill]] %s9212_s12 }
   0xb   :  { %9381 = sst [smem:[#allocation103_spill]] %s9213_s13 }
   0xc   :  { %9382 = sst [smem:[#allocation104_spill]] %s9214_s14 }
   0xd   :  { %9383 = sst [smem:[#allocation105_spill]] %s9215_s15 }
   0xe   :  { %9384 = sst [smem:[#allocation106_spill]] %s9216_s16 }
   0xf   :  { %9385 = sst [smem:[#allocation107_spill]] %s9217_s17 }
  0x10   :  { %s9386_s26 = sld [smem:[#allocation93_spill]] }
  0x16   :  { %s23_s6 = sshll.u32 %s9386_s26, 4  ;;  %s24_s6 = int_to_ptr.vmem [resolvable:$true] %s23_s6 }
  0x17   :  { %26 = dma.vmem_to_smem %s24_s6, 64, %s5634_s0, [#allocation8] }
  0x18   :  { %31 = dma.hbm_to_smem %s29_s29, 64, %s5635_s30, [#allocation8] }
  0x19   :  { %36 = dma.vmem_to_smem %s34_s4, 16, %s5636_s23, [#allocation8] }
  0x1a   :  { %41 = dma.hbm_to_smem %s39_s22, 16, %s5637_s24, [#allocation8] }
  0x1b   :  { %5588 = dma.done.wait [#allocation8], 160 }
  0x1c   :  { %5589 = vsyncadd [#allocation8], 4294967136 }
  0x1d   :  { %44 = sfence }
  0x1e   :  { %45 = vsyncpa [#allocation14], 0 }
  0x1f   :  { %46 = vsyncpa [#allocation17], 0 }
  0x20   :  { %48 = vsyncpa [#allocation17 + $0x1], 0 }
  0x21   :  { %49 = vsyncpa [#allocation20], 0 }
  0x22   :  { %51 = vsyncpa [#allocation20 + $0x1], 0 }
  0x23   :  { %52 = vsyncpa [#allocation23], 0 }
  0x24   :  { %54 = vsyncpa [#allocation23 + $0x1], 0 }
  0x25   :  { %55 = vsyncpa [#allocation26], 0 }
  0x26   :  { %56 = vsyncpa [#allocation15], 0  ;;  %s5758_s1 = smov 0   ;;  %s5760_s2 = smov 0  }
  0x27   :  { %s5762_s3 = smov 0   ;;  %s5764_s6 = smov 0  }
  0x28 LB: > { %9387 = sst [smem:[#allocation36_spill]] %s5624_s2  ;;  %s5777_s25 = sadd.s32 4294967295, %s5632_s6   ;;  %s5632_s6 = sphi %s5764_s6, %s9784_s6   ;;  %s5628_s3 = sphi %s5762_s3, %s9787_s3   ;;  %s5624_s2 = sphi %s5760_s2, %s9786_s2   ;;  %s5620_s1 = sphi %s5758_s1, %s9785_s1  }
  0x29   : > { %9388 = sst [smem:[#allocation37_spill]] %s5628_s3  ;;  %p187_p0 = scmp.ne.s32.totalorder %s5624_s2, %s5620_s1 }
  0x2a   : > { %9389 = sst [smem:[#allocation38_spill]] %s5777_s25  ;;  %p188_p1 = scmp.eq.s32.totalorder %s5777_s25, 0 }
  0x2b   : > { %p4514_p2 = scmp.ge.s32.totalorder %s5632_s6, 1  ;;  %p386_p3 = scmp.lt.s32.totalorder %s5632_s6, 4 }
  0x2c   : > { %p4515_p4 = scmp.ne.s32.totalorder %s5777_s25, 0  ;;  %p5786_p5 = por %p188_p1, %p187_p0 }
  0x2d   : > { %s9392_s14 = sld [smem:[#allocation104_spill]]  ;;  %p5793_p6 = pnand %p4514_p2, %p386_p3 }
  0x2e   : > { %s9390_s26 = scalar_select %p5786_p5, 1, 0 }
  0x2f   : > { %p5053_p7 = pneg %p5793_p6  ;;  %s5638_s30 = smov [#allocation24]  }
  0x30   : > { %9391 = sst [smem:[#allocation39_spill]] %s9390_s26  ;;  %s423_s18 = sshll.u32 %s5638_s30, 4  ;;  %s424_s18 = int_to_ptr.vmem [resolvable:$true] %s423_s18 }
  0x31   : > { %p5801_p8 = pnand %p5053_p7, %p188_p1  ;;  %s5806_s4 = sadd.s32 1, %s5632_s6  }
  0x32   : > { %9395 = sst [smem:[#allocation40_spill]] %s5806_s4  ;;  %s9222_s20 = smov 64  }
  0x33   : > { %s421_s29 = sshll.u32 %s9392_s14, 4  ;;  %s9224_s21 = smov 4   ;;  %s422_s29 = int_to_ptr.hbm [resolvable:$true] %s421_s29 }
  0x34   : > { %5059 = dma.hbm_to_vmem [thread:$0]  (!%p5801_p8), %s422_s29, 1024, %s424_s18, [#allocation23], %s9222_s20, %s9222_s20, %s9224_s21  }
  0x35   : > { %s171_s22 = ssub.s32 %s5632_s6, %s5806_s4  ;;  %s174_s23 = sadd.s32 1, %s5628_s3 }
  0x36   : > { %p172_p9 = scmp.eq.s32.totalorder %s171_s22, 0  ;;  %p181_p10 = scmp.ne.s32.totalorder %s5628_s3, %s5624_s2 }
  0x37   : > { %p182_p11 = scmp.eq.s32.totalorder %s5632_s6, 0  ;;  %p5082_p12 = scmp.lt.s32.totalorder %s5632_s6, 3 }
  0x38   : > { %s5821_s24 = scalar_select %p172_p9, %s5628_s3, %s174_s23  }
  0x39   : > { %p183_p13 = por %p182_p11, %p181_p10  ;;  %s5824_s1 = sand.u32 1, %s5632_s6  }
  0x3a   : > { %9396 = sst [smem:[#allocation41_spill]] %s5821_s24  ;;  %s456_s27 = sand.u32 1, %s5628_s3  }
  0x3b   : > { %s5827_s28 = sshll.u32 %s456_s27, 6  ;;  %s5830_s30 = sshll.u32 %s5632_s6, 6 }
  0x3c   : > { %s9397_s9 = sld [smem:[#allocation99_spill]]  ;;  %s458_s21 = scalar_lea.vmem [#allocation16], %s5827_s28 }
  0x3d   : > { %s466_s14 = sshll.u32 %s458_s21, 4  ;;  %p5839_p0 = pnand %p5082_p12, %p183_p13  ;;  %s467_s14 = int_to_ptr.vmem [resolvable:$true] %s466_s14 }
  0x3e   : > { %s5843_s24 = sshll.u32 %s456_s27, 7 }
  0x3f   : > { %p5849_p3 = pneg %p5839_p0 }
  0x42   : > { %s463_s22 = scalar_lea.hbm %s9397_s9, %s5830_s30  ;;  %s5341_s27 = scalar_lea.hbm %s9397_s9, 192 }
  0x43   : > { %s464_s20 = sshll.u32 %s463_s22, 4  ;;  %s465_s20 = int_to_ptr.hbm [resolvable:$true] %s464_s20 }
  0x44   : > { %s5334_s17 = sshra.s32 %s465_s20, 4  ;;  %s5335_s17 = int_to_ptr.hbm [resolvable:$true] %s5334_s17 }
  0x45   : > { %s5336_s16 = scalar_lea.hbm %s5335_s17, 64  ;;  %p5342_p10 = scmp.lt.s32.totalorder %s5335_s17, %s9397_s9 }
  0x46   : > { %p5337_p2 = scmp.ne.s32.totalorder %s5335_s17, %s5336_s16  ;;  %p5343_p11 = scmp.lt.s32.totalorder %s5341_s27, %s5336_s16 }
  0x48   : > { %p5339_p7 = pnand %p5849_p3, %p5337_p2  ;;  %p5344_p12 = por %p5343_p11, %p5342_p10 }
  0x4a   : > { %p5340_p9 = pneg %p5339_p7 }
  0x4c   : > { %p5345_p13 = pnand %p5344_p12, %p5340_p9 }
  0x4e   : > { %5348 = shalt.err (!%p5345_p13)
}
  0x4f   : > { %s9400_s4 = smov 4   ;;  %s9401_s7 = smov 64  }
  0x50   : > { %s9402_s5 = scalar_lea.sflag [#allocation17], %s5824_s1  ;;  %s9403_s21 = sshll.u32 %s5632_s6, 7 }
  0x51   : > { %5066 = dma.hbm_to_vmem [thread:$0]  (!%p5839_p0), %s465_s20, 1024, %s467_s14, %s9402_s5, %s9401_s7, %s9401_s7, %s9400_s4  }
  0x52   : > { %s9404_s11 = sld [smem:[#allocation101_spill]]  ;;  %s502_s17 = scalar_lea.vmem [#allocation19], %s5843_s24 }
  0x53   : > { %s510_s27 = sshll.u32 %s502_s17, 4  ;;  %s499_s9 = scalar_lea.sflag [#allocation20], %s5824_s1  ;;  %s511_s27 = int_to_ptr.vmem [resolvable:$true] %s510_s27 }
  0x58   : > { %s507_s16 = scalar_lea.hbm %s9404_s11, %s9403_s21  ;;  %s5371_s14 = scalar_lea.hbm %s9404_s11, 384 }
  0x59   : > { %s508_s22 = sshll.u32 %s507_s16, 4  ;;  %s509_s22 = int_to_ptr.hbm [resolvable:$true] %s508_s22 }
  0x5a   : > { %s5364_s26 = sshra.s32 %s509_s22, 4  ;;  %s5365_s26 = int_to_ptr.hbm [resolvable:$true] %s5364_s26 }
  0x5b   : > { %s5366_s2 = scalar_lea.hbm %s5365_s26, 128  ;;  %p5372_p10 = scmp.lt.s32.totalorder %s5365_s26, %s9404_s11 }
  0x5c   : > { %p5367_p2 = scmp.ne.s32.totalorder %s5365_s26, %s5366_s2  ;;  %p5373_p11 = scmp.lt.s32.totalorder %s5371_s14, %s5366_s2 }
  0x5e   : > { %p5369_p7 = pnand %p5367_p2, %p5849_p3  ;;  %p5374_p12 = por %p5373_p11, %p5372_p10 }
  0x60   : > { %p5370_p9 = pneg %p5369_p7 }
  0x62   : > { %p5375_p13 = pnand %p5374_p12, %p5370_p9 }
  0x64   : > { %5378 = shalt.err (!%p5375_p13)
}
  0x65   : > { %5072 = dma.hbm_to_vmem [thread:$0]  (!%p5839_p0), %s509_s22, 2048, %s511_s27, %s499_s9, %s9401_s7, %s9401_s7, %s9400_s4  }
  0x66   : > { %s9405_s25 = smov %s9403_s21  ;;  %s9406_s12 = sld [smem:[#allocation102_spill]] }
  0x67   : > { %s524_s2 = scalar_lea.vmem [#allocation21], %s5843_s24  ;;  %s9407_s8 = sld [smem:[#allocation98_spill]] }
  0x68   : > { %s5896_s16 = sshll.u32 %s524_s2, 4  ;;  %s5641_s6 = smov [#allocation13]   ;;  %s533_s16 = int_to_ptr.vmem [resolvable:$true] %s5896_s16 }
  0x69   : > { %s412_s22 = sshll.u32 %s5641_s6, 4  ;;  %s9408_s15 = sld [smem:[#allocation105_spill]]  ;;  %s413_s22 = int_to_ptr.vmem [resolvable:$true] %s412_s22 }
  0x6a   : > { %s9409_s10 = sld [smem:[#allocation100_spill]]  ;;  %s480_s14 = scalar_lea.vmem [#allocation18], %s5827_s28 }
  0x6b   : > { %s488_s6 = sshll.u32 %s480_s14, 4  ;;  %s489_s6 = int_to_ptr.vmem [resolvable:$true] %s488_s6 }
  0x6c   : > { %s529_s26 = scalar_lea.hbm %s9406_s12, %s9405_s25  ;;  %s5642_s25 = smov [#allocation25]  }
  0x6d   : > { %s530_s17 = sshll.u32 %s529_s26, 4  ;;  %s410_s27 = sshll.u32 %s9407_s8, 4  ;;  %s5899_s17 = int_to_ptr.hbm [resolvable:$true] %s530_s17  ;;  %s411_s27 = int_to_ptr.hbm [resolvable:$true] %s410_s27 }
  0x6e   : > { %5056 = dma.hbm_to_vmem [thread:$0]  (!%p5801_p8), %s411_s27, 128, %s413_s22, [#allocation14]  }
  0x6f   : > { %s435_s24 = sshll.u32 %s9408_s15, 4  ;;  %s437_s21 = sshll.u32 %s5642_s25, 4  ;;  %s436_s24 = int_to_ptr.hbm [resolvable:$true] %s435_s24  ;;  %s438_s21 = int_to_ptr.vmem [resolvable:$true] %s437_s21 }
  0x70   : > { %s485_s2 = scalar_lea.hbm %s9409_s10, %s5830_s30  ;;  %s5461_s25 = scalar_lea.hbm %s9409_s10, 192 }
  0x71   : > { %s486_s5 = sshll.u32 %s485_s2, 4  ;;  %s487_s5 = int_to_ptr.hbm [resolvable:$true] %s486_s5 }
  0x72   : > { %5062 = dma.hbm_to_vmem [thread:$0]  (!%p5801_p8), %s436_s24, 1024, %s438_s21, [#allocation26], %s9401_s7, %s9401_s7, %s9400_s4  }
  0x73   : > { %s5454_s20 = sshra.s32 %s487_s5, 4  ;;  %s5455_s20 = int_to_ptr.hbm [resolvable:$true] %s5454_s20 }
  0x74   : > { %s5456_s27 = scalar_lea.hbm %s5455_s20, 64  ;;  %p5462_p10 = scmp.lt.s32.totalorder %s5455_s20, %s9409_s10 }
  0x75   : > { %p5457_p2 = scmp.ne.s32.totalorder %s5455_s20, %s5456_s27  ;;  %p5463_p8 = scmp.lt.s32.totalorder %s5461_s25, %s5456_s27 }
  0x77   : > { %p5459_p7 = pnand %p5457_p2, %p5849_p3  ;;  %p5464_p11 = por %p5463_p8, %p5462_p10 }
  0x79   : > { %p5460_p9 = pneg %p5459_p7 }
  0x7b   : > { %p5465_p12 = pnand %p5464_p11, %p5460_p9 }
  0x7d   : > { %5468 = shalt.err (!%p5465_p12)
}
  0x7e   : > { %s9410_s24 = scalar_lea.sflag [#allocation17], %s5824_s1  ;;  %s5484_s21 = sshra.s32 %s5899_s17, 4  ;;  %s5485_s21 = int_to_ptr.hbm [resolvable:$true] %s5484_s21 }
  0x7f   : > { %5069 = dma.hbm_to_vmem [thread:$0]  (!%p5839_p0), %s487_s5, 1024, %s489_s6, %s9410_s24, %s9401_s7, %s9401_s7, %s9400_s4  }
  0x80   : > { %s5486_s26 = scalar_lea.hbm %s5485_s21, 128  ;;  %s5491_s20 = scalar_lea.hbm %s9406_s12, 384 }
  0x81   : > { %p5487_p13 = scmp.ne.s32.totalorder %s5485_s21, %s5486_s26  ;;  %p5492_p9 = scmp.lt.s32.totalorder %s5485_s21, %s9406_s12 }
  0x82   : > { %p5493_p10 = scmp.lt.s32.totalorder %s5491_s20, %s5486_s26 }
  0x83   : > { %p5489_p2 = pnand %p5487_p13, %p5849_p3 }
  0x84   : > { %p5494_p8 = por %p5493_p10, %p5492_p9 }
  0x85   : > { %p5490_p7 = pneg %p5489_p2 }
  0x87   : > { %p5495_p11 = pnand %p5494_p8, %p5490_p7 }
  0x89   : > { %5498 = shalt.err (!%p5495_p11)
}
  0x8a   : > { %5075 = dma.hbm_to_vmem [thread:$0]  (!%p5839_p0), %s5899_s17, 2048, %s533_s16, %s499_s9, %s9401_s7, %s9401_s7, %s9400_s4  }
  0x8b   : > { %s9411_s13 = sld [smem:[#allocation103_spill]]  ;;  %s546_s19 = scalar_lea.vmem [#allocation22], %s5827_s28 }
  0x8c   : > { %s554_s3 = sshll.u32 %s546_s19, 4  ;;  %s543_s24 = scalar_lea.sflag [#allocation23], %s5824_s1  ;;  %s555_s3 = int_to_ptr.vmem [resolvable:$true] %s554_s3 }
  0x91   : > { %s551_s18 = scalar_lea.hbm %s9411_s13, %s5830_s30  ;;  %s5521_s9 = scalar_lea.hbm %s9411_s13, 192 }
  0x92   : > { %s552_s25 = sshll.u32 %s551_s18, 4  ;;  %s553_s25 = int_to_ptr.hbm [resolvable:$true] %s552_s25 }
  0x93   : > { %s5514_s21 = sshra.s32 %s553_s25, 4  ;;  %s5515_s21 = int_to_ptr.hbm [resolvable:$true] %s5514_s21 }
  0x94   : > { %s5516_s26 = scalar_lea.hbm %s5515_s21, 64  ;;  %p5522_p7 = scmp.lt.s32.totalorder %s5515_s21, %s9411_s13 }
  0x95   : > { %p5517_p12 = scmp.ne.s32.totalorder %s5515_s21, %s5516_s26  ;;  %p5523_p9 = scmp.lt.s32.totalorder %s5521_s9, %s5516_s26 }
  0x97   : > { %p5519_p13 = pnand %p5517_p12, %p5849_p3  ;;  %p5524_p10 = por %p5523_p9, %p5522_p7 }
  0x99   : > { %p5520_p2 = pneg %p5519_p13 }
  0x9b   : > { %p5525_p8 = pnand %p5524_p10, %p5520_p2 }
  0x9d   : > { %5528 = shalt.err (!%p5525_p8)
}
  0x9e   : > { %5078 = dma.hbm_to_vmem [thread:$0]  (!%p5839_p0), %s553_s25, 1024, %s555_s3, %s543_s24, %s9401_s7, %s9401_s7, %s9400_s4  }
  0x9f   : > { %566 = sbr.rel (%p5793_p6) target bundleno = 1487 (0x5cf), region = 72 }
  0xa4   : > { %s9412_s1 = sld [smem:[#allocation38_spill]] }
  0xa5   : > { %5591 = dma.done.wait (%p188_p1), [#allocation14], 128  }
  0xa6   : > { %5593 = vsyncadd (%p188_p1), [#allocation14], 4294967168  ;;  %s9413_s28 = sld [smem:[#allocation36_spill]] }
  0xaa   : > { %s573_s29 = sand.u32 1, %s9412_s1  }
  0xab   : > { %s574_s23 = scalar_lea.sflag [#allocation17], %s573_s29 }
  0xac   : > { %s575_s20 = sand.u32 1, %s9413_s28  }
  0xad   : > { %s4536_s27 = sshll.u32 %s575_s20, 6 }
  0xae   : > { %s5980_s22 = scalar_lea.vmem [#allocation16], %s4536_s27 }
  0xaf   : > { %5595 = dma.done.wait (%p5786_p5), %s574_s23, 2048  }
  0xb0   : > { %5597 = vsyncadd (%p5786_p5), %s574_s23, 4294965248  ;;  %s4538_s7 = sshll.u32 %s575_s20, 7  ;;  %s5986_s0 = scalar_lea.vmem [#allocation18], %s4536_s27 }
  0xb1   : > { %s594_s4 = scalar_lea.sflag [#allocation20], %s573_s29  ;;  %s5988_s5 = scalar_lea.vmem [#allocation19], %s4538_s7 }
  0xb2   : > { %5599 = dma.done.wait (%p5786_p5), %s594_s4, 4096  }
  0xb3   : > { %5601 = vsyncadd (%p5786_p5), %s594_s4, 4294963200  ;;  %s5994_s6 = scalar_lea.vmem [#allocation21], %s4538_s7  ;;  %s614_s18 = scalar_lea.sflag [#allocation23], %s573_s29 }
  0xb4   : > { %9415 = sst [smem:[#allocation42_spill]] %s5994_s6  ;;  %s5996_s25 = scalar_lea.vmem [#allocation22], %s4536_s27 }
  0xb5   : > { %9416 = sst [smem:[#allocation43_spill]] %s5996_s25 }
  0xb6   : > { %5603 = dma.done.wait (%p5786_p5), %s614_s18, 1024  }
  0xb7   : > { %5605 = vsyncadd (%p5786_p5), %s614_s18, 4294966272 }
  0xb8   : > { %5607 = dma.done.wait (%p188_p1), [#allocation23], 1024  }
  0xb9   : > { %5609 = vsyncadd (%p188_p1), [#allocation23], 4294966272 }
  0xba   : > { %5611 = dma.done.wait (%p188_p1), [#allocation26], 1024  }
  0xbb   : > { %5613 = vsyncadd (%p188_p1), [#allocation26], 4294966272  ;;  %v686_v0 = vlaneseq  ;;  %v5643_v3 = vmov 0.0   ;;  %s9418_s24 = sld [smem:[#allocation94_spill]] (!%p4515_p4) }
  0xbc   : > { %s9419_s2 = sld [smem:[#allocation95_spill]] (!%p4515_p4) }
  0xbd   : > { %v687_v1 = vand.u32 127, %v686_v0  ;;  %v6010_v2 = vshrl.u32 %v686_v0, 7  ;;  %696 = sbr.rel (%p4515_p4) target bundleno = 198 (0xc6), region = 108 }
  0xbf   : > { %vm688_vm0 = vcmp.lt.s32.totalorder %v687_v1, 32 }
  0xc0   : > { %v6012_v4 = vsel %vm688_vm0, 1.0, %v5643_v3 }
  0xc1   : > { %9417 = vst [vmem:[#allocation44_spill] sm:$0xff] %v6012_v4 }
  0xc2   : > { %v697_v5 = vld [vmem:[%s9418_s24] sm:$0xff]  ;;  %v5644_v7 = vmov 0.0  }
  0xc3   : > { %v699_v6 = vld [vmem:[%s9419_s2] sm:$0xff]  ;;  %698 = vst [vmem:[#allocation2] sm:$0xff] %v697_v5 }
  0xc4   : > { %700 = vst [vmem:[#allocation3] sm:$0xff] %v699_v6 }
  0xc5   : > { %701 = vst [vmem:[#allocation7] sm:$0xff] %v5644_v7 }
  0xc6 PF: > { %s9420_s16 = sld [smem:[#allocation97_spill]]  ;;  %v5645_v9 = vmov 2   ;;  %v9242_v10 = vmov 0   ;;  %v4970_v11 = vld [vmem:[%s5986_s0 + $0x38] sm:$0xff]  ;;  %v4969_v13 = vld [vmem:[%s5986_s0 + $0x30] sm:$0xff]  ;;  %v5647_v14 = vmov 1  }
  0xc7   : > { %5144 = vset.pattern.permute.xlu1 %v5645_v9  ;;  %5142 = vset.pattern.permute.xlu0 %v9242_v10  ;;  %v4962_v12 = vld [vmem:[%s5980_s22 + $0x38] sm:$0xff]  ;;  %v4961_v15 = vld [vmem:[%s5980_s22 + $0x30] sm:$0xff]  ;;  %v4968_v16 = vld [vmem:[%s5986_s0 + $0x28] sm:$0xff]  ;;  %v5648_v18 = vmov 3   ;;  %s9421_s28 = sld [smem:[#allocation96_spill]]  ;;  %vm9370_vm7 = vcmp.eq.s32.totalorder %v6010_v2, 0 }
  0xc8   : > { %848 = vmatpush.bf16.msra.mxu1 %v4970_v11  ;;  %5147 = vset.pattern.permute.xlu2 %v5647_v14  ;;  %v4960_v17 = vld [vmem:[%s5980_s22 + $0x28] sm:$0xff]  ;;  %v4967_v19 = vld [vmem:[%s5986_s0 + $0x20] sm:$0xff]  ;;  %v4966_v21 = vld [vmem:[%s5986_s0 + $0x18] sm:$0xff]  ;;  %s6074_s30 = sld [smem:[#allocation10 + $0x100]]  ;;  %vm9363_vm9 = vcmp.eq.s32.totalorder %v6010_v2, 1  ;;  %vm9325_vm10 = vcmp.eq.s32.totalorder %v6010_v2, 2 }
  0xc9   : > { %768 = vmatpush.bf16.msra.mxu0 %v4962_v12  ;;  %v4959_v20 = vld [vmem:[%s5980_s22 + $0x20] sm:$0xff]  ;;  %v4958_v23 = vld [vmem:[%s5980_s22 + $0x18] sm:$0xff]  ;;  %v4965_v24 = vld [vmem:[%s5986_s0 + $0x10] sm:$0xff]  ;;  %s6076_s29 = sld [smem:[#allocation10 + $0x101]]  ;;  %vm9324_vm12 = vcmp.eq.s32.totalorder %v6010_v2, 3  ;;  %vm9320_vm13 = vcmp.eq.s32.totalorder %v6010_v2, 4 }
  0xca   : > { %v4957_v25 = vld [vmem:[%s5980_s22 + $0x10] sm:$0xff]  ;;  %v4964_v26 = vld [vmem:[%s5986_s0 + $0x8] sm:$0xff]  ;;  %v4963_v28 = vld [vmem:[%s5986_s0] sm:$0xff]  ;;  %s6078_s20 = sld [smem:[#allocation10 + $0x102]]  ;;  %vm9318_vm14 = vcmp.eq.s32.totalorder %v6010_v2, 5  ;;  %vm9234_vm15 = vcmp.eq.s32.totalorder %v6010_v2, 6 }
  0xcb   : > { %v4956_v27 = vld [vmem:[%s5980_s22 + $0x8] sm:$0xff]  ;;  %v782_v29 = vld [vmem:[#allocation3] sm:$0xff]  ;;  %v4955_v30 = vld [vmem:[%s5980_s22] sm:$0xff]  ;;  %s6080_s27 = sld [smem:[#allocation10 + $0x103]]  ;;  %vm932_vm0 = vcmp.eq.s32.totalorder %v6010_v2, 7 }
  0xcc   : > { %v2254_v8 = vld [vmem:[%s9420_s16] sm:$0xff]  ;;  %849 = vmatpush.bf16.msra.mxu1 %v4969_v13  ;;  %v783_v32 = vpack.c.bf16 %v782_v29, %v782_v29  ;;  %v6046_v35 = vld [vmem:[#allocation13] sm:$0xff]  ;;  %s6083_s23 = sld [smem:[#allocation10 + $0x104]]  ;;  %v9244_v29 = vmov 1326507024  }
  0xcd   : > { %3036 = vperm.xlu1 %5144, %v2254_v8   ;;  %2297 = vperm.xlu0 %5142, %v2254_v8   ;;  %v865_v22 = vld [vmem:[%s9421_s28] sm:$0xff]  ;;  %v2300_v36 = vperm.slane %v6046_v35, 4  ;;  %v2302_v38 = vperm.slane %v6046_v35, 5  ;;  %v6061_v45 = vperm.slane %v6046_v35, 6  ;;  %v6064_v47 = vperm.slane %v6046_v35, 7  ;;  %s6087_s22 = sld [smem:[#allocation10 + $0x105]] }
  0xce   : > { %769 = vmatpush.bf16.msra.mxu0 %v4961_v15  ;;  %v702_v31 = vld [vmem:[#allocation2] sm:$0xff]  ;;  %s6091_s7 = sld [smem:[#allocation10 + $0x106]]  ;;  %s9428_s9 = scalar_lea.vmem [#allocation5], %s6074_s30 }
  0xcf   : > { %v703_v33 = vpack.c.bf16 %v702_v31, %v702_v31  ;;  %s6093_s0 = sld [smem:[#allocation10 + $0x107]]  ;;  %v9239_v31 = vmov 2131351028   ;;  %s9429_s8 = scalar_lea.vmem [#allocation5], %s6076_s29 }
  0xd0   : > { %850 = vmatpush.bf16.msra.mxu1 %v4968_v16  ;;  %s6099_s4 = sld [smem:[#allocation10]]  ;;  %s9430_s30 = scalar_lea.vmem [#allocation5], %s6078_s20 }
  0xd1   : > { %s6103_s18 = sld [smem:[#allocation10 + $0x1]] }
  0xd2   : > { %770 = vmatpush.bf16.msra.mxu0 %v4960_v17  ;;  %s6105_s19 = sld [smem:[#allocation10 + $0x2]]  ;;  %s9432_s29 = scalar_lea.vmem [#allocation5], %s6083_s23 }
  0xd3   : > { %s6107_s3 = sld [smem:[#allocation10 + $0x3]]  ;;  %s9433_s20 = scalar_lea.vmem [#allocation5], %s6087_s22 }
  0xd4   : > { %851 = vmatpush.bf16.msra.mxu1 %v4967_v19  ;;  %s6110_s24 = sld [smem:[#allocation10 + $0x4]] }
  0xd5   : > { %5145 = vset.pattern.permute.xlu1 %v5648_v18  ;;  %5143 = vset.pattern.permute.xlu0 %v5647_v14  ;;  %s6114_s21 = sld [smem:[#allocation10 + $0x5]]  ;;  %s9435_s23 = scalar_lea.vmem [#allocation5], %s6093_s0 }
  0xd6   : > { %3434 = vperm.xlu1 %5145, %v2254_v8   ;;  %2663 = vperm.xlu0 %5143, %v2254_v8   ;;  %s6117_s2 = sld [smem:[#allocation10 + $0x6]]  ;;  %s9486_s11 = scalar_lea.vmem [#allocation5], %s6099_s4 }
  0xd7   : > { %771 = vmatpush.bf16.msra.mxu0 %v4959_v20  ;;  %s6121_s14 = sld [smem:[#allocation10 + $0x7]] }
  0xd8   : > { %852 = vmatpush.bf16.msra.mxu1 %v4966_v21  ;;  %s6427_s22 = sld [smem:[#allocation10 + $0x80]]  ;;  %s9493_s4 = scalar_lea.vmem [#allocation5], %s6105_s19 }
  0xd9   : > { %s6436_s0 = sld [smem:[#allocation10 + $0x82]] }
  0xda   : > { %s6536_s16 = sld [smem:[#allocation10 + $0x87]]  ;;  %s9503_s19 = scalar_lea.vmem [#allocation5], %s6110_s24 }
  0xdb   : > { %772 = vmatpush.bf16.msra.mxu0 %v4958_v23  ;;  %s6692_s17 = sld [smem:[#allocation10 + $0x183]] }
  0xdc   : > { %853 = vmatpush.bf16.msra.mxu1 %v4965_v24  ;;  %v9249_v24 = vmov 2102212464   ;;  %s6702_s1 = sld [smem:[#allocation10 + $0x184]]  ;;  %s9509_s24 = scalar_lea.vmem [#allocation5], %s6117_s2 }
  0xdd   : > { %s6710_s26 = sld [smem:[#allocation10 + $0x185]] }
  0xde   : > { %5146 = vset.pattern.permute.xlu0 %v9242_v10  ;;  %s6727_s10 = sld [smem:[#allocation10 + $0x186]] }
  0xdf   : > { %939 = vperm.xlu0 %5146, %v865_v22   ;;  %773 = vmatpush.bf16.msra.mxu0 %v4957_v25  ;;  %s6743_s13 = sld [smem:[#allocation10 + $0x187]] }
  0xe0   : > { %854 = vmatpush.bf16.msra.mxu1 %v4964_v26  ;;  %v9254_v26 = vmov 920167782   ;;  %s7110_s2 = sld [smem:[#allocation9 + $0x100]] }
  0xe1   : > { %s7411_s15 = sld [smem:[#allocation9 + $0x4]] }
  0xe2   : > { %s7428_s12 = sld [smem:[#allocation9 + $0x6]] }
  0xe3   : > { %774 = vmatpush.bf16.msra.mxu0 %v4956_v27  ;;  %s7480_s6 = sld [smem:[#allocation9 + $0x7]] }
  0xe4   : > { %855 = vmatpush.bf16.msra.mxu1 %v4963_v28 }
  0xe7   : > { %5148 = vset.pattern.permute.xlu0 %v5645_v9  ;;  %775 = vmatpush.bf16.msra.mxu0 %v4955_v30 }
  0xe8   : > { %1754 = vperm.xlu0 %5148, %v865_v22   ;;  %856 = vmatmul.bf16.vlgmr.msra.gmra.mxu1 %v783_v32 }
  0xea   : > { %776 = vmatmul.bf16.vlgmr.msra.gmra.mxu0 %v703_v33 }
  0xf0   : > { %5149 = vset.pattern.permute.xlu0 %v5648_v18 }
 0x13f   : > { %v3037_v34 = vpop.permute.xlu1 %3036  ;;  %v2298_v41 = vpop.permute.xlu0 %2297 }
 0x140   : > { %v3039_v46 = vmul.f32 %v3037_v34, %v2300_v36  ;;  %v3195_v48 = vmul.f32 %v3037_v34, %v6061_v45  ;;  %v2301_v56 = vmul.f32 %v2300_v36, %v2298_v41  ;;  %v2459_v58 = vmul.f32 %v6061_v45, %v2298_v41 }
 0x142   : > { %v6067_v49 = vadd.f32 %v3039_v46, %v2302_v38  ;;  %v6070_v50 = vadd.f32 %v3195_v48, %v6064_v47  ;;  %v6085_v60 = vadd.f32 %v2302_v38, %v2301_v56  ;;  %v6096_v0 = vadd.f32 %v6064_v47, %v2459_v58 }
 0x143   : > { %v9251_v46 = vmov 683565275  }
 0x144   : > { %9424 = vst [vmem:[#allocation47_spill] sm:$0xff] %v6070_v50  ;;  %v3044_v51 = vand.u32 2139095040, %v6067_v49  ;;  %v3200_v52 = vand.u32 2139095040, %v6070_v50  ;;  %v9235_v1 = vand.u32 2147483647, %v6070_v50  ;;  %v2307_v3 = vand.u32 2139095040, %v6085_v60 }
 0x145   : > { %9425 = vst [vmem:[#allocation48_spill] sm:$0xff] %v6096_v0  ;;  %v2465_v6 = vand.u32 2139095040, %v6096_v0 }
 0x146   : > { %v3045_v53 = vshrl.u32 %v3044_v51, 23  ;;  %v3201_v54 = vshrl.u32 %v3200_v52, 23  ;;  %v3204_v7 = vand.u32 8388607, %v9235_v1  ;;  %v2308_v8 = vshrl.u32 %v2307_v3, 23 }
 0x147   : > { %v2466_v14 = vshrl.u32 %v2465_v6, 23  ;;  %v9247_v51 = vmov 2475754826  }
 0x148   : > { %v6049_v37 = vpop.permute.xlu1 %3434  ;;  %v6055_v42 = vpop.permute.xlu0 %2663  ;;  %v4750_v55 = vadd.s32 4294967169, %v3045_v53  ;;  %v4753_v57 = vadd.s32 4294967169, %v3201_v54  ;;  %v3205_v15 = vor.u32 8388608, %v3204_v7  ;;  %v4722_v16 = vadd.s32 4294967169, %v2308_v8 }
 0x149   : > { %v3437_v39 = vmul.f32 %v6049_v37, %v2300_v36  ;;  %v2666_v43 = vmul.f32 %v6055_v42, %v2300_v36  ;;  %v4725_v19 = vadd.s32 4294967169, %v2466_v14  ;;  %v3593_v36 = vmul.f32 %v6049_v37, %v6061_v45 }
 0x14a   : > { %v3051_v59 = vadd.s32 1, %v4750_v55  ;;  %v3207_v63 = vadd.s32 1, %v4753_v57  ;;  %v6131_v20 = vshll.u32 %v3205_v15, 8  ;;  %v2314_v21 = vadd.s32 1, %v4722_v16 }
 0x14b   : > { %v6053_v40 = vadd.f32 %v3437_v39, %v2302_v38  ;;  %v6058_v44 = vadd.f32 %v2666_v43, %v2302_v38  ;;  %v6153_v34 = vadd.s32 1, %v4725_v19  ;;  %v6193_v3 = vadd.f32 %v3593_v36, %v6064_v47 }
 0x14c   : > { %vm3052_vm1 = vcmp.gt.s32.totalorder %v3051_v59, 0  ;;  %vm3208_vm2 = vcmp.gt.s32.totalorder %v3207_v63, 0  ;;  %9426 = vst [vmem:[#allocation49_spill] sm:$0xff] %v6131_v20  ;;  %v6164_v41 = vand.u32 65535, %v6131_v20  ;;  %v6167_v43 = vshrl.u32 %v6131_v20, 16 }
 0x14d   : > { %9422 = vst [vmem:[#allocation45_spill] sm:$0xff] %v6053_v40  ;;  %v3053_v5 = vsel %vm3052_vm1, %v3051_v59, 0  ;;  %v3209_v13 = vsel %vm3208_vm2, %v3207_v63, 0  ;;  %vm2315_vm4 = vcmp.gt.s32.totalorder %v2314_v21, 0  ;;  %vm2473_vm6 = vcmp.gt.s32.totalorder %v6153_v34, 0 }
 0x14e   : > { %9423 = vst [vmem:[#allocation46_spill] sm:$0xff] %v6058_v44  ;;  %v6119_v12 = vand.u32 31, %v3053_v5  ;;  %v3211_v17 = vand.u32 31, %v3209_v13  ;;  %v6134_v22 = vshrl.u32 %v3053_v5, 5  ;;  %v6161_v39 = vshrl.u32 %v3209_v13, 5 }
 0x14f   : > { %v6190_v63 = vsel %vm2315_vm4, %v2314_v21, 0  ;;  %9427 = vst [vmem:[#allocation50_spill] sm:$0xff] %v6193_v3 }
 0x150   : > { %v6127_v18 = vsub.s32 32, %v6119_v12  ;;  %v3212_v23 = vsub.s32 32, %v3211_v17  ;;  %v3067_v25 = vshll.u32 %v9249_v24, %v6119_v12  ;;  %v3070_v28 = vshll.u32 %v9254_v26, %v6119_v12 }
 0x151   : > { %v3220_v32 = vshll.u32 %v9239_v31, %v3211_v17  ;;  %vm3076_vm3 = vcmp.lt.s32.totalorder %v6134_v22, 4  ;;  %v3214_v48 = vshll.u32 %v9251_v46, %v3211_v17  ;;  %v3217_v53 = vshll.u32 %v9247_v51, %v3211_v17 }
 0x152   : > { %v3068_v27 = vshrl.u32 %v9254_v26, %v6127_v18  ;;  %v3071_v30 = vshrl.u32 %v9244_v29, %v6127_v18  ;;  %v3221_v33 = vshrl.u32 %v9249_v24, %v3212_v23  ;;  %v3215_v37 = vshrl.u32 %v9247_v51, %v3212_v23 }
 0x153   : > { %v3218_v54 = vshrl.u32 %v9239_v31, %v3212_v23  ;;  %v3223_v55 = vshll.u32 %v9249_v24, %v3211_v17  ;;  %v3224_v57 = vshrl.u32 %v9254_v26, %v3212_v23  ;;  %v6179_v58 = vshll.u32 %v9254_v26, %v3211_v17 }
 0x154   : > { %v6159_v38 = vor.u32 %v3068_v27, %v3067_v25  ;;  %v3072_v52 = vor.u32 %v3071_v30, %v3070_v28  ;;  %v6175_v56 = vor.u32 %v3221_v33, %v3220_v32  ;;  %v6182_v59 = vshrl.u32 %v9244_v29, %v3212_v23 }
 0x155   : > { %vm3232_vm5 = vcmp.lt.s32.totalorder %v6161_v39, 4  ;;  %v3213_v6 = vshrl.u32 %v9251_v46, %v3212_v23  ;;  %v3216_v7 = vor.u32 %v3215_v37, %v3214_v48  ;;  %v3219_v13 = vor.u32 %v3218_v54, %v3217_v53 }
 0x156   : > { %vm3229_vm8 = vcmp.lt.s32.totalorder %v6161_v39, 1  ;;  %v3225_v15 = vor.u32 %v3224_v57, %v3223_v55  ;;  %v3228_v16 = vor.u32 %v6182_v59, %v6179_v58  ;;  %v3234_v17 = vsel %vm3232_vm5, %v6175_v56, 2102212464 }
 0x157   : > { %vm3231_vm11 = vcmp.lt.s32.totalorder %v6161_v39, 3  ;;  %v3058_v30 = vshll.u32 %v9251_v46, %v6119_v12  ;;  %v3059_v36 = vshrl.u32 %v9247_v51, %v6127_v18  ;;  %v3061_v48 = vshll.u32 %v9247_v51, %v6119_v12 }
 0x158   : > { %v3062_v37 = vshrl.u32 %v9239_v31, %v6127_v18  ;;  %v3064_v59 = vshll.u32 %v9239_v31, %v6119_v12  ;;  %vm3073_vm1 = vcmp.lt.s32.totalorder %v6134_v22, 1  ;;  %vm3074_vm2 = vcmp.lt.s32.totalorder %v6134_v22, 2 }
 0x159   : > { %v6251_v57 = vor.u32 %v3059_v36, %v3058_v30  ;;  %vm3075_vm4 = vcmp.lt.s32.totalorder %v6134_v22, 3  ;;  %v3237_v30 = vsel %vm3229_vm8, %v3216_v7, %v3219_v13  ;;  %v3598_v22 = vand.u32 2139095040, %v6193_v3 }
 0x15a   : > { %v6253_v58 = vor.u32 %v3062_v37, %v3061_v48 }
 0x15c   : > { %v3081_v12 = vsel %vm3073_vm1, %v6251_v57, %v6253_v58 }
 0x165   : > { %v857_v61 = vpop.f32.mrf.mxu1 }
 0x166   : > { %861 = vst [vmem:[#allocation5] sm:$0xff] %v857_v61  ;;  %v6187_v61 = vsel %vm3076_vm3, %v6159_v38, 920167782 }
 0x167   : > { %v6089_v62 = vpop.f32.mrf.mxu0 }
 0x168   : > { %781 = vst [vmem:[#allocation4] sm:$0xff] %v6089_v62 }
 0x16d   : > { %v859_v9 = vpop.f32.mrf.mxu1  ;;  %v5150_v5 = vld [vmem:[%s9428_s9] ss:$0 sm:$0xff]  ;;  %s6446_s9 = sld [smem:[#allocation10 + $0x83]] }
 0x16e   : > { %v5151_v8 = vld [vmem:[%s9429_s8] ss:$0 sm:$0xff]  ;;  %v9241_v9 = vand.u32 2147483647, %v6067_v49  ;;  %s9431_s8 = scalar_lea.vmem [#allocation5], %s6080_s27  ;;  %v2999_v21 = vsel %vm9370_vm7, %v5150_v5, 0.0 }
 0x16f   : > { %v779_v11 = vpop.f32.mrf.mxu0  ;;  %v5152_v14 = vld [vmem:[%s9430_s30] ss:$0 sm:$0xff]  ;;  %v3004_v25 = vsel %vm9363_vm9, %v5151_v8, %v2999_v21  ;;  %s9434_s27 = scalar_lea.vmem [#allocation5], %s6091_s7  ;;  %v3238_v5 = vsel %vm3232_vm5, %v3225_v15, 920167782  ;;  %s6431_s7 = sld [smem:[#allocation10 + $0x81]] }
 0x170   : > { %v3086_v11 = vsel %vm3076_vm3, %v3072_v52, 1326507024  ;;  %v5153_v19 = vld [vmem:[%s9431_s8] ss:$0 sm:$0xff]  ;;  %v3048_v28 = vand.u32 8388607, %v9241_v9  ;;  %v3009_v32 = vsel %vm9325_vm10, %v5152_v14, %v3004_v25  ;;  %v3065_v14 = vshrl.u32 %v9249_v24, %v6127_v18 }
 0x171   : > { %v5154_v23 = vld [vmem:[%s9432_s29] ss:$0 sm:$0xff]  ;;  %v3014_v52 = vsel %vm9324_vm12, %v5153_v19, %v3009_v32  ;;  %v3087_v25 = vsel %vm3075_vm4, %v6159_v38, %v3086_v11  ;;  %v6289_v32 = vsel %vm2473_vm6, %v6153_v34, 0  ;;  %v3242_v38 = vsel %vm3232_vm5, %v3228_v16, 1326507024  ;;  %s6456_s30 = sld [smem:[#allocation10 + $0x84]] }
 0x172   : > { %v5155_v27 = vld [vmem:[%s9433_s20] ss:$0 sm:$0xff]  ;;  %v3049_v54 = vor.u32 8388608, %v3048_v28  ;;  %v3019_v55 = vsel %vm9320_vm13, %v5154_v23, %v3014_v52  ;;  %v3066_v23 = vor.u32 %v3065_v14, %v3064_v59  ;;  %v3233_v28 = vsel %vm3229_vm8, %v3213_v6, %v3216_v7  ;;  %s6469_s8 = sld [smem:[#allocation10 + $0x85]] }
 0x173   : > { %v5156_v33 = vld [vmem:[%s9434_s27] ss:$0 sm:$0xff]  ;;  %v3024_v8 = vsel %vm9318_vm14, %v5155_v27, %v3019_v55  ;;  %v3239_v7 = vsel %vm3231_vm11, %v6175_v56, %v3238_v5  ;;  %v3241_v52 = vsel %vm3229_vm8, %v3219_v13, %v6175_v56  ;;  %v6317_v59 = vshrl.u32 %v6190_v63, 5  ;;  %s6476_s29 = sld [smem:[#allocation10 + $0x86]] }
 0x174   : > { %v5157_v53 = vld [vmem:[%s9435_s23] ss:$0 sm:$0xff]  ;;  %v3029_v19 = vsel %vm9234_vm15, %v5156_v33, %v3024_v8  ;;  %v6279_v27 = vshll.u32 %v3049_v54, 8  ;;  %vm3230_vm15 = vcmp.lt.s32.totalorder %v6161_v39, 2  ;;  %v3235_v33 = vsel %vm3231_vm11, %v3219_v13, %v3234_v17  ;;  %s6673_s20 = sld [smem:[#allocation10 + $0x180]] }
 0x175   : > { %v6274_v21 = vsel %vm932_vm0, %v5157_v53, %v3029_v19  ;;  %v3083_v11 = vsel %vm3075_vm4, %v3066_v23, %v6187_v61  ;;  %v3085_v6 = vsel %vm3073_vm1, %v6253_v58, %v3066_v23  ;;  %v3243_v53 = vsel %vm3231_vm11, %v3225_v15, %v3242_v38  ;;  %s6677_s23 = sld [smem:[#allocation10 + $0x181]] }
 0x176   : > { %9436 = vst [vmem:[#allocation51_spill] sm:$0xff] %v6274_v21  ;;  %v3084_v34 = vsel %vm3074_vm2, %v3081_v12, %v3083_v11  ;;  %v3088_v17 = vsel %vm3074_vm2, %v3085_v6, %v3087_v25  ;;  %v3090_v16 = vand.u32 65535, %v6279_v27  ;;  %v3091_v36 = vshrl.u32 %v6279_v27, 16  ;;  %s6681_s27 = sld [smem:[#allocation10 + $0x182]] }
 0x177   : > { %v3092_v48 = vand.u32 65535, %v3088_v17  ;;  %v3093_v61 = vshrl.u32 %v3088_v17, 16  ;;  %v3114_v37 = vand.u32 65535, %v3084_v34  ;;  %v3442_v54 = vand.u32 2139095040, %v6053_v40 }
 0x178   : > { %v3115_v55 = vshrl.u32 %v3084_v34, 16  ;;  %v9236_v5 = vand.u32 2147483647, %v6193_v3  ;;  %v6322_v19 = vsel %vm3230_vm15, %v3233_v28, %v3235_v33  ;;  %v6326_v56 = vsel %vm3230_vm15, %v3237_v30, %v3239_v7 }
 0x179   : > { %v3095_v8 = vmul.u32 %v3093_v61, %v3090_v16  ;;  %v3096_v14 = vmul.u32 %v3092_v48, %v3091_v36  ;;  %9437 = vst [vmem:[#allocation52_spill] sm:$0xff] %v6322_v19  ;;  %v3118_v15 = vmul.u32 %v3114_v37, %v3091_v36  ;;  %v6330_v12 = vsel %vm3230_vm15, %v3241_v52, %v3243_v53  ;;  %s9563_s25 = scalar_lea.vmem [#allocation5], %s6476_s29  ;;  %s7784_s29 = sld [smem:[#allocation9 + $0x86]] }
 0x17a   : > { %9438 = vst [vmem:[#allocation53_spill] sm:$0xff] %v6326_v56  ;;  %v3117_v13 = vmul.u32 %v3115_v55, %v3090_v16  ;;  %v6333_v25 = vand.u32 31, %v6190_v63  ;;  %v3094_v38 = vmul.u32 %v3092_v48, %v3090_v16  ;;  %v6336_v6 = vand.u32 31, %v6289_v32 }
 0x17b   : > { %v3098_v11 = vshll.u32 %v3095_v8, 16  ;;  %v3097_v28 = vmul.u32 %v3093_v61, %v3091_v36  ;;  %v3116_v33 = vmul.u32 %v3114_v37, %v3090_v16  ;;  %v3100_v17 = vshll.u32 %v3096_v14, 16 }
 0x17c   : > { %9439 = vst [vmem:[#allocation54_spill] sm:$0xff] %v6336_v6  ;;  %v3120_v34 = vshll.u32 %v3117_v13, 16  ;;  %v3119_v7 = vmul.u32 %v3115_v55, %v3091_v36  ;;  %v3122_v39 = vshll.u32 %v3118_v15, 16  ;;  %v3057_v63 = vshrl.u32 %v9251_v46, %v6127_v18 }
 0x17d   : > { %vm3102_vm5 = vc.u32 %v3094_v38, %v3098_v11  ;;  %v3104_v30 = vadd.s32 %v3098_v11, %v3094_v38  ;;  %v3078_v16 = vsel %vm3076_vm3, %v3066_v23, 2102212464  ;;  %v3443_v36 = vshrl.u32 %v3442_v54, 23 }
 0x17e   : > { %v3103_v1 = vsel %vm3102_vm5, 1, %v9242_v10  ;;  %vm3124_vm6 = vc.u32 %v3116_v33, %v3120_v34  ;;  %v3126_v52 = vadd.s32 %v3120_v34, %v3116_v33  ;;  %v3099_v55 = vshrl.u32 %v3095_v8, 16 }
 0x17f   : > { %v3105_v48 = vadd.s32 %v3103_v1, %v3097_v28  ;;  %vm3106_vm8 = vc.u32 %v3104_v30, %v3100_v17  ;;  %v3125_v53 = vsel %vm3124_vm6, 1, %v9242_v10  ;;  %v9237_v33 = vshrl.u32 %v6330_v12, 16 }
 0x180   : > { %v3107_v61 = vsel %vm3106_vm8, 1, %v9242_v10  ;;  %v3127_v37 = vadd.s32 %v3125_v53, %v3119_v7  ;;  %vm3128_vm11 = vc.u32 %v3126_v52, %v3122_v39  ;;  %v3271_v18 = vshrl.u32 %v6326_v56, 16 }
 0x181   : > { %v3109_v38 = vadd.s32 %v3107_v61, %v3105_v48  ;;  %v3129_v11 = vsel %vm3128_vm11, 1, %v9242_v10  ;;  %v3121_v1 = vshrl.u32 %v3117_v13, 16  ;;  %v3077_v34 = vsel %vm3073_vm1, %v3057_v63, %v6251_v57 }
 0x182   : > { %v3131_v28 = vadd.s32 %v3129_v11, %v3127_v37  ;;  %v3079_v23 = vsel %vm3075_vm4, %v6253_v58, %v3078_v16  ;;  %v3101_v17 = vshrl.u32 %v3096_v14, 16  ;;  %v6356_v30 = vsub.s32 32, %v6336_v6 }
 0x183   : > { %v3110_v54 = vadd.s32 %v3109_v38, %v3099_v55  ;;  %v3123_v7 = vshrl.u32 %v3118_v15, 16  ;;  %v6359_v13 = vshrl.u32 %v6289_v32, 5  ;;  %v4764_v53 = vadd.s32 4294967169, %v3443_v36 }
 0x184   : > { %9440 = vst [vmem:[#allocation55_spill] sm:$0xff] %v6356_v30  ;;  %v3132_v48 = vadd.s32 %v3131_v28, %v3121_v1  ;;  %v6363_v57 = vadd.s32 %v3126_v52, %v3122_v39  ;;  %v6368_v58 = vmul.u32 %v9237_v33, %v6164_v41  ;;  %v3080_v15 = vsel %vm3074_vm2, %v3077_v34, %v3079_v23 }
 0x185   : > { %9441 = vst [vmem:[#allocation56_spill] sm:$0xff] %v6359_v13  ;;  %v6361_v61 = vadd.s32 %v3110_v54, %v3101_v17  ;;  %v9246_v32 = vand.u32 65535, %v6330_v12  ;;  %v6376_v16 = vmul.u32 %v3271_v18, %v6164_v41  ;;  %v6379_v39 = vsub.s32 32, %v6333_v25 }
 0x186   : > { %v3133_v63 = vadd.s32 %v3132_v48, %v3123_v7  ;;  %v6384_v52 = vmul.u32 %v3271_v18, %v6167_v43  ;;  %v2489_v37 = vshrl.u32 %v9254_v26, %v6356_v30  ;;  %v2488_v55 = vshll.u32 %v9249_v24, %v6336_v6 }
 0x187   : > { %9442 = vst [vmem:[#allocation57_spill] sm:$0xff] %v6376_v16  ;;  %vm3136_vm3 = vc.u32 %v6361_v61, %v6363_v57  ;;  %vm9274_vm15 = vcmp.lt.s32.totalorder %v6359_v13, 4  ;;  %v3449_v38 = vadd.s32 1, %v4764_v53  ;;  %v3134_v11 = vmul.u32 %v6279_v27, %v3080_v15 }
 0x188   : > { %9443 = vst [vmem:[#allocation58_spill] sm:$0xff] %v6384_v52  ;;  %v3137_v36 = vadd.s32 1, %v3133_v63  ;;  %v2491_v18 = vshll.u32 %v9254_v26, %v6336_v6  ;;  %v9238_v34 = vand.u32 2147483647, %v6085_v60  ;;  %v2492_v23 = vshrl.u32 %v9244_v29, %v6356_v30 }
 0x189   : > { %v3602_v17 = vand.u32 8388607, %v9236_v5  ;;  %v2325_v7 = vshrl.u32 %v9239_v31, %v6379_v39  ;;  %v6403_v48 = vor.u32 %v2489_v37, %v2488_v55  ;;  %v3599_v27 = vshrl.u32 %v3598_v22, 23 }
 0x18a   : > { %v3138_v28 = vsel %vm3136_vm3, %v3137_v36, %v3133_v63  ;;  %v2328_v53 = vshrl.u32 %v9249_v24, %v6379_v39  ;;  %v2331_v15 = vshrl.u32 %v9254_v26, %v6379_v39  ;;  %vm3450_vm1 = vcmp.gt.s32.totalorder %v3449_v38, 0 }
 0x18b   : > { %v3139_v54 = vadd.s32 %v3138_v28, %v3134_v11  ;;  %9444 = vst [vmem:[#allocation59_spill] sm:$0xff] %v6403_v48  ;;  %v2324_v36 = vshll.u32 %v9247_v51, %v6333_v25  ;;  %v2327_v11 = vshll.u32 %v9239_v31, %v6333_v25  ;;  %v2311_v28 = vand.u32 8388607, %v9238_v34 }
 0x18c   : > { %v2330_v37 = vshll.u32 %v9249_v24, %v6333_v25  ;;  %v2333_v22 = vshll.u32 %v9254_v26, %v6333_v25  ;;  %v2334_v55 = vshrl.u32 %v9244_v29, %v6379_v39  ;;  %v3603_v5 = vor.u32 8388608, %v3602_v17 }
 0x18d   : > { %v3140_v63 = vadd.s32 536870912, %v3139_v54  ;;  %v6423_v8 = vor.u32 %v2325_v7, %v2324_v36  ;;  %v6425_v1 = vor.u32 %v2328_v53, %v2327_v11  ;;  %v2493_v33 = vor.u32 %v2492_v23, %v2491_v18 }
 0x18e   : > { %v2322_v34 = vshrl.u32 %v9247_v51, %v6379_v39  ;;  %v2332_v31 = vor.u32 %v2331_v15, %v2330_v37  ;;  %v2335_v9 = vor.u32 %v2334_v55, %v2333_v22  ;;  %v3451_v10 = vsel %vm3450_vm1, %v3449_v38, 0 }
 0x18f   : > { %v6421_v14 = vshrl.u32 %v3140_v63, 30  ;;  %v4767_v29 = vadd.s32 4294967169, %v3599_v27  ;;  %v2671_v17 = vand.u32 2139095040, %v6058_v44  ;;  %v6441_v18 = vsel %vm9274_vm15, %v6403_v48, 920167782 }
 0x190   : > { %9445 = vst [vmem:[#allocation60_spill] sm:$0xff] %v6441_v18  ;;  %v2312_v23 = vor.u32 8388608, %v2311_v28  ;;  %v2321_v53 = vshll.u32 %v9251_v46, %v6333_v25  ;;  %vm2336_vm2 = vcmp.lt.s32.totalorder %v6317_v59, 1  ;;  %vm2338_vm4 = vcmp.lt.s32.totalorder %v6317_v59, 3 }
 0x191   : > { %v3142_v7 = vshll.u32 %v6421_v14, 30  ;;  %vm2339_vm5 = vcmp.lt.s32.totalorder %v6317_v59, 4  ;;  %v2348_v27 = vsel %vm2336_vm2, %v6423_v8, %v6425_v1  ;;  %v6461_v25 = vmul.u32 %v9246_v32, %v6164_v41 }
 0x192   : > { %v6463_v15 = vor.u32 %v2322_v34, %v2321_v53  ;;  %v2349_v63 = vsel %vm2339_vm5, %v2335_v9, 1326507024  ;;  %vm2337_vm8 = vcmp.lt.s32.totalorder %v6317_v59, 2  ;;  %v6478_v34 = vand.u32 31, %v3451_v10 }
 0x193   : > { %v6448_v38 = vsub.s32 %v3139_v54, %v3142_v7  ;;  %v2345_v54 = vsel %vm2339_vm5, %v2332_v31, 920167782  ;;  %v2350_v11 = vsel %vm2338_vm4, %v2332_v31, %v2349_v63  ;;  %v6480_v28 = vshll.u32 %v3603_v5, 8 }
 0x194   : > { %9446 = vst [vmem:[#allocation61_spill] sm:$0xff] %v6478_v34  ;;  %v2351_v9 = vsel %vm2337_vm8, %v2348_v27, %v2350_v11  ;;  %v6484_v37 = vshll.u32 %v2312_v23, 8  ;;  %v6489_v22 = vsel %vm9274_vm15, %v2493_v33, 1326507024  ;;  %v3605_v55 = vadd.s32 1, %v4767_v29 }
 0x195   : > { %vm3144_vm6 = vcmp.lt.s32.totalorder %v6448_v38, 0  ;;  %v3145_v36 = vsub.s32 0, %v6448_v38  ;;  %9447 = vst [vmem:[#allocation62_spill] sm:$0xff] %v6480_v28  ;;  %v2822_v31 = vmul.f32 %v6055_v42, %v6061_v45  ;;  %v2672_v5 = vshrl.u32 %v2671_v17, 23 }
 0x196   : > { %9448 = vst [vmem:[#allocation63_spill] sm:$0xff] %v6489_v22  ;;  %v2344_v23 = vsel %vm2336_vm2, %v6463_v15, %v6423_v8  ;;  %v2346_v33 = vsel %vm2338_vm4, %v6425_v1, %v2345_v54  ;;  %v6503_v29 = vshrl.u32 %v3451_v10, 5  ;;  %v2353_v42 = vand.u32 65535, %v6484_v37 }
 0x197   : > { %v3146_v7 = vsel %vm3144_vm6, %v3145_v36, %v6448_v38  ;;  %v2355_v45 = vand.u32 65535, %v2351_v9  ;;  %v2356_v27 = vshrl.u32 %v2351_v9, 16  ;;  %v6508_v17 = vsub.s32 32, %v6478_v34 }
 0x198   : > { %v3147_v53 = vclz %v3146_v7  ;;  %v6511_v63 = vand.u32 65535, %v6480_v28  ;;  %v6514_v36 = vshrl.u32 %v6480_v28, 16  ;;  %v3465_v10 = vshll.u32 %v9249_v24, %v6478_v34 }
 0x199   : > { %9449 = vst [vmem:[#allocation64_spill] sm:$0xff] %v6508_v17  ;;  %v2347_v11 = vsel %vm2337_vm8, %v2344_v23, %v2346_v33  ;;  %v2354_v9 = vshrl.u32 %v6484_v37, 16  ;;  %v6521_v7 = vmul.u32 %v2356_v27, %v2353_v42  ;;  %v6527_v32 = vshll.u32 %v9254_v26, %v6478_v34 }
 0x19a   : > { %9450 = vst [vmem:[#allocation65_spill] sm:$0xff] %v6511_v63  ;;  %v4751_v54 = vadd.s32 4294967294, %v3147_v53  ;;  %vm3606_vm11 = vcmp.gt.s32.totalorder %v3605_v55, 0  ;;  %v4736_v51 = vadd.s32 4294967169, %v2672_v5  ;;  %v6531_v53 = vadd.f32 %v2822_v31, %v6064_v47 }
 0x19b   : > { %9451 = vst [vmem:[#allocation66_spill] sm:$0xff] %v6514_v36  ;;  %v6533_v46 = vmul.u32 %v2355_v45, %v2354_v9  ;;  %v2361_v23 = vshll.u32 %v6521_v7, 16  ;;  %v3135_v33 = vadd.s32 %v6363_v57, %v6361_v61  ;;  %v2378_v3 = vshrl.u32 %v2347_v11, 16 }
 0x19c   : > { %vm4752_vm3 = vcmp.lt.s32.totalorder %v4751_v54, 0  ;;  %9452 = vst [vmem:[#allocation67_spill] sm:$0xff] %v6531_v53  ;;  %v9453_v5 = vmov 920167782   ;;  %v3607_v28 = vsel %vm3606_vm11, %v3605_v55, 0  ;;  %v6543_v47 = vperm.slane %v6046_v35, 0 }
 0x19d   : > { %v3150_v24 = vsel %vm4752_vm3, 0, %v4751_v54  ;;  %v3466_v50 = vshrl.u32 %v9453_v5, %v6508_v17  ;;  %v2357_v31 = vmul.u32 %v2355_v45, %v2353_v42  ;;  %v2377_v34 = vand.u32 65535, %v2347_v11 }
 0x19e   : > { %v3151_v4 = vsub.s32 32, %v3150_v24  ;;  %v3155_v26 = vsub.s32 4294967266, %v3150_v24  ;;  %9454 = vst [vmem:[#allocation68_spill] sm:$0xff] %v6543_v47  ;;  %v3152_v54 = vshll.u32 %v6448_v38, %v3150_v24  ;;  %v2360_v40 = vmul.u32 %v2356_v27, %v2354_v9 }
 0x19f   : > { %v2363_v52 = vshll.u32 %v6533_v46, 16  ;;  %vm2365_vm1 = vc.u32 %v2357_v31, %v2361_v23  ;;  %v2367_v61 = vadd.s32 %v2361_v23, %v2357_v31  ;;  %v9455_v48 = vmov 0  }
 0x1a0   : > { %v3153_v19 = vshrl.u32 %v3135_v33, %v3151_v4  ;;  %v3156_v20 = vadd.s32 127, %v3155_v26  ;;  %v2366_v22 = vsel %vm2365_vm1, 1, %v9455_v48  ;;  %v2380_v55 = vmul.u32 %v2378_v3, %v2353_v42 }
 0x1a1   : > { %v9456_v13 = vmov 1326507024   ;;  %v6553_v24 = vperm.slane %v6046_v35, 1  ;;  %v2368_v4 = vadd.s32 %v2366_v22, %v2360_v40  ;;  %vm2369_vm6 = vc.u32 %v2367_v61, %v2363_v52 }
 0x1a2   : > { %v3154_v57 = vor.u32 %v3153_v19, %v3152_v54  ;;  %v3157_v18 = vshll.u32 %v3156_v20, 23  ;;  %v6550_v6 = vshrl.u32 %v9456_v13, %v6508_v17  ;;  %vm9284_vm11 = vcmp.lt.s32.totalorder %v6503_v29, 4 }
 0x1a3   : > { %9457 = vst [vmem:[#allocation69_spill] sm:$0xff] %v6553_v24  ;;  %v6556_v26 = vshrl.u32 %v3607_v28, 5  ;;  %v2370_v19 = vsel %vm2369_vm6, 1, %v9455_v48  ;;  %v2381_v20 = vmul.u32 %v2377_v34, %v2354_v9  ;;  %v3609_v45 = vand.u32 31, %v3607_v28 }
 0x1a4   : > { %v3158_v38 = vor.u32 4788187, %v3157_v18  ;;  %v6560_v27 = vadd.s32 1, %v4736_v51  ;;  %v2379_v23 = vmul.u32 %v2377_v34, %v2353_v42  ;;  %v3161_v35 = vcvt.s32.f32 %v3154_v57 }
 0x1a5   : > { %9458 = vst [vmem:[#allocation70_spill] sm:$0xff] %v6556_v26  ;;  %v2372_v31 = vadd.s32 %v2370_v19, %v2368_v4  ;;  %v2383_v40 = vshll.u32 %v2380_v55, 16  ;;  %v6563_v52 = vor.u32 %v3466_v50, %v3465_v10  ;;  %v2362_v18 = vshrl.u32 %v6521_v7, 16 }
 0x1a6   : > { %v3159_v33 = vand.u32 2147483647, %v3158_v38  ;;  %v2382_v54 = vmul.u32 %v2378_v3, %v2354_v9  ;;  %v2385_v17 = vshll.u32 %v2381_v20, 16  ;;  %v6568_v28 = vsub.s32 32, %v3609_v45 }
 0x1a7   : > { %9459 = vst [vmem:[#allocation71_spill] sm:$0xff] %v6563_v52  ;;  %vm2387_vm3 = vc.u32 %v2379_v23, %v2383_v40  ;;  %v2389_v51 = vadd.s32 %v2383_v40, %v2379_v23  ;;  %v9460_v11 = vmov 683565275   ;;  %v2827_v42 = vand.u32 2139095040, %v6531_v53 }
 0x1a8   : > { %v3162_v61 = vmul.f32 %v3161_v35, %v3159_v33  ;;  %v6571_v34 = vshll.u32 %v9460_v11, %v3609_v45  ;;  %v2388_v50 = vsel %vm2387_vm3, 1, %v9455_v48  ;;  %v2373_v57 = vadd.s32 %v2372_v31, %v2362_v18 }
 0x1a9   : > { %v2390_v4 = vadd.s32 %v2388_v50, %v2382_v54  ;;  %vm2391_vm1 = vc.u32 %v2389_v51, %v2385_v17  ;;  %v9461_v38 = vmov 2475754826   ;;  %v9462_v3 = vand.u32 2147483647, %v6067_v49 }
 0x1aa   : > { %v3163_v10 = vxor.u32 2147483648, %v3162_v61  ;;  %v3615_v7 = vshll.u32 %v9461_v38, %v3609_v45  ;;  %vm3043_vm15 = vcmp.lt.s32.totalorder %v6067_v49, 0  ;;  %v2341_v19 = vsel %vm2339_vm5, %v6425_v1, 2102212464 }
 0x1ab   : > { %vm6578_vm6 = vcmp.le.f32.partialorder %v9462_v3, 0.7853982  ;;  %v2320_v33 = vshrl.u32 %v9460_v11, %v6379_v39  ;;  %v2364_v35 = vshrl.u32 %v6533_v46, 16  ;;  %v2392_v31 = vsel %vm2391_vm1, 1, %v9455_v48 }
 0x1ac   : > { %v3164_v23 = vsel %vm3043_vm15, %v3163_v10, %v3162_v61  ;;  %v9465_v40 = vmov 2131351028   ;;  %v2384_v50 = vshrl.u32 %v2380_v55, 16  ;;  %v2394_v3 = vadd.s32 %v2392_v31, %v2390_v4 }
 0x1ad   : > { %v3618_v18 = vshll.u32 %v9465_v40, %v3609_v45  ;;  %v3167_v54 = vsel %vm6578_vm6, %v6067_v49, %v3164_v23  ;;  %v2340_v1 = vsel %vm2336_vm2, %v2320_v33, %v6463_v15  ;;  %v2342_v39 = vsel %vm2338_vm4, %v6423_v8, %v2341_v19 }
 0x1ae   : > { %v3169_v22 = vmul.f32 %v3167_v54, %v3167_v54  ;;  %v6602_v46 = vadd.s32 %v2373_v57, %v2364_v35  ;;  %v6607_v61 = vsel %vm9284_vm11, %v6563_v52, 920167782  ;;  %v2828_v10 = vshrl.u32 %v2827_v42, 23 }
 0x1af   : > { %9466 = vst [vmem:[#allocation72_spill] sm:$0xff] %v6607_v61  ;;  %v2386_v23 = vshrl.u32 %v2381_v20, 16  ;;  %v2395_v55 = vadd.s32 %v2394_v3, %v2384_v50  ;;  %v9467_v4 = vmov 2102212464   ;;  %v6610_v0 = vadd.s32 %v2389_v51, %v2385_v17 }
 0x1b0   : > { %v3621_v31 = vshll.u32 %v9467_v4, %v3609_v45  ;;  %v3170_v30 = vmul.f32 -0.001358992, %v3169_v22  ;;  %v3177_v48 = vmul.f32 -0.00019511016, %v3169_v22  ;;  %v3624_v15 = vshll.u32 %v9453_v5, %v3609_v45 }
 0x1b1   : > { %v3165_v8 = vsub.s32 4, %v6421_v14  ;;  %v2343_v57 = vsel %vm2337_vm8, %v2340_v1, %v2342_v39  ;;  %v2396_v19 = vadd.s32 %v2395_v55, %v2386_v23  ;;  %v3622_v33 = vshrl.u32 %v9453_v5, %v6568_v28 }
 0x1b2   : > { %v3171_v42 = vadd.f32 0.041655596, %v3170_v30  ;;  %v3178_v20 = vadd.f32 0.008332121, %v3177_v48  ;;  %vm2399_vm2 = vc.u32 %v6602_v46, %v6610_v0  ;;  %v3613_v17 = vshrl.u32 %v9461_v38, %v6568_v28 }
 0x1b3   : > { %v3625_v45 = vshrl.u32 %v9456_v13, %v6568_v28  ;;  %v4739_v51 = vadd.s32 4294967169, %v2828_v10  ;;  %v2400_v35 = vadd.s32 1, %v2396_v19  ;;  %v3616_v59 = vshrl.u32 %v9465_v40, %v6568_v28 }
 0x1b4   : > { %v3172_v50 = vmul.f32 %v3171_v42, %v3169_v22  ;;  %v3179_v3 = vmul.f32 %v3178_v20, %v3169_v22  ;;  %v2397_v1 = vmul.u32 %v6484_v37, %v2343_v57  ;;  %v3619_v30 = vshrl.u32 %v9467_v4, %v6568_v28 }
 0x1b5   : > { %vm3627_vm4 = vcmp.lt.s32.totalorder %v6556_v26, 1  ;;  %v3166_v48 = vsel %vm3043_vm15, %v3165_v8, %v6421_v14  ;;  %v2401_v39 = vsel %vm2399_vm2, %v2400_v35, %v2396_v19  ;;  %v3623_v23 = vor.u32 %v3622_v33, %v3621_v31 }
 0x1b6   : > { %v3173_v10 = vadd.f32 -0.4999988, %v3172_v50  ;;  %v3180_v55 = vadd.f32 -0.16666654, %v3179_v3  ;;  %v2402_v61 = vadd.s32 %v2401_v39, %v2397_v1  ;;  %v3626_v52 = vor.u32 %v3625_v45, %v3624_v15 }
 0x1b7   : > { %vm3630_vm5 = vcmp.lt.s32.totalorder %v6556_v26, 4  ;;  %vm2679_vm8 = vcmp.gt.s32.totalorder %v6560_v27, 0  ;;  %v2834_v37 = vadd.s32 1, %v4739_v51  ;;  %v3168_v57 = vsel %vm6578_vm6, 0, %v3166_v48  ;;  %v6689_v48 = vpop.permute.xlu0 %939 }
 0x1b8   : > { %v3174_v42 = vmul.f32 %v3173_v10, %v3169_v22  ;;  %v3181_v20 = vmul.f32 %v3180_v55, %v3169_v22  ;;  %v2403_v16 = vadd.s32 536870912, %v2402_v61  ;;  %v3614_v56 = vor.u32 %v3613_v17, %v6571_v34  ;;  %9472 = vst [vmem:[#allocation76_spill] sm:$0xff] %v6689_v48 }
 0x1b9   : > { %v6638_v14 = vor.u32 %v3616_v59, %v3615_v7  ;;  %v3620_v31 = vor.u32 %v3619_v30, %v3618_v18  ;;  %vm9298_vm15 = vcmp.lt.s32.totalorder %v6556_v26, 3  ;;  %v3636_v15 = vsel %vm3630_vm5, %v3623_v23, 920167782 }
 0x1ba   : > { %v3175_v8 = vadd.f32 1.0, %v3174_v42  ;;  %v3182_v19 = vadd.f32 1.0, %v3181_v20  ;;  %v6643_v33 = vshrl.u32 %v2403_v16, 30  ;;  %v9469_v9 = vor.u32 %v6550_v6, %v6527_v32 }
 0x1bb   : > { %9468 = vst [vmem:[#allocation73_spill] sm:$0xff] %v6638_v14  ;;  %v3640_v34 = vsel %vm3630_vm5, %v3626_v52, 1326507024  ;;  %v2680_v7 = vsel %vm2679_vm8, %v6560_v27, 0  ;;  %v3185_v18 = vand.u32 3, %v3168_v57  ;;  %vm2835_vm3 = vcmp.gt.s32.totalorder %v2834_v37, 0 }
 0x1bc   : > { %v6650_v22 = vsel %vm9284_vm11, %v9469_v9, 1326507024  ;;  %v3183_v17 = vmul.f32 %v3182_v19, %v3167_v54  ;;  %v3191_v45 = vxor.u32 2147483648, %v3175_v8  ;;  %v2405_v16 = vshll.u32 %v6643_v33, 30 }
 0x1bd   : > { %9470 = vst [vmem:[#allocation74_spill] sm:$0xff] %v6650_v22  ;;  %vm9291_vm1 = vcmp.lt.s32.totalorder %v6556_v26, 2  ;;  %v3635_v6 = vsel %vm3627_vm4, %v3614_v56, %v6638_v14  ;;  %v3637_v32 = vsel %vm9298_vm15, %v3620_v31, %v3636_v15  ;;  %v3639_v52 = vsel %vm3627_vm4, %v6638_v14, %v3620_v31 }
 0x1be   : > { %v3641_v27 = vsel %vm9298_vm15, %v3623_v23, %v3640_v34  ;;  %v6669_v54 = vand.u32 31, %v2680_v7  ;;  %v3188_v51 = vxor.u32 2147483648, %v3183_v17  ;;  %v6671_v35 = vsub.s32 %v2402_v61, %v2405_v16 }
 0x1bf   : > { %v6675_v59 = vsel %vm2835_vm3, %v2834_v37, 0  ;;  %vm3186_vm6 = vcmp.lt.s32.totalorder %v3185_v18, 2  ;;  %vm3187_vm2 = vcmp.eq.s32.totalorder %v3185_v18, 0  ;;  %vm3190_vm8 = vcmp.eq.s32.totalorder %v3185_v18, 2 }
 0x1c0   : > { %v3189_v50 = vsel %vm3187_vm2, %v3175_v8, %v3188_v51  ;;  %v3192_v3 = vsel %vm3190_vm8, %v3191_v45, %v3183_v17  ;;  %vm2407_vm11 = vcmp.lt.s32.totalorder %v6671_v35, 0  ;;  %v2408_v1 = vsub.s32 0, %v6671_v35 }
 0x1c1   : > { %v3611_v61 = vshrl.u32 %v9460_v11, %v6568_v28  ;;  %v6687_v30 = vsel %vm9291_vm1, %v3639_v52, %v3641_v27  ;;  %vm3184_vm3 = vweird.f32 %v6067_v49  ;;  %v3193_v39 = vsel %vm3186_vm6, %v3189_v50, %v3192_v3 }
 0x1c2   : > { %9471 = vst [vmem:[#allocation75_spill] sm:$0xff] %v6687_v30  ;;  %v6696_v23 = vsel %vm9291_vm1, %v3635_v6, %v3637_v32  ;;  %v6699_v10 = vsub.s32 32, %v6669_v54  ;;  %v3194_v55 = vsel %vm3184_vm3, nan, %v3193_v39  ;;  %v2409_v28 = vsel %vm2407_vm11, %v2408_v1, %v6671_v35 }
 0x1c3   : > { %9473 = vst [vmem:[#allocation77_spill] sm:$0xff] %v6696_v23  ;;  %v6704_v37 = vshrl.u32 %v2680_v7, 5  ;;  %v6707_v49 = vand.u32 31, %v6675_v59  ;;  %v3351_v57 = vadd.f32 %v3194_v55, %v6274_v21  ;;  %v2410_v42 = vclz %v2409_v28 }
 0x1c4   : > { %v9474_v20 = vshrl.u32 %v6330_v12, 16  ;;  %v9475_v8 = vshll.u32 %v6368_v58, 16  ;;  %v6724_v9 = vsel %vm3630_vm5, %v3620_v31, 2102212464  ;;  %v9285_v34 = vand.u32 65535, %v6687_v30 }
 0x1c5   : > { %9476 = vst [vmem:[#allocation78_spill] sm:$0xff] %v6724_v9  ;;  %v3647_v7 = vshrl.u32 %v6687_v30, 16  ;;  %v3352_v17 = vmul.f32 %v3351_v57, %v6089_v62  ;;  %v4723_v45 = vadd.s32 4294967294, %v2410_v42  ;;  %v6735_v16 = vsel %vm3627_vm4, %v3611_v61, %v3614_v56 }
 0x1c6   : > { %v6715_v15 = vmul.u32 %v9474_v20, %v6167_v43  ;;  %v6720_v19 = vadd.s32 %v9475_v8, %v6461_v25  ;;  %9477 = vst [vmem:[#allocation79_spill] sm:$0xff] %v6735_v16  ;;  %v2695_v6 = vshrl.u32 %v9453_v5, %v6699_v10  ;;  %v2698_v32 = vshrl.u32 %v9456_v13, %v6699_v10 }
 0x1c7   : > { %v2694_v62 = vshll.u32 %v9467_v4, %v6669_v54  ;;  %vm2703_vm11 = vcmp.lt.s32.totalorder %v6704_v37, 4  ;;  %v6749_v56 = vsub.s32 32, %v6707_v49  ;;  %3353 = vadd.xlane.f32.xlu1 %v3352_v17  ;;  %vm4724_vm4 = vcmp.lt.s32.totalorder %v4723_v45, 0  ;;  %v6778_v17 = vpop.permute.xlu0 %1754 }
 0x1c8   : > { %v2697_v52 = vshll.u32 %v9453_v5, %v6669_v54  ;;  %v9479_v27 = vand.u32 2147483647, %v6531_v53  ;;  %v943_v50 = vmul.f32 %v6543_v47, %v6689_v48  ;;  %v2413_v3 = vsel %vm4724_vm4, 0, %v4723_v45  ;;  %9483 = vst [vmem:[#allocation84_spill] sm:$0xff] %v6778_v17 }
 0x1c9   : > { %9478 = vst [vmem:[#allocation80_spill] sm:$0xff] %v6749_v56  ;;  %v6762_v1 = vmul.u32 %v9285_v34, %v6511_v63  ;;  %v2398_v61 = vadd.s32 %v6610_v0, %v6602_v46  ;;  %v2414_v39 = vsub.s32 32, %v2413_v3  ;;  %v2418_v55 = vsub.s32 4294967266, %v2413_v3 }
 0x1ca   : > { %v2831_v51 = vand.u32 8388607, %v9479_v27  ;;  %v6768_v28 = vmul.u32 %v3647_v7, %v6511_v63  ;;  %v6771_v57 = vmul.u32 %v3647_v7, %v6514_v36  ;;  %v6773_v42 = vor.u32 %v2695_v6, %v2694_v62 }
 0x1cb   : > { %9480 = vst [vmem:[#allocation81_spill] sm:$0xff] %v6762_v1  ;;  %v2699_v20 = vor.u32 %v2698_v32, %v2697_v52  ;;  %v2854_v8 = vshrl.u32 %v9456_v13, %v6749_v56  ;;  %v2415_v0 = vshll.u32 %v6671_v35, %v2413_v3  ;;  %v2416_v46 = vshrl.u32 %v2398_v61, %v2414_v39 }
 0x1cc   : > { %9481 = vst [vmem:[#allocation82_spill] sm:$0xff] %v6768_v28  ;;  %v2419_v45 = vadd.s32 127, %v2418_v55  ;;  %v2832_v27 = vor.u32 8388608, %v2831_v51  ;;  %v2842_v7 = vshrl.u32 %v9461_v38, %v6749_v56  ;;  %v2853_v6 = vshll.u32 %v9453_v5, %v6707_v49 }
 0x1cd   : > { %9482 = vst [vmem:[#allocation83_spill] sm:$0xff] %v6771_v57  ;;  %v6787_v32 = vadd.f32 %v6553_v24, %v943_v50  ;;  %v2845_v62 = vshrl.u32 %v9465_v40, %v6749_v56  ;;  %v2848_v52 = vshrl.u32 %v9467_v4, %v6749_v56  ;;  %v2417_v35 = vor.u32 %v2416_v46, %v2415_v0 }
 0x1ce   : > { %v2420_v3 = vshll.u32 %v2419_v45, 23  ;;  %v6795_v51 = vshrl.u32 %v6675_v59, 5  ;;  %v2841_v61 = vshll.u32 %v9460_v11, %v6707_v49  ;;  %v2851_v50 = vshrl.u32 %v9453_v5, %v6749_v56 }
 0x1cf   : > { %9484 = vst [vmem:[#allocation85_spill] sm:$0xff] %v6787_v32  ;;  %v1757_v39 = vmul.f32 %v6778_v17, %v6543_v47  ;;  %v2844_v55 = vshll.u32 %v9461_v38, %v6707_v49  ;;  %v2847_v0 = vshll.u32 %v9465_v40, %v6707_v49  ;;  %v2855_v46 = vor.u32 %v2854_v8, %v2853_v6  ;;  %v5158_v17 = vld [vmem:[%s9486_s11] ss:$0 sm:$0xff]  ;;  %s9491_s11 = scalar_lea.vmem [#allocation5], %s6103_s18  ;;  %s9500_s18 = scalar_lea.vmem [#allocation5], %s6107_s3 }
 0x1d0   : > { %v2421_v45 = vor.u32 4788187, %v2420_v3  ;;  %v6810_v59 = vsel %vm2703_vm11, %v6773_v42, 920167782  ;;  %v2713_v18 = vsel %vm2703_vm11, %v2699_v20, 1326507024  ;;  %v6814_v34 = vor.u32 %v2842_v7, %v2841_v61 }
 0x1d1   : > { %v2850_v31 = vshll.u32 %v9467_v4, %v6707_v49  ;;  %v6820_v48 = vor.u32 %v2845_v62, %v2844_v55  ;;  %v6822_v8 = vor.u32 %v2848_v52, %v2847_v0  ;;  %v2424_v3 = vcvt.s32.f32 %v2417_v35  ;;  %v5159_v52 = vld [vmem:[%s9491_s11] ss:$0 sm:$0xff]  ;;  %s9507_s3 = scalar_lea.vmem [#allocation5], %s6114_s21  ;;  %s9519_s21 = scalar_lea.vmem [#allocation5], %s6121_s14 }
 0x1d2   : > { %9485 = vst [vmem:[#allocation86_spill] sm:$0xff] %v6814_v34  ;;  %v2422_v6 = vand.u32 2147483647, %v2421_v45  ;;  %vm9317_vm5 = vcmp.lt.s32.totalorder %v6795_v51, 4  ;;  %v6826_v21 = vadd.f32 %v1757_v39, %v6553_v24  ;;  %v9290_v20 = vand.u32 2147483647, %v6058_v44 }
 0x1d3   : > { %9487 = vst [vmem:[#allocation87_spill] sm:$0xff] %v6820_v48  ;;  %v2852_v47 = vor.u32 %v2851_v50, %v2850_v31  ;;  %v2869_v7 = vsel %vm9317_vm5, %v2855_v46, 1326507024  ;;  %v6831_v49 = vshll.u32 %v2832_v27, 8  ;;  %vm9300_vm6 = vcmp.lt.s32.totalorder %v6795_v51, 1  ;;  %s7121_s14 = sld [smem:[#allocation9 + $0x101]] }
 0x1d4   : > { %9488 = vst [vmem:[#allocation88_spill] sm:$0xff] %v6822_v8  ;;  %v2425_v61 = vmul.f32 %v2424_v3, %v2422_v6  ;;  %vm2857_vm2 = vcmp.lt.s32.totalorder %v6795_v51, 2  ;;  %vm9299_vm8 = vcmp.lt.s32.totalorder %v6795_v51, 3  ;;  %v2259_v31 = vsel %vm9370_vm7, %v5158_v17, 0.0  ;;  %v5160_v3 = vld [vmem:[%s9493_s4] ss:$0 sm:$0xff] }
 0x1d5   : > { %9489 = vst [vmem:[#allocation89_spill] sm:$0xff] %v6826_v21  ;;  %v6845_v27 = vsel %vm9300_vm6, %v6814_v34, %v6820_v48  ;;  %v2868_v35 = vsel %vm9300_vm6, %v6820_v48, %v6822_v8  ;;  %v2675_v39 = vand.u32 8388607, %v9290_v20  ;;  %v2865_v55 = vsel %vm9317_vm5, %v2852_v47, 920167782  ;;  %v9511_v48 = vld [vmem:[#allocation55_spill] sm:$0xff] }
 0x1d6   : > { %9490 = vst [vmem:[#allocation90_spill] sm:$0xff] %v6831_v49  ;;  %v2426_v50 = vxor.u32 2147483648, %v2425_v61  ;;  %v2870_v17 = vsel %vm9299_vm8, %v2852_v47, %v2869_v7  ;;  %v1762_v0 = vand.u32 2139095040, %v6826_v21  ;;  %vm2306_vm3 = vcmp.lt.s32.totalorder %v6085_v60, 0  ;;  %v5161_v53 = vld [vmem:[%s9500_s18] ss:$0 sm:$0xff] }
 0x1d7   : > { %v9492_v46 = vand.u32 65535, %v6330_v12  ;;  %v2264_v6 = vsel %vm9363_vm9, %v5159_v52, %v2259_v31  ;;  %v9494_v20 = vand.u32 2147483647, %v6085_v60  ;;  %v2686_v7 = vshrl.u32 %v9461_v38, %v6699_v10  ;;  %s7131_s11 = sld [smem:[#allocation9 + $0x102]] }
 0x1d8   : > { %v2427_v47 = vsel %vm2306_vm3, %v2426_v50, %v2425_v61  ;;  %v2688_v52 = vshll.u32 %v9461_v38, %v6669_v54  ;;  %v9497_v31 = vshll.u32 %v6368_v58, 16  ;;  %v6897_v61 = vsel %vm9299_vm8, %v6822_v8, %v2865_v55  ;;  %s7134_s4 = sld [smem:[#allocation9 + $0x103]] }
 0x1d9   : > { %v6862_v45 = vmul.u32 %v9492_v46, %v6167_v43  ;;  %vm6870_vm4 = vcmp.le.f32.partialorder %v9494_v20, 0.7853982  ;;  %v2689_v20 = vshrl.u32 %v9465_v40, %v6699_v10  ;;  %v6901_v50 = vsel %vm2857_vm2, %v2868_v35, %v2870_v17  ;;  %s7144_s18 = sld [smem:[#allocation9 + $0x104]] }
 0x1da   : > { %v6879_v12 = vsel %vm6870_vm4, %v6085_v60, %v2427_v47  ;;  %vm6890_vm1 = vc.u32 %v6461_v25, %v9497_v31  ;;  %v2676_v24 = vor.u32 8388608, %v2675_v39  ;;  %v2685_v25 = vshll.u32 %v9460_v11, %v6669_v54 }
 0x1db   : > { %v2432_v47 = vmul.f32 %v6879_v12, %v6879_v12  ;;  %v6909_v31 = vor.u32 %v2689_v20, %v2688_v52  ;;  %v2691_v16 = vshll.u32 %v9465_v40, %v6669_v54  ;;  %v2692_v55 = vshrl.u32 %v9467_v4, %v6699_v10 }
 0x1dc   : > { %v6915_v35 = vshrl.u32 %v1762_v0, 23  ;;  %v2269_v17 = vsel %vm9325_vm10, %v5160_v3, %v2264_v6  ;;  %v6920_v9 = vor.u32 %v2686_v7, %v2685_v25  ;;  %vm2702_vm15 = vcmp.lt.s32.totalorder %v6704_v37, 3  ;;  %v9501_v6 = vld [vmem:[#allocation53_spill] sm:$0xff] }
 0x1dd   : > { %v2433_v39 = vmul.f32 -0.001358992, %v2432_v47  ;;  %v2440_v26 = vmul.f32 -0.00019511016, %v2432_v47  ;;  %v6922_v52 = vor.u32 %v2692_v55, %v2691_v16  ;;  %vm2700_vm8 = vcmp.lt.s32.totalorder %v6704_v37, 1 }
 0x1de   : > { %v2714_v0 = vsel %vm2702_vm15, %v6773_v42, %v2713_v18  ;;  %v9502_v3 = vand.u32 65535, %v9501_v6  ;;  %v2274_v7 = vsel %vm9324_vm12, %v5161_v53, %v2269_v17  ;;  %v5162_v16 = vld [vmem:[%s9503_s19] ss:$0 sm:$0xff]  ;;  %v6940_v25 = vshll.u32 %v2676_v24, 8  ;;  %s7151_s19 = sld [smem:[#allocation9 + $0x105]] }
 0x1df   : > { %v2434_v54 = vadd.f32 0.041655596, %v2433_v39  ;;  %v2441_v20 = vadd.f32 0.008332121, %v2440_v26  ;;  %v2712_v26 = vsel %vm2700_vm8, %v6909_v31, %v6922_v52  ;;  %v2428_v55 = vsub.s32 4, %v6643_v33  ;;  %v9505_v53 = vld [vmem:[#allocation57_spill] sm:$0xff] }
 0x1e0   : > { %v3272_v57 = vmul.u32 %v9502_v3, %v6164_v41  ;;  %vm2701_vm6 = vcmp.lt.s32.totalorder %v6704_v37, 2  ;;  %v9504_v41 = vmov %v9502_v3  ;;  %v3276_v17 = vshll.u32 %v9505_v53, 16  ;;  %v9506_v3 = vld [vmem:[#allocation48_spill] sm:$0xff]  ;;  %v5163_v24 = vld [vmem:[%s9507_s3] ss:$0 sm:$0xff]  ;;  %s7160_s3 = sld [smem:[#allocation9 + $0x106]] }
 0x1e1   : > { %v2435_v39 = vmul.f32 %v2434_v54, %v2432_v47  ;;  %v2442_v18 = vmul.f32 %v2441_v20, %v2432_v47  ;;  %v6947_v42 = vmul.u32 %v9504_v41, %v6167_v43  ;;  %v2715_v30 = vsel %vm2701_vm6, %v2712_v26, %v2714_v0 }
 0x1e2   : > { %v2708_v54 = vsel %vm2700_vm8, %v6920_v9, %v6909_v31  ;;  %v2710_v43 = vsel %vm2702_vm15, %v6922_v52, %v6810_v59  ;;  %v2279_v20 = vsel %vm9320_vm13, %v5162_v16, %v2274_v7  ;;  %v2717_v0 = vand.u32 65535, %v6940_v25 }
 0x1e3   : > { %v2436_v36 = vadd.f32 -0.4999988, %v2435_v39  ;;  %v2443_v1 = vadd.f32 -0.16666654, %v2442_v18  ;;  %v2719_v6 = vand.u32 65535, %v2715_v30  ;;  %v2720_v26 = vshrl.u32 %v2715_v30, 16 }
 0x1e4   : > { %v2429_v39 = vsel %vm2306_vm3, %v2428_v55, %v6643_v33  ;;  %v2718_v14 = vshrl.u32 %v6940_v25, 16  ;;  %v9508_v21 = vmov 0   ;;  %v2711_v7 = vsel %vm2701_vm6, %v2708_v54, %v2710_v43 }
 0x1e5   : > { %v2437_v18 = vmul.f32 %v2436_v36, %v2432_v47  ;;  %v2444_v41 = vmul.f32 %v2443_v1, %v2432_v47  ;;  %v6973_v28 = vsel %vm6890_vm1, 1, %v9508_v21  ;;  %v2722_v16 = vmul.u32 %v2720_v26, %v2717_v0  ;;  %v5164_v36 = vld [vmem:[%s9509_s24] ss:$0 sm:$0xff]  ;;  %s9543_s24 = scalar_lea.vmem [#allocation5], %s6427_s22  ;;  %s9546_s22 = scalar_lea.vmem [#allocation5], %s6431_s7 }
 0x1e6   : > { %v6978_v30 = vadd.s32 %v3276_v17, %v3272_v57  ;;  %v2284_v33 = vsel %vm9318_vm14, %v5163_v24, %v2279_v20  ;;  %v6984_v47 = vmul.u32 %v2719_v6, %v2718_v14  ;;  %v2431_v46 = vsel %vm6870_vm4, 0, %v2429_v39  ;;  %s9554_s7 = scalar_lea.vmem [#allocation5], %s6436_s0  ;;  %s7377_s0 = sld [smem:[#allocation9 + $0x1]] }
 0x1e7   : > { %v2445_v1 = vadd.f32 1.0, %v2444_v41  ;;  %v9510_v55 = vand.u32 2147483647, %v9506_v3  ;;  %v2721_v13 = vmul.u32 %v2719_v6, %v2717_v0  ;;  %v2725_v54 = vshll.u32 %v2722_v16, 16 }
 0x1e8   : > { %v2438_v43 = vadd.f32 1.0, %v2437_v18  ;;  %v2483_v24 = vshrl.u32 %v9465_v40, %v9511_v48  ;;  %v2742_v20 = vshrl.u32 %v2711_v7, 16  ;;  %v2724_v34 = vmul.u32 %v2720_v26, %v2718_v14  ;;  %v9513_v18 = vld [vmem:[#allocation54_spill] sm:$0xff] }
 0x1e9   : > { %v6990_v59 = vand.u32 8388607, %v9510_v55  ;;  %v2446_v5 = vmul.f32 %v2445_v1, %v6879_v12  ;;  %vm2729_vm1 = vc.u32 %v2721_v13, %v2725_v54  ;;  %v2731_v41 = vadd.s32 %v2725_v54, %v2721_v13 }
 0x1ea   : > { %v2741_v23 = vand.u32 65535, %v2711_v7  ;;  %vm9512_vm3 = vcmp.eq.s32.totalorder %v6010_v2, 6  ;;  %v2448_v39 = vand.u32 3, %v2431_v46  ;;  %v2727_v55 = vshll.u32 %v6984_v47, 16 }
 0x1eb   : > { %v2289_v62 = vsel %vm9512_vm3, %v5164_v36, %v2284_v33  ;;  %v2730_v6 = vsel %vm2729_vm1, 1, %v9508_v21  ;;  %v2451_v3 = vxor.u32 2147483648, %v2446_v5  ;;  %v2479_v12 = vshll.u32 %v9460_v11, %v9513_v18 }
 0x1ec   : > { %v2482_v1 = vshll.u32 %v9461_v38, %v9513_v18  ;;  %v2732_v63 = vadd.s32 %v2730_v6, %v2724_v34  ;;  %vm7003_vm4 = vc.u32 %v3272_v57, %v3276_v17  ;;  %vm2447_vm5 = vweird.f32 %v6085_v60 }
 0x1ed   : > { %v2454_v13 = vxor.u32 2147483648, %v2438_v43  ;;  %v2486_v7 = vshrl.u32 %v9467_v4, %v9511_v48  ;;  %vm2733_vm3 = vc.u32 %v2731_v41, %v2727_v55  ;;  %v2744_v33 = vmul.u32 %v2742_v20, %v2717_v0 }
 0x1ee   : > { %v2470_v36 = vor.u32 8388608, %v6990_v59  ;;  %v2480_v46 = vshrl.u32 %v9461_v38, %v9511_v48  ;;  %v7013_v54 = vor.u32 %v2483_v24, %v2482_v1  ;;  %v2745_v34 = vmul.u32 %v2741_v23, %v2718_v14 }
 0x1ef   : > { %vm2450_vm1 = vcmp.eq.s32.totalorder %v2448_v39, 0  ;;  %vm2453_vm14 = vcmp.eq.s32.totalorder %v2448_v39, 2  ;;  %v2485_v57 = vshll.u32 %v9465_v40, %v9513_v18  ;;  %v2734_v17 = vsel %vm2733_vm3, 1, %v9508_v21 }
 0x1f0   : > { %v2452_v6 = vsel %vm2450_vm1, %v2438_v43, %v2451_v3  ;;  %v2736_v8 = vadd.s32 %v2734_v17, %v2732_v63  ;;  %v2743_v41 = vmul.u32 %v2741_v23, %v2717_v0  ;;  %v2747_v55 = vshll.u32 %v2744_v33, 16  ;;  %v5165_v0 = vld [vmem:[%s9519_s21] ss:$0 sm:$0xff]  ;;  %s7168_s21 = sld [smem:[#allocation9 + $0x107]] }
 0x1f1   : > { %vm2449_vm13 = vcmp.lt.s32.totalorder %v2448_v39, 2  ;;  %v2455_v59 = vsel %vm2453_vm14, %v2454_v13, %v2446_v5  ;;  %v7018_v56 = vor.u32 %v2486_v7, %v2485_v57  ;;  %v2726_v44 = vshrl.u32 %v2722_v16, 16  ;;  %v9520_v16 = vld [vmem:[#allocation56_spill] sm:$0xff]  ;;  %v9521_v7 = vld [vmem:[#allocation63_spill] sm:$0xff] }
 0x1f2   : > { %v9516_v24 = vshll.u32 %v6862_v45, 16  ;;  %v2746_v18 = vmul.u32 %v2742_v20, %v2718_v14  ;;  %v2749_v22 = vshll.u32 %v2745_v34, 16  ;;  %vm2751_vm3 = vc.u32 %v2743_v41, %v2747_v55 }
 0x1f3   : > { %v2753_v3 = vadd.s32 %v2747_v55, %v2743_v41  ;;  %v2456_v63 = vsel %vm2449_vm13, %v2452_v6, %v2455_v59  ;;  %v7027_v43 = vor.u32 %v2480_v46, %v2479_v12  ;;  %v2737_v23 = vadd.s32 %v2736_v8, %v2726_v44  ;;  %v9522_v46 = vld [vmem:[#allocation59_spill] sm:$0xff] }
 0x1f4   : > { %vm7023_vm12 = vc.u32 %v6720_v19, %v9516_v24  ;;  %v2752_v5 = vsel %vm2751_vm3, 1, %v9508_v21  ;;  %vm2494_vm14 = vcmp.lt.s32.totalorder %v9520_v16, 1  ;;  %v2705_v19 = vsel %vm2703_vm11, %v6922_v52, 2102212464 }
 0x1f5   : > { %v2754_v39 = vadd.s32 %v2752_v5, %v2746_v18  ;;  %vm2755_vm1 = vc.u32 %v2753_v3, %v2749_v22  ;;  %vm2496_vm10 = vcmp.lt.s32.totalorder %v9520_v16, 3  ;;  %v2684_v14 = vshrl.u32 %v9460_v11, %v6699_v10  ;;  %v9527_v18 = vld [vmem:[#allocation60_spill] sm:$0xff] }
 0x1f6   : > { %v2728_v20 = vshrl.u32 %v6984_v47, 16  ;;  %v2756_v44 = vsel %vm2755_vm1, 1, %v9508_v21  ;;  %v2457_v8 = vsel %vm2447_vm5, nan, %v2456_v63  ;;  %v2506_v12 = vsel %vm2494_vm14, %v7013_v54, %v7018_v56 }
 0x1f7   : > { %v2748_v52 = vshrl.u32 %v2744_v33, 16  ;;  %v2758_v13 = vadd.s32 %v2756_v44, %v2754_v39  ;;  %v2508_v57 = vsel %vm2496_vm10, %v9522_v46, %v9521_v7  ;;  %v2704_v10 = vsel %vm2700_vm8, %v2684_v14, %v6920_v9 }
 0x1f8   : > { %v2706_v60 = vsel %vm2702_vm15, %v6909_v31, %v2705_v19  ;;  %v7057_v47 = vadd.s32 %v2737_v23, %v2728_v20  ;;  %v3281_v33 = vsel %vm7003_vm4, 1, %v9508_v21  ;;  %v7064_v17 = vsel %vm932_vm0, %v5165_v0, %v2289_v62  ;;  %v9528_v0 = vld [vmem:[#allocation58_spill] sm:$0xff] }
 0x1f9   : > { %9523 = vst [vmem:[#allocation53_spill] sm:$0xff] %v7064_v17  ;;  %v2750_v6 = vshrl.u32 %v2745_v34, 16  ;;  %v2759_v41 = vadd.s32 %v2758_v13, %v2748_v52  ;;  %v9524_v55 = vshll.u32 %v6947_v42, 16  ;;  %vm2495_vm15 = vcmp.lt.s32.totalorder %v9520_v16, 2 }
 0x1fa   : > { %v2616_v31 = vadd.f32 %v2457_v8, %v7064_v17  ;;  %v7075_v59 = vadd.s32 %v2753_v3, %v2749_v22  ;;  %v2502_v62 = vsel %vm2494_vm14, %v7027_v43, %v7013_v54  ;;  %v7083_v26 = vsel %vm2495_vm15, %v2506_v12, %v2508_v57  ;;  %v7093_v3 = vld [vmem:[#allocation4] sm:$0xff] }
 0x1fb   : > { %vm7069_vm13 = vc.u32 %v6978_v30, %v9524_v55  ;;  %v2707_v34 = vsel %vm2701_vm6, %v2704_v10, %v2706_v60  ;;  %v2760_v24 = vadd.s32 %v2759_v41, %v2750_v6  ;;  %v2504_v63 = vsel %vm2496_vm10, %v7018_v56, %v9527_v18  ;;  %v9534_v6 = vld [vmem:[#allocation61_spill] sm:$0xff] }
 0x1fc   : > { %v7091_v22 = vshll.u32 %v2470_v36, 8  ;;  %v2617_v23 = vmul.f32 %v7093_v3, %v2616_v31  ;;  %vm2763_vm11 = vc.u32 %v7057_v47, %v7075_v59  ;;  %v4644_v5 = vadd.s32 4294967169, %v6915_v35 }
 0x1fd   : > { %v3261_v37 = vadd.s32 %v6973_v28, %v6715_v15  ;;  %v3283_v19 = vadd.s32 %v3281_v33, %v9528_v0  ;;  %v2764_v39 = vadd.s32 1, %v2760_v24  ;;  %v3263_v36 = vsel %vm7023_vm12, 1, %v9508_v21 }
 0x1fe   : > { %v3285_v14 = vsel %vm7069_vm13, 1, %v9508_v21  ;;  %v2514_v20 = vshrl.u32 %v7083_v26, 16  ;;  %2618 = vadd.xlane.f32.xlu2 %v2617_v23  ;;  %v2761_v44 = vmul.u32 %v6940_v25, %v2707_v34  ;;  %v7113_v15 = vand.u32 65535, %v6831_v49 }
 0x1ff   : > { %v9529_v28 = vand.u32 2139095040, %v6787_v32  ;;  %v7119_v1 = vsel %vm2495_vm15, %v2502_v62, %v2504_v63  ;;  %v2765_v8 = vsel %vm2763_vm11, %v2764_v39, %v2760_v24  ;;  %v7127_v25 = vsel %vm2857_vm2, %v6845_v27, %v6897_v61 }
 0x200   : > { %v2876_v12 = vshrl.u32 %v6901_v50, 16  ;;  %v2511_v52 = vand.u32 65535, %v7091_v22  ;;  %v2766_v13 = vadd.s32 %v2765_v8, %v2761_v44  ;;  %v9326_v7 = vand.u32 65535, %v6901_v50 }
 0x201   : > { %v950_v35 = vshrl.u32 %v9529_v28, 23  ;;  %v1769_v46 = vadd.s32 1, %v4644_v5  ;;  %v3265_v57 = vadd.s32 %v3263_v36, %v3261_v37  ;;  %v3287_v10 = vadd.s32 %v3285_v14, %v3283_v19 }
 0x202   : > { %v7137_v60 = vshrl.u32 %v6831_v49, 16  ;;  %v7141_v27 = vmul.u32 %v2514_v20, %v2511_v52  ;;  %v9327_v61 = vshrl.u32 %v7119_v1, 16  ;;  %v2767_v33 = vadd.s32 536870912, %v2766_v13 }
 0x203   : > { %v7147_v41 = vadd.s32 4294967169, %v950_v35  ;;  %v3255_v55 = vshrl.u32 %v6368_v58, 16  ;;  %v3277_v9 = vshrl.u32 %v9505_v53, 16  ;;  %v7154_v31 = vmul.u32 %v2876_v12, %v7113_v15 }
 0x204   : > { %v2898_v62 = vshrl.u32 %v7127_v25, 16  ;;  %v2513_v34 = vand.u32 65535, %v7083_v26  ;;  %v7158_v24 = vshrl.u32 %v2767_v33, 30  ;;  %v7165_v58 = vmul.u32 %v9326_v7, %v7113_v15 }
 0x205   : > { %vm1770_vm12 = vcmp.gt.s32.totalorder %v1769_v46, 0  ;;  %v3266_v53 = vadd.s32 %v3265_v57, %v3255_v55  ;;  %v3288_v18 = vadd.s32 %v3287_v10, %v3277_v9  ;;  %v2512_v63 = vshrl.u32 %v7091_v22, 16 }
 0x206   : > { %v2519_v23 = vshll.u32 %v7141_v27, 16  ;;  %v7174_v5 = vmul.u32 %v9327_v61, %v2511_v52  ;;  %v2769_v37 = vshll.u32 %v7158_v24, 30  ;;  %v7179_v0 = vmul.u32 %v2876_v12, %v7137_v60 }
 0x207   : > { %v3257_v19 = vshrl.u32 %v6862_v45, 16  ;;  %v3279_v39 = vshrl.u32 %v6947_v42, 16  ;;  %v2535_v36 = vand.u32 65535, %v7119_v1  ;;  %v2881_v14 = vshll.u32 %v7154_v31, 16 }
 0x208   : > { %v2515_v44 = vmul.u32 %v2513_v34, %v2511_v52  ;;  %v7185_v28 = vmul.u32 %v2513_v34, %v2512_v63  ;;  %v7187_v35 = vsub.s32 %v2766_v13, %v2769_v37  ;;  %v7191_v8 = vmul.u32 %v2898_v62, %v7113_v15 }
 0x209   : > { %v7194_v12 = vsel %vm1770_vm12, %v1769_v46, 0  ;;  %v7196_v45 = vadd.s32 %v3266_v53, %v3257_v19  ;;  %v3289_v57 = vadd.s32 %v3288_v18, %v3279_v39  ;;  %v2541_v33 = vshll.u32 %v7174_v5, 16 }
 0x20a   : > { %v2525_v10 = vadd.s32 %v2519_v23, %v2515_v44  ;;  %vm2771_vm5 = vcmp.lt.s32.totalorder %v7187_v35, 0  ;;  %v2772_v13 = vsub.s32 0, %v7187_v35  ;;  %v7203_v55 = vmul.u32 %v2898_v62, %v7137_v60 }
 0x20b   : > { %9530 = vst [vmem:[#allocation57_spill] sm:$0xff] %v7196_v45  ;;  %v9531_v9 = vshll.u32 %v6947_v42, 16  ;;  %vm2523_vm6 = vc.u32 %v2515_v44, %v2519_v23  ;;  %v7210_v34 = vmul.u32 %v2535_v36, %v2512_v63  ;;  %v7215_v53 = vadd.s32 %v2881_v14, %v7165_v58 }
 0x20c   : > { %v2521_v18 = vshll.u32 %v7185_v28, 16  ;;  %v2537_v37 = vmul.u32 %v2535_v36, %v2511_v52  ;;  %v2773_v62 = vsel %vm2771_vm5, %v2772_v13, %v7187_v35  ;;  %v7220_v19 = vand.u32 31, %v7194_v12  ;;  %v9533_v13 = vld [vmem:[#allocation45_spill] sm:$0xff] }
 0x20d   : > { %v7208_v46 = vadd.s32 %v6978_v30, %v9531_v9  ;;  %v3293_v42 = vadd.s32 1, %v3289_v57  ;;  %v2774_v30 = vclz %v2773_v62  ;;  %v2518_v23 = vmul.u32 %v2514_v20, %v2512_v63  ;;  %v9535_v62 = vld [vmem:[#allocation64_spill] sm:$0xff] }
 0x20e   : > { %v2524_v39 = vsel %vm2523_vm6, 1, %v9508_v21  ;;  %vm2527_vm4 = vc.u32 %v2525_v10, %v2521_v18  ;;  %v7228_v44 = vadd.s32 %v2541_v33, %v2537_v37  ;;  %v9332_v52 = vshll.u32 %v7210_v34, 16 }
 0x20f   : > { %9532 = vst [vmem:[#allocation55_spill] sm:$0xff] %v7208_v46  ;;  %vm3292_vm8 = vc.u32 %v7196_v45, %v7208_v46  ;;  %vm2545_vm3 = vc.u32 %v2537_v37, %v2541_v33  ;;  %v4737_v36 = vadd.s32 4294967294, %v2774_v30  ;;  %v3459_v7 = vshll.u32 %v9461_v38, %v9534_v6 }
 0x210   : > { %v3460_v61 = vshrl.u32 %v9465_v40, %v9535_v62  ;;  %v3462_v26 = vshll.u32 %v9465_v40, %v9534_v6  ;;  %v3463_v20 = vshrl.u32 %v9467_v4, %v9535_v62  ;;  %v7244_v10 = vsel %vm3292_vm8, %v3293_v42, %v3289_v57 }
 0x211   : > { %v2526_v33 = vadd.s32 %v2524_v39, %v2518_v23  ;;  %v9536_v18 = vshrl.u32 %v7119_v1, 16  ;;  %vm4738_vm1 = vcmp.lt.s32.totalorder %v4737_v36, 0  ;;  %v2528_v30 = vsel %vm2527_vm4, 1, %v9508_v21 }
 0x212   : > { %v2546_v9 = vsel %vm2545_vm3, 1, %v9508_v21  ;;  %vm7253_vm13 = vc.u32 %v7228_v44, %v9332_v52  ;;  %v2777_v32 = vsel %vm4738_vm1, 0, %v4737_v36  ;;  %v2762_v57 = vadd.s32 %v7075_v59, %v7057_v47 }
 0x213   : > { %v2540_v37 = vmul.u32 %v9536_v18, %v2512_v63  ;;  %v2778_v42 = vsub.s32 32, %v2777_v32  ;;  %v2782_v23 = vsub.s32 4294967266, %v2777_v32  ;;  %v9539_v1 = vand.u32 2147483647, %v9533_v13 }
 0x214   : > { %v3456_v39 = vshll.u32 %v9460_v11, %v9534_v6  ;;  %v3457_v18 = vshrl.u32 %v9461_v38, %v9535_v62  ;;  %v7265_v46 = vor.u32 %v3460_v61, %v3459_v7  ;;  %v7267_v52 = vor.u32 %v3463_v20, %v3462_v26 }
 0x215   : > { %v3446_v63 = vand.u32 8388607, %v9539_v1  ;;  %vm7270_vm11 = vc.u32 %v7165_v58, %v2881_v14  ;;  %v2779_v47 = vshll.u32 %v7187_v35, %v2777_v32  ;;  %v2780_v59 = vshrl.u32 %v2762_v57, %v2778_v42  ;;  %v9545_v57 = vld [vmem:[#allocation71_spill] sm:$0xff] }
 0x216   : > { %v2783_v45 = vadd.s32 127, %v2782_v23  ;;  %vm3471_vm12 = vcmp.lt.s32.totalorder %v6503_v29, 1  ;;  %v2478_v6 = vshrl.u32 %v9460_v11, %v9511_v48  ;;  %v2530_v1 = vadd.s32 %v2528_v30, %v2526_v33  ;;  %v9544_v30 = vld [vmem:[#allocation74_spill] sm:$0xff] }
 0x217   : > { %v2548_v7 = vadd.s32 %v2546_v9, %v2540_v37  ;;  %v2550_v61 = vsel %vm7253_vm13, 1, %v9508_v21  ;;  %v2781_v58 = vor.u32 %v2780_v59, %v2779_v47  ;;  %v3447_v26 = vor.u32 8388608, %v3446_v63  ;;  %v5166_v9 = vld [vmem:[%s9543_s24] ss:$0 sm:$0xff]  ;;  %v9547_v47 = vld [vmem:[#allocation46_spill] sm:$0xff]  ;;  %s7356_s24 = sld [smem:[#allocation9]] }
 0x218   : > { %v2784_v14 = vshll.u32 %v2783_v45, 23  ;;  %vm3473_vm5 = vcmp.lt.s32.totalorder %v6503_v29, 3  ;;  %vm9542_vm6 = vcmp.lt.s32.totalorder %v9520_v16, 4  ;;  %v2520_v35 = vshrl.u32 %v7141_v27, 16  ;;  %v9575_v16 = vld [vmem:[#allocation88_spill] sm:$0xff] }
 0x219   : > { %v2499_v32 = vsel %vm9542_vm6, %v7018_v56, 2102212464  ;;  %vm3472_vm8 = vcmp.lt.s32.totalorder %v6503_v29, 2  ;;  %v3483_v48 = vsel %vm3471_vm12, %v7265_v46, %v7267_v52  ;;  %v7294_v17 = vsel %vm2494_vm14, %v2478_v6, %v7027_v43 }
 0x21a   : > { %v2522_v45 = vshrl.u32 %v7185_v28, 16  ;;  %v2785_v56 = vor.u32 4788187, %v2784_v14  ;;  %v7299_v20 = vor.u32 %v3457_v18, %v3456_v39  ;;  %v2531_v27 = vadd.s32 %v2530_v1, %v2520_v35  ;;  %v5167_v18 = vld [vmem:[%s9546_s22] ss:$0 sm:$0xff]  ;;  %v9552_v14 = vld [vmem:[#allocation72_spill] sm:$0xff] }
 0x21b   : > { %v2542_v33 = vshrl.u32 %v7174_v5, 16  ;;  %v2552_v37 = vadd.s32 %v2550_v61, %v2548_v7  ;;  %v3485_v42 = vsel %vm3473_vm5, %v9545_v57, %v9544_v30  ;;  %v2788_v63 = vcvt.s32.f32 %v2781_v58  ;;  %v5168_v57 = vld [vmem:[%s9554_s7] ss:$0 sm:$0xff]  ;;  %s9555_s22 = scalar_lea.vmem [#allocation5], %s6446_s9  ;;  %s7391_s7 = sld [smem:[#allocation9 + $0x2]] }
 0x21c   : > { %v2786_v23 = vand.u32 2147483647, %v2785_v56  ;;  %v7308_v43 = vsel %vm3472_vm8, %v3483_v48, %v3485_v42  ;;  %v7310_v28 = vshll.u32 %v3447_v26, 8  ;;  %v7315_v39 = vsel %vm2496_vm10, %v7013_v54, %v2499_v32  ;;  %v5169_v36 = vld [vmem:[%s9555_s22] ss:$0 sm:$0xff]  ;;  %s7401_s9 = sld [smem:[#allocation9 + $0x3]] }
 0x21d   : > { %v2544_v5 = vshrl.u32 %v7210_v34, 16  ;;  %v9548_v59 = vand.u32 2147483647, %v9547_v47  ;;  %vm2670_vm4 = vcmp.lt.s32.totalorder %v9547_v47, 0  ;;  %v2626_v1 = vsel %vm9370_vm7, %v5166_v9, 0.0  ;;  %s9558_s22 = scalar_lea.vmem [#allocation5], %s6456_s30 }
 0x21e   : > { %v2789_v7 = vmul.f32 %v2788_v63, %v2786_v23  ;;  %v9551_v54 = vand.u32 65535, %v6901_v50  ;;  %v3479_v58 = vsel %vm3471_vm12, %v7299_v20, %v7265_v46  ;;  %v3481_v26 = vsel %vm3473_vm5, %v7267_v52, %v9552_v14  ;;  %s9562_s30 = scalar_lea.vmem [#allocation5], %s6469_s8  ;;  %s7779_s8 = sld [smem:[#allocation9 + $0x85]] }
 0x21f   : > { %vm7322_vm14 = vcmp.le.f32.partialorder %v9548_v59, 0.7853982  ;;  %v7343_v32 = vand.u32 65535, %v7310_v28  ;;  %v3490_v35 = vand.u32 65535, %v7308_v43  ;;  %v3491_v48 = vshrl.u32 %v7308_v43, 16 }
 0x220   : > { %v7332_v61 = vmul.u32 %v9551_v54, %v7137_v60  ;;  %v7347_v50 = vadd.s32 %v2531_v27, %v2522_v45  ;;  %v9553_v9 = vshll.u32 %v7210_v34, 16  ;;  %v2553_v30 = vadd.s32 %v2552_v37, %v2542_v33 }
 0x221   : > { %v2790_v42 = vxor.u32 2147483648, %v2789_v7  ;;  %v2631_v23 = vsel %vm9363_vm9, %v5167_v18, %v2626_v1  ;;  %v2886_v63 = vsel %vm7270_vm11, 1, %v9508_v21  ;;  %v7364_v45 = vshrl.u32 %v7310_v28, 16 }
 0x222   : > { %v7352_v56 = vadd.s32 %v7228_v44, %v9553_v9  ;;  %v7367_v34 = vmul.u32 %v3491_v48, %v7343_v32  ;;  %v2883_v27 = vshll.u32 %v7332_v61, 16  ;;  %v2903_v33 = vshll.u32 %v7191_v8, 16 }
 0x223   : > { %v2791_v44 = vsel %vm2670_vm4, %v2790_v42, %v2789_v7  ;;  %v7375_v37 = vsel %vm3472_vm8, %v3479_v58, %v3481_v26  ;;  %v3492_v18 = vmul.u32 %v3490_v35, %v7343_v32  ;;  %v7388_v59 = vmul.u32 %v3490_v35, %v7364_v45  ;;  %v5170_v35 = vld [vmem:[%s9558_s22] ss:$0 sm:$0xff]  ;;  %s7423_s22 = sld [smem:[#allocation9 + $0x5]] }
 0x224   : > { %v7384_v43 = vsel %vm7322_vm14, %v9547_v47, %v2791_v44  ;;  %v3496_v1 = vshll.u32 %v7367_v34, 16  ;;  %vm9556_vm10 = vcmp.eq.s32.totalorder %v6010_v2, 2  ;;  %v2792_v54 = vsub.s32 4, %v7158_v24 }
 0x225   : > { %v2636_v7 = vsel %vm9556_vm10, %v5168_v57, %v2631_v23  ;;  %v2796_v58 = vmul.f32 %v7384_v43, %v7384_v43  ;;  %v9557_v14 = vand.u32 65535, %v7127_v25  ;;  %v3513_v23 = vshrl.u32 %v7375_v37, 16 }
 0x226   : > { %vm3500_vm3 = vc.u32 %v3492_v18, %v3496_v1  ;;  %v3502_v57 = vadd.s32 %v3496_v1, %v3492_v18  ;;  %v7413_v44 = vadd.s32 %v2553_v30, %v2544_v5  ;;  %vm9560_vm1 = vcmp.eq.s32.totalorder %v6010_v2, 3 }
 0x227   : > { %v2899_v26 = vmul.u32 %v9557_v14, %v7113_v15  ;;  %v9559_v9 = vmov %v9557_v14  ;;  %v2797_v13 = vmul.f32 -0.001358992, %v2796_v58  ;;  %v2804_v15 = vmul.f32 -0.00019511016, %v2796_v58 }
 0x228   : > { %v7408_v42 = vmul.u32 %v9559_v9, %v7137_v60  ;;  %v3512_v14 = vand.u32 65535, %v7375_v37  ;;  %v2641_v49 = vsel %vm9560_vm1, %v5169_v36, %v2636_v7  ;;  %v3498_v25 = vshll.u32 %v7388_v59, 16 }
 0x229   : > { %v7418_v40 = vadd.s32 %v2903_v33, %v2899_v26  ;;  %v3501_v60 = vsel %vm3500_vm3, 1, %v9508_v21  ;;  %v2793_v5 = vsel %vm2670_vm4, %v2792_v54, %v7158_v24  ;;  %v2798_v30 = vadd.f32 0.041655596, %v2797_v13  ;;  %v5171_v24 = vld [vmem:[%s9562_s30] ss:$0 sm:$0xff]  ;;  %s9568_s30 = scalar_lea.vmem [#allocation5], %s6536_s16 }
 0x22a   : > { %v2805_v18 = vadd.f32 0.008332121, %v2804_v15  ;;  %vm2907_vm13 = vc.u32 %v2899_v26, %v2903_v33  ;;  %v2905_v36 = vshll.u32 %v7408_v42, 16  ;;  %v3495_v1 = vmul.u32 %v3491_v48, %v7364_v45  ;;  %v5172_v54 = vld [vmem:[%s9563_s25] ss:$0 sm:$0xff]  ;;  %s7754_s16 = sld [smem:[#allocation9 + $0x82]] }
 0x22b   : > { %vm3504_vm11 = vc.u32 %v3502_v57, %v3498_v25  ;;  %v7435_v7 = vmul.u32 %v3513_v23, %v7343_v32  ;;  %vm9561_vm6 = vcmp.eq.s32.totalorder %v6010_v2, 4  ;;  %v2799_v13 = vmul.f32 %v2798_v30, %v2796_v58  ;;  %s9613_s25 = scalar_lea.vmem [#allocation5], %s6692_s17  ;;  %s9614_s17 = scalar_lea.vmem [#allocation5], %s6702_s1 }
 0x22c   : > { %v2646_v9 = vsel %vm9561_vm6, %v5170_v35, %v2641_v49  ;;  %v2806_v33 = vmul.f32 %v2805_v18, %v2796_v58  ;;  %vm2889_vm4 = vc.u32 %v7215_v53, %v2883_v27  ;;  %v2795_v48 = vsel %vm7322_vm14, 0, %v2793_v5  ;;  %s1328_s1 = scalar_lea.vmem [#allocation4], %s7779_s8  ;;  %s9743_s8 = sld [smem:[#allocation42_spill]] }
 0x22d   : > { %v2908_v26 = vsel %vm2907_vm13, 1, %v9508_v21  ;;  %vm7450_vm10 = vc.u32 %v7418_v40, %v2905_v36  ;;  %v3503_v35 = vadd.s32 %v3501_v60, %v3495_v1  ;;  %v2800_v57 = vadd.f32 -0.4999988, %v2799_v13 }
 0x22e   : > { %v2807_v15 = vadd.f32 -0.16666654, %v2806_v33  ;;  %v3505_v53 = vsel %vm3504_vm11, 1, %v9508_v21  ;;  %v7456_v27 = vmul.u32 %v3512_v14, %v7364_v45  ;;  %v2888_v6 = vadd.s32 %v2886_v63, %v7179_v0 }
 0x22f   : > { %v2890_v25 = vsel %vm2889_vm4, 1, %v9508_v21  ;;  %v2904_v5 = vshrl.u32 %v7191_v8, 16  ;;  %v3518_v30 = vshll.u32 %v7435_v7, 16  ;;  %vm9566_vm14 = vcmp.eq.s32.totalorder %v6010_v2, 5 }
 0x230   : > { %v2651_v60 = vsel %vm9566_vm14, %v5171_v24, %v2646_v9  ;;  %v2801_v18 = vmul.f32 %v2800_v57, %v2796_v58  ;;  %v2808_v1 = vmul.f32 %v2807_v15, %v2796_v58  ;;  %v2910_v13 = vadd.s32 %v2908_v26, %v7203_v55  ;;  %9610 = sst [smem:[#allocation92_spill]] %s7754_s16  ;;  %s9622_s16 = scalar_lea.vmem [#allocation5], %s6727_s10 }
 0x231   : > { %vm2811_vm3 = vweird.f32 %v9547_v47  ;;  %v2812_v0 = vand.u32 3, %v2795_v48  ;;  %v2912_v8 = vsel %vm7450_vm10, 1, %v9508_v21  ;;  %v3507_v63 = vadd.s32 %v3505_v53, %v3503_v35  ;;  %v5173_v53 = vld [vmem:[%s9568_s30] ss:$0 sm:$0xff]  ;;  %s9595_s30 = scalar_lea.vmem [#allocation5], %s6673_s20  ;;  %s9596_s20 = scalar_lea.vmem [#allocation5], %s6677_s23 }
 0x232   : > { %v3514_v33 = vmul.u32 %v3512_v14, %v7343_v32  ;;  %v2802_v9 = vadd.f32 1.0, %v2801_v18  ;;  %v2809_v24 = vadd.f32 1.0, %v2808_v1  ;;  %v3497_v58 = vshrl.u32 %v7367_v34, 16  ;;  %s7732_s23 = sld [smem:[#allocation9 + $0x80]]  ;;  %s9627_s10 = scalar_lea.vmem [#allocation5], %s6743_s13 }
 0x233   : > { %v3520_v55 = vshll.u32 %v7456_v27, 16  ;;  %vm9567_vm1 = vcmp.eq.s32.totalorder %v6010_v2, 6  ;;  %v2892_v48 = vadd.s32 %v2890_v25, %v2888_v6  ;;  %v3455_v49 = vshrl.u32 %v9460_v11, %v9535_v62 }
 0x234   : > { %v2656_v26 = vsel %vm9567_vm1, %v5172_v54, %v2651_v60  ;;  %vm3522_vm13 = vc.u32 %v3514_v33, %v3518_v30  ;;  %v3524_v57 = vadd.s32 %v3518_v30, %v3514_v33  ;;  %v2810_v32 = vmul.f32 %v2809_v24, %v7384_v43 }
 0x235   : > { %v2818_v14 = vxor.u32 2147483648, %v2802_v9  ;;  %v3517_v34 = vmul.u32 %v3513_v23, %v7364_v45  ;;  %v2914_v35 = vadd.s32 %v2912_v8, %v2910_v13  ;;  %v3508_v15 = vadd.s32 %v3507_v63, %v3497_v58 }
 0x236   : > { %v3523_v54 = vsel %vm3522_vm13, 1, %v9508_v21  ;;  %vm3526_vm11 = vc.u32 %v3524_v57, %v3520_v55  ;;  %vm2813_vm6 = vcmp.lt.s32.totalorder %v2812_v0, 2  ;;  %v2815_v6 = vxor.u32 2147483648, %v2810_v32 }
 0x237   : > { %vm9569_vm4 = vcmp.lt.s32.totalorder %v6503_v29, 4  ;;  %v3525_v25 = vadd.s32 %v3523_v54, %v3517_v34  ;;  %vm2814_vm10 = vcmp.eq.s32.totalorder %v2812_v0, 0  ;;  %vm2817_vm14 = vcmp.eq.s32.totalorder %v2812_v0, 2  ;;  %v9577_v54 = vld [vmem:[#allocation65_spill] sm:$0xff] }
 0x238   : > { %v3476_v43 = vsel %vm9569_vm4, %v7267_v52, 2102212464  ;;  %v3499_v62 = vshrl.u32 %v7388_v59, 16  ;;  %v3527_v45 = vsel %vm3526_vm11, 1, %v9508_v21  ;;  %v2816_v37 = vsel %vm2814_vm10, %v2802_v9, %v2815_v6 }
 0x239   : > { %v2819_v23 = vsel %vm2817_vm14, %v2818_v14, %v2810_v32  ;;  %v3519_v30 = vshrl.u32 %v7435_v7, 16  ;;  %v3529_v60 = vadd.s32 %v3527_v45, %v3525_v25  ;;  %v3475_v1 = vsel %vm3471_vm12, %v3455_v49, %v7299_v20  ;;  %v9582_v45 = vld [vmem:[#allocation87_spill] sm:$0xff] }
 0x23a   : > { %v2820_v18 = vsel %vm2813_vm6, %v2816_v37, %v2819_v23  ;;  %v3477_v52 = vsel %vm3473_vm5, %v7265_v46, %v3476_v43  ;;  %v7503_v13 = vadd.s32 %v3508_v15, %v3499_v62  ;;  %v7507_v59 = vsel %vm932_vm0, %v5173_v53, %v2656_v26  ;;  %v9578_v53 = vld [vmem:[#allocation77_spill] sm:$0xff]  ;;  %v9580_v62 = vld [vmem:[#allocation86_spill] sm:$0xff] }
 0x23b   : > { %9570 = vst [vmem:[#allocation54_spill] sm:$0xff] %v7507_v59  ;;  %v2821_v0 = vsel %vm2811_vm3, nan, %v2820_v18  ;;  %v3521_v7 = vshrl.u32 %v7456_v27, 16  ;;  %v3530_v8 = vadd.s32 %v3529_v60, %v3519_v30  ;;  %v2558_v63 = vadd.s32 1, %v7413_v44 }
 0x23c   : > { %v2882_v20 = vshrl.u32 %v7154_v31, 16  ;;  %v2978_v33 = vadd.f32 %v2821_v0, %v7507_v59  ;;  %v7515_v9 = vadd.s32 %v3524_v57, %v3520_v55  ;;  %vm2557_vm12 = vc.u32 %v7347_v50, %v7352_v56  ;;  %v9571_v55 = vld [vmem:[#allocation80_spill] sm:$0xff]  ;;  %v9572_v57 = vld [vmem:[#allocation49_spill] sm:$0xff] }
 0x23d   : > { %v2915_v46 = vadd.s32 %v2914_v35, %v2904_v5  ;;  %v3478_v47 = vsel %vm3472_vm8, %v3475_v1, %v3477_v52  ;;  %v3531_v24 = vadd.s32 %v3530_v8, %v3521_v7  ;;  %v2501_v27 = vsel %vm2495_vm15, %v7294_v17, %v7315_v39  ;;  %v9573_v5 = vld [vmem:[#allocation52_spill] sm:$0xff] }
 0x23e   : > { %v2893_v58 = vadd.s32 %v2892_v48, %v2882_v20  ;;  %v2979_v31 = vmul.f32 %v7093_v3, %v2978_v33  ;;  %vm3534_vm5 = vc.u32 %v7503_v13, %v7515_v9  ;;  %v2840_v26 = vshrl.u32 %v9460_v11, %v9571_v55 }
 0x23f   : > { %v9574_v32 = vmul.u32 %v9572_v57, %v9573_v5  ;;  %v2906_v14 = vshrl.u32 %v7408_v42, 16  ;;  %v3535_v49 = vadd.s32 1, %v3531_v24  ;;  %vm9576_vm15 = vcmp.lt.s32.totalorder %v6795_v51, 4 }
 0x240   : > { %v2861_v17 = vsel %vm9576_vm15, %v9575_v16, 2102212464  ;;  %v2559_v3 = vsel %vm2557_vm12, %v2558_v63, %v7413_v44  ;;  %v2884_v39 = vshrl.u32 %v7332_v61, 16  ;;  %2980 = vadd.xlane.f32.xlu2 %v2979_v31  ;;  %v3532_v48 = vmul.u32 %v7310_v28, %v3478_v47  ;;  %v9586_v63 = vld [vmem:[#allocation82_spill] sm:$0xff] }
 0x241   : > { %v7535_v29 = vadd.s32 %v7244_v10, %v9574_v32  ;;  %v7545_v34 = vsub.s32 32, %v7220_v19  ;;  %v2555_v10 = vmul.u32 %v7091_v22, %v2501_v27  ;;  %v2916_v35 = vadd.s32 %v2915_v46, %v2906_v14  ;;  %v9589_v16 = vld [vmem:[#allocation90_spill] sm:$0xff] }
 0x242   : > { %v3536_v15 = vsel %vm3534_vm5, %v3535_v49, %v3531_v24  ;;  %v9579_v6 = vshrl.u32 %v9578_v53, 16  ;;  %v956_v25 = vadd.s32 1, %v7147_v41  ;;  %v7554_v44 = vadd.s32 %v2893_v58, %v2884_v39 }
 0x243   : > { %v3537_v61 = vadd.s32 %v3536_v15, %v3532_v48  ;;  %vm9581_vm8 = vcmp.lt.s32.totalorder %v6795_v51, 1  ;;  %vm9583_vm3 = vcmp.lt.s32.totalorder %v6795_v51, 3  ;;  %v3296_v37 = vadd.s32 536870912, %v7535_v29 }
 0x244   : > { %v7551_v43 = vmul.u32 %v9579_v6, %v9577_v54  ;;  %v2860_v28 = vsel %vm9581_vm8, %v2840_v26, %v9580_v62  ;;  %v2862_v22 = vsel %vm9583_vm3, %v9582_v45, %v2861_v17  ;;  %v2560_v23 = vadd.s32 %v2559_v3, %v2555_v10 }
 0x245   : > { %v7564_v30 = vshrl.u32 %v7194_v12, 5  ;;  %v1785_v41 = vshll.u32 %v9467_v4, %v7220_v19  ;;  %v7571_v60 = vadd.s32 %v7418_v40, %v2905_v36  ;;  %v3538_v18 = vadd.s32 536870912, %v3537_v61  ;;  %v9587_v40 = vld [vmem:[#allocation89_spill] sm:$0xff] }
 0x246   : > { %v9584_v1 = vmov 920167782   ;;  %v9585_v7 = vmov 1326507024   ;;  %v2920_v12 = vadd.s32 1, %v2916_v35  ;;  %v3652_v20 = vshll.u32 %v9586_v63, 16 }
 0x247   : > { %v1786_v52 = vshrl.u32 %v9584_v1, %v7545_v34  ;;  %v1788_v0 = vshll.u32 %v9584_v1, %v7220_v19  ;;  %v1789_v8 = vshrl.u32 %v9585_v7, %v7545_v34  ;;  %vm2919_vm1 = vc.u32 %v7554_v44, %v7571_v60 }
 0x248   : > { %v7582_v42 = vshrl.u32 %v3538_v18, 30  ;;  %v9339_v36 = vand.u32 2147483647, %v9587_v40  ;;  %v2863_v33 = vsel %vm2857_vm2, %v2860_v28, %v2862_v22  ;;  %vm957_vm13 = vcmp.gt.s32.totalorder %v956_v25, 0  ;;  %v9590_v18 = vld [vmem:[#allocation81_spill] sm:$0xff] }
 0x249   : > { %v7587_v46 = vshrl.u32 %v3296_v37, 30  ;;  %v2561_v47 = vadd.s32 536870912, %v2560_v23  ;;  %vm1794_vm11 = vcmp.lt.s32.totalorder %v7564_v30, 4  ;;  %v1779_v27 = vshll.u32 %v9461_v38, %v7220_v19 }
 0x24a   : > { %v3540_v24 = vshll.u32 %v7582_v42, 30  ;;  %v9588_v58 = vmov 2131351028   ;;  %v1787_v55 = vor.u32 %v1786_v52, %v1785_v41  ;;  %v1790_v26 = vor.u32 %v1789_v8, %v1788_v0  ;;  %v9593_v0 = vld [vmem:[#allocation66_spill] sm:$0xff] }
 0x24b   : > { %v1780_v31 = vshrl.u32 %v9588_v58, %v7545_v34  ;;  %v2921_v57 = vsel %vm2919_vm1, %v2920_v12, %v2916_v35  ;;  %v1782_v51 = vshll.u32 %v9588_v58, %v7220_v19  ;;  %v1766_v32 = vand.u32 8388607, %v9339_v36 }
 0x24c   : > { %v7597_v5 = vsub.s32 %v3537_v61, %v3540_v24  ;;  %v1776_v14 = vshll.u32 %v9460_v11, %v7220_v19  ;;  %v1777_v49 = vshrl.u32 %v9461_v38, %v7545_v34  ;;  %v2917_v17 = vmul.u32 %v9589_v16, %v2863_v33 }
 0x24d   : > { %v3298_v3 = vshll.u32 %v7587_v46, 30  ;;  %v7607_v39 = vshrl.u32 %v2561_v47, 30  ;;  %v1783_v48 = vshrl.u32 %v9467_v4, %v7545_v34  ;;  %v7612_v10 = vsel %vm957_vm13, %v956_v25, 0 }
 0x24e   : > { %vm3542_vm2 = vcmp.lt.s32.totalorder %v7597_v5, 0  ;;  %v3543_v35 = vsub.s32 0, %v7597_v5  ;;  %v7616_v19 = vor.u32 %v1780_v31, %v1779_v27  ;;  %v1800_v15 = vsel %vm1794_vm11, %v1787_v55, 920167782 }
 0x24f   : > { %v7620_v6 = vadd.s32 %v2921_v57, %v2917_v17  ;;  %v7622_v61 = vor.u32 %v1783_v48, %v1782_v51  ;;  %vm1791_vm6 = vcmp.lt.s32.totalorder %v7564_v30, 1  ;;  %v1804_v62 = vsel %vm1794_vm11, %v1790_v26, 1326507024 }
 0x250   : > { %v3544_v25 = vsel %vm3542_vm2, %v3543_v35, %v7597_v5  ;;  %v1767_v28 = vor.u32 8388608, %v1766_v32  ;;  %v7628_v45 = vor.u32 %v1777_v49, %v1776_v14  ;;  %v7631_v22 = vsub.s32 %v7535_v29, %v3298_v3  ;;  %v5174_v14 = vld [vmem:[%s9595_s30] ss:$0 sm:$0xff]  ;;  %s7746_s30 = sld [smem:[#allocation9 + $0x81]] }
 0x251   : > { %v2563_v37 = vshll.u32 %v7607_v39, 30  ;;  %v3545_v41 = vclz %v3544_v25  ;;  %vm1793_vm4 = vcmp.lt.s32.totalorder %v7564_v30, 3  ;;  %vm7636_vm10 = vc.u32 %v9590_v18, %v3652_v20  ;;  %v5175_v25 = vld [vmem:[%s9596_s20] ss:$0 sm:$0xff]  ;;  %s9609_s20 = scalar_lea.vmem [#allocation5], %s6681_s27  ;;  %s7765_s27 = sld [smem:[#allocation9 + $0x83]] }
 0x252   : > { %v9594_v8 = vshrl.u32 %v9578_v53, 16  ;;  %vm1792_vm14 = vcmp.lt.s32.totalorder %v7564_v30, 2  ;;  %v1803_v29 = vsel %vm1791_vm6, %v7616_v19, %v7622_v61  ;;  %v3658_v33 = vadd.s32 %v3652_v20, %v9590_v18 }
 0x253   : > { %v7652_v47 = vand.u32 31, %v7612_v10  ;;  %v2923_v24 = vadd.s32 536870912, %v7620_v6  ;;  %v4765_v27 = vadd.s32 4294967294, %v3545_v41  ;;  %v1799_v31 = vsel %vm1791_vm6, %v7628_v45, %v7616_v19 }
 0x254   : > { %v7643_v12 = vmul.u32 %v9594_v8, %v9593_v0  ;;  %v1801_v26 = vsel %vm1793_vm4, %v7622_v61, %v1800_v15  ;;  %v1805_v57 = vsel %vm1793_vm4, %v1787_v55, %v1804_v62  ;;  %v7664_v20 = vshll.u32 %v1767_v28, 8  ;;  %v9597_v28 = vld [vmem:[#allocation75_spill] sm:$0xff] }
 0x255   : > { %v7667_v32 = vsub.s32 %v2560_v23, %v2563_v37  ;;  %vm4766_vm12 = vcmp.lt.s32.totalorder %v4765_v27, 0  ;;  %v1806_v49 = vsel %vm1792_vm14, %v1803_v29, %v1805_v57  ;;  %v3533_v55 = vadd.s32 %v7515_v9, %v7503_v13 }
 0x256   : > { %v3548_v16 = vsel %vm4766_vm12, 0, %v4765_v27  ;;  %v1808_v17 = vand.u32 65535, %v7664_v20  ;;  %v1809_v3 = vshrl.u32 %v7664_v20, 16  ;;  %v1810_v48 = vand.u32 65535, %v1806_v49  ;;  %9608 = sst [smem:[#allocation91_spill]] %s7746_s30 }
 0x257   : > { %v3549_v35 = vsub.s32 32, %v3548_v16  ;;  %v3553_v15 = vsub.s32 4294967266, %v3548_v16  ;;  %v1802_v23 = vsel %vm1792_vm14, %v1799_v31, %v1801_v26  ;;  %v7679_v62 = vshrl.u32 %v2923_v24, 30  ;;  %s7838_s30 = sld [smem:[#allocation9 + $0x87]] }
 0x258   : > { %v9598_v37 = vand.u32 65535, %v9597_v28  ;;  %v1811_v18 = vshrl.u32 %v1806_v49, 16  ;;  %v7688_v8 = vmul.u32 %v1810_v48, %v1809_v3  ;;  %v3376_v13 = vsel %vm9370_vm7, %v5174_v14, 0.0  ;;  %v9601_v14 = vld [vmem:[#allocation45_spill] sm:$0xff] }
 0x259   : > { %v3550_v9 = vshll.u32 %v7597_v5, %v3548_v16  ;;  %v3551_v29 = vshrl.u32 %v3533_v55, %v3549_v35  ;;  %v3554_v27 = vadd.s32 127, %v3553_v15  ;;  %v3674_v24 = vshll.u32 %v7551_v43, 16 }
 0x25a   : > { %v7686_v41 = vmul.u32 %v9598_v37, %v9593_v0  ;;  %v1812_v31 = vmul.u32 %v1810_v48, %v1808_v17  ;;  %v1813_v26 = vmul.u32 %v1811_v18, %v1808_v17  ;;  %v1833_v57 = vshrl.u32 %v1802_v23, 16 }
 0x25b   : > { %v3552_v36 = vor.u32 %v3551_v29, %v3550_v9  ;;  %v3555_v51 = vshll.u32 %v3554_v27, 23  ;;  %v9599_v28 = vand.u32 65535, %v9578_v53  ;;  %v7704_v5 = vsel %vm9363_vm9, %v5175_v25, %v3376_v13 }
 0x25c   : > { %vm3441_vm5 = vcmp.lt.s32.totalorder %v9601_v14, 0  ;;  %v1816_v16 = vshll.u32 %v1813_v26, 16  ;;  %v1818_v48 = vshll.u32 %v7688_v8, 16  ;;  %v1832_v55 = vand.u32 65535, %v1802_v23 }
 0x25d   : > { %v3670_v49 = vmul.u32 %v9599_v28, %v9577_v54  ;;  %v9600_v37 = vmov %v9599_v28  ;;  %v9602_v35 = vand.u32 2147483647, %v9601_v14  ;;  %v3556_v54 = vor.u32 4788187, %v3555_v51  ;;  %s1352_s13 = scalar_lea.vmem [#allocation4], %s7838_s30  ;;  %s9003_s30 = sld [smem:[#allocation11 + $0x1]] }
 0x25e   : > { %v7700_v59 = vmul.u32 %v9600_v37, %v9593_v0  ;;  %v3654_v53 = vshll.u32 %v7686_v41, 16  ;;  %v3657_v0 = vsel %vm7636_vm10, 1, %v9508_v21  ;;  %v1815_v25 = vmul.u32 %v1811_v18, %v1809_v3 }
 0x25f   : > { %vm7710_vm15 = vcmp.le.f32.partialorder %v9602_v35, 0.7853982  ;;  %v7718_v13 = vadd.s32 %v3674_v24, %v3670_v49  ;;  %vm1820_vm8 = vc.u32 %v1812_v31, %v1816_v16  ;;  %v1822_v9 = vadd.s32 %v1816_v16, %v1812_v31 }
 0x260   : > { %v7720_v29 = vmul.u32 %v1833_v57, %v1808_v17  ;;  %vm3300_vm3 = vcmp.lt.s32.totalorder %v7631_v22, 0  ;;  %v3557_v23 = vand.u32 2147483647, %v3556_v54  ;;  %v3559_v27 = vcvt.s32.f32 %v3552_v36  ;;  %v9607_v36 = vld [vmem:[#allocation83_spill] sm:$0xff] }
 0x261   : > { %vm7723_vm1 = vc.u32 %v3658_v33, %v3654_v53  ;;  %v3676_v51 = vshll.u32 %v7700_v59, 16  ;;  %v1821_v52 = vsel %vm1820_vm8, 1, %v9508_v21  ;;  %vm1824_vm13 = vc.u32 %v1822_v9, %v1818_v48 }
 0x262   : > { %v1834_v18 = vmul.u32 %v1832_v55, %v1808_v17  ;;  %v7729_v37 = vmul.u32 %v1832_v55, %v1809_v3  ;;  %v3560_v35 = vmul.f32 %v3559_v27, %v3557_v23  ;;  %vm3678_vm2 = vc.u32 %v3670_v49, %v3674_v24 }
 0x263   : > { %v1823_v31 = vadd.s32 %v1821_v52, %v1815_v25  ;;  %v1825_v16 = vsel %vm1824_vm13, 1, %v9508_v21  ;;  %v3659_v33 = vadd.s32 %v3657_v0, %v9607_v36  ;;  %vm3682_vm10 = vc.u32 %v7718_v13, %v3676_v51 }
 0x264   : > { %v1837_v54 = vmul.u32 %v1833_v57, %v1809_v3  ;;  %v1838_v48 = vshll.u32 %v7720_v29, 16  ;;  %v3561_v17 = vxor.u32 2147483648, %v3560_v35  ;;  %v1817_v55 = vshrl.u32 %v1813_v26, 16  ;;  %v5176_v3 = vld [vmem:[%s9609_s20] ss:$0 sm:$0xff]  ;;  %s7770_s20 = sld [smem:[#allocation9 + $0x84]] }
 0x265   : > { %v1827_v53 = vadd.s32 %v1825_v16, %v1823_v31  ;;  %v1840_v24 = vshll.u32 %v7729_v37, 16  ;;  %v3661_v49 = vsel %vm7723_vm1, 1, %v9508_v21  ;;  %v3679_v25 = vsel %vm3678_vm2, 1, %v9508_v21 }
 0x266   : > { %v1775_v0 = vshrl.u32 %v9460_v11, %v7545_v34  ;;  %vm1842_vm12 = vc.u32 %v1834_v18, %v1838_v48  ;;  %v3562_v26 = vsel %vm3441_vm5, %v3561_v17, %v3560_v35  ;;  %v3683_v57 = vsel %vm3682_vm10, 1, %v9508_v21 }
 0x267   : > { %v1843_v9 = vsel %vm1842_vm12, 1, %v9508_v21  ;;  %v1844_v23 = vadd.s32 %v1838_v48, %v1834_v18  ;;  %v3563_v27 = vsub.s32 4, %v7582_v42  ;;  %v7760_v34 = vsel %vm7710_vm15, %v9601_v14, %v3562_v26 }
 0x268   : > { %v1796_v28 = vsel %vm1794_vm11, %v7622_v61, 2102212464  ;;  %v1845_v52 = vadd.s32 %v1843_v9, %v1837_v54  ;;  %v3567_v18 = vmul.f32 %v7760_v34, %v7760_v34  ;;  %v1819_v35 = vshrl.u32 %v7688_v8, 16 }
 0x269   : > { %v1828_v31 = vadd.s32 %v1827_v53, %v1817_v55  ;;  %vm1846_vm8 = vc.u32 %v1844_v23, %v1840_v24  ;;  %v3681_v16 = vadd.s32 %v3679_v25, %v7643_v12  ;;  %v1795_v36 = vsel %vm1791_vm6, %v1775_v0, %v7628_v45  ;;  %v5177_v25 = vld [vmem:[%s9613_s25] ss:$0 sm:$0xff]  ;;  %s9616_s25 = scalar_lea.vmem [#allocation5], %s6710_s26  ;;  %s1340_s26 = scalar_lea.vmem [#allocation4], %s7784_s29 }
 0x26a   : > { %v1839_v61 = vshrl.u32 %v7720_v29, 16  ;;  %v1847_v54 = vsel %vm1846_vm8, 1, %v9508_v21  ;;  %v3568_v48 = vmul.f32 -0.001358992, %v3567_v18  ;;  %v3575_v8 = vmul.f32 -0.00019511016, %v3567_v18 }
 0x26b   : > { %v1797_v17 = vsel %vm1793_vm4, %v7616_v19, %v1796_v28  ;;  %v1849_v55 = vadd.s32 %v1847_v54, %v1845_v52  ;;  %v9611_v12 = vsub.s32 0, %v7631_v22  ;;  %v2566_v29 = vsub.s32 0, %v7667_v32  ;;  %s9000_s29 = sld [smem:[#allocation11]] }
 0x26c   : > { %vm9612_vm11 = vcmp.eq.s32.totalorder %v6010_v2, 2  ;;  %v1841_v19 = vshrl.u32 %v7729_v37, 16  ;;  %v3569_v0 = vadd.f32 0.041655596, %v3568_v48  ;;  %v3576_v26 = vadd.f32 0.008332121, %v3575_v8 }
 0x26d   : > { %v3302_v45 = vsel %vm3300_vm3, %v9611_v12, %v7631_v22  ;;  %v3392_v53 = vsel %vm9612_vm11, %v5176_v3, %v7704_v5  ;;  %v7798_v9 = vadd.s32 %v1828_v31, %v1819_v35  ;;  %v7800_v28 = vadd.s32 %v1844_v23, %v1840_v24  ;;  %v5178_v37 = vld [vmem:[%s9614_s17] ss:$0 sm:$0xff]  ;;  %v9617_v48 = vld [vmem:[#allocation78_spill] sm:$0xff]  ;;  %s1304_s17 = scalar_lea.vmem [#allocation4], %s7765_s27  ;;  %s9006_s27 = sld [smem:[#allocation11 + $0x2]] }
 0x26e   : > { %vm2565_vm6 = vcmp.lt.s32.totalorder %v7667_v32, 0  ;;  %v3663_v52 = vadd.s32 %v3661_v49, %v3659_v33  ;;  %v3685_v54 = vadd.s32 %v3683_v57, %v3681_v16  ;;  %v1798_v12 = vsel %vm1792_vm14, %v1795_v36, %v1797_v17  ;;  %v5179_v33 = vld [vmem:[%s9616_s25] ss:$0 sm:$0xff]  ;;  %v9619_v17 = vld [vmem:[#allocation70_spill] sm:$0xff]  ;;  %s1316_s25 = scalar_lea.vmem [#allocation4], %s7770_s20  ;;  %s9008_s20 = sld [smem:[#allocation11 + $0x3]] }
 0x26f   : > { %v1850_v5 = vadd.s32 %v1849_v55, %v1839_v61  ;;  %v2925_v3 = vshll.u32 %v7679_v62, 30  ;;  %v3564_v35 = vsel %vm3441_vm5, %v3563_v27, %v7582_v42  ;;  %v3570_v31 = vmul.f32 %v3569_v0, %v3567_v18  ;;  %v9618_v8 = vld [vmem:[#allocation73_spill] sm:$0xff] }
 0x270   : > { %v3577_v24 = vmul.f32 %v3576_v26, %v3567_v18  ;;  %vm9615_vm4 = vcmp.eq.s32.totalorder %v6010_v2, 3  ;;  %v3653_v30 = vshrl.u32 %v9586_v63, 16  ;;  %v3675_v49 = vshrl.u32 %v7551_v43, 16 }
 0x271   : > { %v3400_v23 = vsel %vm9615_vm4, %v5177_v25, %v3392_v53  ;;  %v1851_v57 = vadd.s32 %v1850_v5, %v1841_v19  ;;  %v3571_v16 = vadd.f32 -0.4999988, %v3570_v31  ;;  %v1852_v42 = vmul.u32 %v7664_v20, %v1798_v12 }
 0x272   : > { %v3578_v36 = vadd.f32 -0.16666654, %v3577_v24  ;;  %vm1854_vm14 = vc.u32 %v7798_v9, %v7800_v28  ;;  %v3566_v27 = vsel %vm7710_vm15, 0, %v3564_v35  ;;  %v3664_v61 = vadd.s32 %v3663_v52, %v3653_v30  ;;  %v5180_v52 = vld [vmem:[%s9622_s16] ss:$0 sm:$0xff]  ;;  %v9624_v35 = vld [vmem:[#allocation79_spill] sm:$0xff] }
 0x273   : > { %v3686_v63 = vadd.s32 %v3685_v54, %v3675_v49  ;;  %v1855_v43 = vadd.s32 1, %v1851_v57  ;;  %vm9620_vm5 = vcmp.lt.s32.totalorder %v9619_v17, 3  ;;  %vm9621_vm3 = vcmp.eq.s32.totalorder %v6010_v2, 4  ;;  %s9632_s16 = scalar_lea.vmem [#allocation4], %s7110_s2  ;;  %s9633_s2 = scalar_lea.vmem [#allocation4], %s7121_s14 }
 0x274   : > { %v3633_v55 = vsel %vm9620_vm5, %v9618_v8, %v9617_v48  ;;  %v3408_v20 = vsel %vm9621_vm3, %v5178_v37, %v3400_v23  ;;  %v3572_v53 = vmul.f32 %v3571_v16, %v3567_v18  ;;  %v3579_v25 = vmul.f32 %v3578_v36, %v3567_v18  ;;  %s9634_s14 = scalar_lea.vmem [#allocation4], %s7131_s11  ;;  %s9638_s11 = scalar_lea.vmem [#allocation4], %s7134_s4 }
 0x275   : > { %v3303_v15 = vclz %v3302_v45  ;;  %v3655_v19 = vshrl.u32 %v7686_v41, 16  ;;  %v3677_v0 = vshrl.u32 %v7700_v59, 16  ;;  %v1856_v26 = vsel %vm1854_vm14, %v1855_v43, %v1851_v57  ;;  %s9640_s4 = scalar_lea.vmem [#allocation4], %s7144_s18  ;;  %s9751_s18 = sld [smem:[#allocation43_spill]] }
 0x276   : > { %v3573_v54 = vadd.f32 1.0, %v3572_v53  ;;  %v3580_v12 = vadd.f32 1.0, %v3579_v25  ;;  %v1857_v5 = vadd.s32 %v1856_v26, %v1852_v42  ;;  %vm9623_vm15 = vcmp.eq.s32.totalorder %v6010_v2, 5  ;;  %v5181_v42 = vld [vmem:[%s9627_s10] ss:$0 sm:$0xff]  ;;  %s3948_s10 = scalar_lea.vmem [#allocation2], %s9008_s20 }
 0x277   : > { %v3416_v18 = vsel %vm9623_vm15, %v5179_v33, %v3408_v20  ;;  %v3583_v37 = vand.u32 3, %v3566_v27  ;;  %v7842_v45 = vadd.s32 %v3664_v61, %v3655_v19  ;;  %v3687_v41 = vadd.s32 %v3686_v63, %v3677_v0 }
 0x278   : > { %vm9625_vm1 = vcmp.lt.s32.totalorder %v9619_v17, 2  ;;  %v3581_v24 = vmul.f32 %v3580_v12, %v7760_v34  ;;  %v3589_v23 = vxor.u32 2147483648, %v3573_v54  ;;  %v1858_v30 = vadd.s32 536870912, %v1857_v5  ;;  %v9628_v17 = vld [vmem:[#allocation62_spill] sm:$0xff] }
 0x279   : > { %v3634_v31 = vsel %vm9625_vm1, %v9624_v35, %v3633_v55  ;;  %v7849_v49 = vsub.s32 32, %v7652_v47  ;;  %v4754_v57 = vadd.s32 4294967294, %v3303_v15  ;;  %v7852_v16 = vsub.s32 %v7620_v6, %v2925_v3 }
 0x27a   : > { %v7857_v33 = vadd.s32 %v7718_v13, %v3676_v51  ;;  %v2567_v34 = vsel %vm2565_vm6, %v2566_v29, %v7667_v32  ;;  %vm9626_vm13 = vcmp.eq.s32.totalorder %v6010_v2, 6  ;;  %v3586_v27 = vxor.u32 2147483648, %v3581_v24 }
 0x27b   : > { %v3424_v36 = vsel %vm9626_vm13, %v5180_v52, %v3416_v18  ;;  %v7868_v6 = vshrl.u32 %v1858_v30, 30  ;;  %vm3585_vm2 = vcmp.eq.s32.totalorder %v3583_v37, 0  ;;  %vm3588_vm10 = vcmp.eq.s32.totalorder %v3583_v37, 2  ;;  %v5243_v52 = vld [vmem:[#allocation4] sm:$0xff] }
 0x27c   : > { %vm3690_vm12 = vc.u32 %v7842_v45, %v7857_v33  ;;  %v3691_v59 = vadd.s32 1, %v3687_v41  ;;  %vm3584_vm8 = vcmp.lt.s32.totalorder %v3583_v37, 2  ;;  %v3587_v13 = vsel %vm3585_vm2, %v3573_v54, %v3586_v27 }
 0x27d   : > { %v3590_v51 = vsel %vm3588_vm10, %v3589_v23, %v3581_v24  ;;  %v1860_v29 = vshll.u32 %v7868_v6, 30  ;;  %v2568_v3 = vclz %v2567_v34  ;;  %v2928_v61 = vsub.s32 0, %v7852_v16 }
 0x27e   : > { %vm3582_vm11 = vweird.f32 %v9601_v14  ;;  %v3591_v63 = vsel %vm3584_vm8, %v3587_v13, %v3590_v51  ;;  %vm2927_vm6 = vcmp.lt.s32.totalorder %v7852_v16, 0  ;;  %v7879_v43 = vsel %vm932_vm0, %v5181_v42, %v3424_v36 }
 0x27f   : > { %v3592_v48 = vsel %vm3582_vm11, nan, %v3591_v63  ;;  %v1861_v8 = vsub.s32 %v1857_v5, %v1860_v29  ;;  %v3688_v55 = vmul.u32 %v9628_v17, %v3634_v31  ;;  %v972_v20 = vshll.u32 %v9467_v4, %v7652_v47  ;;  %v9631_v17 = vld [vmem:[#allocation55_spill] sm:$0xff] }
 0x280   : > { %v3692_v53 = vsel %vm3690_vm12, %v3691_v59, %v3687_v41  ;;  %v3749_v14 = vadd.f32 %v3592_v48, %v7879_v43  ;;  %v973_v25 = vshrl.u32 %v9584_v1, %v7849_v49  ;;  %vm4755_vm4 = vcmp.lt.s32.totalorder %v4754_v57, 0  ;;  %v9630_v48 = vld [vmem:[#allocation57_spill] sm:$0xff] }
 0x281   : > { %vm1862_vm14 = vcmp.lt.s32.totalorder %v1861_v8, 0  ;;  %v1863_v15 = vsub.s32 0, %v1861_v8  ;;  %v7891_v19 = vshrl.u32 %v7612_v10, 5  ;;  %v4726_v0 = vadd.s32 4294967294, %v2568_v3  ;;  %v9629_v3 = vld [vmem:[#allocation85_spill] sm:$0xff] }
 0x282   : > { %v2929_v26 = vsel %vm2927_vm6, %v2928_v61, %v7852_v16  ;;  %v3750_v54 = vmul.f32 %v5243_v52, %v3749_v14  ;;  %v975_v12 = vshll.u32 %v9584_v1, %v7652_v47  ;;  %v976_v5 = vshrl.u32 %v9585_v7, %v7849_v49 }
 0x283   : > { %v3693_v18 = vadd.s32 %v3692_v53, %v3688_v55  ;;  %v1864_v37 = vsel %vm1862_vm14, %v1863_v15, %v1861_v8  ;;  %v7898_v41 = vsel %vm4755_vm4, 0, %v4754_v57  ;;  %v974_v31 = vor.u32 %v973_v25, %v972_v20 }
 0x284   : > { %3751 = vadd.xlane.f32.xlu2 %v3750_v54  ;;  %v1865_v35 = vclz %v1864_v37  ;;  %v2930_v10 = vclz %v2929_v26  ;;  %vm981_vm5 = vcmp.lt.s32.totalorder %v7891_v19, 4  ;;  %vm4727_vm3 = vcmp.lt.s32.totalorder %v4726_v0, 0 }
 0x285   : > { %v977_v23 = vor.u32 %v976_v5, %v975_v12  ;;  %v3311_v30 = vsub.s32 4294967266, %v7898_v41  ;;  %v3694_v34 = vadd.s32 536870912, %v3693_v18  ;;  %v1853_v36 = vadd.s32 %v7800_v28, %v7798_v9  ;;  %v5182_v5 = vld [vmem:[%s9632_s16] ss:$0 sm:$0xff]  ;;  %s9642_s16 = scalar_lea.vmem [#allocation4], %s7151_s19  ;;  %s9644_s19 = scalar_lea.vmem [#allocation4], %s7160_s3 }
 0x286   : > { %v4645_v24 = vadd.s32 4294967294, %v1865_v35  ;;  %v7906_v57 = vsel %vm981_vm5, %v974_v31, 920167782  ;;  %v2571_v42 = vsel %vm4727_vm3, 0, %v4726_v0  ;;  %v4740_v27 = vadd.s32 4294967294, %v2930_v10  ;;  %s9647_s3 = scalar_lea.vmem [#allocation4], %s7168_s21 }
 0x287   : > { %v9343_v61 = vand.u32 2147483647, %v9629_v3  ;;  %v991_v63 = vsel %vm981_vm5, %v977_v23, 1326507024  ;;  %v7913_v55 = vadd.s32 %v9631_v17, %v9630_v48  ;;  %v7915_v9 = vadd.s32 127, %v3311_v30  ;;  %s9668_s21 = scalar_lea.vmem [#allocation4], %s7356_s24 }
 0x288   : > { %vm4646_vm15 = vcmp.lt.s32.totalorder %v4645_v24, 0  ;;  %v7917_v28 = vshrl.u32 %v3694_v34, 30  ;;  %v2556_v20 = vadd.s32 %v7352_v56, %v7347_v50  ;;  %v2576_v53 = vsub.s32 4294967266, %v2571_v42  ;;  %s9672_s24 = scalar_lea.vmem [#allocation4], %s7377_s0  ;;  %s9673_s0 = scalar_lea.vmem [#allocation4], %s7391_s7 }
 0x289   : > { %v1868_v59 = vsel %vm4646_vm15, 0, %v4645_v24  ;;  %vm4741_vm1 = vcmp.lt.s32.totalorder %v4740_v27, 0  ;;  %v966_v25 = vshll.u32 %v9461_v38, %v7652_v47  ;;  %v967_v15 = vshrl.u32 %v9588_v58, %v7849_v49  ;;  %s9674_s7 = scalar_lea.vmem [#allocation4], %s7401_s9  ;;  %s9676_s9 = scalar_lea.vmem [#allocation4], %s7411_s15 }
 0x28a   : > { %v1869_v13 = vsub.s32 32, %v1868_v59  ;;  %v1870_v51 = vshll.u32 %v1861_v8, %v1868_v59  ;;  %v1873_v29 = vsub.s32 4294967266, %v1868_v59  ;;  %v969_v0 = vshll.u32 %v9588_v58, %v7652_v47  ;;  %v5183_v59 = vld [vmem:[%s9633_s2] ss:$0 sm:$0xff]  ;;  %s9678_s2 = scalar_lea.vmem [#allocation4], %s7423_s22  ;;  %s9680_s15 = scalar_lea.vmem [#allocation4], %s7428_s12 }
 0x28b   : > { %v953_v54 = vand.u32 8388607, %v9343_v61  ;;  %v970_v50 = vshrl.u32 %v9467_v4, %v7849_v49  ;;  %v2572_v56 = vsub.s32 32, %v2571_v42  ;;  %v3696_v12 = vshll.u32 %v7917_v28, 30  ;;  %s9682_s22 = scalar_lea.vmem [#allocation4], %s7480_s6  ;;  %s9718_s12 = sld [smem:[#allocation91_spill]] }
 0x28c   : > { %v1871_v8 = vshrl.u32 %v1853_v36, %v1869_v13  ;;  %v1874_v14 = vadd.s32 127, %v1873_v29  ;;  %v7934_v37 = vor.u32 %v967_v15, %v966_v25  ;;  %vm978_vm13 = vcmp.lt.s32.totalorder %v7891_v19, 1 }
 0x28d   : > { %v7937_v24 = vor.u32 %v970_v50, %v969_v0  ;;  %vm980_vm2 = vcmp.lt.s32.totalorder %v7891_v19, 3  ;;  %v2577_v23 = vadd.s32 127, %v2576_v53  ;;  %v7941_v30 = vsel %vm4741_vm1, 0, %v4740_v27  ;;  %v5184_v0 = vld [vmem:[%s9634_s14] ss:$0 sm:$0xff] }
 0x28e   : > { %v1872_v26 = vor.u32 %v1871_v8, %v1870_v51  ;;  %v1875_v52 = vshll.u32 %v1874_v14, 23  ;;  %vm979_vm10 = vcmp.lt.s32.totalorder %v7891_v19, 2  ;;  %v992_v34 = vsel %vm980_vm2, %v974_v31, %v991_v63 }
 0x28f   : > { %v954_v51 = vor.u32 8388608, %v953_v54  ;;  %v990_v29 = vsel %vm978_vm13, %v7934_v37, %v7937_v24  ;;  %v2574_v48 = vshrl.u32 %v2556_v20, %v2572_v56  ;;  %v1696_v27 = vsel %vm9370_vm7, %v5182_v5, 0.0 }
 0x290   : > { %v1876_v35 = vor.u32 4788187, %v1875_v52  ;;  %v1879_v10 = vcvt.s32.f32 %v1872_v26  ;;  %v963_v17 = vshll.u32 %v9460_v11, %v7652_v47  ;;  %v964_v31 = vshrl.u32 %v9461_v38, %v7849_v49 }
 0x291   : > { %v2938_v63 = vsub.s32 4294967266, %v7941_v30  ;;  %v7960_v53 = vsub.s32 %v3693_v18, %v3696_v12  ;;  %v993_v14 = vsel %vm979_vm10, %v990_v29, %v992_v34  ;;  %v2573_v25 = vshll.u32 %v7667_v32, %v2571_v42  ;;  %s9723_s6 = scalar_lea.vmem [#allocation4], %s9718_s12 }
 0x292   : > { %v1877_v13 = vand.u32 2147483647, %v1876_v35  ;;  %v2578_v15 = vshll.u32 %v2577_v23, 23  ;;  %vm1761_vm12 = vcmp.lt.s32.totalorder %v9587_v40, 0  ;;  %v1704_v47 = vsel %vm9363_vm9, %v5183_v59, %v1696_v27  ;;  %v5185_v35 = vld [vmem:[%s9638_s11] ss:$0 sm:$0xff] }
 0x293   : > { %v9635_v18 = vand.u32 2147483647, %v9587_v40  ;;  %v7977_v54 = vshll.u32 %v954_v51, 8  ;;  %v7979_v50 = vor.u32 %v2574_v48, %v2573_v25  ;;  %v7981_v32 = vor.u32 %v964_v31, %v963_v17  ;;  %v5186_v31 = vld [vmem:[%s9640_s4] ss:$0 sm:$0xff]  ;;  %s3938_s11 = scalar_lea.vmem [#allocation2], %s9003_s30 }
 0x294   : > { %v1880_v8 = vmul.f32 %v1879_v10, %v1877_v13  ;;  %v997_v42 = vand.u32 65535, %v993_v14  ;;  %v998_v56 = vshrl.u32 %v993_v14, 16  ;;  %v2939_v12 = vadd.s32 127, %v2938_v63  ;;  %s3943_s4 = scalar_lea.vmem [#allocation2], %s9006_s27 }
 0x295   : > { %vm7973_vm8 = vcmp.le.f32.partialorder %v9635_v18, 0.7853982  ;;  %v3699_v5 = vsub.s32 0, %v7960_v53  ;;  %v995_v23 = vand.u32 65535, %v7977_v54  ;;  %vm3698_vm11 = vcmp.lt.s32.totalorder %v7960_v53, 0  ;;  %v5244_v18 = vld [vmem:[%s9421_s28] sm:$0xff] }
 0x296   : > { %v1881_v52 = vxor.u32 2147483648, %v1880_v8  ;;  %vm9639_vm6 = vcmp.eq.s32.totalorder %v6010_v2, 2  ;;  %v1883_v59 = vsub.s32 4, %v7868_v6  ;;  %v7996_v51 = vor.u32 4788187, %v2578_v15 }
 0x297   : > { %v1712_v34 = vsel %vm9639_vm6, %v5184_v0, %v1704_v47  ;;  %v996_v48 = vshrl.u32 %v7977_v54, 16  ;;  %v7999_v27 = vmul.u32 %v998_v56, %v995_v23  ;;  %v2934_v17 = vsub.s32 32, %v7941_v30 }
 0x298   : > { %v1882_v10 = vsel %vm1761_vm12, %v1881_v52, %v1880_v8  ;;  %v986_v63 = vsel %vm978_vm13, %v7981_v32, %v7934_v37  ;;  %v988_v8 = vsel %vm980_vm2, %v7937_v24, %v7906_v57  ;;  %v999_v14 = vmul.u32 %v997_v42, %v995_v23 }
 0x299   : > { %v1885_v13 = vsel %vm7973_vm8, %v9587_v40, %v1882_v10  ;;  %v3700_v25 = vsel %vm3698_vm11, %v3699_v5, %v7960_v53  ;;  %vm9641_vm4 = vcmp.eq.s32.totalorder %v6010_v2, 3  ;;  %v2940_v52 = vshll.u32 %v2939_v12, 23 }
 0x29a   : > { %v1887_v29 = vmul.f32 %v1885_v13, %v1885_v13  ;;  %v1720_v15 = vsel %vm9641_vm4, %v5185_v35, %v1712_v34  ;;  %v1884_v10 = vsel %vm1761_vm12, %v1883_v59, %v7868_v6  ;;  %v8021_v57 = vmul.u32 %v997_v42, %v996_v48  ;;  %v5187_v34 = vld [vmem:[%s9642_s16] ss:$0 sm:$0xff] }
 0x29b   : > { %v1003_v5 = vshll.u32 %v7999_v27, 16  ;;  %v2918_v35 = vadd.s32 %v7571_v60, %v7554_v44  ;;  %v3701_v12 = vclz %v3700_v25  ;;  %vm9643_vm14 = vcmp.eq.s32.totalorder %v6010_v2, 4  ;;  %v5188_v60 = vld [vmem:[%s9644_s19] ss:$0 sm:$0xff] }
 0x29c   : > { %v1888_v0 = vmul.f32 -0.001358992, %v1887_v29  ;;  %v1895_v47 = vmul.f32 -0.00019511016, %v1887_v29  ;;  %1357 = vperm.xlu2 %5147, %v5244_v18   ;;  %v989_v18 = vsel %vm979_vm10, %v986_v63, %v988_v8  ;;  %v1728_v36 = vsel %vm9643_vm14, %v5186_v31, %v1720_v15 }
 0x29d   : > { %v1002_v6 = vmul.u32 %v998_v56, %v996_v48  ;;  %vm1007_vm3 = vc.u32 %v999_v14, %v1003_v5  ;;  %v1886_v42 = vsel %vm7973_vm8, 0, %v1884_v10  ;;  %v1019_v1 = vand.u32 65535, %v989_v18 }
 0x29e   : > { %v1889_v61 = vadd.f32 0.041655596, %v1888_v0  ;;  %v1896_v20 = vadd.f32 0.008332121, %v1895_v47  ;;  %v1008_v44 = vsel %vm1007_vm3, 1, %v9508_v21  ;;  %v1005_v0 = vshll.u32 %v8021_v57, 16 }
 0x29f   : > { %v1009_v47 = vadd.s32 %v1003_v5, %v999_v14  ;;  %v1020_v63 = vshrl.u32 %v989_v18, 16  ;;  %vm9645_vm15 = vcmp.eq.s32.totalorder %v6010_v2, 5  ;;  %v1903_v26 = vand.u32 3, %v1886_v42 }
 0x2a0   : > { %v1890_v59 = vmul.f32 %v1889_v61, %v1887_v29  ;;  %v1897_v4 = vmul.f32 %v1896_v20, %v1887_v29  ;;  %v1736_v56 = vsel %vm9645_vm15, %v5187_v34, %v1728_v36  ;;  %v2935_v61 = vshll.u32 %v7852_v16, %v7941_v30 }
 0x2a1   : > { %v2936_v20 = vshrl.u32 %v2918_v35, %v2934_v17  ;;  %v1010_v15 = vadd.s32 %v1008_v44, %v1002_v6  ;;  %v8043_v10 = vor.u32 4788187, %v2940_v52  ;;  %v8045_v58 = vadd.s32 4294967294, %v3701_v12 }
 0x2a2   : > { %v1891_v31 = vadd.f32 -0.4999988, %v1890_v59  ;;  %v1898_v25 = vadd.f32 -0.16666654, %v1897_v4  ;;  %vm9646_vm1 = vcmp.eq.s32.totalorder %v6010_v2, 6  ;;  %vm1011_vm12 = vc.u32 %v1009_v47, %v1005_v0 }
 0x2a3   : > { %v1744_v18 = vsel %vm9646_vm1, %v5188_v60, %v1736_v56  ;;  %v1022_v8 = vmul.u32 %v1020_v63, %v995_v23  ;;  %v1023_v36 = vmul.u32 %v1019_v1, %v996_v48  ;;  %v1012_v16 = vsel %vm1011_vm12, 1, %v9508_v21 }
 0x2a4   : > { %v1892_v14 = vmul.f32 %v1891_v31, %v1887_v29  ;;  %v1899_v5 = vmul.f32 %v1898_v25, %v1887_v29  ;;  %v1021_v30 = vmul.u32 %v1019_v1, %v995_v23  ;;  %vm1908_vm8 = vcmp.eq.s32.totalorder %v1903_v26, 2  ;;  %v5189_v1 = vld [vmem:[%s9647_s3] ss:$0 sm:$0xff] }
 0x2a5   : > { %v1004_v17 = vshrl.u32 %v7999_v27, 16  ;;  %v1014_v52 = vadd.s32 %v1012_v16, %v1010_v15  ;;  %v1025_v35 = vshll.u32 %v1022_v8, 16  ;;  %v962_v29 = vshrl.u32 %v9460_v11, %v7849_v49  ;;  %v8082_v16 = vld [vmem:[#allocation5] sm:$0xff] }
 0x2a6   : > { %v1893_v34 = vadd.f32 1.0, %v1892_v14  ;;  %v1900_v4 = vadd.f32 1.0, %v1899_v5  ;;  %v1024_v42 = vmul.u32 %v1020_v63, %v996_v48  ;;  %vm1904_vm11 = vcmp.lt.s32.totalorder %v1903_v26, 2 }
 0x2a7   : > { %vm1905_vm6 = vcmp.eq.s32.totalorder %v1903_v26, 0  ;;  %v983_v59 = vsel %vm981_vm5, %v7937_v24, 2102212464  ;;  %v1027_v44 = vshll.u32 %v1023_v36, 16  ;;  %vm1029_vm4 = vc.u32 %v1021_v30, %v1025_v35 }
 0x2a8   : > { %v1901_v12 = vmul.f32 %v1900_v4, %v1885_v13  ;;  %v1909_v6 = vxor.u32 2147483648, %v1893_v34  ;;  %v1031_v27 = vadd.s32 %v1025_v35, %v1021_v30  ;;  %vm1902_vm14 = vweird.f32 %v9587_v40 }
 0x2a9   : > { %v1006_v13 = vshrl.u32 %v8021_v57, 16  ;;  %v1015_v0 = vadd.s32 %v1014_v52, %v1004_v17  ;;  %v1030_v49 = vsel %vm1029_vm4, 1, %v9508_v21  ;;  %v1026_v47 = vshrl.u32 %v1022_v8, 16 }
 0x2aa   : > { %v1906_v23 = vxor.u32 2147483648, %v1901_v12  ;;  %v1910_v60 = vsel %vm1908_vm8, %v1909_v6, %v1901_v12  ;;  %v1032_v63 = vadd.s32 %v1030_v49, %v1024_v42  ;;  %vm1033_vm3 = vc.u32 %v1031_v27, %v1027_v44 }
 0x2ab   : > { %v982_v56 = vsel %vm978_vm13, %v962_v29, %v7981_v32  ;;  %v984_v31 = vsel %vm980_vm2, %v7934_v37, %v983_v59  ;;  %v1034_v40 = vsel %vm1033_vm3, 1, %v9508_v21  ;;  %v8071_v57 = vsel %vm932_vm0, %v5189_v1, %v1744_v18  ;;  %v9652_v1 = vld [vmem:[#allocation48_spill] sm:$0xff] }
 0x2ac   : > { %v1907_v48 = vsel %vm1905_vm6, %v1893_v34, %v1906_v23  ;;  %9648 = vst [vmem:[#allocation56_spill] sm:$0xff] %v8071_v57  ;;  %v1028_v8 = vshrl.u32 %v1023_v36, 16  ;;  %v1036_v15 = vadd.s32 %v1034_v40, %v1032_v63  ;;  %v2937_v14 = vor.u32 %v2936_v20, %v2935_v61 }
 0x2ad   : > { %v1911_v24 = vsel %vm1904_vm11, %v1907_v48, %v1910_v60  ;;  %v8074_v5 = vadd.s32 %v1015_v0, %v1006_v13  ;;  %v8076_v34 = vadd.s32 %v1031_v27, %v1027_v44  ;;  %v9649_v32 = vsub.s32 32, %v7898_v41 }
 0x2ae   : > { %v1912_v25 = vsel %vm1902_vm14, nan, %v1911_v24  ;;  %v2582_v4 = vcvt.s32.f32 %v7979_v50  ;;  %v985_v18 = vsel %vm979_vm10, %v982_v56, %v984_v31  ;;  %v1037_v36 = vadd.s32 %v1036_v15, %v1026_v47 }
 0x2af   : > { %v2069_v26 = vadd.f32 %v1912_v25, %v8071_v57  ;;  %v3309_v37 = vshrl.u32 %v7913_v55, %v9649_v32  ;;  %v2942_v61 = vand.u32 2147483647, %v8043_v10  ;;  %vm4769_vm5 = vcmp.lt.s32.totalorder %v8045_v58, 0 }
 0x2b0   : > { %v3308_v30 = vshll.u32 %v7631_v22, %v7898_v41  ;;  %v9650_v17 = vshll.u32 %v7915_v9, 23  ;;  %v9651_v50 = vand.u32 2147483647, %v7996_v51  ;;  %v1038_v35 = vadd.s32 %v1037_v36, %v1028_v8 }
 0x2b1   : > { %v2070_v20 = vmul.f32 %v2069_v26, %v8082_v16  ;;  %v2944_v12 = vcvt.s32.f32 %v2937_v14  ;;  %v1039_v19 = vmul.u32 %v7977_v54, %v985_v18  ;;  %vm1041_vm13 = vc.u32 %v8074_v5, %v8076_v34 }
 0x2b2   : > { %v3314_v55 = vor.u32 4788187, %v9650_v17  ;;  %v2583_v52 = vmul.f32 %v2582_v4, %v9651_v50  ;;  %v3310_v10 = vor.u32 %v3309_v37, %v3308_v30  ;;  %v3704_v6 = vsel %vm4769_vm5, 0, %v8045_v58  ;;  %v9653_v58 = vld [vmem:[#allocation67_spill] sm:$0xff] }
 0x2b3   : > { %2071 = vadd.xlane.f32.xlu1 %v2070_v20  ;;  %v1042_v29 = vadd.s32 1, %v1038_v35  ;;  %v2945_v42 = vmul.f32 %v2944_v12, %v2942_v61  ;;  %v3709_v59 = vsub.s32 4294967266, %v3704_v6  ;;  %vm2464_vm2 = vcmp.lt.s32.totalorder %v9652_v1, 0  ;;  %v9660_v37 = vld [vmem:[#allocation47_spill] sm:$0xff] }
 0x2b4   : > { %v3315_v22 = vand.u32 2147483647, %v3314_v55  ;;  %v2584_v41 = vxor.u32 2147483648, %v2583_v52  ;;  %v3317_v51 = vcvt.s32.f32 %v3310_v10  ;;  %vm2826_vm10 = vcmp.lt.s32.totalorder %v9653_v58, 0 }
 0x2b5   : > { %v1043_v9 = vsel %vm1041_vm13, %v1042_v29, %v1038_v35  ;;  %v2946_v23 = vxor.u32 2147483648, %v2945_v42  ;;  %v3710_v13 = vadd.s32 127, %v3709_v59  ;;  %v9654_v49 = vand.u32 2147483647, %v9652_v1 }
 0x2b6   : > { %v1044_v44 = vadd.s32 %v1043_v9, %v1039_v19  ;;  %v3318_v27 = vmul.f32 %v3317_v51, %v3315_v22  ;;  %v2585_v54 = vsel %vm2464_vm2, %v2584_v41, %v2583_v52  ;;  %v3705_v24 = vsub.s32 32, %v3704_v6 }
 0x2b7   : > { %vm8107_vm15 = vcmp.le.f32.partialorder %v9654_v49, 0.7853982  ;;  %v2947_v63 = vsel %vm2826_vm10, %v2946_v23, %v2945_v42  ;;  %v9657_v40 = vand.u32 2147483647, %v9653_v58  ;;  %v3689_v8 = vadd.s32 %v7857_v33, %v7842_v45 }
 0x2b8   : > { %v1045_v60 = vadd.s32 536870912, %v1044_v44  ;;  %v8114_v47 = vsel %vm8107_vm15, %v9652_v1, %v2585_v54  ;;  %v3319_v31 = vxor.u32 2147483648, %v3318_v27  ;;  %v3711_v15 = vshll.u32 %v3710_v13, 23 }
 0x2b9   : > { %vm8121_vm1 = vcmp.le.f32.partialorder %v9657_v40, 0.7853982  ;;  %v2590_v26 = vmul.f32 %v8114_v47, %v8114_v47  ;;  %vm3199_vm12 = vcmp.lt.s32.totalorder %v9660_v37, 0  ;;  %v3707_v4 = vshrl.u32 %v3689_v8, %v3705_v24 }
 0x2ba   : > { %v8102_v0 = vshrl.u32 %v1045_v60, 30  ;;  %v8132_v32 = vsel %vm8121_vm1, %v9653_v58, %v2947_v63  ;;  %v3320_v36 = vsel %vm3199_vm12, %v3319_v31, %v3318_v27  ;;  %v3706_v33 = vshll.u32 %v7960_v53, %v3704_v6 }
 0x2bb   : > { %v8139_v45 = vmul.f32 %v8132_v32, %v8132_v32  ;;  %v3712_v61 = vor.u32 4788187, %v3711_v15  ;;  %v2591_v30 = vmul.f32 -0.001358992, %v2590_v26  ;;  %v2598_v17 = vmul.f32 -0.00019511016, %v2590_v26 }
 0x2bc   : > { %v1047_v56 = vshll.u32 %v8102_v0, 30  ;;  %v9661_v50 = vand.u32 2147483647, %v9660_v37  ;;  %v3708_v35 = vor.u32 %v3707_v4, %v3706_v33  ;;  %v1040_v42 = vadd.s32 %v8076_v34, %v8074_v5 }
 0x2bd   : > { %v2960_v53 = vmul.f32 -0.00019511016, %v8139_v45  ;;  %v3713_v10 = vand.u32 2147483647, %v3712_v61  ;;  %v2592_v6 = vadd.f32 0.041655596, %v2591_v30 }
 0x2be   : > { %v1048_v14 = vsub.s32 %v1044_v44, %v1047_v56  ;;  %vm8144_vm11 = vcmp.le.f32.partialorder %v9661_v50, 0.7853982  ;;  %v2599_v29 = vadd.f32 0.008332121, %v2598_v17  ;;  %v3715_v41 = vcvt.s32.f32 %v3708_v35  ;;  %v9664_v61 = vld [vmem:[#allocation50_spill] sm:$0xff] }
 0x2bf   : > { %v8151_v12 = vsel %vm8144_vm11, %v9660_v37, %v3320_v36  ;;  %v2953_v23 = vmul.f32 -0.001358992, %v8139_v45  ;;  %v2961_v60 = vadd.f32 0.008332121, %v2960_v53  ;;  %v2593_v54 = vmul.f32 %v2592_v6, %v2590_v26 }
 0x2c0   : > { %vm1049_vm8 = vcmp.lt.s32.totalorder %v1048_v14, 0  ;;  %v1050_v18 = vsub.s32 0, %v1048_v14  ;;  %v8158_v22 = vmul.f32 %v8151_v12, %v8151_v12  ;;  %v3716_v27 = vmul.f32 %v3715_v41, %v3713_v10  ;;  %v5190_v41 = vld [vmem:[%s9668_s21] ss:$0 sm:$0xff] }
 0x2c1   : > { %v2600_v13 = vmul.f32 %v2599_v29, %v2590_v26  ;;  %v2954_v31 = vadd.f32 0.041655596, %v2953_v23  ;;  %v2962_v40 = vmul.f32 %v2961_v60, %v8139_v45  ;;  %v2594_v15 = vadd.f32 -0.4999988, %v2593_v54 }
 0x2c2   : > { %v1051_v20 = vsel %vm1049_vm8, %v1050_v18, %v1048_v14  ;;  %v3326_v5 = vmul.f32 -0.001358992, %v8158_v22  ;;  %v3333_v56 = vmul.f32 -0.00019511016, %v8158_v22  ;;  %v3717_v8 = vxor.u32 2147483648, %v3716_v27 }
 0x2c3   : > { %v1052_v55 = vclz %v1051_v20  ;;  %v2586_v33 = vsub.s32 4, %v7607_v39  ;;  %vm3597_vm4 = vcmp.lt.s32.totalorder %v9664_v61, 0  ;;  %v2955_v17 = vmul.f32 %v2954_v31, %v8139_v45 }
 0x2c4   : > { %v3327_v36 = vadd.f32 0.041655596, %v3326_v5  ;;  %v3334_v30 = vadd.f32 0.008332121, %v3333_v56  ;;  %v3718_v50 = vsel %vm3597_vm4, %v3717_v8, %v3716_v27  ;;  %v2595_v35 = vmul.f32 %v2594_v15, %v2590_v26 }
 0x2c5   : > { %v4617_v19 = vadd.s32 4294967294, %v1052_v55  ;;  %v2963_v55 = vadd.f32 -0.16666654, %v2962_v40  ;;  %v2587_v6 = vsel %vm2464_vm2, %v2586_v33, %v7607_v39  ;;  %v9665_v29 = vand.u32 2147483647, %v9664_v61  ;;  %v2619_v33 = vpop.xlane.xlu2 %2618 }
 0x2c6   : > { %v3328_v10 = vmul.f32 %v3327_v36, %v8158_v22  ;;  %vm948_vm3 = vcmp.lt.s32.totalorder %v9629_v3, 0  ;;  %v2956_v23 = vadd.f32 -0.4999988, %v2955_v17  ;;  %v2589_v27 = vsel %vm8107_vm15, 0, %v2587_v6  ;;  %v5192_v36 = vld [vmem:[%s9673_s0] ss:$0 sm:$0xff] }
 0x2c7   : > { %vm4618_vm6 = vcmp.lt.s32.totalorder %v4617_v19, 0  ;;  %vm8175_vm14 = vcmp.le.f32.partialorder %v9665_v29, 0.7853982  ;;  %v2964_v60 = vmul.f32 %v2963_v55, %v8139_v45  ;;  %v2596_v54 = vadd.f32 1.0, %v2595_v35 }
 0x2c8   : > { %v1055_v9 = vsel %vm4618_vm6, 0, %v4617_v19  ;;  %v3321_v56 = vsub.s32 4, %v7587_v46  ;;  %v8215_v31 = vadd.f32 -0.4999988, %v3328_v10  ;;  %vm9675_vm2 = vcmp.eq.s32.totalorder %v6010_v2, 2 }
 0x2c9   : > { %v1056_v59 = vsub.s32 32, %v1055_v9  ;;  %v1057_v44 = vshll.u32 %v1048_v14, %v1055_v9  ;;  %v1060_v51 = vsub.s32 4294967266, %v1055_v9  ;;  %v2601_v14 = vadd.f32 -0.16666654, %v2600_v13 }
 0x2ca   : > { %v8186_v9 = vsel %vm8175_vm14, %v9664_v61, %v3718_v50  ;;  %v2612_v55 = vxor.u32 2147483648, %v2596_v54  ;;  %vm9677_vm15 = vcmp.eq.s32.totalorder %v6010_v2, 3  ;;  %vm9679_vm6 = vcmp.eq.s32.totalorder %v6010_v2, 4 }
 0x2cb   : > { %v1058_v49 = vshrl.u32 %v1040_v42, %v1056_v59  ;;  %v1061_v63 = vadd.s32 127, %v1060_v51  ;;  %v2602_v19 = vmul.f32 %v2601_v14, %v2590_v26  ;;  %v2948_v26 = vsub.s32 4, %v7679_v62 }
 0x2cc   : > { %v9669_v59 = vand.u32 2147483647, %v9629_v3  ;;  %v3335_v51 = vmul.f32 %v3334_v30, %v8158_v22  ;;  %v8204_v5 = vmul.f32 %v8186_v9, %v8186_v9  ;;  %v8222_v14 = vand.u32 3, %v2589_v27 }
 0x2cd   : > { %v1059_v34 = vor.u32 %v1058_v49, %v1057_v44  ;;  %v1062_v24 = vshll.u32 %v1061_v63, 23  ;;  %v2603_v13 = vadd.f32 1.0, %v2602_v19  ;;  %v5191_v49 = vld [vmem:[%s9672_s24] ss:$0 sm:$0xff]  ;;  %v2949_v40 = vsel %vm2826_vm10, %v2948_v26, %v7679_v62  ;;  %s9773_s24 = sld [smem:[#allocation38_spill]] }
 0x2ce   : > { %vm8190_vm5 = vcmp.le.f32.partialorder %v9669_v59, 0.7853982  ;;  %v3336_v15 = vadd.f32 -0.16666654, %v3335_v51  ;;  %v2951_v50 = vsel %vm8121_vm1, 0, %v2949_v40  ;;  %vm2608_vm13 = vcmp.eq.s32.totalorder %v8222_v14, 0 }
 0x2cf   : > { %v1063_v4 = vor.u32 4788187, %v1062_v24  ;;  %v1066_v18 = vcvt.s32.f32 %v1059_v34  ;;  %v873_v34 = vsel %vm9370_vm7, %v5190_v41, 0.0  ;;  %v1070_v24 = vsub.s32 4, %v8102_v0  ;;  %v5193_v19 = vld [vmem:[%s9674_s7] ss:$0 sm:$0xff] }
 0x2d0   : > { %v882_v30 = vsel %vm9363_vm9, %v5191_v49, %v873_v34  ;;  %v3731_v35 = vmul.f32 -0.00019511016, %v8204_v5  ;;  %vm2611_vm10 = vcmp.eq.s32.totalorder %v8222_v14, 2  ;;  %v8246_v26 = vmul.f32 %v3336_v15, %v8158_v22  ;;  %v5195_v40 = vld [vmem:[%s9678_s2] ss:$0 sm:$0xff] }
 0x2d1   : > { %v1064_v20 = vand.u32 2147483647, %v1063_v4  ;;  %v2957_v4 = vmul.f32 %v2956_v23, %v8139_v45  ;;  %v1071_v45 = vsel %vm948_vm3, %v1070_v24, %v8102_v0  ;;  %v891_v25 = vsel %vm9675_vm2, %v5192_v36, %v882_v30  ;;  %v5194_v23 = vld [vmem:[%s9676_s9] ss:$0 sm:$0xff]  ;;  %v2981_v24 = vpop.xlane.xlu2 %2980 }
 0x2d2   : > { %v1073_v29 = vsel %vm8190_vm5, 0, %v1071_v45  ;;  %v3732_v51 = vadd.f32 0.008332121, %v3731_v35  ;;  %vm2607_vm1 = vcmp.lt.s32.totalorder %v8222_v14, 2  ;;  %v2982_v36 = vmul.f32 0.17677669, %v2981_v24 }
 0x2d3   : > { %v1067_v53 = vmul.f32 %v1066_v18, %v1064_v20  ;;  %v2965_v18 = vadd.f32 1.0, %v2964_v60  ;;  %v2604_v20 = vmul.f32 %v2603_v13, %v8114_v47  ;;  %v2958_v10 = vadd.f32 1.0, %v2957_v4  ;;  %v5196_v35 = vld [vmem:[%s9680_s15] ss:$0 sm:$0xff]  ;;  %p4874_p1 = scmp.ne.s32.totalorder %s9773_s24, 2 }
 0x2d4   : > { %v900_v60 = vsel %vm9677_vm15, %v5193_v19, %v891_v25  ;;  %v1090_v34 = vand.u32 3, %v1073_v29  ;;  %v3733_v30 = vmul.f32 %v3732_v51, %v8204_v5  ;;  %v3719_v14 = vsub.s32 4, %v7917_v28  ;;  %s4059_s0 = sld [smem:[#allocation12]] (!%p4874_p1) }
 0x2d5   : > { %v1068_v44 = vxor.u32 2147483648, %v1067_v53  ;;  %v2966_v6 = vmul.f32 %v2965_v18, %v8132_v32  ;;  %v2609_v59 = vxor.u32 2147483648, %v2604_v20  ;;  %v2613_v32 = vsel %vm2611_vm10, %v2612_v55, %v2604_v20  ;;  %s4875_s7 = sld [smem:[#allocation12 + $0x1]] (!%p4874_p1) }
 0x2d6   : > { %v2974_v49 = vxor.u32 2147483648, %v2958_v10  ;;  %v2620_v18 = vmul.f32 0.17677669, %v2619_v33  ;;  %vm9681_vm10 = vcmp.eq.s32.totalorder %v6010_v2, 5  ;;  %v3734_v25 = vadd.f32 -0.16666654, %v3733_v30 }
 0x2d7   : > { %v1069_v63 = vsel %vm948_vm3, %v1068_v44, %v1067_v53  ;;  %v2968_v44 = vand.u32 3, %v2951_v50  ;;  %v2971_v39 = vxor.u32 2147483648, %v2966_v6  ;;  %v2610_v20 = vsel %vm2608_vm13, %v2596_v54, %v2609_v59  ;;  %v3354_v54 = vpop.xlane.xlu1 %3353  ;;  %s4876_s9 = sld [smem:[#allocation12 + $0x2]] (!%p4874_p1) }
 0x2d8   : > { %v8212_v48 = vsel %vm8190_vm5, %v9629_v3, %v1069_v63  ;;  %v3724_v63 = vmul.f32 -0.001358992, %v8204_v5  ;;  %vm2605_vm3 = vweird.f32 %v9652_v1  ;;  %v8262_v50 = vmax.f32 %v2620_v18, %v2982_v36  ;;  %s4877_s2 = sld [smem:[#allocation12 + $0x3]] (!%p4874_p1) }
 0x2d9   : > { %v1074_v8 = vmul.f32 %v8212_v48, %v8212_v48  ;;  %vm2970_vm8 = vcmp.eq.s32.totalorder %v2968_v44, 0  ;;  %vm2973_vm5 = vcmp.eq.s32.totalorder %v2968_v44, 2  ;;  %vm2969_vm2 = vcmp.lt.s32.totalorder %v2968_v44, 2  ;;  %s4878_s15 = sld [smem:[#allocation12 + $0x4]] (!%p4874_p1) }
 0x2da   : > { %v2975_v33 = vsel %vm2973_vm5, %v2974_v49, %v2966_v6  ;;  %vm1095_vm13 = vcmp.eq.s32.totalorder %v1090_v34, 2  ;;  %v3725_v45 = vadd.f32 0.041655596, %v3724_v63  ;;  %vm1092_vm15 = vcmp.eq.s32.totalorder %v1090_v34, 0  ;;  %v5197_v6 = vld [vmem:[%s9682_s22] ss:$0 sm:$0xff] }
 0x2db   : > { %v1075_v17 = vmul.f32 -0.001358992, %v1074_v8  ;;  %v1082_v62 = vmul.f32 -0.00019511016, %v1074_v8  ;;  %v2984_v29 = vsub.f32 %v2620_v18, %v8262_v50  ;;  %v8273_v59 = vmul.f32 0.17677669, %v3354_v54 }
 0x2dc   : > { %vm1089_vm5 = vweird.f32 %v9629_v3  ;;  %v3726_v49 = vmul.f32 %v3725_v45, %v8204_v5  ;;  %v3735_v24 = vmul.f32 %v3734_v25, %v8204_v5  ;;  %v4993_v18 = vld [vmem:[%s5988_s5 + $0x30] sm:$0xff]  ;;  %v3322_v30 = vsel %vm3199_vm12, %v3321_v56, %v7587_v46  ;;  %v9686_v56 = vld [vmem:[#allocation54_spill] sm:$0xff]  ;;  %s4879_s22 = sld [smem:[#allocation12 + $0x5]] (!%p4874_p1) }
 0x2dd   : > { %v1076_v53 = vadd.f32 0.041655596, %v1075_v17  ;;  %v1083_v47 = vadd.f32 0.008332121, %v1082_v62  ;;  %v909_v17 = vsel %vm9679_vm6, %v5194_v23, %v900_v60  ;;  %vm9683_vm6 = vcmp.eq.s32.totalorder %v6010_v2, 6  ;;  %v5002_v60 = vld [vmem:[%s5988_s5 + $0x78] sm:$0xff] }
 0x2de   : > { %v918_v19 = vsel %vm9681_vm10, %v5195_v40, %v909_v17  ;;  %3852 = vmatpush.bf16.msrb.mxu0 %v5002_v60  ;;  %v3330_v3 = vmul.f32 %v8215_v31, %v8158_v22  ;;  %v3324_v46 = vsel %vm8144_vm11, 0, %v3322_v30  ;;  %vm3738_vm10 = vweird.f32 %v9664_v61  ;;  %v9687_v30 = vld [vmem:[#allocation51_spill] sm:$0xff]  ;;  %s4880_s12 = sld [smem:[#allocation12 + $0x6]] (!%p4874_p1) }
 0x2df   : > { %v1077_v41 = vmul.f32 %v1076_v53, %v1074_v8  ;;  %v1084_v0 = vmul.f32 %v1083_v47, %v1074_v8  ;;  %v927_v51 = vsel %vm9683_vm6, %v5196_v35, %v918_v19  ;;  %v3341_v25 = vand.u32 3, %v3324_v46  ;;  %s4881_s27 = sld [smem:[#allocation12 + $0x7]] (!%p4874_p1) }
 0x2e0   : > { %v8293_v44 = vsel %vm932_vm0, %v5197_v6, %v927_v51  ;;  %v3331_v54 = vadd.f32 1.0, %v3330_v3 }
 0x2e1   : > { %v1078_v27 = vadd.f32 -0.4999988, %v1077_v41  ;;  %v1085_v13 = vadd.f32 -0.16666654, %v1084_v0  ;;  %9684 = vst [vmem:[#allocation63_spill] sm:$0xff] %v8293_v44  ;;  %vm3343_vm12 = vcmp.eq.s32.totalorder %v3341_v25, 0 }
 0x2e2   : > { %v3347_v51 = vxor.u32 2147483648, %v3331_v54  ;;  %vm3346_vm11 = vcmp.eq.s32.totalorder %v3341_v25, 2 }
 0x2e3   : > { %v1079_v15 = vmul.f32 %v1078_v27, %v1074_v8  ;;  %v1086_v4 = vmul.f32 %v1085_v13, %v1074_v8  ;;  %v2972_v8 = vsel %vm2970_vm8, %v2958_v10, %v2971_v39  ;;  %v2987_v10 = vsub.f32 %v2982_v36, %v8262_v50  ;;  %v4994_v27 = vld [vmem:[%s5988_s5 + $0x38] sm:$0xff] }
 0x2e4   : > { %vm1091_vm8 = vcmp.lt.s32.totalorder %v1090_v34, 2  ;;  %v2614_v13 = vsel %vm2607_vm1, %v2610_v20, %v2613_v32  ;;  %v2976_v39 = vsel %vm2969_vm2, %v2972_v8, %v2975_v33  ;;  %3913 = vmatpush.bf16.msrb.mxu1 %v4994_v27  ;;  %v3338_v34 = vadd.f32 1.0, %v8246_v26  ;;  %s4090_s30 = scalar_lea.vmem (!%p4874_p1), [#allocation3], %s4880_s12 }
 0x2e5   : > { %v1080_v62 = vadd.f32 1.0, %v1079_v15  ;;  %v1087_v55 = vadd.f32 1.0, %v1086_v4  ;;  %v2988_v23 = vmul.f32 1.442695, %v2987_v10  ;;  %v3356_v15 = vmax.f32 %v8262_v50, %v8273_v59  ;;  %v5001_v4 = vld [vmem:[%s5988_s5 + $0x70] sm:$0xff]  ;;  %s4095_s20 = scalar_lea.vmem (!%p4874_p1), [#allocation3], %s4881_s27 }
 0x2e6   : > { %v2615_v36 = vsel %vm2605_vm3, nan, %v2614_v13  ;;  %vm2967_vm1 = vweird.f32 %v9653_v58  ;;  %3853 = vmatpush.bf16.msrb.mxu0 %v5001_v4  ;;  %v9685_v58 = vld [vmem:[#allocation53_spill] sm:$0xff]  ;;  %v3720_v33 = vsel %vm3597_vm4, %v3719_v14, %v7917_v28  ;;  %v3339_v22 = vmul.f32 %v3338_v34, %v8151_v12  ;;  %v4992_v34 = vld [vmem:[%s5988_s5 + $0x28] sm:$0xff] }
 0x2e7   : > { %v1088_v53 = vmul.f32 %v1087_v55, %v8212_v48  ;;  %v1096_v47 = vxor.u32 2147483648, %v1080_v62  ;;  %v2985_v48 = vmul.f32 1.442695, %v2984_v29  ;;  %v2977_v17 = vsel %vm2967_vm1, nan, %v2976_v39 }
 0x2e8   : > { %v3736_v55 = vadd.f32 1.0, %v3735_v24  ;;  %v3357_v1 = vsub.f32 %v8262_v50, %v3356_v15  ;;  %3914 = vmatpush.bf16.msrb.mxu1 %v4993_v18  ;;  %v2621_v8 = vadd.f32 %v2615_v36, %v9685_v58  ;;  %v2991_v31 = vadd.f32 %v2977_v17, %v9686_v56 }
 0x2e9   : > { %v1093_v41 = vxor.u32 2147483648, %v1088_v53  ;;  %v1097_v0 = vsel %vm1095_vm13, %v1096_v47, %v1088_v53  ;;  %5214 = vpow2.f32 %v2985_v48  ;;  %v3722_v19 = vsel %vm8175_vm14, 0, %v3720_v33  ;;  %v4998_v33 = vld [vmem:[%s5988_s5 + $0x58] sm:$0xff] }
 0x2ea   : > { %5216 = vpow2.f32 %v2988_v23  ;;  %v3737_v53 = vmul.f32 %v3736_v55, %v8186_v9  ;;  %v3358_v47 = vmul.f32 1.442695, %v3357_v1  ;;  %v3360_v52 = vsub.f32 %v8273_v59, %v3356_v15  ;;  %v4991_v1 = vld [vmem:[%s5988_s5 + $0x20] sm:$0xff] }
 0x2eb   : > { %v1094_v63 = vsel %vm1092_vm15, %v1080_v62, %v1093_v41  ;;  %v3727_v62 = vadd.f32 -0.4999988, %v3726_v49  ;;  %v3344_v29 = vxor.u32 2147483648, %v3339_v22  ;;  %v3739_v41 = vand.u32 3, %v3722_v19  ;;  %v4995_v19 = vld [vmem:[%s5988_s5 + $0x40] sm:$0xff] }
 0x2ec   : > { %v1098_v40 = vsel %vm1091_vm8, %v1094_v63, %v1097_v0  ;;  %v3742_v48 = vxor.u32 2147483648, %v3737_v53  ;;  %5218 = vpow2.f32 %v3358_v47  ;;  %vm3342_vm14 = vcmp.lt.s32.totalorder %v3341_v25, 2  ;;  %3915 = vmatpush.bf16.msrb.mxu1 %v4992_v34 }
 0x2ed   : > { %v1099_v32 = vsel %vm1089_vm5, nan, %v1098_v40  ;;  %v3728_v50 = vmul.f32 %v3727_v62, %v8204_v5  ;;  %v3361_v5 = vmul.f32 1.442695, %v3360_v52  ;;  %v3345_v23 = vsel %vm3343_vm12, %v3331_v54, %v3344_v29  ;;  %v5245_v52 = vld [vmem:[#allocation13] sm:$0xff] }
 0x2ee   : > { %v1258_v20 = vadd.f32 %v1099_v32, %v8293_v44  ;;  %vm3741_vm4 = vcmp.eq.s32.totalorder %v3739_v41, 0  ;;  %v3348_v59 = vsel %vm3346_vm11, %v3347_v51, %v3339_v22  ;;  %vm3744_vm3 = vcmp.eq.s32.totalorder %v3739_v41, 2  ;;  %v5000_v32 = vld [vmem:[%s5988_s5 + $0x68] sm:$0xff] }
 0x2ef   : > { %v5215_v35 = vpop.eup %5214  ;;  %v3729_v6 = vadd.f32 1.0, %v3728_v50  ;;  %5220 = vpow2.f32 %v3361_v5  ;;  %v3349_v40 = vsel %vm3342_vm14, %v3345_v23, %v3348_v59  ;;  %vm3740_vm2 = vcmp.lt.s32.totalorder %v3739_v41, 2  ;;  %3854 = vmatpush.bf16.msrb.mxu0 %v5000_v32  ;;  %v4996_v50 = vld [vmem:[%s5988_s5 + $0x48] sm:$0xff]  ;;  %v9691_v23 = vld [vmem:[#allocation69_spill] sm:$0xff] }
 0x2f0   : > { %v1259_v26 = vmul.f32 %v1258_v20, %v8082_v16  ;;  %v5217_v16 = vpop.eup %5216  ;;  %v2990_v45 = vmul.f32 %v5215_v35, %v2621_v8  ;;  %vm3340_vm13 = vweird.f32 %v9660_v37  ;;  %3916 = vmatpush.bf16.msrb.mxu1 %v4991_v1  ;;  %v8342_v29 = vperm.slane %v5245_v52, 2  ;;  %v9690_v5 = vld [vmem:[#allocation44_spill] sm:$0xff] }
 0x2f1   : > { %v2992_v28 = vmul.f32 %v5217_v16, %v2991_v31  ;;  %v3745_v9 = vxor.u32 2147483648, %v3729_v6  ;;  %v3743_v13 = vsel %vm3741_vm4, %v3729_v6, %v3742_v48  ;;  %v2994_v39 = vadd.f32 %v5217_v16, %v5215_v35  ;;  %v4990_v35 = vld [vmem:[%s5988_s5 + $0x18] sm:$0xff]  ;;  %v4989_v16 = vld [vmem:[%s5988_s5 + $0x10] sm:$0xff] }
 0x2f2   : > { %1260 = vadd.xlane.f32.xlu2 %v1259_v26  ;;  %v5219_v24 = vpop.eup %5218  ;;  %v4999_v26 = vld [vmem:[%s5988_s5 + $0x60] sm:$0xff]  ;;  %v8348_v48 = vperm.slane %v5245_v52, 3 }
 0x2f3   : > { %v2993_v12 = vadd.f32 %v2992_v28, %v2990_v45  ;;  %v3746_v4 = vsel %vm3744_vm3, %v3745_v9, %v3737_v53  ;;  %v3367_v14 = vmul.f32 %v5219_v24, %v2994_v39  ;;  %3855 = vmatpush.bf16.msrb.mxu0 %v4999_v26  ;;  %v4988_v45 = vld [vmem:[%s5988_s5 + $0x8] sm:$0xff]  ;;  %v4987_v53 = vld [vmem:[%s5988_s5] sm:$0xff]  ;;  %v2253_v28 = vld [vmem:[#allocation2] sm:$0xff] }
 0x2f4   : > { %v3747_v18 = vsel %vm3740_vm2, %v3743_v13, %v3746_v4  ;;  %3917 = vmatpush.bf16.msrb.mxu1 %v4990_v35  ;;  %v9693_v39 = vld [vmem:[#allocation84_spill] sm:$0xff]  ;;  %v9695_v35 = vmov 2131351028  }
 0x2f5   : > { %v5221_v36 = vpop.eup %5220  ;;  %v3748_v20 = vsel %vm3738_vm10, nan, %v3747_v18  ;;  %v3363_v58 = vmul.f32 %v5219_v24, %v2993_v12  ;;  %v3787_v12 = vpack.c.bf16 %v2253_v28, %v2253_v28 }
 0x2f6   : > { %v3368_v37 = vadd.f32 %v5221_v36, %v3367_v14  ;;  %v3762_v55 = vadd.f32 %v3748_v20, %v7879_v43  ;;  %v4997_v43 = vld [vmem:[%s5988_s5 + $0x50] sm:$0xff]  ;;  %s9719_s5 = scalar_lea.vmem [#allocation4], %s7732_s23  ;;  %s9724_s23 = sld [smem:[#allocation92_spill]] }
 0x2f7   : > { %v3752_v10 = vpop.xlane.xlu2 %3751  ;;  %3856 = vmatpush.bf16.msrb.mxu0 %v4998_v33 }
 0x2f8   : > { %v3753_v0 = vmul.f32 0.17677669, %v3752_v10  ;;  %3918 = vmatpush.bf16.msrb.mxu1 %v4989_v16  ;;  %v9688_v10 = vld [vmem:[#allocation68_spill] sm:$0xff] }
 0x2fa   : > { %v3754_v42 = vmax.f32 %v3356_v15, %v3753_v0 }
 0x2fb   : > { %3857 = vmatpush.bf16.msrb.mxu0 %v4997_v43  ;;  %v9697_v43 = vmov 2102212464  }
 0x2fc   : > { %v3755_v60 = vsub.f32 %v3356_v15, %v3754_v42  ;;  %v3758_v27 = vsub.f32 %v3753_v0, %v3754_v42  ;;  %v3350_v15 = vsel %vm3340_vm13, nan, %v3349_v40  ;;  %3919 = vmatpush.bf16.msrb.mxu1 %v4988_v45  ;;  %v9689_v0 = vld [vmem:[#allocation76_spill] sm:$0xff]  ;;  %s9729_s14 = scalar_lea.vmem [#allocation4], %s9724_s23  ;;  %s4070_s23 = scalar_lea.vmem (!%p4874_p1), [#allocation3], %s4876_s9 }
 0x2fd   : > { %v3364_v3 = vadd.f32 %v3350_v15, %v9687_v30  ;;  %v1101_v51 = vmul.f32 %v8342_v29, %v9689_v0 }
 0x2fe   : > { %v3756_v49 = vmul.f32 1.442695, %v3755_v60  ;;  %v3759_v63 = vmul.f32 1.442695, %v3758_v27 }
 0x2ff   : > { %v3365_v8 = vmul.f32 %v5221_v36, %v3364_v3  ;;  %3858 = vmatpush.bf16.msrb.mxu0 %v4996_v50  ;;  %v8340_v25 = vpop.permute.xlu2 %1357  ;;  %v8355_v27 = vadd.f32 %v8348_v48, %v1101_v51 }
 0x300   : > { %5222 = vpow2.f32 %v3756_v49  ;;  %v1360_v6 = vmul.f32 %v8340_v25, %v9688_v10  ;;  %3920 = vmatpush.bf16.msrb.mxu1 %v4987_v53  ;;  %v1913_v49 = vmul.f32 %v9693_v39, %v8342_v29 }
 0x301   : > { %5224 = vpow2.f32 %v3759_v63  ;;  %v3366_v46 = vadd.f32 %v3365_v8, %v3363_v58  ;;  %9692 = vst [vmem:[#allocation59_spill] sm:$0xff] %v8355_v27  ;;  %v1107_v13 = vand.u32 2139095040, %v8355_v27 }
 0x302   : > { %v8352_v9 = vadd.f32 %v1360_v6, %v9691_v23  ;;  %v8362_v40 = vadd.f32 %v1913_v49, %v8348_v48 }
 0x303   : > { %3859 = vmatpush.bf16.msrb.mxu0 %v4995_v19  ;;  %v1108_v24 = vshrl.u32 %v1107_v13, 23 }
 0x304   : > { %v1365_v59 = vand.u32 2139095040, %v8352_v9  ;;  %9694 = vst [vmem:[#allocation60_spill] sm:$0xff] %v8362_v40  ;;  %v1918_v15 = vand.u32 2139095040, %v8362_v40  ;;  %v9347_v8 = vand.u32 2147483647, %v8362_v40 }
 0x305   : > { %v4619_v18 = vadd.s32 4294967169, %v1108_v24  ;;  %v9349_v49 = vand.u32 2147483647, %v8352_v9 }
 0x306   : > { %v5223_v17 = vpop.eup %5222  ;;  %3860 = vmatmul.bf16.vlgmr.msrb.gmra.mxu0 %v3787_v12  ;;  %v1366_v63 = vshrl.u32 %v1365_v59, 23  ;;  %v1919_v34 = vshrl.u32 %v1918_v15, 23  ;;  %v8401_v12 = vand.u32 8388607, %v9347_v8  ;;  %v1516_v15 = vmul.f32 %v8340_v25, %v8342_v29 }
 0x307   : > { %v5225_v62 = vpop.eup %5224  ;;  %v3765_v61 = vmul.f32 %v5223_v17, %v3368_v37  ;;  %v3761_v56 = vmul.f32 %v5223_v17, %v3366_v46  ;;  %v1114_v32 = vadd.s32 1, %v4619_v18 }
 0x308   : > { %v3763_v22 = vmul.f32 %v5225_v62, %v3762_v55  ;;  %v4630_v4 = vadd.s32 4294967169, %v1366_v63  ;;  %v4647_v20 = vadd.s32 4294967169, %v1919_v34  ;;  %v9348_v55 = vand.u32 2147483647, %v8355_v27 }
 0x309   : > { %v3766_v31 = vadd.f32 %v5225_v62, %v3765_v61  ;;  %vm1115_vm8 = vcmp.gt.s32.totalorder %v1114_v32, 0 }
 0x30a   : > { %v3764_v54 = vadd.f32 %v3763_v22, %v3761_v56  ;;  %v1372_v14 = vadd.s32 1, %v4630_v4  ;;  %v1116_v30 = vsel %vm1115_vm8, %v1114_v32, 0  ;;  %v1925_v17 = vadd.s32 1, %v4647_v20 }
 0x30b   : > { %5226 = vrcp.f32 %v3766_v31  ;;  %v1118_v37 = vand.u32 31, %v1116_v30  ;;  %v8374_v58 = vand.u32 8388607, %v9348_v55  ;;  %v9696_v22 = vmov 920167782  }
 0x30c   : > { %vm1373_vm15 = vcmp.gt.s32.totalorder %v1372_v14, 0  ;;  %vm1926_vm6 = vcmp.gt.s32.totalorder %v1925_v17, 0  ;;  %v8397_v52 = vshrl.u32 %v1116_v30, 5 }
 0x30d   : > { %v1374_v36 = vsel %vm1373_vm15, %v1372_v14, 0  ;;  %v8368_v26 = vsub.s32 32, %v1118_v37  ;;  %v8377_v61 = vsel %vm1926_vm6, %v1925_v17, 0  ;;  %v1124_v33 = vshll.u32 %v9461_v38, %v1118_v37 }
 0x30e   : > { %v1376_v3 = vand.u32 31, %v1374_v36  ;;  %v1127_v46 = vshll.u32 %v9695_v35, %v1118_v37  ;;  %v1130_v45 = vshll.u32 %v9697_v43, %v1118_v37  ;;  %v8394_v53 = vand.u32 31, %v8377_v61 }
 0x30f   : > { %v1125_v31 = vshrl.u32 %v9695_v35, %v8368_v26  ;;  %v1128_v16 = vshrl.u32 %v9697_v43, %v8368_v26  ;;  %v1131_v19 = vshrl.u32 %v9696_v22, %v8368_v26  ;;  %v8405_v6 = vshll.u32 %v9460_v11, %v1118_v37 }
 0x310   : > { %v8365_v62 = vsub.s32 32, %v1376_v3  ;;  %v1391_v56 = vshll.u32 %v9696_v22, %v1376_v3  ;;  %v1388_v10 = vshll.u32 %v9697_v43, %v1376_v3  ;;  %v8412_v0 = vshll.u32 %v9696_v22, %v1118_v37 }
 0x311   : > { %v5227_v47 = vpop.eup %5226  ;;  %v8416_v51 = vshrl.u32 %v9585_v7, %v8368_v26  ;;  %v8420_v23 = vor.u32 %v1128_v16, %v1127_v46  ;;  %v8423_v59 = vor.u32 %v1131_v19, %v1130_v45  ;;  %v8426_v13 = vsub.s32 32, %v8394_v53 }
 0x312   : > { %v3768_v41 = vmul.f32 %v5227_v47, %v3764_v54  ;;  %v1392_v1 = vshrl.u32 %v9585_v7, %v8365_v62  ;;  %v8386_v54 = vshrl.u32 %v1374_v36, 5  ;;  %v1389_v50 = vshrl.u32 %v9696_v22, %v8365_v62 }
 0x313   : > { %v1379_v63 = vshll.u32 %v9460_v11, %v1376_v3  ;;  %v1380_v24 = vshrl.u32 %v9461_v38, %v8365_v62  ;;  %v1382_v4 = vshll.u32 %v9461_v38, %v1376_v3  ;;  %v1383_v18 = vshrl.u32 %v9695_v35, %v8365_v62 }
 0x314   : > { %v3769_v42 = vmul.f32 %v9690_v5, %v3768_v41  ;;  %v1393_v28 = vor.u32 %v1392_v1, %v1391_v56  ;;  %v8409_v41 = vshrl.u32 %v9461_v38, %v8368_v26  ;;  %vm1397_vm5 = vcmp.lt.s32.totalorder %v8386_v54, 4 }
 0x315   : > { %v1369_v14 = vand.u32 8388607, %v9349_v49  ;;  %v1385_v32 = vshll.u32 %v9695_v35, %v1376_v3  ;;  %v1386_v34 = vshrl.u32 %v9697_v43, %v8365_v62  ;;  %v8446_v20 = vor.u32 %v1380_v24, %v1379_v63 }
 0x316   : > { %v3770_v60 = vpack.c.bf16 %v3769_v42, %v3769_v42  ;;  %v8418_v42 = vor.u32 %v1125_v31, %v1124_v33  ;;  %v1407_v39 = vsel %vm1397_vm5, %v1393_v28, 1326507024  ;;  %v8448_v30 = vor.u32 %v1383_v18, %v1382_v4 }
 0x317   : > { %vm1396_vm1 = vcmp.lt.s32.totalorder %v8386_v54, 3  ;;  %v1370_v17 = vor.u32 8388608, %v1369_v14  ;;  %v1387_v37 = vor.u32 %v1386_v34, %v1385_v32  ;;  %vm1394_vm12 = vcmp.lt.s32.totalorder %v8386_v54, 1 }
 0x318   : > { %3921 = vmatmul.bf16.vlgmr.msrb.gmra.mxu1 %v3770_v60  ;;  %v1390_v60 = vor.u32 %v1389_v50, %v1388_v10  ;;  %v1935_v1 = vshll.u32 %v9461_v38, %v8394_v53  ;;  %v1402_v33 = vsel %vm1394_vm12, %v8446_v20, %v8448_v30  ;;  %vm1395_vm11 = vcmp.lt.s32.totalorder %v8386_v54, 2 }
 0x319   : > { %v1406_v56 = vsel %vm1394_vm12, %v8448_v30, %v1387_v37  ;;  %v8469_v31 = vshll.u32 %v1370_v17, 8  ;;  %v1936_v16 = vshrl.u32 %v9695_v35, %v8426_v13  ;;  %v8475_v50 = vshll.u32 %v9696_v22, %v8394_v53 }
 0x31a   : > { %v1403_v36 = vsel %vm1397_vm5, %v1390_v60, 920167782  ;;  %v1408_v25 = vsel %vm1396_vm1, %v1390_v60, %v1407_v39  ;;  %v1945_v28 = vshrl.u32 %v9585_v7, %v8426_v13  ;;  %v8484_v10 = vadd.f32 %v1516_v15, %v8348_v48 }
 0x31b   : > { %v1404_v46 = vsel %vm1396_vm1, %v1387_v37, %v1403_v36  ;;  %v1409_v19 = vsel %vm1395_vm11, %v1406_v56, %v1408_v25  ;;  %v1412_v60 = vshrl.u32 %v8469_v31, 16  ;;  %v1411_v63 = vand.u32 65535, %v8469_v31 }
 0x31c   : > { %v1405_v45 = vsel %vm1395_vm11, %v1402_v33, %v1404_v46  ;;  %9698 = vst [vmem:[#allocation58_spill] sm:$0xff] %v8484_v10  ;;  %v1413_v39 = vand.u32 65535, %v1409_v19  ;;  %v1414_v24 = vshrl.u32 %v1409_v19, 16  ;;  %v8489_v14 = vshrl.u32 %v8377_v61, 5 }
 0x31d   : > { %v1435_v4 = vand.u32 65535, %v1405_v45  ;;  %v1436_v18 = vshrl.u32 %v1405_v45, 16  ;;  %v1938_v32 = vshll.u32 %v9695_v35, %v8394_v53  ;;  %v1941_v34 = vshll.u32 %v9697_v43, %v8394_v53 }
 0x31e   : > { %v1417_v36 = vmul.u32 %v1413_v39, %v1412_v60  ;;  %v1939_v48 = vshrl.u32 %v9697_v43, %v8426_v13  ;;  %v1942_v15 = vshrl.u32 %v9696_v22, %v8426_v13  ;;  %v1416_v17 = vmul.u32 %v1414_v24, %v1411_v63 }
 0x31f   : > { %v1438_v25 = vmul.u32 %v1436_v18, %v1411_v63  ;;  %v8499_v33 = vor.u32 %v1936_v16, %v1935_v1  ;;  %v1946_v61 = vor.u32 %v1945_v28, %v8475_v50  ;;  %v1521_v46 = vand.u32 2139095040, %v8484_v10 }
 0x320   : > { %v1439_v56 = vmul.u32 %v1435_v4, %v1412_v60  ;;  %vm1139_vm4 = vcmp.lt.s32.totalorder %v8397_v52, 4  ;;  %v1415_v45 = vmul.u32 %v1413_v39, %v1411_v63  ;;  %v1419_v19 = vshll.u32 %v1416_v17, 16 }
 0x321   : > { %9699 = vst [vmem:[#allocation61_spill] sm:$0xff] %v8499_v33  ;;  %v1437_v8 = vmul.u32 %v1435_v4, %v1411_v63  ;;  %v1441_v55 = vshll.u32 %v1438_v25, 16  ;;  %v1418_v49 = vmul.u32 %v1414_v24, %v1412_v60  ;;  %v1421_v47 = vshll.u32 %v1417_v36, 16 }
 0x322   : > { %v1440_v3 = vmul.u32 %v1436_v18, %v1412_v60  ;;  %v1443_v29 = vshll.u32 %v1439_v56, 16  ;;  %vm1423_vm14 = vc.u32 %v1415_v45, %v1419_v19  ;;  %v1425_v5 = vadd.s32 %v1419_v19, %v1415_v45 }
 0x323   : > { %vm1445_vm3 = vc.u32 %v1437_v8, %v1441_v55  ;;  %v1447_v1 = vadd.s32 %v1441_v55, %v1437_v8  ;;  %vm1136_vm2 = vcmp.lt.s32.totalorder %v8397_v52, 1  ;;  %vm1950_vm13 = vcmp.lt.s32.totalorder %v8489_v14, 4 }
 0x324   : > { %v1399_v16 = vsel %vm1397_vm5, %v1387_v37, 2102212464  ;;  %v1424_v50 = vsel %vm1423_vm14, 1, %v9508_v21  ;;  %v1446_v28 = vsel %vm1445_vm3, 1, %v9508_v21  ;;  %vm1138_vm10 = vcmp.lt.s32.totalorder %v8397_v52, 3 }
 0x325   : > { %v1426_v39 = vadd.s32 %v1424_v50, %v1418_v49  ;;  %vm1427_vm15 = vc.u32 %v1425_v5, %v1421_v47  ;;  %v1448_v60 = vadd.s32 %v1446_v28, %v1440_v3  ;;  %vm1449_vm8 = vc.u32 %v1447_v1, %v1443_v29 }
 0x326   : > { %v1522_v63 = vshrl.u32 %v1521_v46, 23  ;;  %v1378_v55 = vshrl.u32 %v9460_v11, %v8365_v62  ;;  %v1428_v8 = vsel %vm1427_vm15, 1, %v9508_v21  ;;  %v1450_v24 = vsel %vm1449_vm8, 1, %v9508_v21 }
 0x327   : > { %v1420_v4 = vshrl.u32 %v1416_v17, 16  ;;  %v1430_v37 = vadd.s32 %v1428_v8, %v1426_v39  ;;  %v1442_v18 = vshrl.u32 %v1438_v25, 16  ;;  %v1452_v45 = vadd.s32 %v1450_v24, %v1448_v60 }
 0x328   : > { %v8515_v19 = vor.u32 %v1939_v48, %v1938_v32  ;;  %vm1947_vm6 = vcmp.lt.s32.totalorder %v8489_v14, 1  ;;  %v1398_v5 = vsel %vm1394_vm12, %v1378_v55, %v8446_v20  ;;  %v1400_v62 = vsel %vm1396_vm1, %v8448_v30, %v1399_v16 }
 0x329   : > { %v1422_v47 = vshrl.u32 %v1417_v36, 16  ;;  %v1431_v49 = vadd.s32 %v1430_v37, %v1420_v4  ;;  %v1444_v3 = vshrl.u32 %v1439_v56, 16  ;;  %v1453_v46 = vadd.s32 %v1452_v45, %v1442_v18 }
 0x32a   : > { %v1943_v17 = vor.u32 %v1942_v15, %v1941_v34  ;;  %vm1949_vm5 = vcmp.lt.s32.totalorder %v8489_v14, 3  ;;  %v1960_v32 = vsel %vm1950_vm13, %v1946_v61, 1326507024  ;;  %v4633_v48 = vadd.s32 4294967169, %v1522_v63 }
 0x32b   : > { %v1401_v25 = vsel %vm1395_vm11, %v1398_v5, %v1400_v62  ;;  %v8529_v50 = vadd.s32 %v1431_v49, %v1422_v47  ;;  %v8531_v20 = vadd.s32 %v1447_v1, %v1443_v29  ;;  %v1454_v28 = vadd.s32 %v1453_v46, %v1444_v3 }
 0x32c   : > { %v9700_v30 = vor.u32 %v8416_v51, %v8412_v0  ;;  %v1932_v36 = vshll.u32 %v9460_v11, %v8394_v53  ;;  %v1933_v15 = vshrl.u32 %v9461_v38, %v8426_v13  ;;  %vm1948_vm1 = vcmp.lt.s32.totalorder %v8489_v14, 2 }
 0x32d   : > { %v1959_v54 = vsel %vm1947_vm6, %v8499_v33, %v8515_v19  ;;  %v1961_v29 = vsel %vm1949_vm5, %v1943_v17, %v1960_v32  ;;  %vm1457_vm12 = vc.u32 %v8529_v50, %v8531_v20  ;;  %v1458_v0 = vadd.s32 1, %v1454_v28 }
 0x32e   : > { %v1149_v34 = vsel %vm1139_vm4, %v9700_v30, 1326507024  ;;  %v1123_v53 = vor.u32 %v8409_v41, %v8405_v6  ;;  %vm1137_vm11 = vcmp.lt.s32.totalorder %v8397_v52, 2  ;;  %v1528_v51 = vadd.s32 1, %v4633_v48 }
 0x32f   : > { %v1455_v61 = vmul.u32 %v8469_v31, %v1401_v25  ;;  %v1145_v56 = vsel %vm1139_vm4, %v8423_v59, 920167782  ;;  %v1148_v1 = vsel %vm1136_vm2, %v8418_v42, %v8420_v23  ;;  %v9701_v16 = vor.u32 8388608, %v8401_v12 }
 0x330   : > { %v1459_v60 = vsel %vm1457_vm12, %v1458_v0, %v1454_v28  ;;  %v1150_v6 = vsel %vm1138_vm10, %v8423_v59, %v1149_v34  ;;  %v8569_v41 = vor.u32 %v1933_v15, %v1932_v36  ;;  %v8573_v31 = vsel %vm1948_vm1, %v1959_v54, %v1961_v29 }
 0x331   : > { %v8564_v39 = vshll.u32 %v9701_v16, 8  ;;  %v1460_v63 = vadd.s32 %v1459_v60, %v1455_v61  ;;  %v1956_v55 = vsel %vm1950_vm13, %v1943_v17, 920167782  ;;  %v1144_v12 = vsel %vm1136_vm2, %v1123_v53, %v8418_v42 }
 0x332   : > { %v9703_v8 = vor.u32 8388608, %v8374_v58  ;;  %vm1529_vm14 = vcmp.gt.s32.totalorder %v1528_v51, 0  ;;  %v1146_v4 = vsel %vm1138_vm10, %v8420_v23, %v1145_v56  ;;  %v8589_v37 = vsel %vm1137_vm11, %v1148_v1, %v1150_v6 }
 0x333   : > { %9702 = vst [vmem:[#allocation64_spill] sm:$0xff] %v8564_v39  ;;  %v1461_v59 = vadd.s32 536870912, %v1460_v63  ;;  %v1964_v18 = vand.u32 65535, %v8564_v39  ;;  %v9352_v45 = vshrl.u32 %v8573_v31, 16  ;;  %v1955_v58 = vsel %vm1947_vm6, %v8569_v41, %v8499_v33 }
 0x334   : > { %v8582_v24 = vshll.u32 %v9703_v8, 8  ;;  %v1957_v5 = vsel %vm1949_vm5, %v8515_v19, %v1956_v55  ;;  %v1530_v47 = vsel %vm1529_vm14, %v1528_v51, 0  ;;  %v8604_v49 = vsel %vm1137_vm11, %v1144_v12, %v1146_v4 }
 0x335   : > { %v8600_v62 = vshrl.u32 %v1461_v59, 30  ;;  %v1156_v46 = vshrl.u32 %v8589_v37, 16  ;;  %v8613_v32 = vsel %vm1948_vm1, %v1955_v58, %v1957_v5  ;;  %v1966_v48 = vand.u32 65535, %v8573_v31 }
 0x336   : > { %9704 = vst [vmem:[#allocation74_spill] sm:$0xff] %v8582_v24  ;;  %v8607_v3 = vand.u32 65535, %v8582_v24  ;;  %v8618_v25 = vmul.u32 %v9352_v45, %v1964_v18  ;;  %v1120_v28 = vshrl.u32 %v9460_v11, %v8368_v26  ;;  %v8623_v30 = vshrl.u32 %v8564_v39, 16 }
 0x337   : > { %v1463_v17 = vshll.u32 %v8600_v62, 30  ;;  %v1532_v34 = vand.u32 31, %v1530_v47  ;;  %v1141_v15 = vsel %vm1139_vm4, %v8420_v23, 2102212464  ;;  %v9351_v54 = vand.u32 65535, %v8589_v37 }
 0x338   : > { %v1178_v29 = vshrl.u32 %v8604_v49, 16  ;;  %v8631_v0 = vmul.u32 %v1156_v46, %v8607_v3  ;;  %v9350_v51 = vshrl.u32 %v8613_v32, 16  ;;  %v8635_v61 = vshrl.u32 %v8582_v24, 16 }
 0x339   : > { %v1464_v36 = vsub.s32 %v1460_v63, %v1463_v17  ;;  %v1968_v56 = vmul.u32 %v1966_v48, %v1964_v18  ;;  %v1972_v1 = vshll.u32 %v8618_v25, 16  ;;  %v1988_v16 = vand.u32 65535, %v8613_v32 }
 0x33a   : > { %v8641_v23 = vsel %vm1136_vm2, %v1120_v28, %v1123_v53  ;;  %v8644_v60 = vmul.u32 %v1966_v48, %v8623_v30  ;;  %v8646_v6 = vsub.s32 32, %v1532_v34  ;;  %v8651_v55 = vsel %vm1138_vm10, %v8418_v42, %v1141_v15 }
 0x33b   : > { %vm1465_vm3 = vcmp.lt.s32.totalorder %v1464_v36, 0  ;;  %v1466_v26 = vsub.s32 0, %v1464_v36  ;;  %v8656_v12 = vmul.u32 %v9351_v54, %v8607_v3  ;;  %v8660_v59 = vmul.u32 %v1156_v46, %v8635_v61 }
 0x33c   : > { %9705 = vst [vmem:[#allocation71_spill] sm:$0xff] %v8646_v6  ;;  %v1161_v4 = vshll.u32 %v8631_v0, 16  ;;  %v8664_v58 = vmul.u32 %v1178_v29, %v8607_v3  ;;  %v8668_v42 = vmul.u32 %v9350_v51, %v1964_v18  ;;  %vm8670_vm4 = vc.u32 %v1968_v56, %v1972_v1 }
 0x33d   : > { %v1467_v63 = vsel %vm1465_vm3, %v1466_v26, %v1464_v36  ;;  %v1978_v17 = vadd.s32 %v1972_v1, %v1968_v56  ;;  %v1990_v48 = vmul.u32 %v1988_v16, %v1964_v18  ;;  %v1974_v15 = vshll.u32 %v8644_v60, 16 }
 0x33e   : > { %v1468_v53 = vclz %v1467_v63  ;;  %v8676_v46 = vmul.u32 %v1988_v16, %v8623_v30  ;;  %v1545_v63 = vshrl.u32 %v9696_v22, %v8646_v6  ;;  %v8681_v8 = vshrl.u32 %v1530_v47, 5 }
 0x33f   : > { %v1544_v51 = vshll.u32 %v9697_v43, %v1532_v34  ;;  %v1548_v54 = vshrl.u32 %v9585_v7, %v8646_v6  ;;  %v1536_v18 = vshrl.u32 %v9461_v38, %v8646_v6  ;;  %v1539_v56 = vshrl.u32 %v9695_v35, %v8646_v6 }
 0x340   : > { %v4631_v28 = vadd.s32 4294967294, %v1468_v53  ;;  %v1547_v1 = vshll.u32 %v9696_v22, %v1532_v34  ;;  %v1542_v53 = vshrl.u32 %v9697_v43, %v8646_v6  ;;  %v1456_v47 = vadd.s32 %v8531_v20, %v8529_v50 }
 0x341   : > { %v1535_v7 = vshll.u32 %v9460_v11, %v1532_v34  ;;  %v1538_v57 = vshll.u32 %v9461_v38, %v1532_v34  ;;  %v1541_v44 = vshll.u32 %v9695_v35, %v1532_v34  ;;  %v1546_v40 = vor.u32 %v1545_v63, %v1544_v51 }
 0x342   : > { %vm4632_vm2 = vcmp.lt.s32.totalorder %v4631_v28, 0  ;;  %v1549_v27 = vor.u32 %v1548_v54, %v1547_v1  ;;  %v9708_v43 = vand.u32 2147483647, %v8484_v10  ;;  %vm1553_vm10 = vcmp.lt.s32.totalorder %v8681_v8, 4 }
 0x343   : > { %v1471_v16 = vsel %vm4632_vm2, 0, %v4631_v28  ;;  %v1994_v28 = vshll.u32 %v8668_v42, 16  ;;  %v8701_v33 = vor.u32 %v1536_v18, %v1535_v7  ;;  %v8703_v50 = vor.u32 %v1539_v56, %v1538_v57 }
 0x344   : > { %v1472_v45 = vsub.s32 32, %v1471_v16  ;;  %v1476_v26 = vsub.s32 4294967266, %v1471_v16  ;;  %v1473_v39 = vshll.u32 %v1464_v36, %v1471_v16  ;;  %v1525_v6 = vand.u32 8388607, %v9708_v43 }
 0x345   : > { %v8705_v20 = vor.u32 %v1542_v53, %v1541_v44  ;;  %v8709_v34 = vmul.u32 %v1178_v29, %v8635_v61  ;;  %v1977_v54 = vsel %vm8670_vm4, 1, %v9508_v21  ;;  %v1559_v57 = vsel %vm1553_vm10, %v1546_v40, 920167782 }
 0x346   : > { %v1474_v24 = vshrl.u32 %v1456_v47, %v1472_v45  ;;  %v1477_v22 = vadd.s32 127, %v1476_v26  ;;  %v9709_v45 = vshrl.u32 %v8573_v31, 16  ;;  %vm8720_vm15 = vc.u32 %v8656_v12, %v1161_v4 }
 0x347   : > { %vm8724_vm8 = vc.u32 %v1978_v17, %v1974_v15  ;;  %v1563_v31 = vsel %vm1553_vm10, %v1549_v27, 1326507024  ;;  %vm8731_vm12 = vc.u32 %v1990_v48, %v1994_v28  ;;  %v1526_v5 = vor.u32 8388608, %v1525_v6 }
 0x348   : > { %v1475_v38 = vor.u32 %v1474_v24, %v1473_v39  ;;  %v1478_v35 = vshll.u32 %v1477_v22, 23  ;;  %v1971_v36 = vmul.u32 %v9709_v45, %v8623_v30  ;;  %v9364_v24 = vshll.u32 %v8676_v46, 16 }
 0x349   : > { %vm1550_vm14 = vcmp.lt.s32.totalorder %v8681_v8, 1  ;;  %vm1552_vm3 = vcmp.lt.s32.totalorder %v8681_v8, 3  ;;  %v8744_v63 = vadd.s32 %v1994_v28, %v1990_v48  ;;  %v9716_v6 = vand.u32 65535, %v8589_v37  ;;  %v5198_v37 = vld [vmem:[%s9719_s5] ss:$0 sm:$0xff]  ;;  %s4060_s5 = scalar_lea.vmem (!%p4874_p1), [#allocation3], %s4059_s0 }
 0x34a   : > { %v1479_v29 = vor.u32 4788187, %v1478_v35  ;;  %v1558_v17 = vsel %vm1550_vm14, %v8701_v33, %v8703_v50  ;;  %v1560_v27 = vsel %vm1552_vm3, %v8705_v20, %v1559_v57  ;;  %v1482_v26 = vcvt.s32.f32 %v1475_v38 }
 0x34b   : > { %v8749_v18 = vmul.u32 %v9716_v6, %v8635_v61  ;;  %v1562_v56 = vsel %vm1550_vm14, %v8703_v50, %v8705_v20  ;;  %v1564_v1 = vsel %vm1552_vm3, %v1546_v40, %v1563_v31  ;;  %v1167_v16 = vadd.s32 %v1161_v4, %v8656_v12  ;;  %v5203_v31 = vld [vmem:[%s1328_s1] ss:$0 sm:$0xff]  ;;  %s9010_s1 = sld [smem:[#allocation11 + $0x4]] }
 0x34c   : > { %v1480_v15 = vand.u32 2147483647, %v1479_v29  ;;  %v9717_v53 = vshrl.u32 %v8613_v32, 16  ;;  %vm1551_vm4 = vcmp.lt.s32.totalorder %v8681_v8, 2  ;;  %v1979_v22 = vadd.s32 %v1977_v54, %v1971_v36  ;;  %v5199_v36 = vld [vmem:[%s9723_s6] ss:$0 sm:$0xff] }
 0x34d   : > { %v1981_v28 = vsel %vm8724_vm8, 1, %v9508_v21  ;;  %v8770_v40 = vsel %vm1551_vm4, %v1558_v17, %v1560_v27  ;;  %v1999_v32 = vsel %vm8731_vm12, 1, %v9508_v21  ;;  %v8779_v12 = vshll.u32 %v1526_v5, 8  ;;  %s4065_s6 = scalar_lea.vmem (!%p4874_p1), [#allocation3], %s4875_s7 }
 0x34e   : > { %v1993_v48 = vmul.u32 %v9717_v53, %v8623_v30  ;;  %v1483_v47 = vmul.f32 %v1482_v26, %v1480_v15  ;;  %v8777_v30 = vsel %vm1551_vm4, %v1562_v56, %v1564_v1  ;;  %vm8784_vm2 = vc.u32 %v8744_v63, %v9364_v24 }
 0x34f   : > { %v1163_v38 = vshll.u32 %v8749_v18, 16  ;;  %v9722_v35 = vand.u32 65535, %v8604_v49  ;;  %vm1364_vm8 = vcmp.lt.s32.totalorder %v8352_v9, 0  ;;  %v9367_v54 = vshrl.u32 %v8770_v40, 16 }
 0x350   : > { %v1484_v4 = vxor.u32 2147483648, %v1483_v47  ;;  %v1271_v57 = vsel %vm9370_vm7, %v5198_v37, 0.0  ;;  %v9725_v39 = vand.u32 2147483647, %v8352_v9  ;;  %v1183_v5 = vshll.u32 %v8664_v58, 16 }
 0x351   : > { %v1179_v45 = vmul.u32 %v9722_v35, %v8607_v3  ;;  %v9728_v3 = vmov %v9722_v35  ;;  %v9366_v17 = vshrl.u32 %v8777_v30, 16  ;;  %v8816_v15 = vadd.s32 %v1981_v28, %v1979_v22  ;;  %s3953_s16 = scalar_lea.vmem [#allocation2], %s9010_s1 }
 0x352   : > { %vm8800_vm12 = vcmp.le.f32.partialorder %v9725_v39, 0.7853982  ;;  %v1485_v29 = vsel %vm1364_vm8, %v1484_v4, %v1483_v47  ;;  %v8809_v51 = vmul.u32 %v9728_v3, %v8635_v61  ;;  %v8818_v26 = vadd.s32 %v1999_v32, %v1993_v48  ;;  %v5200_v48 = vld [vmem:[%s9729_s14] ss:$0 sm:$0xff]  ;;  %s4075_s14 = scalar_lea.vmem (!%p4874_p1), [#allocation3], %s4877_s2 }
 0x353   : > { %v1488_v27 = vsel %vm8800_vm12, %v8352_v9, %v1485_v29  ;;  %v1567_v6 = vand.u32 65535, %v8779_v12  ;;  %v8824_v49 = vsel %vm8784_vm2, 1, %v9508_v21  ;;  %v1166_v1 = vsel %vm8720_vm15, 1, %v9508_v21  ;;  %v5201_v3 = vld [vmem:[%s1304_s17] ss:$0 sm:$0xff]  ;;  %s9015_s17 = sld [smem:[#allocation11 + $0x6]] }
 0x354   : > { %v1490_v56 = vmul.f32 %v1488_v27, %v1488_v27  ;;  %v1283_v53 = vsel %vm9363_vm9, %v5199_v36, %v1271_v57  ;;  %v1486_v47 = vsub.s32 4, %v8600_v62  ;;  %vm8839_vm2 = vc.u32 %v1167_v16, %v1163_v38 }
 0x355   : > { %v8836_v37 = vmul.u32 %v9367_v54, %v1567_v6  ;;  %v9365_v44 = vshll.u32 %v8809_v51, 16  ;;  %v8844_v4 = vadd.s32 %v1183_v5, %v1179_v45  ;;  %v8848_v43 = vmul.u32 %v9366_v17, %v1567_v6 }
 0x356   : > { %v1491_v22 = vmul.f32 -0.001358992, %v1490_v56  ;;  %v1498_v28 = vmul.f32 -0.00019511016, %v1490_v56  ;;  %vm1187_vm15 = vc.u32 %v1179_v45, %v1183_v5  ;;  %v1591_v35 = vand.u32 65535, %v8770_v40 }
 0x357   : > { %v1168_v39 = vadd.s32 %v1166_v1, %v8660_v59  ;;  %v1568_v16 = vshrl.u32 %v8779_v12, 16  ;;  %v1569_v38 = vand.u32 65535, %v8777_v30  ;;  %vm9732_vm9 = vcmp.eq.s32.totalorder %v6010_v2, 2 }
 0x358   : > { %v1492_v36 = vadd.f32 0.041655596, %v1491_v22  ;;  %v1499_v57 = vadd.f32 0.008332121, %v1498_v28  ;;  %v1295_v29 = vsel %vm9732_vm9, %v5200_v48, %v1283_v53  ;;  %v1487_v45 = vsel %vm1364_vm8, %v1486_v47, %v8600_v62  ;;  %v5202_v62 = vld [vmem:[%s1316_s25] ss:$0 sm:$0xff] }
 0x359   : > { %v1597_v22 = vshll.u32 %v8836_v37, 16  ;;  %v1170_v59 = vsel %vm8839_vm2, 1, %v9508_v21  ;;  %v1188_v1 = vsel %vm1187_vm15, 1, %v9508_v21  ;;  %vm8869_vm9 = vc.u32 %v8844_v4, %v9365_v44  ;;  %s9017_s25 = sld [smem:[#allocation11 + $0x7]]  ;;  %s3963_s3 = scalar_lea.vmem [#allocation2], %s9015_s17 }
 0x35a   : > { %v1493_v5 = vmul.f32 %v1492_v36, %v1490_v56  ;;  %v1500_v24 = vmul.f32 %v1499_v57, %v1490_v56  ;;  %v1575_v48 = vshll.u32 %v8848_v43, 16  ;;  %v1593_v36 = vmul.u32 %v1591_v35, %v1567_v6  ;;  %s9781_s17 = sld [smem:[#allocation106_spill]] (!%p4874_p1) }
 0x35b   : > { %v8876_v57 = vmul.u32 %v1591_v35, %v1568_v16  ;;  %v1571_v32 = vmul.u32 %v1569_v38, %v1567_v6  ;;  %vm9735_vm8 = vcmp.eq.s32.totalorder %v6010_v2, 3  ;;  %v1489_v44 = vsel %vm8800_vm12, 0, %v1487_v45 }
 0x35c   : > { %v1494_v47 = vadd.f32 -0.4999988, %v1493_v5  ;;  %v1501_v28 = vadd.f32 -0.16666654, %v1500_v24  ;;  %v1307_v7 = vsel %vm9735_vm8, %v5201_v3, %v1295_v29  ;;  %v8882_v61 = vmul.u32 %v1569_v38, %v1568_v16 }
 0x35d   : > { %vm1601_vm2 = vc.u32 %v1593_v36, %v1597_v22  ;;  %v8884_v10 = vadd.s32 %v1597_v22, %v1593_v36  ;;  %v1190_v24 = vadd.s32 %v1188_v1, %v8709_v34  ;;  %v1192_v35 = vsel %vm8869_vm9, 1, %v9508_v21  ;;  %v5204_v36 = vld [vmem:[%s1340_s26] ss:$0 sm:$0xff]  ;;  %s9013_s26 = sld [smem:[#allocation11 + $0x5]] }
 0x35e   : > { %v1495_v17 = vmul.f32 %v1494_v47, %v1490_v56  ;;  %v1502_v54 = vmul.f32 %v1501_v28, %v1490_v56  ;;  %vm1579_vm15 = vc.u32 %v1571_v32, %v1575_v48  ;;  %v1581_v6 = vadd.s32 %v1575_v48, %v1571_v32 }
 0x35f   : > { %vm9736_vm8 = vcmp.eq.s32.totalorder %v6010_v2, 4  ;;  %v1599_v56 = vshll.u32 %v8876_v57, 16  ;;  %v9737_v45 = vshrl.u32 %v8770_v40, 16  ;;  %v1506_v34 = vand.u32 3, %v1489_v44  ;;  %s3968_s21 = scalar_lea.vmem [#allocation2], %s9017_s25 }
 0x360   : > { %v1319_v29 = vsel %vm9736_vm8, %v5202_v62, %v1307_v7  ;;  %v1496_v38 = vadd.f32 1.0, %v1495_v17  ;;  %v1503_v3 = vadd.f32 1.0, %v1502_v54  ;;  %v1577_v22 = vshll.u32 %v8882_v61, 16 }
 0x361   : > { %v1596_v5 = vmul.u32 %v9737_v45, %v1568_v16  ;;  %v1602_v1 = vsel %vm1601_vm2, 1, %v9508_v21  ;;  %v1580_v47 = vsel %vm1579_vm15, 1, %v9508_v21  ;;  %vm1605_vm12 = vc.u32 %v8884_v10, %v1599_v56  ;;  %v5205_v45 = vld [vmem:[%s1352_s13] ss:$0 sm:$0xff]  ;;  %s3933_s13 = scalar_lea.vmem [#allocation2], %s9000_s29  ;;  %s4085_s29 = scalar_lea.vmem (!%p4874_p1), [#allocation3], %s4879_s22 }
 0x362   : > { %v1504_v53 = vmul.f32 %v1503_v3, %v1488_v27  ;;  %v1512_v48 = vxor.u32 2147483648, %v1496_v38  ;;  %v1172_v7 = vadd.s32 %v1170_v59, %v1168_v39  ;;  %v1184_v54 = vshrl.u32 %v8664_v58, 16 }
 0x363   : > { %v9738_v40 = vshrl.u32 %v8777_v30, 16  ;;  %vm1583_vm9 = vc.u32 %v1581_v6, %v1577_v22  ;;  %v1194_v44 = vadd.s32 %v1192_v35, %v1190_v24  ;;  %vm9739_vm8 = vcmp.eq.s32.totalorder %v6010_v2, 5  ;;  %s3958_s19 = scalar_lea.vmem [#allocation2], %s9013_s26 }
 0x364   : > { %v1331_v62 = vsel %vm9739_vm8, %v5203_v31, %v1319_v29  ;;  %v1509_v28 = vxor.u32 2147483648, %v1504_v53  ;;  %v1604_v27 = vadd.s32 %v1602_v1, %v1596_v5  ;;  %vm1508_vm2 = vcmp.eq.s32.totalorder %v1506_v34, 0 }
 0x365   : > { %v1574_v17 = vmul.u32 %v9738_v40, %v1568_v16  ;;  %vm1511_vm15 = vcmp.eq.s32.totalorder %v1506_v34, 2  ;;  %v1606_v39 = vsel %vm1605_vm12, 1, %v9508_v21  ;;  %vm1507_vm7 = vcmp.lt.s32.totalorder %v1506_v34, 2 }
 0x366   : > { %v1510_v58 = vsel %vm1508_vm2, %v1496_v38, %v1509_v28  ;;  %v1513_v59 = vsel %vm1511_vm15, %v1512_v48, %v1504_v53  ;;  %v1584_v30 = vsel %vm1583_vm9, 1, %v9508_v21  ;;  %v1931_v16 = vshrl.u32 %v9460_v11, %v8426_v13 }
 0x367   : > { %v1582_v32 = vadd.s32 %v1580_v47, %v1574_v17  ;;  %v1995_v24 = vshrl.u32 %v8668_v42, 16  ;;  %v2005_v35 = vadd.s32 %v8824_v49, %v8818_v26  ;;  %v1514_v6 = vsel %vm1507_vm7, %v1510_v58, %v1513_v59  ;;  %v9745_v47 = vld [vmem:[#allocation61_spill] sm:$0xff] }
 0x368   : > { %v1164_v29 = vshrl.u32 %v8749_v18, 16  ;;  %v1186_v31 = vshrl.u32 %v8809_v51, 16  ;;  %v1195_v3 = vadd.s32 %v1194_v44, %v1184_v54  ;;  %v1608_v38 = vadd.s32 %v1606_v39, %v1604_v27 }
 0x369   : > { %v9740_v5 = vshrl.u32 %v8631_v0, 16  ;;  %vm9741_vm12 = vcmp.eq.s32.totalorder %v6010_v2, 6  ;;  %vm1505_vm9 = vweird.f32 %v8352_v9  ;;  %v1586_v42 = vadd.s32 %v1584_v30, %v1582_v32  ;;  %v4985_v30 = vld [vmem:[%s9743_s8 + $0x70] sm:$0xff] }
 0x36a   : > { %v1343_v13 = vsel %vm9741_vm12, %v5204_v36, %v1331_v62  ;;  %v1975_v26 = vshrl.u32 %v8644_v60, 16  ;;  %v9742_v49 = vshrl.u32 %v8618_v25, 16  ;;  %v1515_v34 = vsel %vm1505_vm9, nan, %v1514_v6 }
 0x36b   : > { %v1173_v21 = vadd.s32 %v1172_v7, %v9740_v5  ;;  %v1598_v22 = vshrl.u32 %v8836_v37, 16  ;;  %v1143_v0 = vsel %vm1137_vm11, %v8641_v23, %v8651_v55  ;;  %v1952_v9 = vsel %vm1950_vm13, %v8515_v19, 2102212464 }
 0x36c   : > { %v1984_v18 = vadd.s32 %v8816_v15, %v9742_v49  ;;  %v1997_v1 = vshrl.u32 %v8676_v46, 16  ;;  %v1576_v60 = vshrl.u32 %v8848_v43, 16  ;;  %v2006_v25 = vadd.s32 %v2005_v35, %v1995_v24  ;;  %v9748_v24 = vld [vmem:[#allocation74_spill] sm:$0xff] }
 0x36d   : > { %v1196_v53 = vadd.s32 %v1195_v3, %v1186_v31  ;;  %v8942_v15 = vsel %vm932_vm0, %v5205_v45, %v1343_v13  ;;  %v1609_v37 = vadd.s32 %v1608_v38, %v1598_v22  ;;  %v8944_v48 = vadd.s32 %v1173_v21, %v1164_v29  ;;  %v4984_v38 = vld [vmem:[%s9743_s8 + $0x68] sm:$0xff]  ;;  %v4983_v13 = vld [vmem:[%s9743_s8 + $0x60] sm:$0xff]  ;;  %v4982_v22 = vld [vmem:[%s9743_s8 + $0x58] sm:$0xff] }
 0x36e   : > { %v9744_v52 = vshll.u32 %v8809_v51, 16  ;;  %v1587_v55 = vadd.s32 %v1586_v42, %v1576_v60  ;;  %v1672_v19 = vadd.f32 %v1515_v34, %v8942_v15  ;;  %v1951_v43 = vsel %vm1947_vm6, %v1931_v16, %v8569_v41  ;;  %v4986_v51 = vld [vmem:[%s9743_s8 + $0x78] sm:$0xff]  ;;  %v4981_v60 = vld [vmem:[%s9743_s8 + $0x50] sm:$0xff] }
 0x36f   : > { %v1953_v7 = vsel %vm1949_vm5, %v9745_v47, %v1952_v9  ;;  %v8958_v54 = vadd.s32 %v1984_v18, %v1975_v26  ;;  %v1600_v40 = vshrl.u32 %v8876_v57, 16  ;;  %v9746_v44 = vshll.u32 %v8676_v46, 16  ;;  %v5246_v41 = vld [vmem:[#allocation5] sm:$0xff]  ;;  %2172 = vmatpush.bf16.msra.mxu2 %v4986_v51  ;;  %v9747_v46 = vld [vmem:[#allocation71_spill] sm:$0xff] }
 0x370   : > { %v8949_v23 = vadd.s32 %v8844_v4, %v9744_v52  ;;  %v1578_v28 = vshrl.u32 %v8882_v61, 16  ;;  %v1673_v27 = vmul.f32 %v5246_v41, %v1672_v19  ;;  %v2007_v32 = vadd.s32 %v2006_v25, %v1997_v1  ;;  %v9749_v57 = vld [vmem:[#allocation64_spill] sm:$0xff]  ;;  %v4980_v52 = vld [vmem:[%s9743_s8 + $0x48] sm:$0xff] }
 0x371   : > { %v8965_v62 = vadd.s32 %v8744_v63, %v9746_v44  ;;  %v1200_v39 = vadd.s32 1, %v1196_v53  ;;  %v1555_v58 = vsel %vm1553_vm10, %v8705_v20, 2102212464  ;;  %v1610_v59 = vadd.s32 %v1609_v37, %v1600_v40 }
 0x372   : > { %vm1199_vm7 = vc.u32 %v8944_v48, %v8949_v23  ;;  %v1534_v63 = vshrl.u32 %v9460_v11, %v9747_v46  ;;  %v8976_v61 = vadd.s32 %v1587_v55, %v1578_v28  ;;  %1674 = vadd.xlane.f32.xlu0 %v1673_v27  ;;  %v1197_v35 = vmul.u32 %v9748_v24, %v1143_v0  ;;  %v864_v28 = vld [vmem:[#allocation3] sm:$0xff] }
 0x373   : > { %v1556_v6 = vsel %vm1552_vm3, %v8703_v50, %v1555_v58  ;;  %v8988_v29 = vadd.s32 %v8884_v10, %v1599_v56  ;;  %v1954_v11 = vsel %vm1948_vm1, %v1951_v43, %v1953_v7  ;;  %v2011_v31 = vadd.s32 1, %v2007_v32  ;;  %2173 = vmatpush.bf16.msra.mxu2 %v4985_v30 }
 0x374   : > { %v1554_v20 = vsel %vm1550_vm14, %v1534_v63, %v8701_v33  ;;  %v1201_v3 = vsel %vm1199_vm7, %v1200_v39, %v1196_v53  ;;  %v1614_v45 = vadd.s32 1, %v1610_v59  ;;  %vm2010_vm13 = vc.u32 %v8958_v54, %v8965_v62 }
 0x375   : > { %vm1613_vm6 = vc.u32 %v8976_v61, %v8988_v29  ;;  %v1557_v10 = vsel %vm1551_vm4, %v1554_v20, %v1556_v6  ;;  %v2008_v14 = vmul.u32 %v9749_v57, %v1954_v11  ;;  %v1202_v56 = vadd.s32 %v1201_v3, %v1197_v35  ;;  %vm9756_vm4 = vmmov %vm9739_vm8  ;;  %v5009_v20 = vld [vmem:[%s9751_s18 + $0x30] sm:$0xff] }
 0x376   : > { %v2012_v5 = vsel %vm2010_vm13, %v2011_v31, %v2007_v32  ;;  %v1615_v21 = vsel %vm1613_vm6, %v1614_v45, %v1610_v59  ;;  %v1611_v26 = vmul.u32 %v8779_v12, %v1557_v10  ;;  %vm9750_vm1 = vcmp.eq.s32.totalorder %v6010_v2, 0  ;;  %v5010_v32 = vld [vmem:[%s9751_s18 + $0x38] sm:$0xff]  ;;  %vm9757_vm8 = vmmov %vm9741_vm12  ;;  %v5008_v45 = vld [vmem:[%s9751_s18 + $0x28] sm:$0xff] }
 0x377   : > { %2174 = vmatpush.bf16.msra.mxu2 %v4984_v38  ;;  %v2013_v49 = vadd.s32 %v2012_v5, %v2008_v14  ;;  %v1203_v18 = vadd.s32 536870912, %v1202_v56  ;;  %vm9752_vm11 = vcmp.eq.s32.totalorder %v6010_v2, 1  ;;  %vm9753_vm10 = vcmp.eq.s32.totalorder %v6010_v2, 2  ;;  %v5006_v5 = vld [vmem:[%s9751_s18 + $0x18] sm:$0xff] }
 0x378   : > { %v1616_v34 = vadd.s32 %v1615_v21, %v1611_v26  ;;  %vm9754_vm14 = vcmp.eq.s32.totalorder %v6010_v2, 3  ;;  %vm9755_vm3 = vcmp.eq.s32.totalorder %v6010_v2, 4  ;;  %v2107_v63 = vpack.c.bf16 %v864_v28, %v864_v28 }
 0x379   : > { %v2014_v12 = vadd.s32 536870912, %v2013_v49  ;;  %v9019_v9 = vshrl.u32 %v1203_v18, 30  ;;  %v5004_v18 = vld [vmem:[%s9751_s18 + $0x8] sm:$0xff] }
 0x37a   : > { %v1617_v1 = vadd.s32 536870912, %v1616_v34 }
 0x37b   : > { %2175 = vmatpush.bf16.msra.mxu2 %v4983_v13  ;;  %v9022_v25 = vshrl.u32 %v2014_v12, 30  ;;  %v1205_v53 = vshll.u32 %v9019_v9, 30  ;;  %v5003_v12 = vld [vmem:[%s9751_s18] sm:$0xff] }
 0x37c   : > { %v9025_v37 = vshrl.u32 %v1617_v1, 30  ;;  %v1198_v1 = vadd.s32 %v8949_v23, %v8944_v48 }
 0x37d   : > { %v9042_v41 = vsub.s32 %v1202_v56, %v1205_v53  ;;  %v2016_v59 = vshll.u32 %v9022_v25, 30 }
 0x37e   : > { %v1619_v7 = vshll.u32 %v9025_v37, 30 }
 0x37f   : > { %2176 = vmatpush.bf16.msra.mxu2 %v4982_v22  ;;  %v1208_v35 = vsub.s32 0, %v9042_v41  ;;  %vm1207_vm2 = vcmp.lt.s32.totalorder %v9042_v41, 0  ;;  %v9063_v11 = vsub.s32 %v2013_v49, %v2016_v59 }
 0x380   : > { %v9052_v30 = vsub.s32 %v1616_v34, %v1619_v7 }
 0x381   : > { %v1209_v3 = vsel %vm1207_vm2, %v1208_v35, %v9042_v41  ;;  %v2019_v38 = vsub.s32 0, %v9063_v11  ;;  %vm2018_vm12 = vcmp.lt.s32.totalorder %v9063_v11, 0 }
 0x382   : > { %v1622_v31 = vsub.s32 0, %v9052_v30  ;;  %vm1621_vm15 = vcmp.lt.s32.totalorder %v9052_v30, 0 }
 0x383   : > { %v3861_v17 = vpop.f32.mrf.mxu0  ;;  %2177 = vmatpush.bf16.msra.mxu2 %v4981_v60  ;;  %v2020_v14 = vsel %vm2018_vm12, %v2019_v38, %v9063_v11 }
 0x384   : > { %v1623_v10 = vsel %vm1621_vm15, %v1622_v31, %v9052_v30  ;;  %v2021_v21 = vclz %v2020_v14  ;;  %v9758_v31 = vld [vmem:[#allocation59_spill] sm:$0xff] }
 0x385   : > { %v1624_v57 = vclz %v1623_v10  ;;  %vm1106_vm6 = vcmp.lt.s32.totalorder %v9758_v31, 0  ;;  %v9762_v10 = vld [vmem:[#allocation58_spill] sm:$0xff] }
 0x386   : > { %v4648_v26 = vadd.s32 4294967294, %v2021_v21 }
 0x387   : > { %2178 = vmatpush.bf16.msra.mxu2 %v4980_v52  ;;  %v4634_v13 = vadd.s32 4294967294, %v1624_v57  ;;  %v9763_v57 = vld [vmem:[#allocation60_spill] sm:$0xff] }
 0x388   : > { %vm4649_vm13 = vcmp.lt.s32.totalorder %v4648_v26, 0 }
 0x389   : > { %vm4635_vm7 = vcmp.lt.s32.totalorder %v4634_v13, 0 }
 0x38a   : > { %v1627_v49 = vsel %vm4635_vm7, 0, %v4634_v13  ;;  %v9767_v13 = vand.u32 2147483647, %v9763_v57  ;;  %vm1247_vm7 = vweird.f32 %v9758_v31 }
 0x38b   : > { %v3863_v50 = vpop.f32.mrf.mxu0  ;;  %v1632_v22 = vsub.s32 4294967266, %v1627_v49 }
 0x38c   : > { %v5007_v50 = vld [vmem:[%s9751_s18 + $0x20] sm:$0xff] }
 0x395   : > { %v3922_v4 = vpop.f32.mrf.mxu1 }
 0x396   : > { %v3923_v36 = vadd.f32 %v3922_v4, %v3861_v17  ;;  %v4979_v17 = vld [vmem:[%s9743_s8 + $0x40] sm:$0xff] }
 0x397   : > { %2179 = vmatpush.bf16.msra.mxu2 %v4979_v17 }
 0x398   : > { %v3927_v16 = vmul.f32 1.442695, %v3923_v36  ;;  %vm3926_vm5 = vcmp.gt.f32.partialorder %v3923_v36, 0.0 }
 0x39a   : > { %5228 = vpow2.f32 %v3927_v16  ;;  %2180 = vmatmul.bf16.vlgmr.msra.gmra.mxu2 %v2107_v63 }
 0x39b   : > { %4040 = vmatpush.bf16.msrb.mxu2 %v5010_v32 }
 0x39d   : > { %v3924_v33 = vpop.f32.mrf.mxu1 }
 0x39e   : > { %v1210_v33 = vclz %v1209_v3 }
 0x39f   : > { %4041 = vmatpush.bf16.msrb.mxu2 %v5009_v20 }
 0x3a0   : > { %v5229_v42 = vpop.eup %5228  ;;  %v4620_v56 = vadd.s32 4294967294, %v1210_v33 }
 0x3a1   : > { %v4834_v8 = vadd.f32 -1.0, %v5229_v42  ;;  %v5005_v42 = vld [vmem:[%s9751_s18 + $0x10] sm:$0xff] }
 0x3a2   : > { %vm4621_vm9 = vcmp.lt.s32.totalorder %v4620_v56, 0 }
 0x3a3   : > { %v3930_v0 = vsel %vm3926_vm5, %v3923_v36, %v4834_v8  ;;  %4042 = vmatpush.bf16.msrb.mxu2 %v5008_v45  ;;  %v1213_v8 = vsel %vm4621_vm9, 0, %v4620_v56  ;;  %v9759_v45 = vand.u32 2147483647, %v9758_v31  ;;  %v9764_v56 = vand.u32 2147483647, %v9762_v10 }
 0x3a4   : > { %3931 = vst [vmem:[#allocation2] sm:$0xff] %v3930_v0  ;;  %v1218_v34 = vsub.s32 4294967266, %v1213_v8  ;;  %v2024_v0 = vsel %vm4649_vm13, 0, %v4648_v26  ;;  %v1214_v60 = vsub.s32 32, %v1213_v8 }
 0x3a5   : > { %v2029_v52 = vsub.s32 4294967266, %v2024_v0  ;;  %v2025_v17 = vsub.s32 32, %v2024_v0  ;;  %vm9090_vm5 = vcmp.le.f32.partialorder %v9759_v45, 0.7853982 }
 0x3a6   : > { %v1219_v53 = vadd.s32 127, %v1218_v34 }
 0x3a7   : > { %4043 = vmatpush.bf16.msrb.mxu2 %v5007_v50 }
 0x3a8   : > { %v1220_v7 = vshll.u32 %v1219_v53, 23 }
 0x3aa   : > { %v1221_v28 = vor.u32 4788187, %v1220_v7 }
 0x3ab   : > { %v5206_v55 = vld [vmem:[%s3933_s13] ss:$0 sm:$0xff]  ;;  %4044 = vmatpush.bf16.msrb.mxu2 %v5006_v5 }
 0x3ac   : > { %v5207_v19 = vld [vmem:[%s3938_s11] ss:$0 sm:$0xff]  ;;  %v3936_v43 = vsel %vm9750_vm1, %v5206_v55, 0.0  ;;  %v1633_v55 = vadd.s32 127, %v1632_v22  ;;  %v1222_v59 = vand.u32 2147483647, %v1221_v28 }
 0x3ad   : > { %v5208_v47 = vld [vmem:[%s3943_s4] ss:$0 sm:$0xff]  ;;  %v3941_v40 = vsel %vm9752_vm11, %v5207_v19, %v3936_v43  ;;  %v1215_v43 = vshll.u32 %v9042_v41, %v1213_v8  ;;  %vm1520_vm1 = vcmp.lt.s32.totalorder %v9762_v10, 0  ;;  %vm1917_vm11 = vcmp.lt.s32.totalorder %v9763_v57, 0  ;;  %v4978_v28 = vld [vmem:[%s9743_s8 + $0x38] sm:$0xff] }
 0x3ae   : > { %v5209_v51 = vld [vmem:[%s3948_s10] ss:$0 sm:$0xff]  ;;  %v3946_v4 = vsel %vm9753_vm10, %v5208_v47, %v3941_v40  ;;  %v1216_v47 = vshrl.u32 %v1198_v1, %v1214_v60  ;;  %v1628_v40 = vsub.s32 32, %v1627_v49  ;;  %v1634_v48 = vshll.u32 %v1633_v55, 23  ;;  %2233 = vmatpush.bf16.msra.mxu3 %v4978_v28 }
 0x3af   : > { %v5210_v44 = vld [vmem:[%s3953_s16] ss:$0 sm:$0xff]  ;;  %v3951_v27 = vsel %vm9754_vm14, %v5209_v51, %v3946_v4  ;;  %4045 = vmatpush.bf16.msrb.mxu2 %v5005_v42  ;;  %v2009_v51 = vadd.s32 %v8965_v62, %v8958_v54  ;;  %v2030_v4 = vadd.s32 127, %v2029_v52  ;;  %vm9105_vm10 = vcmp.le.f32.partialorder %v9764_v56, 0.7853982  ;;  %v2072_v42 = vpop.xlane.xlu1 %2071 }
 0x3b0   : > { %v5211_v36 = vld [vmem:[%s3958_s19] ss:$0 sm:$0xff]  ;;  %v3956_v58 = vsel %vm9755_vm3, %v5210_v44, %v3951_v27  ;;  %v1612_v44 = vadd.s32 %v8988_v29, %v8976_v61  ;;  %v1217_v23 = vor.u32 %v1216_v47, %v1215_v43  ;;  %vm9114_vm14 = vcmp.le.f32.partialorder %v9767_v13, 0.7853982  ;;  %v1261_v13 = vpop.xlane.xlu2 %1260 }
 0x3b1   : > { %v5212_v39 = vld [vmem:[%s3963_s3] ss:$0 sm:$0xff]  ;;  %v3961_v16 = vsel %vm9756_vm4, %v5211_v36, %v3956_v58  ;;  %v2026_v36 = vshll.u32 %v9063_v11, %v2024_v0  ;;  %v2027_v32 = vshrl.u32 %v2009_v51, %v2025_v17  ;;  %v2031_v41 = vshll.u32 %v2030_v4, 23 }
 0x3b2   : > { %v5213_v46 = vld [vmem:[%s3968_s21] ss:$0 sm:$0xff]  ;;  %v3966_v24 = vsel %vm9757_vm8, %v5212_v39, %v3961_v16  ;;  %v1630_v27 = vshrl.u32 %v1612_v44, %v1628_v40  ;;  %v1629_v39 = vshll.u32 %v9052_v30, %v1627_v49  ;;  %v1635_v58 = vor.u32 4788187, %v1634_v48 }
 0x3b3   : > { %v3971_v6 = vsel %vm932_vm0, %v5213_v46, %v3966_v24  ;;  %4046 = vmatpush.bf16.msrb.mxu2 %v5004_v18  ;;  %v1224_v46 = vcvt.s32.f32 %v1217_v23  ;;  %v2028_v62 = vor.u32 %v2027_v32, %v2026_v36  ;;  %v2032_v63 = vor.u32 4788187, %v2031_v41 }
 0x3b4   : > { %v3975_v19 = vpack.c.bf16 %v3971_v6, %v3971_v6  ;;  %v1631_v54 = vor.u32 %v1630_v27, %v1629_v39  ;;  %v1636_v16 = vand.u32 2147483647, %v1635_v58  ;;  %v1228_v4 = vsub.s32 4, %v9019_v9  ;;  %v4977_v58 = vld [vmem:[%s9743_s8 + $0x30] sm:$0xff] }
 0x3b5   : > { %v1225_v24 = vmul.f32 %v1224_v46, %v1222_v59  ;;  %v2033_v29 = vand.u32 2147483647, %v2032_v63  ;;  %v2035_v35 = vcvt.s32.f32 %v2028_v62  ;;  %v2039_v41 = vsub.s32 4, %v9022_v25  ;;  %2234 = vmatpush.bf16.msra.mxu3 %v4977_v58 }
 0x3b6   : > { %v1638_v61 = vcvt.s32.f32 %v1631_v54  ;;  %v1229_v39 = vsel %vm1106_vm6, %v1228_v4, %v9019_v9  ;;  %v1642_v62 = vsub.s32 4, %v9025_v37  ;;  %v4976_v9 = vld [vmem:[%s9743_s8 + $0x28] sm:$0xff] }
 0x3b7   : > { %4047 = vmatpush.bf16.msrb.mxu2 %v5003_v12  ;;  %v1226_v6 = vxor.u32 2147483648, %v1225_v24  ;;  %v2036_v11 = vmul.f32 %v2035_v35, %v2033_v29  ;;  %v1231_v63 = vsel %vm9090_vm5, 0, %v1229_v39  ;;  %v2040_v29 = vsel %vm1917_vm11, %v2039_v41, %v9022_v25 }
 0x3b8   : > { %v1639_v20 = vmul.f32 %v1638_v61, %v1636_v16  ;;  %v2042_v45 = vsel %vm9114_vm14, 0, %v2040_v29 }
 0x3b9   : > { %v1227_v38 = vsel %vm1106_vm6, %v1226_v6, %v1225_v24  ;;  %v2037_v33 = vxor.u32 2147483648, %v2036_v11  ;;  %2235 = vmatpush.bf16.msra.mxu3 %v4976_v9 }
 0x3ba   : > { %4048 = vmatmul.bf16.vlgmr.msrb.gmra.mxu2 %v3975_v19  ;;  %v1640_v3 = vxor.u32 2147483648, %v1639_v20  ;;  %v1230_v14 = vsel %vm9090_vm5, %v9758_v31, %v1227_v38  ;;  %vm1661_vm5 = vweird.f32 %v9762_v10 }
 0x3bb   : > { %v2038_v26 = vsel %vm1917_vm11, %v2037_v33, %v2036_v11  ;;  %v1232_v8 = vmul.f32 %v1230_v14, %v1230_v14  ;;  %v1248_v11 = vand.u32 3, %v1231_v63 }
 0x3bc   : > { %v1641_v50 = vsel %vm1520_vm1, %v1640_v3, %v1639_v20  ;;  %v9123_v18 = vsel %vm9114_vm14, %v9763_v57, %v2038_v26  ;;  %v1643_v3 = vsel %vm1520_vm1, %v1642_v62, %v9025_v37  ;;  %vm2058_vm1 = vweird.f32 %v9763_v57 }
 0x3bd   : > { %v1644_v21 = vsel %vm9105_vm10, %v9762_v10, %v1641_v50  ;;  %v1240_v34 = vmul.f32 -0.00019511016, %v1232_v8  ;;  %v2043_v22 = vmul.f32 %v9123_v18, %v9123_v18  ;;  %v1233_v12 = vmul.f32 -0.001358992, %v1232_v8  ;;  %v4975_v50 = vld [vmem:[%s9743_s8 + $0x20] sm:$0xff] }
 0x3be   : > { %v1646_v49 = vmul.f32 %v1644_v21, %v1644_v21  ;;  %v1645_v26 = vsel %vm9105_vm10, 0, %v1643_v3  ;;  %vm1250_vm3 = vcmp.eq.s32.totalorder %v1248_v11, 0  ;;  %vm1253_vm4 = vcmp.eq.s32.totalorder %v1248_v11, 2  ;;  %2236 = vmatpush.bf16.msra.mxu3 %v4975_v50 }
 0x3bf   : > { %v1241_v1 = vadd.f32 0.008332121, %v1240_v34  ;;  %v2051_v60 = vmul.f32 -0.00019511016, %v2043_v22  ;;  %v1234_v52 = vadd.f32 0.041655596, %v1233_v12 }
 0x3c0   : > { %v1654_v0 = vmul.f32 -0.00019511016, %v1646_v49  ;;  %v1647_v19 = vmul.f32 -0.001358992, %v1646_v49  ;;  %v2044_v43 = vmul.f32 -0.001358992, %v2043_v22 }
 0x3c1   : > { %v1242_v55 = vmul.f32 %v1241_v1, %v1232_v8  ;;  %v2052_v47 = vadd.f32 0.008332121, %v2051_v60  ;;  %v1235_v40 = vmul.f32 %v1234_v52, %v1232_v8  ;;  %v2059_v34 = vand.u32 3, %v2042_v45 }
 0x3c2   : > { %v1655_v53 = vadd.f32 0.008332121, %v1654_v0  ;;  %v1648_v17 = vadd.f32 0.041655596, %v1647_v19  ;;  %v2045_v44 = vadd.f32 0.041655596, %v2044_v43 }
 0x3c3   : > { %v1243_v51 = vadd.f32 -0.16666654, %v1242_v55  ;;  %v2053_v48 = vmul.f32 %v2052_v47, %v2043_v22  ;;  %v1236_v27 = vadd.f32 -0.4999988, %v1235_v40  ;;  %vm2061_vm8 = vcmp.eq.s32.totalorder %v2059_v34, 0 }
 0x3c4   : > { %v1656_v7 = vmul.f32 %v1655_v53, %v1646_v49  ;;  %v1649_v32 = vmul.f32 %v1648_v17, %v1646_v49  ;;  %v2046_v59 = vmul.f32 %v2045_v44, %v2043_v22  ;;  %vm2064_vm2 = vcmp.eq.s32.totalorder %v2059_v34, 2  ;;  %v4973_v17 = vld [vmem:[%s9743_s8 + $0x10] sm:$0xff] }
 0x3c5   : > { %v1244_v36 = vmul.f32 %v1243_v51, %v1232_v8  ;;  %v2054_v46 = vadd.f32 -0.16666654, %v2053_v48  ;;  %v1237_v16 = vmul.f32 %v1236_v27, %v1232_v8  ;;  %vm1249_vm15 = vcmp.lt.s32.totalorder %v1248_v11, 2 }
 0x3c6   : > { %v1657_v23 = vadd.f32 -0.16666654, %v1656_v7  ;;  %v1650_v61 = vadd.f32 -0.4999988, %v1649_v32  ;;  %v2047_v35 = vadd.f32 -0.4999988, %v2046_v59 }
 0x3c7   : > { %v1245_v24 = vadd.f32 1.0, %v1244_v36  ;;  %v2055_v20 = vmul.f32 %v2054_v46, %v2043_v22  ;;  %v1238_v30 = vadd.f32 1.0, %v1237_v16  ;;  %v4972_v59 = vld [vmem:[%s9743_s8 + $0x8] sm:$0xff]  ;;  %vm2060_vm6 = vcmp.lt.s32.totalorder %v2059_v34, 2  ;;  %v4971_v16 = vld [vmem:[%s9743_s8] sm:$0xff] }
 0x3c8   : > { %v1658_v54 = vmul.f32 %v1657_v23, %v1646_v49  ;;  %v1651_v33 = vmul.f32 %v1650_v61, %v1646_v49  ;;  %v2048_v56 = vmul.f32 %v2047_v35, %v2043_v22  ;;  %v1662_v49 = vand.u32 3, %v1645_v26  ;;  %v4974_v22 = vld [vmem:[%s9743_s8 + $0x18] sm:$0xff]  ;;  %s4080_s8 = scalar_lea.vmem (!%p4874_p1), [#allocation3], %s4878_s15 }
 0x3c9   : > { %v1246_v38 = vmul.f32 %v1245_v24, %v1230_v14  ;;  %v2056_v25 = vadd.f32 1.0, %v2055_v20  ;;  %v1254_v37 = vxor.u32 2147483648, %v1238_v30  ;;  %v1262_v14 = vmul.f32 0.17677669, %v1261_v13  ;;  %2237 = vmatpush.bf16.msra.mxu3 %v4974_v22  ;;  %v9770_v24 = vld [vmem:[#allocation63_spill] sm:$0xff] }
 0x3ca   : > { %v1659_v6 = vadd.f32 1.0, %v1658_v54  ;;  %v1652_v12 = vadd.f32 1.0, %v1651_v33  ;;  %v2049_v53 = vadd.f32 1.0, %v2048_v56  ;;  %vm1664_vm12 = vcmp.eq.s32.totalorder %v1662_v49, 0 }
 0x3cb   : > { %v1251_v0 = vxor.u32 2147483648, %v1246_v38  ;;  %v2057_v52 = vmul.f32 %v2056_v25, %v9123_v18  ;;  %v1255_v43 = vsel %vm1253_vm4, %v1254_v37, %v1246_v38  ;;  %vm1667_vm9 = vcmp.eq.s32.totalorder %v1662_v49, 2 }
 0x3cc   : > { %v1660_v8 = vmul.f32 %v1659_v6, %v1644_v21  ;;  %v2073_v21 = vmul.f32 0.17677669, %v2072_v42  ;;  %v1668_v47 = vxor.u32 2147483648, %v1652_v12  ;;  %v2065_v44 = vxor.u32 2147483648, %v2049_v53 }
 0x3cd   : > { %v1252_v19 = vsel %vm1250_vm3, %v1238_v30, %v1251_v0  ;;  %v2062_v4 = vxor.u32 2147483648, %v2057_v52  ;;  %vm1663_vm13 = vcmp.lt.s32.totalorder %v1662_v49, 2  ;;  %2238 = vmatpush.bf16.msra.mxu3 %v4973_v17  ;;  %v9771_v30 = vld [vmem:[#allocation56_spill] sm:$0xff] }
 0x3ce   : > { %v1665_v5 = vxor.u32 2147483648, %v1660_v8  ;;  %v1256_v36 = vsel %vm1249_vm15, %v1252_v19, %v1255_v43  ;;  %v1669_v32 = vsel %vm1667_vm9, %v1668_v47, %v1660_v8  ;;  %v2066_v54 = vsel %vm2064_vm2, %v2065_v44, %v2057_v52 }
 0x3cf   : > { %v2063_v46 = vsel %vm2061_vm8, %v2049_v53, %v2062_v4  ;;  %v1257_v62 = vsel %vm1247_vm7, nan, %v1256_v36 }
 0x3d0   : > { %v1666_v18 = vsel %vm1664_vm12, %v1652_v12, %v1665_v5  ;;  %v2067_v63 = vsel %vm2060_vm6, %v2063_v46, %v2066_v54  ;;  %v1263_v61 = vadd.f32 %v1257_v62, %v9770_v24  ;;  %v3973_v12 = vld [vmem:[#allocation7] sm:$0xff] }
 0x3d1   : > { %v1670_v41 = vsel %vm1663_vm13, %v1666_v18, %v1669_v32  ;;  %2239 = vmatpush.bf16.msra.mxu3 %v4972_v59  ;;  %v2068_v20 = vsel %vm2058_vm1, nan, %v2067_v63 }
 0x3d2   : > { %v1671_v31 = vsel %vm1661_vm5, nan, %v1670_v41  ;;  %v2082_v38 = vadd.f32 %v2068_v20, %v9771_v30 }
 0x3d3   : > { %v1685_v9 = vadd.f32 %v1671_v31, %v8942_v15  ;;  %v9772_v15 = vld [vmem:[#allocation44_spill] sm:$0xff] }
 0x3d5   : > { %2240 = vmatpush.bf16.msra.mxu3 %v4971_v16 }
 0x3e5   : > { %v1675_v1 = vpop.xlane.xlu0 %1674 }
 0x3e6   : > { %v1676_v60 = vmul.f32 0.17677669, %v1675_v1 }
 0x3e8   : > { %v1677_v55 = vmax.f32 %v1262_v14, %v1676_v60 }
 0x3ea   : > { %v1678_v7 = vsub.f32 %v1262_v14, %v1677_v55  ;;  %v1681_v40 = vsub.f32 %v1676_v60, %v1677_v55  ;;  %v2074_v51 = vmax.f32 %v1677_v55, %v2073_v21 }
 0x3ec   : > { %v1679_v48 = vmul.f32 1.442695, %v1678_v7  ;;  %v1682_v23 = vmul.f32 1.442695, %v1681_v40  ;;  %v2075_v28 = vsub.f32 %v1677_v55, %v2074_v51  ;;  %v2078_v27 = vsub.f32 %v2073_v21, %v2074_v51 }
 0x3ee   : > { %5230 = vpow2.f32 %v1679_v48  ;;  %v2076_v39 = vmul.f32 1.442695, %v2075_v28  ;;  %v2079_v58 = vmul.f32 1.442695, %v2078_v27 }
 0x3ef   : > { %5232 = vpow2.f32 %v1682_v23 }
 0x3f0   : > { %5234 = vpow2.f32 %v2076_v39 }
 0x3f1   : > { %5236 = vpow2.f32 %v2079_v58 }
 0x3f4   : > { %v5231_v29 = vpop.eup %5230 }
 0x3f5   : > { %v5233_v35 = vpop.eup %5232  ;;  %v1684_v6 = vmul.f32 %v5231_v29, %v1263_v61 }
 0x3f6   : > { %v5235_v11 = vpop.eup %5234  ;;  %v1686_v3 = vmul.f32 %v5233_v35, %v1685_v9  ;;  %v1688_v45 = vadd.f32 %v5233_v35, %v5231_v29 }
 0x3f7   : > { %v5237_v10 = vpop.eup %5236 }
 0x3f8   : > { %v2085_v33 = vmul.f32 %v5235_v11, %v1688_v45  ;;  %v1687_v57 = vadd.f32 %v1686_v3, %v1684_v6  ;;  %v2083_v56 = vmul.f32 %v5237_v10, %v2082_v38 }
 0x3fa   : > { %v2081_v50 = vmul.f32 %v5235_v11, %v1687_v57  ;;  %v2086_v25 = vadd.f32 %v5237_v10, %v2085_v33 }
 0x3fc   : > { %v2084_v13 = vadd.f32 %v2083_v56, %v2081_v50  ;;  %5238 = vrcp.f32 %v2086_v25 }
 0x402   : > { %v5239_v26 = vpop.eup %5238 }
 0x403   : > { %v2088_v8 = vmul.f32 %v5239_v26, %v2084_v13 }
 0x405   : > { %v2089_v34 = vmul.f32 %v9772_v15, %v2088_v8 }
 0x407   : > { %v2090_v0 = vpack.c.bf16 %v2089_v34, %v2089_v34 }
 0x409   : > { %2241 = vmatmul.bf16.vlgmr.msra.gmra.mxu3 %v2090_v0 }
 0x41d   : > { %v2181_v37 = vpop.f32.mrf.mxu2 }
 0x425   : > { %v2183_v42 = vpop.f32.mrf.mxu2 }
 0x43d   : > { %v4049_v1 = vpop.f32.mrf.mxu2 }
 0x43e   : > { %v4053_v14 = vadd.f32 %v4049_v1, %v3973_v12 }
 0x440   : > { %4054 = vst [vmem:[#allocation7] sm:$0xff] %v4053_v14 }
 0x445   : > { %v4051_v49 = vpop.f32.mrf.mxu2 }
 0x48c   : > { %v2242_v60 = vpop.f32.mrf.mxu3 }
 0x48d   : > { %v2243_v22 = vadd.f32 %v2242_v60, %v2181_v37 }
 0x48f   : > { %v2247_v53 = vmul.f32 1.442695, %v2243_v22  ;;  %vm2246_vm11 = vcmp.gt.f32.partialorder %v2243_v22, 0.0 }
 0x491   : > { %5240 = vpow2.f32 %v2247_v53 }
 0x494   : > { %v2244_v52 = vpop.f32.mrf.mxu3 }
 0x497   : > { %v5241_v5 = vpop.eup %5240  ;;  %4058 = sbr.rel (%p4874_p1) target bundleno = 1476 (0x5c4), region = 112 }
 0x498   : > { %v4714_v21 = vadd.f32 -1.0, %v5241_v5 }
 0x49a   : > { %v2250_v55 = vsel %vm2246_vm11, %v2243_v22, %v4714_v21 }
 0x49b   : > { %2251 = vst [vmem:[#allocation3] sm:$0xff] %v2250_v55 }
 0x49c   : > { %v5018_v19 = vld [vmem:[#allocation24 + $0x38] sm:$0xff]  ;;  %v5017_v43 = vld [vmem:[#allocation24 + $0x30] sm:$0xff]  ;;  %v5016_v40 = vld [vmem:[#allocation24 + $0x28] sm:$0xff]  ;;  %vm9774_vm10 = vcmp.eq.s32.totalorder %v6010_v2, 0  ;;  %vm9775_vm14 = vcmp.eq.s32.totalorder %v6010_v2, 1  ;;  %vm9776_vm3 = vcmp.eq.s32.totalorder %v6010_v2, 2 }
 0x49d   : > { %4167 = vmatpush.bf16.msra.mxu0 %v5018_v19  ;;  %v5026_v47 = vld [vmem:[#allocation25 + $0x38] sm:$0xff]  ;;  %v5025_v7 = vld [vmem:[#allocation25 + $0x30] sm:$0xff]  ;;  %v5024_v4 = vld [vmem:[#allocation25 + $0x28] sm:$0xff]  ;;  %vm9777_vm4 = vcmp.eq.s32.totalorder %v6010_v2, 3  ;;  %vm9778_vm8 = vcmp.eq.s32.totalorder %v6010_v2, 4  ;;  %vm9779_vm2 = vcmp.eq.s32.totalorder %v6010_v2, 5 }
 0x49e   : > { %4250 = vmatpush.bf16.msra.mxu1 %v5026_v47  ;;  %v5015_v48 = vld [vmem:[#allocation24 + $0x20] sm:$0xff]  ;;  %v5014_v59 = vld [vmem:[#allocation24 + $0x18] sm:$0xff]  ;;  %v5013_v31 = vld [vmem:[#allocation24 + $0x10] sm:$0xff]  ;;  %vm9780_vm15 = vcmp.eq.s32.totalorder %v6010_v2, 6 }
 0x49f   : > { %v5023_v39 = vld [vmem:[#allocation25 + $0x20] sm:$0xff]  ;;  %v5022_v62 = vld [vmem:[#allocation25 + $0x18] sm:$0xff]  ;;  %v5021_v24 = vld [vmem:[#allocation25 + $0x10] sm:$0xff] }
 0x4a0   : > { %v5012_v61 = vld [vmem:[#allocation24 + $0x8] sm:$0xff]  ;;  %v5011_v35 = vld [vmem:[#allocation24] sm:$0xff]  ;;  %v4100_v11 = vld [vmem:[#allocation7] sm:$0xff] }
 0x4a1   : > { %4168 = vmatpush.bf16.msra.mxu0 %v5017_v43  ;;  %v5020_v9 = vld [vmem:[#allocation25 + $0x8] sm:$0xff]  ;;  %v5019_v6 = vld [vmem:[#allocation25] sm:$0xff]  ;;  %v5255_v2 = vld [vmem:[%s9781_s17] ss:$0 sm:$0xff] }
 0x4a2   : > { %v5247_v51 = vld [vmem:[%s4060_s5] ss:$0 sm:$0xff]  ;;  %4251 = vmatpush.bf16.msra.mxu1 %v5025_v7 }
 0x4a3   : > { %v5248_v17 = vld [vmem:[%s4065_s6] ss:$0 sm:$0xff]  ;;  %v4063_v44 = vsel %vm9774_vm10, %v5247_v51, 0.0 }
 0x4a4   : > { %v5249_v18 = vld [vmem:[%s4070_s23] ss:$0 sm:$0xff]  ;;  %v4068_v23 = vsel %vm9775_vm14, %v5248_v17, %v4063_v44 }
 0x4a5   : > { %4169 = vmatpush.bf16.msra.mxu0 %v5016_v40  ;;  %v5250_v28 = vld [vmem:[%s4075_s14] ss:$0 sm:$0xff]  ;;  %v4073_v27 = vsel %vm9776_vm3, %v5249_v18, %v4068_v23 }
 0x4a6   : > { %v5251_v36 = vld [vmem:[%s4080_s8] ss:$0 sm:$0xff]  ;;  %v4078_v32 = vsel %vm9777_vm4, %v5250_v28, %v4073_v27  ;;  %4252 = vmatpush.bf16.msra.mxu1 %v5024_v4 }
 0x4a7   : > { %v5252_v41 = vld [vmem:[%s4085_s29] ss:$0 sm:$0xff]  ;;  %v4083_v58 = vsel %vm9778_vm8, %v5251_v36, %v4078_v32 }
 0x4a8   : > { %v5253_v46 = vld [vmem:[%s4090_s30] ss:$0 sm:$0xff]  ;;  %v4088_v54 = vsel %vm9779_vm2, %v5252_v41, %v4083_v58 }
 0x4a9   : > { %4170 = vmatpush.bf16.msra.mxu0 %v5015_v48  ;;  %v4093_v63 = vsel %vm9780_vm15, %v5253_v46, %v4088_v54  ;;  %v5254_v16 = vld [vmem:[%s4095_s20] ss:$0 sm:$0xff] }
 0x4aa   : > { %4253 = vmatpush.bf16.msra.mxu1 %v5023_v39  ;;  %v4098_v29 = vsel %vm932_vm0, %v5254_v16, %v4093_v63 }
 0x4ab   : > { %v4102_v20 = vpack.c.bf16 %v4098_v29, %v4098_v29 }
 0x4ad   : > { %4171 = vmatpush.bf16.msra.mxu0 %v5014_v59 }
 0x4ae   : > { %4254 = vmatpush.bf16.msra.mxu1 %v5022_v62 }
 0x4b1   : > { %4172 = vmatpush.bf16.msra.mxu0 %v5013_v31 }
 0x4b2   : > { %4255 = vmatpush.bf16.msra.mxu1 %v5021_v24 }
 0x4b5   : > { %4173 = vmatpush.bf16.msra.mxu0 %v5012_v61 }
 0x4b6   : > { %4256 = vmatpush.bf16.msra.mxu1 %v5020_v9 }
 0x4b9   : > { %4174 = vmatpush.bf16.msra.mxu0 %v5011_v35 }
 0x4ba   : > { %4257 = vmatpush.bf16.msra.mxu1 %v5019_v6 }
 0x4bc   : > { %4175 = vmatmul.bf16.vlgmr.msra.gmra.mxu0 %v4102_v20 }
 0x539   : > { %v4176_v3 = vpop.f32.mrf.mxu0 }
 0x53a   : > { %v4180_v45 = vadd.f32 %v4176_v3, %v4100_v11 }
 0x53c   : > { %v4181_v10 = vpack.c.bf16 %v4180_v45, %v4180_v45 }
 0x53e   : > { %4258 = vmatmul.bf16.vlgmr.msra.gmra.mxu1 %v4181_v10 }
 0x541   : > { %v4178_v30 = vpop.f32.mrf.mxu0 }
 0x5bb   : > { %v4259_v38 = vpop.f32.mrf.mxu1 }
 0x5bc   : > { %v4260_v33 = vadd.f32 %v5255_v2, %v4259_v38 }
 0x5be   : > { %v4263_v57 = vmax.f32 %v4260_v33, 0.0 }
 0x5c0   : > { %4264 = vst [vmem:[#allocation27] sm:$0xff] %v4263_v57 }
 0x5c3   : > { %v4261_v50 = vpop.f32.mrf.mxu1 }
 0x5c4 PF: > { %s9782_s25 = sld [smem:[#allocation38_spill]]  ;;  %s5655_s13 = smov [#allocation27]  }
 0x5c5   : > { %s4271_s11 = sshll.u32 %s5655_s13, 4  ;;  %s9783_s10 = sld [smem:[#allocation107_spill]]  ;;  %s4272_s11 = int_to_ptr.vmem [resolvable:$true] %s4271_s11 }
 0x5ca   : > { %p5086_p4 = scmp.eq.s32.totalorder %s9782_s25, 2 }
 0x5cb   : > { %s4273_s16 = sshll.u32 %s9783_s10, 4  ;;  %s4274_s16 = int_to_ptr.hbm [resolvable:$true] %s4273_s16 }
 0x5cc   : > { %5050 = dma.vmem_to_hbm [thread:$0]  (%p5086_p4), %s4272_s11, 128, %s4274_s16, [#allocation15]  }
 0x5cd   : > { %5615 = dma.done.wait (%p5086_p4), [#allocation15], 128  }
 0x5ce   : > { %5617 = vsyncadd (%p5086_p4), [#allocation15], 4294967168 }
 0x5cf PF: > { %s9784_s6 = sld [smem:[#allocation40_spill]] }
 0x5d0   : > { %s9785_s1 = sld [smem:[#allocation36_spill]] }
 0x5d1   : > { %s9786_s2 = sld [smem:[#allocation37_spill]] }
 0x5d2   : > { %s9787_s3 = sld [smem:[#allocation41_spill]] }
 0x5d5   : > { %p59_p5 = scmp.ge.s32.totalorder %s9784_s6, 5  }
 0x5d7   :  { %61 = sbr.rel (!%p59_p5) target bundleno = 40 (0x28), region = 250 }
 0x5dc   :  { %4287 = vsyncpa [#allocation14], 1 }
 0x5dd   :  { %4289 = vsyncpa [#allocation14 + $0x1], 1 }
 0x5de   :  { %4290 = vsyncpa [#allocation17], 1 }
 0x5df   :  { %4292 = vsyncpa [#allocation17 + $0x1], 1 }
 0x5e0   :  { %4293 = vsyncpa [#allocation20], 1 }
 0x5e1   :  { %4295 = vsyncpa [#allocation20 + $0x1], 1 }
 0x5e2   :  { %4296 = vsyncpa [#allocation23], 1 }
 0x5e3   :  { %4298 = vsyncpa [#allocation23 + $0x1], 1 }
 0x5e4   :  { %4299 = vsyncpa [#allocation26], 1 }
 0x5e5   :  { %4300 = vsyncpa [#allocation15], 1 }
 0x5e6   :  { %4302 = vsyncpa [#allocation15 + $0x1], 1 }

</bundles_post_ra>
